<compile_context>
chip_gen: v6e
topology: v6e:2x2x1
jax: 0.10.0
libtpu: 0.0.40
codegen_flags: <defaults>
</compile_context>

<pallas_src>
import functools
import math

import numpy as np
import jax
import jax.numpy as jnp
from jax import lax
from jax.experimental import pallas as pl
from jax.experimental.pallas import tpu as pltpu

# bf16 MXU operands (f32 accumulation is always requested). Set to jnp.float32
# for a bit-tight comparison against the f32 reference.
MATMUL_DTYPE = jnp.bfloat16

NEG_INF = -1e30


def _replicated_spec(shape):
    """Full-array block spec: the same (whole) block at every grid step."""
    nd = len(shape)
    return pl.BlockSpec(tuple(shape), lambda *args: (0,) * nd)


# ----------------------------- kernel helpers ------------------------------

def _ln(x, g, b):
    mu = jnp.mean(x, axis=-1, keepdims=True)
    var = jnp.mean((x - mu) ** 2, axis=-1, keepdims=True)
    return (x - mu) * lax.rsqrt(var + 1e-5) * g + b


def _gelu_tanh(x):
    c = math.sqrt(2.0 / math.pi)
    return 0.5 * x * (1.0 + jnp.tanh(c * (x + 0.044715 * x * x * x)))


def _mm(a, b):
    # Cast only the MXU operands; accumulate in f32.
    return jnp.dot(a.astype(MATMUL_DTYPE), b.astype(MATMUL_DTYPE),
                   preferred_element_type=jnp.float32)


# ----------------------- fused transformer-block kernel ---------------------

def _block_kernel(x_ref, ln1g_ref, ln1b_ref, wqkv_ref, bqkv_ref,
                  wproj_ref, bproj_ref, ln2g_ref, ln2b_ref,
                  wfc_ref, bfc_ref, wproj2_ref, bproj2_ref,
                  o_ref, *, n_head):
    Bt, T, C = x_ref.shape
    M = Bt * T
    dh = C // n_head
    scale = 1.0 / math.sqrt(dh)

    # Flatten the Bt sequences into one (M, C) row block so every GEMM sees a
    # large M (T=16 is a multiple of 8, so this reshape is layout-free).
    x = x_ref[...].reshape(M, C)

    # ---- attention branch ----------------------------------------------------
    h = _ln(x, ln1g_ref[...], ln1b_ref[...])
    qkv = _mm(h, wqkv_ref[...]) + bqkv_ref[...]        # (M, 3C), stays in vregs/VMEM
    q = qkv[:, :C].reshape(Bt, T, C)
    k = qkv[:, C:2 * C].reshape(Bt, T, C)
    v = qkv[:, 2 * C:].reshape(Bt, T, C)

    # causal mask built once per grid step (hoisted out of the head loop)
    row = lax.broadcasted_iota(jnp.int32, (T, T), 0)
    col = lax.broadcasted_iota(jnp.int32, (T, T), 1)
    causal = (col <= row)[None]                        # (1, T, T)

    wproj = wproj_ref[...]
    acc = None                                          # f32 accumulator (M, C)
    # Short static per-head loop; each iteration is batched over the Bt
    # sequences (single-batch-dim einsums -> robust Mosaic lowering). The head
    # output is pushed straight through the matching 32-row slice of the
    # out-projection, so there is no (T, C) scratch and no masked stores.
    for hd in range(n_head):
        lo = hd * dh
        q_h = q[:, :, lo:lo + dh]                       # (Bt, T, dh)
        k_h = k[:, :, lo:lo + dh]
        v_h = v[:, :, lo:lo + dh]
        s = jnp.einsum('bqd,bkd->bqk',
                       q_h.astype(MATMUL_DTYPE), k_h.astype(MATMUL_DTYPE),
                       preferred_element_type=jnp.float32) * scale
        s = jnp.where(causal, s, NEG_INF)
        s = s - jnp.max(s, axis=-1, keepdims=True)
        p = jnp.exp(s)
        # approx reciprocal -> EUP slot instead of a VPU divide
        p = p * pl.reciprocal(jnp.sum(p, axis=-1, keepdims=True), approx=True)
        y_h = jnp.einsum('bqk,bkd->bqd',
                         p.astype(MATMUL_DTYPE), v_h.astype(MATMUL_DTYPE),
                         preferred_element_type=jnp.float32)   # (Bt, T, dh)
        contrib = _mm(y_h.reshape(M, dh), wproj[lo:lo + dh, :])  # (M, C)
        acc = contrib if acc is None else acc + contrib

    x = x + acc + bproj_ref[...]                        # residual add, fused

    # ---- MLP branch ----------------------------------------------------------
    h2 = _ln(x, ln2g_ref[...], ln2b_ref[...])
    hfc = _gelu_tanh(_mm(h2, wfc_ref[...]) + bfc_ref[...])
    m = _mm(hfc, wproj2_ref[...]) + bproj2_ref[...]
    o_ref[...] = (x + m).reshape(Bt, T, C)              # residual add, fused


def pallas_block(x, p, n_head):
    B, T, C = x.shape
    # >= 2 grid steps so both v7x TensorCores get work; each step carries
    # Bt*T rows (128 at the demo shapes) into every GEMM.
    Bt = B // 2 if (B % 2 == 0 and B >= 2) else B
    assert B % Bt == 0

    wd = MATMUL_DTYPE   # big matrices travel as bf16 -> half the weight DMA
    w_args = [
        p['ln1_g'].reshape(1, C), p['ln1_b'].reshape(1, C),
        p['w_attn'].astype(wd), p['b_attn'].reshape(1, 3 * C),
        p['w_proj'].astype(wd), p['b_proj'].reshape(1, C),
        p['ln2_g'].reshape(1, C), p['ln2_b'].reshape(1, C),
        p['w_fc'].astype(wd), p['b_fc'].reshape(1, 4 * C),
        p['w_proj2'].astype(wd), p['b_proj2'].reshape(1, C),
    ]
    in_specs = ([pl.BlockSpec((Bt, T, C), lambda b: (b, 0, 0))]
                + [_replicated_spec(a.shape) for a in w_args])
    return pl.pallas_call(
        functools.partial(_block_kernel, n_head=n_head),
        out_shape=jax.ShapeDtypeStruct((B, T, C), jnp.float32),
        grid=(B // Bt,),
        in_specs=in_specs,
        out_specs=pl.BlockSpec((Bt, T, C), lambda b: (b, 0, 0)),
        compiler_params=pltpu.CompilerParams(
            dimension_semantics=("parallel",)),
    )(x, *w_args)


# --------------------- fused final LayerNorm + lm_head ----------------------

def _lnf_head_kernel(x_ref, g_ref, b_ref, w_ref, o_ref):
    h = _ln(x_ref[...], g_ref[...], b_ref[...])
    o_ref[...] = _mm(h, w_ref[...])


def _row_tile(M):
    """Row tile: >=2 grid steps when possible (v7x megacore), capped at 256."""
    if M % 2 == 0 and (M // 2) % 8 == 0:
        tm = M // 2
        while tm > 256 and tm % 2 == 0 and (tm // 2) % 8 == 0:
            tm //= 2
        return tm
    return M


def pallas_lnf_lm_head(x2d, g, b, w):
    M, C = x2d.shape
    V = w.shape[1]
    tm = _row_tile(M)
    assert M % tm == 0, "row tile must divide M"
    tn = V if V <= 256 else 256                 # vocab tile (lane-dense)
    assert V % tn == 0 and (tn % 128 == 0 or tn == V)
    grid = (M // tm, V // tn)
    return pl.pallas_call(
        _lnf_head_kernel,
        out_shape=jax.ShapeDtypeStruct((M, V), jnp.float32),
        grid=grid,
        in_specs=[pl.BlockSpec((tm, C), lambda i, j: (i, 0)),
                  pl.BlockSpec((1, C), lambda i, j: (0, 0)),
                  pl.BlockSpec((1, C), lambda i, j: (0, 0)),
                  pl.BlockSpec((C, tn), lambda i, j: (0, j))],
        out_specs=pl.BlockSpec((tm, tn), lambda i, j: (i, j)),
        compiler_params=pltpu.CompilerParams(
            dimension_semantics=("parallel", "parallel")),
    )(x2d, g.reshape(1, C), b.reshape(1, C), w.astype(MATMUL_DTYPE))


# --------------------------------- Model ------------------------------------

# Small, lane-dense config consistent with JXTConfig (n_embd / vocab are
# multiples of 128 so every kernel output is lane-dense; head dim = 32).
CONFIG = dict(block_size=16, vocab_size=128, n_layer=2, n_head=4, n_embd=128)


def init_params(key, cfg):
    C = cfg['n_embd']
    V = cfg['vocab_size']
    S = cfg['block_size']

    def normal(k, shape, std=0.02):
        return (std * jax.random.normal(k, shape)).astype(jnp.float32)

    keys = jax.random.split(key, 3 + cfg['n_layer'])
    params = {
        'wte': normal(keys[0], (V, C)),
        'wpe': normal(keys[1], (S, C)),
        'ln_f_g': jnp.ones((C,), jnp.float32),
        'ln_f_b': jnp.zeros((C,), jnp.float32),
        'lm_head': normal(keys[2], (C, V)),
        'blocks': [],
    }
    for li in range(cfg['n_layer']):
        bk = jax.random.split(keys[3 + li], 4)
        params['blocks'].append({
            'ln1_g': jnp.ones((C,), jnp.float32),
            'ln1_b': jnp.zeros((C,), jnp.float32),
            'w_attn': normal(bk[0], (C, 3 * C)),
            'b_attn': jnp.zeros((3 * C,), jnp.float32),
            'w_proj': normal(bk[1], (C, C)),
            'b_proj': jnp.zeros((C,), jnp.float32),
            'ln2_g': jnp.ones((C,), jnp.float32),
            'ln2_b': jnp.zeros((C,), jnp.float32),
            'w_fc': normal(bk[2], (C, 4 * C)),
            'b_fc': jnp.zeros((4 * C,), jnp.float32),
            'w_proj2': normal(bk[3], (4 * C, C)),
            'b_proj2': jnp.zeros((C,), jnp.float32),
        })
    return params


def jxt_forward(params, idx, cfg):
    B, T = idx.shape
    C = cfg['n_embd']
    assert T <= cfg['block_size']
    # embedding gathers stay in plain JAX (glue); everything else is Pallas
    x = params['wte'][idx] + params['wpe'][:T][None, :, :]
    for blk in params['blocks']:
        x = pallas_block(x, blk, cfg['n_head'])
    logits = pallas_lnf_lm_head(x.reshape(B * T, C),
                                params['ln_f_g'], params['ln_f_b'],
                                params['lm_head'])
    return logits.reshape(B, T, cfg['vocab_size'])


# ------------------------ Pure-JAX reference ---------------------------------

def _ref_ln(x, g, b):
    mu = x.mean(-1, keepdims=True)
    var = ((x - mu) ** 2).mean(-1, keepdims=True)
    return (x - mu) / jnp.sqrt(var + 1e-5) * g + b


def _ref_gelu(x):
    c = math.sqrt(2.0 / math.pi)
    return 0.5 * x * (1.0 + jnp.tanh(c * (x + 0.044715 * x ** 3)))


def ref_forward(params, idx, cfg, matmul_dtype=jnp.float32):
    """Reference forward. matmul_dtype=f32 gives the exact PyTorch-f32
    semantics; matmul_dtype=bf16 mirrors the kernel's MXU input precision
    (f32 accumulation either way) for a tight numerical check."""
    B, T = idx.shape
    C = cfg['n_embd']
    H = cfg['n_head']
    Dh = C // H
    dt = matmul_dtype

    def mm(a, b):
        return jnp.einsum('...i,io->...o', a.astype(dt), b.astype(dt),
                          preferred_element_type=jnp.float32)

    x = params['wte'][idx] + params['wpe'][:T][None]
    for p in params['blocks']:
        h = _ref_ln(x, p['ln1_g'], p['ln1_b'])
        qkv = mm(h, p['w_attn']) + p['b_attn']
        q, k, v = jnp.split(qkv, 3, axis=-1)
        q = q.reshape(B, T, H, Dh).transpose(0, 2, 1, 3)
        k = k.reshape(B, T, H, Dh).transpose(0, 2, 1, 3)
        v = v.reshape(B, T, H, Dh).transpose(0, 2, 1, 3)
        att = jnp.einsum('bhqd,bhkd->bhqk', q.astype(dt), k.astype(dt),
                         preferred_element_type=jnp.float32) / math.sqrt(Dh)
        mask = jnp.tril(jnp.ones((T, T), bool))
        att = jnp.where(mask[None, None], att, NEG_INF)
        att = jax.nn.softmax(att, axis=-1)
        y = jnp.einsum('bhqk,bhkd->bhqd', att.astype(dt), v.astype(dt),
                       preferred_element_type=jnp.float32)
        y = y.transpose(0, 2, 1, 3).reshape(B, T, C)
        x = x + (mm(y, p['w_proj']) + p['b_proj'])
        h2 = _ref_ln(x, p['ln2_g'], p['ln2_b'])
        m = mm(_ref_gelu(mm(h2, p['w_fc']) + p['b_fc']), p['w_proj2']) + p['b_proj2']
        x = x + m
    x = _ref_ln(x, params['ln_f_g'], params['ln_f_b'])
    return mm(x, params['lm_head'])


# --------------------------------- Main ---------------------------------------

if __name__ == "__main__":
    key = jax.random.PRNGKey(0)
    k_params, k_idx = jax.random.split(key)

    params = init_params(k_params, CONFIG)

    # B*T = 256 rows: 128-row GEMMs per block grid step and a 2-step grid for
    # both kernels (keeps both v7x TensorCores busy) while staying tiny.
    B, T = 16, 16
    idx = jax.random.randint(k_idx, (B, T), 0, CONFIG['vocab_size'],
                             dtype=jnp.int32)

    fwd = jax.jit(lambda p, i: jxt_forward(p, i, CONFIG))
    logits = jax.block_until_ready(fwd(params, idx))
    assert logits.shape == (B, T, CONFIG['vocab_size'])

    # Tight check vs. a reference that mirrors the kernel's bf16 MXU inputs.
    ref_matched = ref_forward(params, idx, CONFIG, matmul_dtype=MATMUL_DTYPE)
    np.testing.assert_allclose(np.asarray(logits), np.asarray(ref_matched),
                               rtol=5e-3, atol=5e-3)

    # Looser sanity check vs. the pure-f32 (PyTorch-semantics) reference.
    ref_f32 = ref_forward(params, idx, CONFIG, matmul_dtype=jnp.float32)
    np.testing.assert_allclose(np.asarray(logits), np.asarray(ref_f32),
                               rtol=5e-2, atol=5e-2)

    print("KERNEL_OK")
</pallas_src>

<mosaic_0001>
module attributes {stable_mosaic.version = 11 : i64} {
  func.func @_lnf_head_kernel(%arg0: i32, %arg1: i32, %arg2: memref<128x128xf32, #tpu.memory_space<vmem>>, %arg3: memref<1x128xf32, #tpu.memory_space<vmem>>, %arg4: memref<1x128xf32, #tpu.memory_space<vmem>>, %arg5: memref<128x128xbf16, #tpu.memory_space<vmem>>, %arg6: memref<128x128xf32, #tpu.memory_space<vmem>>) attributes {dimension_semantics = [#tpu.dimension_semantics<parallel>, #tpu.dimension_semantics<parallel>], iteration_bounds = array<i64: 2, 1>, scalar_prefetch = 0 : i64, scratch_operands = 0 : i64, tpu.core_type = #tpu.core_type<tc>, window_params = [{transform_indices = @transform_0, window_bounds = array<i64: 128, 128>}, {pipeline_mode = #tpu.pipeline_mode<synchronous>, transform_indices = @transform_1, window_bounds = array<i64: 1, 128>}, {pipeline_mode = #tpu.pipeline_mode<synchronous>, transform_indices = @transform_2, window_bounds = array<i64: 1, 128>}, {transform_indices = @transform_3, window_bounds = array<i64: 128, 128>}, {transform_indices = @transform_4, window_bounds = array<i64: 128, 128>}]} {
    %c0 = arith.constant 0 : index
    %c0_0 = arith.constant 0 : index
    %0 = vector.load %arg2[%c0, %c0_0] : memref<128x128xf32, #tpu.memory_space<vmem>>, vector<128x128xf32>
    %c0_1 = arith.constant 0 : index
    %c0_2 = arith.constant 0 : index
    %1 = vector.load %arg3[%c0_1, %c0_2] : memref<1x128xf32, #tpu.memory_space<vmem>>, vector<1x128xf32>
    %c0_3 = arith.constant 0 : index
    %c0_4 = arith.constant 0 : index
    %2 = vector.load %arg4[%c0_3, %c0_4] : memref<1x128xf32, #tpu.memory_space<vmem>>, vector<1x128xf32>
    %cst = arith.constant dense<0.000000e+00> : vector<128xf32>
    %3 = vector.multi_reduction <add>, %0, %cst [1] : vector<128x128xf32> to vector<128xf32>
    %4 = vector.shape_cast %3 : vector<128xf32> to vector<128x1xf32>
    %cst_5 = arith.constant 1.280000e+02 : f32
    %5 = vector.broadcast %cst_5 : f32 to vector<128x1xf32>
    %6 = arith.divf %4, %5 : vector<128x1xf32>
    %7 = vector.broadcast %6 : vector<128x1xf32> to vector<128x128xf32>
    %8 = arith.subf %0, %7 : vector<128x128xf32>
    %9 = arith.mulf %8, %8 : vector<128x128xf32>
    %cst_6 = arith.constant dense<0.000000e+00> : vector<128xf32>
    %10 = vector.multi_reduction <add>, %9, %cst_6 [1] : vector<128x128xf32> to vector<128xf32>
    %11 = vector.shape_cast %10 : vector<128xf32> to vector<128x1xf32>
    %cst_7 = arith.constant 1.280000e+02 : f32
    %12 = vector.broadcast %cst_7 : f32 to vector<128x1xf32>
    %13 = arith.divf %11, %12 : vector<128x1xf32>
    %14 = vector.broadcast %6 : vector<128x1xf32> to vector<128x128xf32>
    %15 = arith.subf %0, %14 : vector<128x128xf32>
    %cst_8 = arith.constant 9.99999974E-6 : f32
    %16 = vector.broadcast %cst_8 : f32 to vector<128x1xf32>
    %17 = arith.addf %13, %16 : vector<128x1xf32>
    %18 = math.rsqrt %17 : vector<128x1xf32>
    %19 = vector.broadcast %18 : vector<128x1xf32> to vector<128x128xf32>
    %20 = arith.mulf %15, %19 : vector<128x128xf32>
    %21 = vector.broadcast %1 : vector<1x128xf32> to vector<128x128xf32>
    %22 = arith.mulf %20, %21 : vector<128x128xf32>
    %23 = vector.broadcast %2 : vector<1x128xf32> to vector<128x128xf32>
    %24 = arith.addf %22, %23 : vector<128x128xf32>
    %c0_9 = arith.constant 0 : index
    %c0_10 = arith.constant 0 : index
    %25 = vector.load %arg5[%c0_9, %c0_10] : memref<128x128xbf16, #tpu.memory_space<vmem>>, vector<128x128xbf16>
    %26 = arith.truncf %24 : vector<128x128xf32> to vector<128x128xbf16>
    %cst_11 = arith.constant dense<0.000000e+00> : vector<128x128xf32>
    %27 = tpu.matmul %26, %25, %cst_11 {dimension_numbers = #tpu.dot_dimension_numbers<[1], [0], [0], [1], [0, 0, 1, 1], [], []>} : vector<128x128xbf16>, vector<128x128xbf16>, vector<128x128xf32> -> vector<128x128xf32>
    %c0_12 = arith.constant 0 : index
    %c0_13 = arith.constant 0 : index
    %28 = vector.load %arg6[%c0_12, %c0_13] : memref<128x128xf32, #tpu.memory_space<vmem>>, vector<128x128xf32>
    tpu.vector_store %arg6[%c0_12, %c0_13], %27 {strides = array<i32>} : memref<128x128xf32, #tpu.memory_space<vmem>>, vector<128x128xf32>,
    return
  }
  func.func @transform_0(%arg0: i32, %arg1: i32) -> (i32, i32) {
    %c0_i32 = arith.constant 0 : i32
    %c0_i32_0 = arith.constant 0 : i32
    return %arg0, %c0_i32 : i32, i32
  }
  func.func @transform_1(%arg0: i32, %arg1: i32) -> (i32, i32) {
    %c0_i32 = arith.constant 0 : i32
    %c0_i32_0 = arith.constant 0 : i32
    %c0_i32_1 = arith.constant 0 : i32
    return %c0_i32, %c0_i32_0 : i32, i32
  }
  func.func @transform_2(%arg0: i32, %arg1: i32) -> (i32, i32) {
    %c0_i32 = arith.constant 0 : i32
    %c0_i32_0 = arith.constant 0 : i32
    %c0_i32_1 = arith.constant 0 : i32
    return %c0_i32, %c0_i32_0 : i32, i32
  }
  func.func @transform_3(%arg0: i32, %arg1: i32) -> (i32, i32) {
    %c0_i32 = arith.constant 0 : i32
    %c0_i32_0 = arith.constant 0 : i32
    return %c0_i32, %arg1 : i32, i32
  }
  func.func @transform_4(%arg0: i32, %arg1: i32) -> (i32, i32) {
    %c0_i32 = arith.constant 0 : i32
    return %arg0, %arg1 : i32, i32
  }
}

module attributes {stable_mosaic.version = 11 : i64} {
  func.func @_block_kernel(%arg0: i32, %arg1: memref<8x16x128xf32, #tpu.memory_space<vmem>>, %arg2: memref<1x128xf32, #tpu.memory_space<vmem>>, %arg3: memref<1x128xf32, #tpu.memory_space<vmem>>, %arg4: memref<128x384xbf16, #tpu.memory_space<vmem>>, %arg5: memref<1x384xf32, #tpu.memory_space<vmem>>, %arg6: memref<128x128xbf16, #tpu.memory_space<vmem>>, %arg7: memref<1x128xf32, #tpu.memory_space<vmem>>, %arg8: memref<1x128xf32, #tpu.memory_space<vmem>>, %arg9: memref<1x128xf32, #tpu.memory_space<vmem>>, %arg10: memref<128x512xbf16, #tpu.memory_space<vmem>>, %arg11: memref<1x512xf32, #tpu.memory_space<vmem>>, %arg12: memref<512x128xbf16, #tpu.memory_space<vmem>>, %arg13: memref<1x128xf32, #tpu.memory_space<vmem>>, %arg14: memref<8x16x128xf32, #tpu.memory_space<vmem>>) attributes {dimension_semantics = [#tpu.dimension_semantics<parallel>], iteration_bounds = array<i64: 2>, scalar_prefetch = 0 : i64, scratch_operands = 0 : i64, tpu.core_type = #tpu.core_type<tc>, window_params = [{transform_indices = @transform_0, window_bounds = array<i64: 8, 16, 128>}, {pipeline_mode = #tpu.pipeline_mode<synchronous>, transform_indices = @transform_1, window_bounds = array<i64: 1, 128>}, {pipeline_mode = #tpu.pipeline_mode<synchronous>, transform_indices = @transform_2, window_bounds = array<i64: 1, 128>}, {pipeline_mode = #tpu.pipeline_mode<synchronous>, transform_indices = @transform_3, window_bounds = array<i64: 128, 384>}, {pipeline_mode = #tpu.pipeline_mode<synchronous>, transform_indices = @transform_4, window_bounds = array<i64: 1, 384>}, {pipeline_mode = #tpu.pipeline_mode<synchronous>, transform_indices = @transform_5, window_bounds = array<i64: 128, 128>}, {pipeline_mode = #tpu.pipeline_mode<synchronous>, transform_indices = @transform_6, window_bounds = array<i64: 1, 128>}, {pipeline_mode = #tpu.pipeline_mode<synchronous>, transform_indices = @transform_7, window_bounds = array<i64: 1, 128>}, {pipeline_mode = #tpu.pipeline_mode<synchronous>, transform_indices = @transform_8, window_bounds = array<i64: 1, 128>}, {pipeline_mode = #tpu.pipeline_mode<synchronous>, transform_indices = @transform_9, window_bounds = array<i64: 128, 512>}, {pipeline_mode = #tpu.pipeline_mode<synchronous>, transform_indices = @transform_10, window_bounds = array<i64: 1, 512>}, {pipeline_mode = #tpu.pipeline_mode<synchronous>, transform_indices = @transform_11, window_bounds = array<i64: 512, 128>}, {pipeline_mode = #tpu.pipeline_mode<synchronous>, transform_indices = @transform_12, window_bounds = array<i64: 1, 128>}, {transform_indices = @transform_13, window_bounds = array<i64: 8, 16, 128>}]} {
    %c0 = arith.constant 0 : index
    %c0_0 = arith.constant 0 : index
    %c0_1 = arith.constant 0 : index
    %0 = vector.load %arg1[%c0, %c0_0, %c0_1] : memref<8x16x128xf32, #tpu.memory_space<vmem>>, vector<8x16x128xf32>
    %1 = vector.shape_cast %0 : vector<8x16x128xf32> to vector<128x128xf32>
    %c0_2 = arith.constant 0 : index
    %c0_3 = arith.constant 0 : index
    %2 = vector.load %arg2[%c0_2, %c0_3] : memref<1x128xf32, #tpu.memory_space<vmem>>, vector<1x128xf32>
    %c0_4 = arith.constant 0 : index
    %c0_5 = arith.constant 0 : index
    %3 = vector.load %arg3[%c0_4, %c0_5] : memref<1x128xf32, #tpu.memory_space<vmem>>, vector<1x128xf32>
    %cst = arith.constant dense<0.000000e+00> : vector<128xf32>
    %4 = vector.multi_reduction <add>, %1, %cst [1] : vector<128x128xf32> to vector<128xf32>
    %5 = vector.shape_cast %4 : vector<128xf32> to vector<128x1xf32>
    %cst_6 = arith.constant 1.280000e+02 : f32
    %6 = vector.broadcast %cst_6 : f32 to vector<128x1xf32>
    %7 = arith.divf %5, %6 : vector<128x1xf32>
    %8 = vector.broadcast %7 : vector<128x1xf32> to vector<128x128xf32>
    %9 = arith.subf %1, %8 : vector<128x128xf32>
    %10 = arith.mulf %9, %9 : vector<128x128xf32>
    %cst_7 = arith.constant dense<0.000000e+00> : vector<128xf32>
    %11 = vector.multi_reduction <add>, %10, %cst_7 [1] : vector<128x128xf32> to vector<128xf32>
    %12 = vector.shape_cast %11 : vector<128xf32> to vector<128x1xf32>
    %cst_8 = arith.constant 1.280000e+02 : f32
    %13 = vector.broadcast %cst_8 : f32 to vector<128x1xf32>
    %14 = arith.divf %12, %13 : vector<128x1xf32>
    %15 = vector.broadcast %7 : vector<128x1xf32> to vector<128x128xf32>
    %16 = arith.subf %1, %15 : vector<128x128xf32>
    %cst_9 = arith.constant 9.99999974E-6 : f32
    %17 = vector.broadcast %cst_9 : f32 to vector<128x1xf32>
    %18 = arith.addf %14, %17 : vector<128x1xf32>
    %19 = math.rsqrt %18 : vector<128x1xf32>
    %20 = vector.broadcast %19 : vector<128x1xf32> to vector<128x128xf32>
    %21 = arith.mulf %16, %20 : vector<128x128xf32>
    %22 = vector.broadcast %2 : vector<1x128xf32> to vector<128x128xf32>
    %23 = arith.mulf %21, %22 : vector<128x128xf32>
    %24 = vector.broadcast %3 : vector<1x128xf32> to vector<128x128xf32>
    %25 = arith.addf %23, %24 : vector<128x128xf32>
    %c0_10 = arith.constant 0 : index
    %c0_11 = arith.constant 0 : index
    %26 = vector.load %arg4[%c0_10, %c0_11] : memref<128x384xbf16, #tpu.memory_space<vmem>>, vector<128x384xbf16>
    %27 = arith.truncf %25 : vector<128x128xf32> to vector<128x128xbf16>
    %cst_12 = arith.constant dense<0.000000e+00> : vector<128x384xf32>
    %28 = tpu.matmul %27, %26, %cst_12 {dimension_numbers = #tpu.dot_dimension_numbers<[1], [0], [0], [1], [0, 0, 1, 1], [], []>} : vector<128x128xbf16>, vector<128x384xbf16>, vector<128x384xf32> -> vector<128x384xf32>
    %c0_13 = arith.constant 0 : index
    %c0_14 = arith.constant 0 : index
    %29 = vector.load %arg5[%c0_13, %c0_14] : memref<1x384xf32, #tpu.memory_space<vmem>>, vector<1x384xf32>
    %30 = vector.broadcast %29 : vector<1x384xf32> to vector<128x384xf32>
    %31 = arith.addf %28, %30 : vector<128x384xf32>
    %32 = vector.extract_strided_slice %31 {offsets = [0, 0], sizes = [128, 128], strides = [1, 1]} : vector<128x384xf32> to vector<128x128xf32>
    %33 = vector.shape_cast %32 : vector<128x128xf32> to vector<8x16x128xf32>
    %34 = vector.extract_strided_slice %31 {offsets = [0, 128], sizes = [128, 128], strides = [1, 1]} : vector<128x384xf32> to vector<128x128xf32>
    %35 = vector.shape_cast %34 : vector<128x128xf32> to vector<8x16x128xf32>
    %36 = vector.extract_strided_slice %31 {offsets = [0, 256], sizes = [128, 128], strides = [1, 1]} : vector<128x384xf32> to vector<128x128xf32>
    %37 = vector.shape_cast %36 : vector<128x128xf32> to vector<8x16x128xf32>
    %38 = tpu.iota {dimensions = array<i32: 0>} : vector<16x16xi32>
    %39 = tpu.iota {dimensions = array<i32: 1>} : vector<16x16xi32>
    %40 = arith.cmpi sle, %39, %38 : vector<16x16xi32>
    %41 = vector.shape_cast %40 : vector<16x16xi1> to vector<1x16x16xi1>
    %c0_15 = arith.constant 0 : index
    %c0_16 = arith.constant 0 : index
    %42 = vector.load %arg6[%c0_15, %c0_16] : memref<128x128xbf16, #tpu.memory_space<vmem>>, vector<128x128xbf16>
    %43 = vector.extract_strided_slice %33 {offsets = [0, 0, 0], sizes = [8, 16, 32], strides = [1, 1, 1]} : vector<8x16x128xf32> to vector<8x16x32xf32>
    %44 = vector.extract_strided_slice %35 {offsets = [0, 0, 0], sizes = [8, 16, 32], strides = [1, 1, 1]} : vector<8x16x128xf32> to vector<8x16x32xf32>
    %45 = vector.extract_strided_slice %37 {offsets = [0, 0, 0], sizes = [8, 16, 32], strides = [1, 1, 1]} : vector<8x16x128xf32> to vector<8x16x32xf32>
    %46 = arith.truncf %43 : vector<8x16x32xf32> to vector<8x16x32xbf16>
    %47 = arith.truncf %44 : vector<8x16x32xf32> to vector<8x16x32xbf16>
    "tpu.trace_start"() <{level = 10 : i32, message = "bqd,bkd->bqk"}> : () -> ()
    %cst_17 = arith.constant dense<0.000000e+00> : vector<8x16x16xf32>
    %48 = tpu.matmul %46, %47, %cst_17 {dimension_numbers = #tpu.dot_dimension_numbers<[2], [2], [1], [1], [0, 0, 0, 1, 1, 1], [0], [0]>} : vector<8x16x32xbf16>, vector<8x16x32xbf16>, vector<8x16x16xf32> -> vector<8x16x16xf32>
    "tpu.trace_stop"() : () -> ()
    %cst_18 = arith.constant 0.176776692 : f32
    %49 = vector.broadcast %cst_18 : f32 to vector<8x16x16xf32>
    %50 = arith.mulf %48, %49 : vector<8x16x16xf32>
    %cst_19 = arith.constant -1.000000e+30 : f32
    %51 = vector.shape_cast %41 : vector<1x16x16xi1> to vector<1x16x16xi1>
    %52 = vector.broadcast %51 : vector<1x16x16xi1> to vector<8x16x16xi1>
    %53 = vector.broadcast %cst_19 : f32 to vector<8x16x16xf32>
    %54 = arith.select %52, %50, %53 : vector<8x16x16xi1>, vector<8x16x16xf32>
    %cst_20 = arith.constant dense<0xFF800000> : vector<8x16xf32>
    %55 = vector.multi_reduction <maximumf>, %54, %cst_20 [2] : vector<8x16x16xf32> to vector<8x16xf32>
    %56 = vector.shape_cast %55 : vector<8x16xf32> to vector<8x16x1xf32>
    %57 = vector.broadcast %56 : vector<8x16x1xf32> to vector<8x16x16xf32>
    %58 = arith.subf %54, %57 : vector<8x16x16xf32>
    %59 = math.exp %58 : vector<8x16x16xf32>
    %cst_21 = arith.constant dense<0.000000e+00> : vector<8x16xf32>
    %60 = vector.multi_reduction <add>, %59, %cst_21 [2] : vector<8x16x16xf32> to vector<8x16xf32>
    %61 = vector.shape_cast %60 : vector<8x16xf32> to vector<8x16x1xf32>
    %62 = tpu.reciprocal %61 {approx = true} : vector<8x16x1xf32> -> vector<8x16x1xf32>
    %63 = vector.broadcast %62 : vector<8x16x1xf32> to vector<8x16x16xf32>
    %64 = arith.mulf %59, %63 : vector<8x16x16xf32>
    %65 = arith.truncf %64 : vector<8x16x16xf32> to vector<8x16x16xbf16>
    %66 = arith.truncf %45 : vector<8x16x32xf32> to vector<8x16x32xbf16>
    "tpu.trace_start"() <{level = 10 : i32, message = "bqk,bkd->bqd"}> : () -> ()
    %cst_22 = arith.constant dense<0.000000e+00> : vector<8x16x32xf32>
    %67 = tpu.matmul %65, %66, %cst_22 {dimension_numbers = #tpu.dot_dimension_numbers<[2], [1], [1], [2], [0, 0, 0, 1, 1, 2], [0], [0]>} : vector<8x16x16xbf16>, vector<8x16x32xbf16>, vector<8x16x32xf32> -> vector<8x16x32xf32>
    "tpu.trace_stop"() : () -> ()
    %68 = vector.shape_cast %67 : vector<8x16x32xf32> to vector<128x32xf32>
    %69 = vector.extract_strided_slice %42 {offsets = [0, 0], sizes = [32, 128], strides = [1, 1]} : vector<128x128xbf16> to vector<32x128xbf16>
    %70 = arith.truncf %68 : vector<128x32xf32> to vector<128x32xbf16>
    %cst_23 = arith.constant dense<0.000000e+00> : vector<128x128xf32>
    %71 = tpu.matmul %70, %69, %cst_23 {dimension_numbers = #tpu.dot_dimension_numbers<[1], [0], [0], [1], [0, 0, 1, 1], [], []>} : vector<128x32xbf16>, vector<32x128xbf16>, vector<128x128xf32> -> vector<128x128xf32>
    %72 = vector.extract_strided_slice %33 {offsets = [0, 0, 32], sizes = [8, 16, 32], strides = [1, 1, 1]} : vector<8x16x128xf32> to vector<8x16x32xf32>
    %73 = vector.extract_strided_slice %35 {offsets = [0, 0, 32], sizes = [8, 16, 32], strides = [1, 1, 1]} : vector<8x16x128xf32> to vector<8x16x32xf32>
    %74 = vector.extract_strided_slice %37 {offsets = [0, 0, 32], sizes = [8, 16, 32], strides = [1, 1, 1]} : vector<8x16x128xf32> to vector<8x16x32xf32>
    %75 = arith.truncf %72 : vector<8x16x32xf32> to vector<8x16x32xbf16>
    %76 = arith.truncf %73 : vector<8x16x32xf32> to vector<8x16x32xbf16>
    "tpu.trace_start"() <{level = 10 : i32, message = "bqd,bkd->bqk"}> : () -> ()
    %cst_24 = arith.constant dense<0.000000e+00> : vector<8x16x16xf32>
    %77 = tpu.matmul %75, %76, %cst_24 {dimension_numbers = #tpu.dot_dimension_numbers<[2], [2], [1], [1], [0, 0, 0, 1, 1, 1], [0], [0]>} : vector<8x16x32xbf16>, vector<8x16x32xbf16>, vector<8x16x16xf32> -> vector<8x16x16xf32>
    "tpu.trace_stop"() : () -> ()
    %cst_25 = arith.constant 0.176776692 : f32
    %78 = vector.broadcast %cst_25 : f32 to vector<8x16x16xf32>
    %79 = arith.mulf %77, %78 : vector<8x16x16xf32>
    %cst_26 = arith.constant -1.000000e+30 : f32
    %80 = vector.shape_cast %41 : vector<1x16x16xi1> to vector<1x16x16xi1>
    %81 = vector.broadcast %80 : vector<1x16x16xi1> to vector<8x16x16xi1>
    %82 = vector.broadcast %cst_26 : f32 to vector<8x16x16xf32>
    %83 = arith.select %81, %79, %82 : vector<8x16x16xi1>, vector<8x16x16xf32>
    %cst_27 = arith.constant dense<0xFF800000> : vector<8x16xf32>
    %84 = vector.multi_reduction <maximumf>, %83, %cst_27 [2] : vector<8x16x16xf32> to vector<8x16xf32>
    %85 = vector.shape_cast %84 : vector<8x16xf32> to vector<8x16x1xf32>
    %86 = vector.broadcast %85 : vector<8x16x1xf32> to vector<8x16x16xf32>
    %87 = arith.subf %83, %86 : vector<8x16x16xf32>
    %88 = math.exp %87 : vector<8x16x16xf32>
    %cst_28 = arith.constant dense<0.000000e+00> : vector<8x16xf32>
    %89 = vector.multi_reduction <add>, %88, %cst_28 [2] : vector<8x16x16xf32> to vector<8x16xf32>
    %90 = vector.shape_cast %89 : vector<8x16xf32> to vector<8x16x1xf32>
    %91 = tpu.reciprocal %90 {approx = true} : vector<8x16x1xf32> -> vector<8x16x1xf32>
    %92 = vector.broadcast %91 : vector<8x16x1xf32> to vector<8x16x16xf32>
    %93 = arith.mulf %88, %92 : vector<8x16x16xf32>
    %94 = arith.truncf %93 : vector<8x16x16xf32> to vector<8x16x16xbf16>
    %95 = arith.truncf %74 : vector<8x16x32xf32> to vector<8x16x32xbf16>
    "tpu.trace_start"() <{level = 10 : i32, message = "bqk,bkd->bqd"}> : () -> ()
    %cst_29 = arith.constant dense<0.000000e+00> : vector<8x16x32xf32>
    %96 = tpu.matmul %94, %95, %cst_29 {dimension_numbers = #tpu.dot_dimension_numbers<[2], [1], [1], [2], [0, 0, 0, 1, 1, 2], [0], [0]>} : vector<8x16x16xbf16>, vector<8x16x32xbf16>, vector<8x16x32xf32> -> vector<8x16x32xf32>
    "tpu.trace_stop"() : () -> ()
    %97 = vector.shape_cast %96 : vector<8x16x32xf32> to vector<128x32xf32>
    %98 = vector.extract_strided_slice %42 {offsets = [32, 0], sizes = [32, 128], strides = [1, 1]} : vector<128x128xbf16> to vector<32x128xbf16>
    %99 = arith.truncf %97 : vector<128x32xf32> to vector<128x32xbf16>
    %cst_30 = arith.constant dense<0.000000e+00> : vector<128x128xf32>
    %100 = tpu.matmul %99, %98, %cst_30 {dimension_numbers = #tpu.dot_dimension_numbers<[1], [0], [0], [1], [0, 0, 1, 1], [], []>} : vector<128x32xbf16>, vector<32x128xbf16>, vector<128x128xf32> -> vector<128x128xf32>
    %101 = arith.addf %71, %100 : vector<128x128xf32>
    %102 = vector.extract_strided_slice %33 {offsets = [0, 0, 64], sizes = [8, 16, 32], strides = [1, 1, 1]} : vector<8x16x128xf32> to vector<8x16x32xf32>
    %103 = vector.extract_strided_slice %35 {offsets = [0, 0, 64], sizes = [8, 16, 32], strides = [1, 1, 1]} : vector<8x16x128xf32> to vector<8x16x32xf32>
    %104 = vector.extract_strided_slice %37 {offsets = [0, 0, 64], sizes = [8, 16, 32], strides = [1, 1, 1]} : vector<8x16x128xf32> to vector<8x16x32xf32>
    %105 = arith.truncf %102 : vector<8x16x32xf32> to vector<8x16x32xbf16>
    %106 = arith.truncf %103 : vector<8x16x32xf32> to vector<8x16x32xbf16>
    "tpu.trace_start"() <{level = 10 : i32, message = "bqd,bkd->bqk"}> : () -> ()
    %cst_31 = arith.constant dense<0.000000e+00> : vector<8x16x16xf32>
    %107 = tpu.matmul %105, %106, %cst_31 {dimension_numbers = #tpu.dot_dimension_numbers<[2], [2], [1], [1], [0, 0, 0, 1, 1, 1], [0], [0]>} : vector<8x16x32xbf16>, vector<8x16x32xbf16>, vector<8x16x16xf32> -> vector<8x16x16xf32>
    "tpu.trace_stop"() : () -> ()
    %cst_32 = arith.constant 0.176776692 : f32
    %108 = vector.broadcast %cst_32 : f32 to vector<8x16x16xf32>
    %109 = arith.mulf %107, %108 : vector<8x16x16xf32>
    %cst_33 = arith.constant -1.000000e+30 : f32
    %110 = vector.shape_cast %41 : vector<1x16x16xi1> to vector<1x16x16xi1>
    %111 = vector.broadcast %110 : vector<1x16x16xi1> to vector<8x16x16xi1>
    %112 = vector.broadcast %cst_33 : f32 to vector<8x16x16xf32>
    %113 = arith.select %111, %109, %112 : vector<8x16x16xi1>, vector<8x16x16xf32>
    %cst_34 = arith.constant dense<0xFF800000> : vector<8x16xf32>
    %114 = vector.multi_reduction <maximumf>, %113, %cst_34 [2] : vector<8x16x16xf32> to vector<8x16xf32>
    %115 = vector.shape_cast %114 : vector<8x16xf32> to vector<8x16x1xf32>
    %116 = vector.broadcast %115 : vector<8x16x1xf32> to vector<8x16x16xf32>
    %117 = arith.subf %113, %116 : vector<8x16x16xf32>
    %118 = math.exp %117 : vector<8x16x16xf32>
    %cst_35 = arith.constant dense<0.000000e+00> : vector<8x16xf32>
    %119 = vector.multi_reduction <add>, %118, %cst_35 [2] : vector<8x16x16xf32> to vector<8x16xf32>
    %120 = vector.shape_cast %119 : vector<8x16xf32> to vector<8x16x1xf32>
    %121 = tpu.reciprocal %120 {approx = true} : vector<8x16x1xf32> -> vector<8x16x1xf32>
    %122 = vector.broadcast %121 : vector<8x16x1xf32> to vector<8x16x16xf32>
    %123 = arith.mulf %118, %122 : vector<8x16x16xf32>
    %124 = arith.truncf %123 : vector<8x16x16xf32> to vector<8x16x16xbf16>
    %125 = arith.truncf %104 : vector<8x16x32xf32> to vector<8x16x32xbf16>
    "tpu.trace_start"() <{level = 10 : i32, message = "bqk,bkd->bqd"}> : () -> ()
    %cst_36 = arith.constant dense<0.000000e+00> : vector<8x16x32xf32>
    %126 = tpu.matmul %124, %125, %cst_36 {dimension_numbers = #tpu.dot_dimension_numbers<[2], [1], [1], [2], [0, 0, 0, 1, 1, 2], [0], [0]>} : vector<8x16x16xbf16>, vector<8x16x32xbf16>, vector<8x16x32xf32> -> vector<8x16x32xf32>
    "tpu.trace_stop"() : () -> ()
    %127 = vector.shape_cast %126 : vector<8x16x32xf32> to vector<128x32xf32>
    %128 = vector.extract_strided_slice %42 {offsets = [64, 0], sizes = [32, 128], strides = [1, 1]} : vector<128x128xbf16> to vector<32x128xbf16>
    %129 = arith.truncf %127 : vector<128x32xf32> to vector<128x32xbf16>
    %cst_37 = arith.constant dense<0.000000e+00> : vector<128x128xf32>
    %130 = tpu.matmul %129, %128, %cst_37 {dimension_numbers = #tpu.dot_dimension_numbers<[1], [0], [0], [1], [0, 0, 1, 1], [], []>} : vector<128x32xbf16>, vector<32x128xbf16>, vector<128x128xf32> -> vector<128x128xf32>
    %131 = arith.addf %101, %130 : vector<128x128xf32>
    %132 = vector.extract_strided_slice %33 {offsets = [0, 0, 96], sizes = [8, 16, 32], strides = [1, 1, 1]} : vector<8x16x128xf32> to vector<8x16x32xf32>
    %133 = vector.extract_strided_slice %35 {offsets = [0, 0, 96], sizes = [8, 16, 32], strides = [1, 1, 1]} : vector<8x16x128xf32> to vector<8x16x32xf32>
    %134 = vector.extract_strided_slice %37 {offsets = [0, 0, 96], sizes = [8, 16, 32], strides = [1, 1, 1]} : vector<8x16x128xf32> to vector<8x16x32xf32>
    %135 = arith.truncf %132 : vector<8x16x32xf32> to vector<8x16x32xbf16>
    %136 = arith.truncf %133 : vector<8x16x32xf32> to vector<8x16x32xbf16>
    "tpu.trace_start"() <{level = 10 : i32, message = "bqd,bkd->bqk"}> : () -> ()
    %cst_38 = arith.constant dense<0.000000e+00> : vector<8x16x16xf32>
    %137 = tpu.matmul %135, %136, %cst_38 {dimension_numbers = #tpu.dot_dimension_numbers<[2], [2], [1], [1], [0, 0, 0, 1, 1, 1], [0], [0]>} : vector<8x16x32xbf16>, vector<8x16x32xbf16>, vector<8x16x16xf32> -> vector<8x16x16xf32>
    "tpu.trace_stop"() : () -> ()
    %cst_39 = arith.constant 0.176776692 : f32
    %138 = vector.broadcast %cst_39 : f32 to vector<8x16x16xf32>
    %139 = arith.mulf %137, %138 : vector<8x16x16xf32>
    %cst_40 = arith.constant -1.000000e+30 : f32
    %140 = vector.shape_cast %41 : vector<1x16x16xi1> to vector<1x16x16xi1>
    %141 = vector.broadcast %140 : vector<1x16x16xi1> to vector<8x16x16xi1>
    %142 = vector.broadcast %cst_40 : f32 to vector<8x16x16xf32>
    %143 = arith.select %141, %139, %142 : vector<8x16x16xi1>, vector<8x16x16xf32>
    %cst_41 = arith.constant dense<0xFF800000> : vector<8x16xf32>
    %144 = vector.multi_reduction <maximumf>, %143, %cst_41 [2] : vector<8x16x16xf32> to vector<8x16xf32>
    %145 = vector.shape_cast %144 : vector<8x16xf32> to vector<8x16x1xf32>
    %146 = vector.broadcast %145 : vector<8x16x1xf32> to vector<8x16x16xf32>
    %147 = arith.subf %143, %146 : vector<8x16x16xf32>
    %148 = math.exp %147 : vector<8x16x16xf32>
    %cst_42 = arith.constant dense<0.000000e+00> : vector<8x16xf32>
    %149 = vector.multi_reduction <add>, %148, %cst_42 [2] : vector<8x16x16xf32> to vector<8x16xf32>
    %150 = vector.shape_cast %149 : vector<8x16xf32> to vector<8x16x1xf32>
    %151 = tpu.reciprocal %150 {approx = true} : vector<8x16x1xf32> -> vector<8x16x1xf32>
    %152 = vector.broadcast %151 : vector<8x16x1xf32> to vector<8x16x16xf32>
    %153 = arith.mulf %148, %152 : vector<8x16x16xf32>
    %154 = arith.truncf %153 : vector<8x16x16xf32> to vector<8x16x16xbf16>
    %155 = arith.truncf %134 : vector<8x16x32xf32> to vector<8x16x32xbf16>
    "tpu.trace_start"() <{level = 10 : i32, message = "bqk,bkd->bqd"}> : () -> ()
    %cst_43 = arith.constant dense<0.000000e+00> : vector<8x16x32xf32>
    %156 = tpu.matmul %154, %155, %cst_43 {dimension_numbers = #tpu.dot_dimension_numbers<[2], [1], [1], [2], [0, 0, 0, 1, 1, 2], [0], [0]>} : vector<8x16x16xbf16>, vector<8x16x32xbf16>, vector<8x16x32xf32> -> vector<8x16x32xf32>
    "tpu.trace_stop"() : () -> ()
    %157 = vector.shape_cast %156 : vector<8x16x32xf32> to vector<128x32xf32>
    %158 = vector.extract_strided_slice %42 {offsets = [96, 0], sizes = [32, 128], strides = [1, 1]} : vector<128x128xbf16> to vector<32x128xbf16>
    %159 = arith.truncf %157 : vector<128x32xf32> to vector<128x32xbf16>
    %cst_44 = arith.constant dense<0.000000e+00> : vector<128x128xf32>
    %160 = tpu.matmul %159, %158, %cst_44 {dimension_numbers = #tpu.dot_dimension_numbers<[1], [0], [0], [1], [0, 0, 1, 1], [], []>} : vector<128x32xbf16>, vector<32x128xbf16>, vector<128x128xf32> -> vector<128x128xf32>
    %161 = arith.addf %131, %160 : vector<128x128xf32>
    %162 = arith.addf %1, %161 : vector<128x128xf32>
    %c0_45 = arith.constant 0 : index
    %c0_46 = arith.constant 0 : index
    %163 = vector.load %arg7[%c0_45, %c0_46] : memref<1x128xf32, #tpu.memory_space<vmem>>, vector<1x128xf32>
    %164 = vector.broadcast %163 : vector<1x128xf32> to vector<128x128xf32>
    %165 = arith.addf %162, %164 : vector<128x128xf32>
    %c0_47 = arith.constant 0 : index
    %c0_48 = arith.constant 0 : index
    %166 = vector.load %arg8[%c0_47, %c0_48] : memref<1x128xf32, #tpu.memory_space<vmem>>, vector<1x128xf32>
    %c0_49 = arith.constant 0 : index
    %c0_50 = arith.constant 0 : index
    %167 = vector.load %arg9[%c0_49, %c0_50] : memref<1x128xf32, #tpu.memory_space<vmem>>, vector<1x128xf32>
    %cst_51 = arith.constant dense<0.000000e+00> : vector<128xf32>
    %168 = vector.multi_reduction <add>, %165, %cst_51 [1] : vector<128x128xf32> to vector<128xf32>
    %169 = vector.shape_cast %168 : vector<128xf32> to vector<128x1xf32>
    %cst_52 = arith.constant 1.280000e+02 : f32
    %170 = vector.broadcast %cst_52 : f32 to vector<128x1xf32>
    %171 = arith.divf %169, %170 : vector<128x1xf32>
    %172 = vector.broadcast %171 : vector<128x1xf32> to vector<128x128xf32>
    %173 = arith.subf %165, %172 : vector<128x128xf32>
    %174 = arith.mulf %173, %173 : vector<128x128xf32>
    %cst_53 = arith.constant dense<0.000000e+00> : vector<128xf32>
    %175 = vector.multi_reduction <add>, %174, %cst_53 [1] : vector<128x128xf32> to vector<128xf32>
    %176 = vector.shape_cast %175 : vector<128xf32> to vector<128x1xf32>
    %cst_54 = arith.constant 1.280000e+02 : f32
    %177 = vector.broadcast %cst_54 : f32 to vector<128x1xf32>
    %178 = arith.divf %176, %177 : vector<128x1xf32>
    %179 = vector.broadcast %171 : vector<128x1xf32> to vector<128x128xf32>
    %180 = arith.subf %165, %179 : vector<128x128xf32>
    %cst_55 = arith.constant 9.99999974E-6 : f32
    %181 = vector.broadcast %cst_55 : f32 to vector<128x1xf32>
    %182 = arith.addf %178, %181 : vector<128x1xf32>
    %183 = math.rsqrt %182 : vector<128x1xf32>
    %184 = vector.broadcast %183 : vector<128x1xf32> to vector<128x128xf32>
    %185 = arith.mulf %180, %184 : vector<128x128xf32>
    %186 = vector.broadcast %166 : vector<1x128xf32> to vector<128x128xf32>
    %187 = arith.mulf %185, %186 : vector<128x128xf32>
    %188 = vector.broadcast %167 : vector<1x128xf32> to vector<128x128xf32>
    %189 = arith.addf %187, %188 : vector<128x128xf32>
    %c0_56 = arith.constant 0 : index
    %c0_57 = arith.constant 0 : index
    %190 = vector.load %arg10[%c0_56, %c0_57] : memref<128x512xbf16, #tpu.memory_space<vmem>>, vector<128x512xbf16>
    %191 = arith.truncf %189 : vector<128x128xf32> to vector<128x128xbf16>
    %cst_58 = arith.constant dense<0.000000e+00> : vector<128x512xf32>
    %192 = tpu.matmul %191, %190, %cst_58 {dimension_numbers = #tpu.dot_dimension_numbers<[1], [0], [0], [1], [0, 0, 1, 1], [], []>} : vector<128x128xbf16>, vector<128x512xbf16>, vector<128x512xf32> -> vector<128x512xf32>
    %c0_59 = arith.constant 0 : index
    %c0_60 = arith.constant 0 : index
    %193 = vector.load %arg11[%c0_59, %c0_60] : memref<1x512xf32, #tpu.memory_space<vmem>>, vector<1x512xf32>
    %194 = vector.broadcast %193 : vector<1x512xf32> to vector<128x512xf32>
    %195 = arith.addf %192, %194 : vector<128x512xf32>
    %cst_61 = arith.constant 5.000000e-01 : f32
    %196 = vector.broadcast %cst_61 : f32 to vector<128x512xf32>
    %197 = arith.mulf %196, %195 : vector<128x512xf32>
    %cst_62 = arith.constant 4.471500e-02 : f32
    %198 = vector.broadcast %cst_62 : f32 to vector<128x512xf32>
    %199 = arith.mulf %198, %195 : vector<128x512xf32>
    %200 = arith.mulf %199, %195 : vector<128x512xf32>
    %201 = arith.mulf %200, %195 : vector<128x512xf32>
    %202 = arith.addf %195, %201 : vector<128x512xf32>
    %cst_63 = arith.constant 0.797884583 : f32
    %203 = vector.broadcast %cst_63 : f32 to vector<128x512xf32>
    %204 = arith.mulf %203, %202 : vector<128x512xf32>
    %205 = math.tanh %204 : vector<128x512xf32>
    %cst_64 = arith.constant 1.000000e+00 : f32
    %206 = vector.broadcast %cst_64 : f32 to vector<128x512xf32>
    %207 = arith.addf %206, %205 : vector<128x512xf32>
    %208 = arith.mulf %197, %207 : vector<128x512xf32>
    %c0_65 = arith.constant 0 : index
    %c0_66 = arith.constant 0 : index
    %209 = vector.load %arg12[%c0_65, %c0_66] : memref<512x128xbf16, #tpu.memory_space<vmem>>, vector<512x128xbf16>
    %210 = arith.truncf %208 : vector<128x512xf32> to vector<128x512xbf16>
    %cst_67 = arith.constant dense<0.000000e+00> : vector<128x128xf32>
    %211 = tpu.matmul %210, %209, %cst_67 {dimension_numbers = #tpu.dot_dimension_numbers<[1], [0], [0], [1], [0, 0, 1, 1], [], []>} : vector<128x512xbf16>, vector<512x128xbf16>, vector<128x128xf32> -> vector<128x128xf32>
    %c0_68 = arith.constant 0 : index
    %c0_69 = arith.constant 0 : index
    %212 = vector.load %arg13[%c0_68, %c0_69] : memref<1x128xf32, #tpu.memory_space<vmem>>, vector<1x128xf32>
    %213 = vector.broadcast %212 : vector<1x128xf32> to vector<128x128xf32>
    %214 = arith.addf %211, %213 : vector<128x128xf32>
    %215 = arith.addf %165, %214 : vector<128x128xf32>
    %216 = vector.shape_cast %215 : vector<128x128xf32> to vector<8x16x128xf32>
    %c0_70 = arith.constant 0 : index
    %c0_71 = arith.constant 0 : index
    %c0_72 = arith.constant 0 : index
    %217 = vector.load %arg14[%c0_70, %c0_71, %c0_72] : memref<8x16x128xf32, #tpu.memory_space<vmem>>, vector<8x16x128xf32>
    tpu.vector_store %arg14[%c0_70, %c0_71, %c0_72], %216 {strides = array<i32>} : memref<8x16x128xf32, #tpu.memory_space<vmem>>, vector<8x16x128xf32>,
    return
  }
  func.func @transform_0(%arg0: i32) -> (i32, i32, i32) {
    %c0_i32 = arith.constant 0 : i32
    %c0_i32_0 = arith.constant 0 : i32
    %c0_i32_1 = arith.constant 0 : i32
    return %arg0, %c0_i32, %c0_i32_0 : i32, i32, i32
  }
  func.func @transform_1(%arg0: i32) -> (i32, i32) {
    %c0_i32 = arith.constant 0 : i32
    %c0_i32_0 = arith.constant 0 : i32
    %c0_i32_1 = arith.constant 0 : i32
    return %c0_i32, %c0_i32_0 : i32, i32
  }
  func.func @transform_2(%arg0: i32) -> (i32, i32) {
    %c0_i32 = arith.constant 0 : i32
    %c0_i32_0 = arith.constant 0 : i32
    %c0_i32_1 = arith.constant 0 : i32
    return %c0_i32, %c0_i32_0 : i32, i32
  }
  func.func @transform_3(%arg0: i32) -> (i32, i32) {
    %c0_i32 = arith.constant 0 : i32
    %c0_i32_0 = arith.constant 0 : i32
    %c0_i32_1 = arith.constant 0 : i32
    return %c0_i32, %c0_i32_0 : i32, i32
  }
  func.func @transform_4(%arg0: i32) -> (i32, i32) {
    %c0_i32 = arith.constant 0 : i32
    %c0_i32_0 = arith.constant 0 : i32
    %c0_i32_1 = arith.constant 0 : i32
    return %c0_i32, %c0_i32_0 : i32, i32
  }
  func.func @transform_5(%arg0: i32) -> (i32, i32) {
    %c0_i32 = arith.constant 0 : i32
    %c0_i32_0 = arith.constant 0 : i32
    %c0_i32_1 = arith.constant 0 : i32
    return %c0_i32, %c0_i32_0 : i32, i32
  }
  func.func @transform_6(%arg0: i32) -> (i32, i32) {
    %c0_i32 = arith.constant 0 : i32
    %c0_i32_0 = arith.constant 0 : i32
    %c0_i32_1 = arith.constant 0 : i32
    return %c0_i32, %c0_i32_0 : i32, i32
  }
  func.func @transform_7(%arg0: i32) -> (i32, i32) {
    %c0_i32 = arith.constant 0 : i32
    %c0_i32_0 = arith.constant 0 : i32
    %c0_i32_1 = arith.constant 0 : i32
    return %c0_i32, %c0_i32_0 : i32, i32
  }
  func.func @transform_8(%arg0: i32) -> (i32, i32) {
    %c0_i32 = arith.constant 0 : i32
    %c0_i32_0 = arith.constant 0 : i32
    %c0_i32_1 = arith.constant 0 : i32
    return %c0_i32, %c0_i32_0 : i32, i32
  }
  func.func @transform_9(%arg0: i32) -> (i32, i32) {
    %c0_i32 = arith.constant 0 : i32
    %c0_i32_0 = arith.constant 0 : i32
    %c0_i32_1 = arith.constant 0 : i32
    return %c0_i32, %c0_i32_0 : i32, i32
  }
  func.func @transform_10(%arg0: i32) -> (i32, i32) {
    %c0_i32 = arith.constant 0 : i32
    %c0_i32_0 = arith.constant 0 : i32
    %c0_i32_1 = arith.constant 0 : i32
    return %c0_i32, %c0_i32_0 : i32, i32
  }
  func.func @transform_11(%arg0: i32) -> (i32, i32) {
    %c0_i32 = arith.constant 0 : i32
    %c0_i32_0 = arith.constant 0 : i32
    %c0_i32_1 = arith.constant 0 : i32
    return %c0_i32, %c0_i32_0 : i32, i32
  }
  func.func @transform_12(%arg0: i32) -> (i32, i32) {
    %c0_i32 = arith.constant 0 : i32
    %c0_i32_0 = arith.constant 0 : i32
    %c0_i32_1 = arith.constant 0 : i32
    return %c0_i32, %c0_i32_0 : i32, i32
  }
  func.func @transform_13(%arg0: i32) -> (i32, i32, i32) {
    %c0_i32 = arith.constant 0 : i32
    %c0_i32_0 = arith.constant 0 : i32
    %c0_i32_1 = arith.constant 0 : i32
    return %arg0, %c0_i32, %c0_i32_0 : i32, i32, i32
  }
}

</mosaic_0001>

<bundles_post_ra>
// kernel: _lambda_.5
= control target key start
LH: loop header
LB: loop body
LE: loop exit
PB: predicated region body
PF: predicated region fallthrough
CT: control target
= control target key end

     0   :  { %9 = vsyncpa [#allocation3], 0  ;;  %s1355_s0 = inlined_call_operand.vmem [shape: f32[256,128], index: 0, kind: input, shape index: {}]   ;;  %s1356_s1 = inlined_call_operand.vmem [shape: f32[1,128], index: 1, kind: input, shape index: {}]   ;;  %s1357_s2 = inlined_call_operand.vmem [shape: f32[1,128], index: 2, kind: input, shape index: {}]   ;;  %s1358_s3 = inlined_call_operand.vmem [shape: bf16[128,128], index: 3, kind: input, shape index: {}]   ;;  %s1359_s4 = inlined_call_operand.hbm [shape: f32[256,128], index: 4, kind: output, shape index: {}]  }
   0x1   :  { %11 = vsyncpa [#allocation3 + $0x1], 0  ;;  %s1049_s15 = smov 0   ;;  %s1051_s16 = smov 0  }
   0x2   :  { %s1053_s17 = smov 0   ;;  %s1055_s18 = smov 0  }
   0x3   :  { %s1057_s19 = smov 0   ;;  %s1059_s20 = smov 0  }
   0x4 LB: > { %s757_s21 = sadd.s32 4294967295, %s1019_s20   ;;  %s758_s22 = sadd.s32 4294967294, %s1019_s20   ;;  %s1019_s20 = sphi %s1059_s20, %s17_s20   ;;  %s1015_s19 = sphi %s1057_s19, %s1366_s19   ;;  %s1011_s18 = sphi %s1055_s18, %s1365_s18   ;;  %s1007_s17 = sphi %s1053_s17, %s1364_s17   ;;  %s1003_s16 = sphi %s1051_s16, %s1363_s16   ;;  %s999_s15 = sphi %s1049_s15, %s1362_s15  }
   0x5   : > { %s29_s23 = sadd.s32 1, %s1015_s19  ;;  %s132_s24 = sadd.s32 1, %s1007_s17 }
   0x6   : > { %p31_p0 = scmp.ge.s32.totalorder %s29_s23, 2  ;;  %p142_p1 = scmp.ne.s32.totalorder %s1007_s17, %s1003_s16 }
   0x7   : > { %p143_p2 = scmp.eq.s32.totalorder %s757_s21, 1  ;;  %p148_p3 = scmp.ne.s32.totalorder %s1003_s16, %s999_s15 }
   0x8   : > { %s1368_s23 = smov (%p31_p0, %s29_s23), 0  ;;  %p149_p5 = scmp.eq.s32.totalorder %s758_s22, 1 }
   0x9   : > { %p1089_p4 = por %p143_p2, %p142_p1  ;;  %s127_s26 = ssub.s32 %s1015_s19, %s1368_s23 }
   0xa   : > { %p762_p6 = scmp.ge.s32.totalorder %s1019_s20, 1  ;;  %p130_p7 = scmp.eq.s32.totalorder %s127_s26, 0 }
   0xb   : > { %p1096_p8 = por %p149_p5, %p148_p3  ;;  %p189_p9 = scmp.lt.s32.totalorder %s1019_s20, 3 }
   0xc   : > { %s1102_s28 = scalar_select %p130_p7, %s1007_s17, %s132_s24  }
   0xd   : > { %p190_p10 = pnand %p762_p6, %p189_p9 }
   0xe   : > { %s764_s29 = sshll.u32 (!%p190_p10), %s1011_s18, 4  ;;  %s216_s12 = sand.u32 (!%p190_p10), 1, %s1003_s16  }
   0xf   : > { %193 = sbr.rel (%p190_p10) target bundleno = 577 (0x241), region = 36  ;;  %p220_p11 = scmp.lt.s32.totalorder (!%p190_p10), %s764_s29, 31 }
  0x10   : > { %s763_s13 = sshll.u32 (!%p190_p10), %s216_s12, 7  ;;  %s781_s21 = sshll.u32 (!%p190_p10), %s1011_s18, 11 }
  0x11   : > { %s1281_s14 = scalar_lea.vmem (!%p190_p10), [#allocation2], %s763_s13  ;;  %s1310_s18 = scalar_lea.sflag (!%p190_p10), [#allocation3], %s216_s12 }
  0x12   : > { %s670_s22 = sshll.u32 (!%p190_p10), %s1281_s14, 4  ;;  %s1021_s5 = smov (!%p190_p10), [#allocation2]   ;;  %s1304_s22 = int_to_ptr.vmem [resolvable:$true] %s670_s22 }
  0x13   : > { %s947_s6 = sshll.u32 (!%p190_p10), %s1021_s5, 4  ;;  %s948_s6 = int_to_ptr.vmem [resolvable:$false] %s947_s6 }
  0x14   : > { %s1370_s29 = smov (!%p220_p11, %s764_s29), 31  ;;  %v903_v59 = vld [vmem:[%s1358_s3 + $0x38] sm:$0xff]   ;;  %p950_p1 = scmp.lt.s32.totalorder %s1304_s22, %s948_s6 }
  0x15   : > { %s765_s30 = sshll.u32 %s1370_s29, 3  ;;  %798 = vmatprep.subr.bf16.mxu0 %v903_v59  ;;  %830 = vmatprep.subr.bf16.mxu1 %v903_v59  ;;  %s1302_s29 = scalar_lea.hbm %s1359_s4, %s781_s21 }
  0x16   : > { %s223_s7 = scalar_lea.vmem %s1355_s0, %s765_s30  ;;  %799 = vmatpush3.bf16.msra.mxu0 %v903_v59  ;;  %838 = vmatpush3.bf16.msra.mxu1 %v903_v59  ;;  %s943_s30 = scalar_lea.vmem %s1304_s22, 2048 }
  0x17   : > { %v231_v0 = vld [vmem:[%s223_s7] sm:$0xff]  ;;  %v232_v2 = vld [vmem:[%s223_s7 + $0x8] sm:$0xff]  ;;  %v233_v4 = vld [vmem:[%s223_s7 + $0x10] sm:$0xff]  ;;  %p944_p12 = scmp.ne.s32.totalorder %s1304_s22, %s943_s30 }
  0x18   : > { %v239_v1 = vld [vmem:[%s223_s7 + $0x40] sm:$0xff]  ;;  %249 = vadd.xlane.f32.xlu0 %v231_v0  ;;  %v240_v3 = vld [vmem:[%s223_s7 + $0x48] sm:$0xff]  ;;  %v234_v5 = vld [vmem:[%s223_s7 + $0x18] sm:$0xff] }
  0x19   : > { %265 = vadd.xlane.f32.xlu1 %v239_v1  ;;  %v241_v6 = vld [vmem:[%s223_s7 + $0x50] sm:$0xff]  ;;  %v242_v7 = vld [vmem:[%s223_s7 + $0x58] sm:$0xff]  ;;  %v235_v8 = vld [vmem:[%s223_s7 + $0x20] sm:$0xff]  ;;  %p945_p13 = pnand %p944_p12, %p1089_p4 }
  0x1a   : > { %v236_v9 = vld [vmem:[%s223_s7 + $0x28] sm:$0xff]  ;;  %v1108_v10 = vld [vmem:[%s223_s7 + $0x60] sm:$0xff]  ;;  %v1114_v12 = vld [vmem:[%s223_s7 + $0x30] sm:$0xff] }
  0x1b   : > { %v1110_v11 = vld [vmem:[%s223_s7 + $0x68] sm:$0xff]  ;;  %v1116_v13 = vld [vmem:[%s223_s7 + $0x38] sm:$0xff]  ;;  %v1120_v14 = vld [vmem:[%s223_s7 + $0x70] sm:$0xff]  ;;  %p946_p0 = pneg %p945_p13 }
  0x1c   : > { %251 = vadd.xlane.f32.xlu0 %v232_v2  ;;  %v1122_v15 = vld [vmem:[%s223_s7 + $0x78] sm:$0xff]  ;;  %s949_s7 = scalar_lea.vmem %s948_s6, 4096 }
  0x1d   : > { %267 = vadd.xlane.f32.xlu1 %v240_v3  ;;  %p951_p2 = scmp.lt.s32.totalorder %s949_s7, %s943_s30 }
  0x1f   : > { %p952_p3 = por %p951_p2, %p950_p1 }
  0x20   : > { %253 = vadd.xlane.f32.xlu0 %v233_v4 }
  0x21   : > { %255 = vadd.xlane.f32.xlu1 %v234_v5  ;;  %p953_p5 = pnand %p952_p3, %p946_p0 }
  0x24   : > { %269 = vadd.xlane.f32.xlu0 %v241_v6 }
  0x25   : > { %271 = vadd.xlane.f32.xlu1 %v242_v7 }
  0x28   : > { %257 = vadd.xlane.f32.xlu0 %v235_v8 }
  0x29   : > { %259 = vadd.xlane.f32.xlu1 %v236_v9 }
  0x2c   : > { %273 = vadd.xlane.f32.xlu0 %v1108_v10 }
  0x2d   : > { %275 = vadd.xlane.f32.xlu1 %v1110_v11 }
  0x30   : > { %261 = vadd.xlane.f32.xlu0 %v1114_v12 }
  0x31   : > { %263 = vadd.xlane.f32.xlu1 %v1116_v13 }
  0x34   : > { %277 = vadd.xlane.f32.xlu0 %v1120_v14 }
  0x35   : > { %279 = vadd.xlane.f32.xlu1 %v1122_v15 }
  0xa1   : > { %v250_v16 = vpop.xlane.xlu0 %249 }
  0xa2   : > { %v266_v17 = vpop.xlane.xlu1 %265  ;;  %v282_v18 = vmul.f32 0.0078125, %v250_v16 }
  0xa3   : > { %v290_v19 = vmul.f32 0.0078125, %v266_v17 }
  0xa4   : > { %v1126_v20 = vsub.f32 %v231_v0, %v282_v18 }
  0xa5   : > { %v1128_v21 = vsub.f32 %v239_v1, %v290_v19  ;;  %v252_v22 = vpop.xlane.xlu0 %251 }
  0xa6   : > { %v268_v23 = vpop.xlane.xlu1 %267  ;;  %v283_v24 = vmul.f32 0.0078125, %v252_v22  ;;  %v314_v25 = vmul.f32 %v1126_v20, %v1126_v20  ;;  %v907_v22 = vld [vmem:[%s1358_s3 + $0x18] sm:$0xff]  }
  0xa7   : > { %v291_v26 = vmul.f32 0.0078125, %v268_v23  ;;  %v322_v29 = vmul.f32 %v1128_v21, %v1128_v21  ;;  %v908_v23 = vld [vmem:[%s1358_s3 + $0x10] sm:$0xff]  }
  0xa8   : > { %v1132_v27 = vsub.f32 %v232_v2, %v283_v24  ;;  %330 = vadd.xlane.f32.xlu0 %v314_v25  ;;  %v909_v24 = vld [vmem:[%s1358_s3 + $0x8] sm:$0xff]   ;;  %v910_v25 = vld [vmem:[%s1358_s3] sm:$0xff]  }
  0xa9   : > { %v1134_v28 = vsub.f32 %v240_v3, %v291_v26  ;;  %v254_v30 = vpop.xlane.xlu0 %253 }
  0xaa   : > { %v256_v31 = vpop.xlane.xlu1 %255  ;;  %v284_v32 = vmul.f32 0.0078125, %v254_v30  ;;  %v315_v33 = vmul.f32 %v1132_v27, %v1132_v27 }
  0xab   : > { %v285_v34 = vmul.f32 0.0078125, %v256_v31  ;;  %v323_v37 = vmul.f32 %v1134_v28, %v1134_v28 }
  0xac   : > { %v1140_v35 = vsub.f32 %v233_v4, %v284_v32  ;;  %346 = vadd.xlane.f32.xlu0 %v322_v29  ;;  %332 = vadd.xlane.f32.xlu1 %v315_v33  ;;  %v904_v4 = vld [vmem:[%s1358_s3 + $0x30] sm:$0xff]  }
  0xad   : > { %v1142_v36 = vsub.f32 %v234_v5, %v285_v34  ;;  %v270_v38 = vpop.xlane.xlu0 %269  ;;  %800 = vmatprep.subr.bf16.mxu0 %v904_v4  ;;  %831 = vmatprep.subr.bf16.mxu1 %v904_v4 }
  0xae   : > { %v272_v39 = vpop.xlane.xlu1 %271  ;;  %v292_v40 = vmul.f32 0.0078125, %v270_v38  ;;  %v316_v41 = vmul.f32 %v1140_v35, %v1140_v35  ;;  %801 = vmatpush3.bf16.msra.mxu0 %v904_v4  ;;  %839 = vmatpush3.bf16.msra.mxu1 %v904_v4 }
  0xaf   : > { %v293_v42 = vmul.f32 0.0078125, %v272_v39  ;;  %v317_v45 = vmul.f32 %v1142_v36, %v1142_v36 }
  0xb0   : > { %v1148_v43 = vsub.f32 %v241_v6, %v292_v40  ;;  %348 = vadd.xlane.f32.xlu1 %v323_v37  ;;  %334 = vadd.xlane.f32.xlu0 %v316_v41 }
  0xb1   : > { %v1150_v44 = vsub.f32 %v242_v7, %v293_v42  ;;  %v258_v46 = vpop.xlane.xlu0 %257 }
  0xb2   : > { %v260_v47 = vpop.xlane.xlu1 %259  ;;  %v286_v48 = vmul.f32 0.0078125, %v258_v46  ;;  %v324_v49 = vmul.f32 %v1148_v43, %v1148_v43 }
  0xb3   : > { %v287_v50 = vmul.f32 0.0078125, %v260_v47  ;;  %v325_v53 = vmul.f32 %v1150_v44, %v1150_v44 }
  0xb4   : > { %v1156_v51 = vsub.f32 %v235_v8, %v286_v48  ;;  %336 = vadd.xlane.f32.xlu1 %v317_v45  ;;  %350 = vadd.xlane.f32.xlu0 %v324_v49 }
  0xb5   : > { %v1158_v52 = vsub.f32 %v236_v9, %v287_v50  ;;  %v274_v54 = vpop.xlane.xlu0 %273 }
  0xb6   : > { %v276_v55 = vpop.xlane.xlu1 %275  ;;  %v294_v56 = vmul.f32 0.0078125, %v274_v54  ;;  %v318_v57 = vmul.f32 %v1156_v51, %v1156_v51 }
  0xb7   : > { %v295_v58 = vmul.f32 0.0078125, %v276_v55  ;;  %v319_v62 = vmul.f32 %v1158_v52, %v1158_v52 }
  0xb8   : > { %v1168_v60 = vsub.f32 %v1108_v10, %v294_v56  ;;  %352 = vadd.xlane.f32.xlu1 %v325_v53  ;;  %338 = vadd.xlane.f32.xlu0 %v318_v57 }
  0xb9   : > { %v1171_v61 = vsub.f32 %v1110_v11, %v295_v58  ;;  %v262_v63 = vpop.xlane.xlu0 %261 }
  0xba   : > { %v264_v0 = vpop.xlane.xlu1 %263  ;;  %v288_v1 = vmul.f32 0.0078125, %v262_v63  ;;  %v326_v2 = vmul.f32 %v1168_v60, %v1168_v60 }
  0xbb   : > { %v289_v3 = vmul.f32 0.0078125, %v264_v0  ;;  %v327_v7 = vmul.f32 %v1171_v61, %v1171_v61  ;;  %v1223_v0 = vld [vmem:[%s1356_s1] ss:$0 sm:$0xff] }
  0xbc   : > { %v1181_v5 = vsub.f32 %v1114_v12, %v288_v1  ;;  %340 = vadd.xlane.f32.xlu1 %v319_v62  ;;  %354 = vadd.xlane.f32.xlu0 %v326_v2  ;;  %v905_v12 = vld [vmem:[%s1358_s3 + $0x28] sm:$0xff]  }
  0xbd   : > { %v1184_v6 = vsub.f32 %v1116_v13, %v289_v3  ;;  %v278_v8 = vpop.xlane.xlu0 %277  ;;  %802 = vmatprep.subr.bf16.mxu0 %v905_v12  ;;  %832 = vmatprep.subr.bf16.mxu1 %v905_v12 }
  0xbe   : > { %v280_v9 = vpop.xlane.xlu1 %279  ;;  %v296_v10 = vmul.f32 0.0078125, %v278_v8  ;;  %v320_v11 = vmul.f32 %v1181_v5, %v1181_v5  ;;  %803 = vmatpush3.bf16.msra.mxu0 %v905_v12  ;;  %840 = vmatpush3.bf16.msra.mxu1 %v905_v12  ;;  %v1230_v12 = vld [vmem:[%s1357_s2] ss:$0 sm:$0xff] }
  0xbf   : > { %v297_v16 = vmul.f32 0.0078125, %v280_v9  ;;  %v321_v18 = vmul.f32 %v1184_v6, %v1184_v6 }
  0xc0   : > { %v1194_v13 = vsub.f32 %v1120_v14, %v296_v10  ;;  %356 = vadd.xlane.f32.xlu1 %v327_v7  ;;  %342 = vadd.xlane.f32.xlu0 %v320_v11  ;;  %v906_v14 = vld [vmem:[%s1358_s3 + $0x20] sm:$0xff]  }
  0xc1   : > { %v1197_v17 = vsub.f32 %v1122_v15, %v297_v16  ;;  %804 = vmatprep.subr.bf16.mxu0 %v906_v14  ;;  %833 = vmatprep.subr.bf16.mxu1 %v906_v14 }
  0xc2   : > { %v328_v19 = vmul.f32 %v1194_v13, %v1194_v13  ;;  %805 = vmatpush3.bf16.msra.mxu0 %v906_v14  ;;  %841 = vmatpush3.bf16.msra.mxu1 %v906_v14 }
  0xc3   : > { %v329_v15 = vmul.f32 %v1197_v17, %v1197_v17  ;;  %806 = vmatprep.subr.bf16.mxu0 %v907_v22  ;;  %834 = vmatprep.subr.bf16.mxu1 %v907_v22 }
  0xc4   : > { %344 = vadd.xlane.f32.xlu1 %v321_v18  ;;  %358 = vadd.xlane.f32.xlu0 %v328_v19 }
  0xc6   : > { %807 = vmatpush3.bf16.msra.mxu0 %v907_v22  ;;  %842 = vmatpush3.bf16.msra.mxu1 %v907_v22 }
  0xc7   : > { %808 = vmatprep.subr.bf16.mxu0 %v908_v23  ;;  %835 = vmatprep.subr.bf16.mxu1 %v908_v23 }
  0xc8   : > { %360 = vadd.xlane.f32.xlu1 %v329_v15 }
  0xca   : > { %809 = vmatpush3.bf16.msra.mxu0 %v908_v23  ;;  %843 = vmatpush3.bf16.msra.mxu1 %v908_v23 }
  0xcb   : > { %810 = vmatprep.subr.bf16.mxu0 %v909_v24  ;;  %836 = vmatprep.subr.bf16.mxu1 %v909_v24 }
  0xce   : > { %811 = vmatpush3.bf16.msra.mxu0 %v909_v24  ;;  %844 = vmatpush3.bf16.msra.mxu1 %v909_v24 }
  0xcf   : > { %812 = vmatprep.subr.bf16.mxu0 %v910_v25  ;;  %837 = vmatprep.subr.bf16.mxu1 %v910_v25 }
  0xd2   : > { %813 = vmatpush3.bf16.msra.mxu0 %v910_v25  ;;  %845 = vmatpush3.bf16.msra.mxu1 %v910_v25 }
 0x131   : > { %v331_v26 = vpop.xlane.xlu0 %330 }
 0x132   : > { %v362_v29 = vmul.f32 0.0078125, %v331_v26 }
 0x134   : > { %v378_v30 = vadd.f32 1e-05, %v362_v29 }
 0x135   : > { %v333_v31 = vpop.xlane.xlu1 %332  ;;  %v347_v32 = vpop.xlane.xlu0 %346 }
 0x136   : > { %911 = vrsqrt.f32 %v378_v30  ;;  %v363_v33 = vmul.f32 0.0078125, %v333_v31  ;;  %v370_v34 = vmul.f32 0.0078125, %v347_v32 }
 0x138   : > { %v379_v37 = vadd.f32 1e-05, %v363_v33  ;;  %v386_v38 = vadd.f32 1e-05, %v370_v34 }
 0x139   : > { %v349_v39 = vpop.xlane.xlu1 %348  ;;  %v335_v40 = vpop.xlane.xlu0 %334 }
 0x13a   : > { %913 = vrsqrt.f32 %v379_v37  ;;  %v371_v41 = vmul.f32 0.0078125, %v349_v39  ;;  %v364_v42 = vmul.f32 0.0078125, %v335_v40 }
 0x13b   : > { %915 = vrsqrt.f32 %v386_v38 }
 0x13c   : > { %v387_v45 = vadd.f32 1e-05, %v371_v41  ;;  %v380_v46 = vadd.f32 1e-05, %v364_v42 }
 0x13d   : > { %v337_v47 = vpop.xlane.xlu1 %336  ;;  %v351_v48 = vpop.xlane.xlu0 %350 }
 0x13e   : > { %917 = vrsqrt.f32 %v387_v45  ;;  %v365_v49 = vmul.f32 0.0078125, %v337_v47  ;;  %v372_v50 = vmul.f32 0.0078125, %v351_v48 }
 0x13f   : > { %919 = vrsqrt.f32 %v380_v46 }
 0x140   : > { %v381_v53 = vadd.f32 1e-05, %v365_v49  ;;  %v388_v54 = vadd.f32 1e-05, %v372_v50 }
 0x141   : > { %v353_v55 = vpop.xlane.xlu1 %352  ;;  %v339_v56 = vpop.xlane.xlu0 %338 }
 0x142   : > { %921 = vrsqrt.f32 %v381_v53  ;;  %v373_v57 = vmul.f32 0.0078125, %v353_v55  ;;  %v366_v58 = vmul.f32 0.0078125, %v339_v56 }
 0x143   : > { %v912_v59 = vpop.eup %911  ;;  %923 = vrsqrt.f32 %v388_v54 }
 0x144   : > { %v389_v62 = vadd.f32 1e-05, %v373_v57  ;;  %v382_v63 = vadd.f32 1e-05, %v366_v58  ;;  %v410_v1 = vmul.f32 %v912_v59, %v1126_v20 }
 0x145   : > { %v341_v2 = vpop.xlane.xlu1 %340  ;;  %v355_v3 = vpop.xlane.xlu0 %354 }
 0x146   : > { %925 = vrsqrt.f32 %v389_v62  ;;  %v367_v4 = vmul.f32 0.0078125, %v341_v2  ;;  %v374_v7 = vmul.f32 0.0078125, %v355_v3  ;;  %v432_v9 = vmul.f32 %v1223_v0, %v410_v1 }
 0x147   : > { %v914_v8 = vpop.eup %913  ;;  %927 = vrsqrt.f32 %v382_v63 }
 0x148   : > { %v916_v10 = vpop.eup %915  ;;  %v383_v11 = vadd.f32 1e-05, %v367_v4  ;;  %v390_v16 = vadd.f32 1e-05, %v374_v7  ;;  %v411_v18 = vmul.f32 %v914_v8, %v1132_v27  ;;  %v454_v25 = vadd.f32 %v1230_v12, %v432_v9 }
 0x149   : > { %v357_v20 = vpop.xlane.xlu1 %356  ;;  %v343_v19 = vpop.xlane.xlu0 %342  ;;  %v418_v14 = vmul.f32 %v916_v10, %v1128_v21 }
 0x14a   : > { %929 = vrsqrt.f32 %v383_v11  ;;  %v375_v15 = vmul.f32 0.0078125, %v357_v20  ;;  %v368_v22 = vmul.f32 0.0078125, %v343_v19  ;;  %v433_v23 = vmul.f32 %v1223_v0, %v411_v18 }
 0x14b   : > { %v918_v24 = vpop.eup %917  ;;  %931 = vrsqrt.f32 %v390_v16  ;;  %v440_v21 = vmul.f32 %v1223_v0, %v418_v14 }
 0x14c   : > { %v920_v26 = vpop.eup %919  ;;  %v391_v29 = vadd.f32 1e-05, %v375_v15  ;;  %v384_v30 = vadd.f32 1e-05, %v368_v22  ;;  %v455_v31 = vadd.f32 %v1230_v12, %v433_v23  ;;  %v419_v27 = vmul.f32 %v918_v24, %v1134_v28 }
 0x14d   : > { %v345_v32 = vpop.xlane.xlu1 %344  ;;  %v359_v33 = vpop.xlane.xlu0 %358  ;;  %v412_v34 = vmul.f32 %v920_v26, %v1140_v35  ;;  %v462_v49 = vadd.f32 %v1230_v12, %v440_v21 }
 0x14e   : > { %933 = vrsqrt.f32 %v391_v29  ;;  %v369_v37 = vmul.f32 0.0078125, %v345_v32  ;;  %v376_v38 = vmul.f32 0.0078125, %v359_v33  ;;  %v486_v39 = vpack.c.bf16 %v455_v31, %v454_v25 }
 0x14f   : > { %v922_v40 = vpop.eup %921  ;;  %935 = vrsqrt.f32 %v384_v30  ;;  %v441_v41 = vmul.f32 %v1223_v0, %v419_v27  ;;  %v434_v42 = vmul.f32 %v1223_v0, %v412_v34 }
 0x150   : > { %v924_v45 = vpop.eup %923  ;;  %v385_v46 = vadd.f32 1e-05, %v369_v37  ;;  %v392_v47 = vadd.f32 1e-05, %v376_v38  ;;  %814 = vmatprep.mubr.bf16.mxu0 %v486_v39  ;;  %v413_v28 = vmul.f32 %v922_v40, %v1142_v36 }
 0x151   : > { %v361_v48 = vpop.xlane.xlu1 %360  ;;  %v463_v35 = vadd.f32 %v1230_v12, %v441_v41  ;;  %v420_v50 = vmul.f32 %v924_v45, %v1148_v43  ;;  %v456_v57 = vadd.f32 %v1230_v12, %v434_v42 }
 0x152   : > { %937 = vrsqrt.f32 %v385_v46  ;;  %v377_v53 = vmul.f32 0.0078125, %v361_v48  ;;  %v435_v54 = vmul.f32 %v1223_v0, %v413_v28 }
 0x153   : > { %v926_v55 = vpop.eup %925  ;;  %939 = vrsqrt.f32 %v392_v47  ;;  %v490_v56 = vpack.c.bf16 %v463_v35, %v462_v49  ;;  %v442_v63 = vmul.f32 %v1223_v0, %v420_v50 }
 0x154   : > { %v928_v58 = vpop.eup %927  ;;  %v393_v59 = vadd.f32 1e-05, %v377_v53  ;;  %v457_v36 = vadd.f32 %v1230_v12, %v435_v54  ;;  %v421_v62 = vmul.f32 %v926_v55, %v1150_v44 }
 0x155   : > { %822 = vmatprep.mubr.bf16.mxu1 %v490_v56  ;;  %v414_v43 = vmul.f32 %v928_v58, %v1156_v51  ;;  %v464_v7 = vadd.f32 %v1230_v12, %v442_v63 }
 0x156   : > { %941 = vrsqrt.f32 %v393_v59  ;;  %v487_v1 = vpack.c.bf16 %v457_v36, %v456_v57  ;;  %v443_v2 = vmul.f32 %v1223_v0, %v421_v62 }
 0x157   : > { %v930_v3 = vpop.eup %929  ;;  %v436_v44 = vmul.f32 %v1223_v0, %v414_v43 }
 0x158   : > { %v932_v4 = vpop.eup %931  ;;  %815 = vmatmul.mubr.bf16.vlgmr.msra.gmra.mxu0 %v487_v1  ;;  %v465_v8 = vadd.f32 %v1230_v12, %v443_v2  ;;  %v415_v9 = vmul.f32 %v930_v3, %v1158_v52 }
 0x159   : > { %v422_v10 = vmul.f32 %v932_v4, %v1168_v60  ;;  %v458_v20 = vadd.f32 %v1230_v12, %v436_v44 }
 0x15a   : > { %v491_v11 = vpack.c.bf16 %v465_v8, %v464_v7  ;;  %v437_v51 = vmul.f32 %v1223_v0, %v415_v9 }
 0x15b   : > { %v934_v16 = vpop.eup %933  ;;  %v444_v15 = vmul.f32 %v1223_v0, %v422_v10 }
 0x15c   : > { %v936_v18 = vpop.eup %935  ;;  %823 = vmatmul.mubr.bf16.vlgmr.msra.gmra.mxu1 %v491_v11  ;;  %v459_v19 = vadd.f32 %v1230_v12, %v437_v51  ;;  %v423_v14 = vmul.f32 %v934_v16, %v1171_v61 }
 0x15d   : > { %v416_v52 = vmul.f32 %v936_v18, %v1181_v5  ;;  %v466_v25 = vadd.f32 %v1230_v12, %v444_v15 }
 0x15e   : > { %v488_v22 = vpack.c.bf16 %v459_v19, %v458_v20  ;;  %v445_v23 = vmul.f32 %v1223_v0, %v423_v14 }
 0x15f   : > { %v938_v60 = vpop.eup %937  ;;  %v438_v30 = vmul.f32 %v1223_v0, %v416_v52 }
 0x160   : > { %v940_v24 = vpop.eup %939  ;;  %818 = vmatprep.mubr.bf16.mxu0 %v488_v22  ;;  %v467_v26 = vadd.f32 %v1230_v12, %v445_v23  ;;  %v417_v29 = vmul.f32 %v938_v60, %v1184_v6 }
 0x161   : > { %v424_v61 = vmul.f32 %v940_v24, %v1194_v13  ;;  %v460_v32 = vadd.f32 %v1230_v12, %v438_v30 }
 0x162   : > { %v492_v31 = vpack.c.bf16 %v467_v26, %v466_v25  ;;  %v439_v5 = vmul.f32 %v1223_v0, %v417_v29 }
 0x163   : > { %v942_v27 = vpop.eup %941  ;;  %v446_v34 = vmul.f32 %v1223_v0, %v424_v61 }
 0x164   : > { %826 = vmatprep.mubr.bf16.mxu1 %v492_v31  ;;  %v461_v33 = vadd.f32 %v1230_v12, %v439_v5  ;;  %v425_v21 = vmul.f32 %v942_v27, %v1197_v17 }
 0x165   : > { %v468_v13 = vadd.f32 %v1230_v12, %v446_v34 }
 0x166   : > { %v489_v6 = vpack.c.bf16 %v461_v33, %v460_v32  ;;  %v447_v37 = vmul.f32 %v1223_v0, %v425_v21 }
 0x168   : > { %819 = vmatmul.mubr.bf16.gmra.mxu0 %v489_v6  ;;  %v469_v38 = vadd.f32 %v1230_v12, %v447_v37 }
 0x16a   : > { %v493_v39 = vpack.c.bf16 %v469_v38, %v468_v13 }
 0x16c   : > { %827 = vmatmul.mubr.bf16.gmra.mxu1 %v493_v39 }
 0x218   : > { %v816_v40 = vpop.f32.mrf.mxu0 }
 0x219   : > { %641 = vst [vmem:[%s1281_s14 + $0x10] sm:$0xff] %v816_v40 }
 0x21a   : > { %v576_v17 = vpop.f32.mrf.mxu0 }
 0x21b   : > { %639 = vst [vmem:[%s1281_s14] sm:$0xff] %v576_v17 }
 0x21c   : > { %v817_v0 = vpop.f32.mrf.mxu0  ;;  %v824_v12 = vpop.f32.mrf.mxu1 }
 0x21d   : > { %642 = vst [vmem:[%s1281_s14 + $0x18] sm:$0xff] %v817_v0  ;;  %649 = vst [vmem:[%s1281_s14 + $0x50] sm:$0xff] %v824_v12 }
 0x21e   : > { %v579_v41 = vpop.f32.mrf.mxu0  ;;  %v608_v42 = vpop.f32.mrf.mxu1 }
 0x21f   : > { %640 = vst [vmem:[%s1281_s14 + $0x8] sm:$0xff] %v579_v41  ;;  %647 = vst [vmem:[%s1281_s14 + $0x40] sm:$0xff] %v608_v42 }
 0x220   : > { %v825_v45 = vpop.f32.mrf.mxu1 }
 0x221   : > { %650 = vst [vmem:[%s1281_s14 + $0x58] sm:$0xff] %v825_v45 }
 0x222   : > { %v611_v46 = vpop.f32.mrf.mxu1 }
 0x223   : > { %648 = vst [vmem:[%s1281_s14 + $0x48] sm:$0xff] %v611_v46 }
 0x228   : > { %v820_v47 = vpop.f32.mrf.mxu0 }
 0x229   : > { %645 = vst [vmem:[%s1281_s14 + $0x30] sm:$0xff] %v820_v47 }
 0x22a   : > { %v592_v28 = vpop.f32.mrf.mxu0 }
 0x22b   : > { %643 = vst [vmem:[%s1281_s14 + $0x20] sm:$0xff] %v592_v28 }
 0x22c   : > { %v821_v48 = vpop.f32.mrf.mxu0  ;;  %v828_v49 = vpop.f32.mrf.mxu1 }
 0x22d   : > { %646 = vst [vmem:[%s1281_s14 + $0x38] sm:$0xff] %v821_v48  ;;  %653 = vst [vmem:[%s1281_s14 + $0x70] sm:$0xff] %v828_v49 }
 0x22e   : > { %v595_v35 = vpop.f32.mrf.mxu0  ;;  %v624_v50 = vpop.f32.mrf.mxu1 }
 0x22f   : > { %644 = vst [vmem:[%s1281_s14 + $0x28] sm:$0xff] %v595_v35  ;;  %651 = vst [vmem:[%s1281_s14 + $0x60] sm:$0xff] %v624_v50 }
 0x230   : > { %v829_v53 = vpop.f32.mrf.mxu1 }
 0x231   : > { %654 = vst [vmem:[%s1281_s14 + $0x78] sm:$0xff] %v829_v53 }
 0x232   : > { %v627_v54 = vpop.f32.mrf.mxu1 }
 0x233   : > { %652 = vst [vmem:[%s1281_s14 + $0x68] sm:$0xff] %v627_v54 }
 0x234   : > { %956 = shalt.err (!%p953_p5)
}
 0x235   : > { %s957_s8 = scalar_lea.hbm %s1302_s29, 2048  ;;  %s961_s11 = scalar_lea.hbm %s1359_s4, 4096 }
 0x236   : > { %p958_p6 = scmp.ne.s32.totalorder %s1302_s29, %s957_s8  ;;  %p962_p10 = scmp.lt.s32.totalorder %s1302_s29, %s1359_s4 }
 0x237   : > { %p963_p11 = scmp.lt.s32.totalorder %s961_s11, %s957_s8 }
 0x238   : > { %p959_p7 = pnand %p958_p6, %p1089_p4 }
 0x239   : > { %p964_p12 = por %p963_p11, %p962_p10 }
 0x23a   : > { %p960_p9 = pneg %p959_p7 }
 0x23c   : > { %p965_p13 = pnand %p964_p12, %p960_p9 }
 0x23e   : > { %968 = shalt.err (!%p965_p13)
}
 0x23f   : > { %s1022_s14 = smov 128   ;;  %s1023_s21 = smov 8  }
 0x240   : > { %846 = dma.vmem_to_hbm [thread:$0]  (%p1089_p4), %s1304_s22, 2048, %s1302_s29, %s1310_s18, %s1022_s14, %s1022_s14, %s1023_s21  }
 0x241 PF: > { %p852_p0 = scmp.ge.s32.totalorder %s1019_s20, 2  ;;  %s685_s24 = sand.u32 1, %s999_s15  }
 0x242   : > { %s686_s26 = scalar_lea.sflag [#allocation3], %s685_s24 }
 0x243   : > { %p849_p1 = pnand %p852_p0, %p1096_p8 }
 0x245   : > { %p850_p2 = pneg %p849_p1 }
 0x247   : > { %994 = dma.done.wait (%p850_p2), %s686_s26, 2048  }
 0x248   : > { %996 = vsyncadd (%p850_p2), %s686_s26, 4294965248  ;;  %s17_s20 = sadd.s32 1, %s1019_s20   ;;  %s1362_s15 = smov %s1003_s16 }
 0x249   : > { %p14_p3 = scmp.ge.s32.totalorder %s17_s20, 4   ;;  %s1363_s16 = smov %s1007_s17 }
 0x24a   : > { %s1364_s17 = smov %s1102_s28  ;;  %s1365_s18 = smov %s1015_s19 }
 0x24b   : > { %s1366_s19 = smov %s1368_s23  ;;  %16 = sbr.rel (!%p14_p3) target bundleno = 4 (0x4), region = 74 }
 0x250   :  { %691 = vsyncpa [#allocation3], 1 }
 0x251   :  { %693 = vsyncpa [#allocation3 + $0x1], 1 }

// kernel: _lambda_.3
= control target key start
LH: loop header
LB: loop body
LE: loop exit
PB: predicated region body
PF: predicated region fallthrough
CT: control target
= control target key end

     0   :  { %s9268_s25 = smov 0   ;;  %s12384_s0 = inlined_call_operand.vmem [shape: f32[16,16,128], index: 0, kind: input, shape index: {}]   ;;  %s12385_s1 = inlined_call_operand.vmem [shape: f32[1,128], index: 1, kind: input, shape index: {}]   ;;  %s12386_s2 = inlined_call_operand.vmem [shape: f32[1,128], index: 2, kind: input, shape index: {}]   ;;  %s12387_s3 = inlined_call_operand.vmem [shape: bf16[128,384], index: 3, kind: input, shape index: {}]   ;;  %s12388_s4 = inlined_call_operand.vmem [shape: f32[1,384], index: 4, kind: input, shape index: {}]   ;;  %s12389_s5 = inlined_call_operand.vmem [shape: bf16[128,128], index: 5, kind: input, shape index: {}]   ;;  %s12390_s6 = inlined_call_operand.vmem [shape: f32[1,128], index: 6, kind: input, shape index: {}]   ;;  %s12391_s7 = inlined_call_operand.vmem [shape: f32[1,128], index: 7, kind: input, shape index: {}]   ;;  %s12392_s8 = inlined_call_operand.vmem [shape: f32[1,128], index: 8, kind: input, shape index: {}]   ;;  %s12393_s9 = inlined_call_operand.vmem [shape: bf16[128,512], index: 9, kind: input, shape index: {}]   ;;  %s12394_s10 = inlined_call_operand.vmem [shape: f32[1,512], index: 10, kind: input, shape index: {}]   ;;  %s12395_s11 = inlined_call_operand.vmem [shape: bf16[512,128], index: 11, kind: input, shape index: {}]   ;;  %s12396_s12 = inlined_call_operand.vmem [shape: f32[1,128], index: 12, kind: input, shape index: {}]   ;;  %s12397_s13 = inlined_call_operand.vmem [shape: f32[16,16,128], index: 13, kind: output, shape index: {}]  }
   0x1 LB: > { %s7565_s26 = sadd.s32 4294967295, %s9190_s25   ;;  %p7569_p0 = scmp.ge.s32.totalorder %s9190_s25, 1  ;;  %s9190_s25 = sphi %s9268_s25, %s23_s25  }
   0x2   : > { %p389_p1 = scmp.lt.s32.totalorder %s9190_s25, 3 }
   0x4   : > { %p390_p2 = pnand %p7569_p0, %p389_p1 }
   0x6   : > { %393 = sbr.rel (%p390_p2) target bundleno = 4530 (0x11b2), region = 72 }
   0xb   : > { %s7570_s27 = sshll.u32 %s7565_s26, 3  ;;  %v8600_v16 = vld [vmem:[%s12387_s3 + $0xac] ss:$12 sps:$4 sm:$0xff]   ;;  %v8602_v17 = vld [vmem:[%s12387_s3 + $0xa8] ss:$12 sps:$4 sm:$0xff]   ;;  %vm9194_vm0 = vmmov 0  }
   0xc   : > { %p436_p3 = scmp.lt.s32.totalorder %s7570_s27, 15  ;;  %874 = vmatprep.subr.bf16.mxu0 %v8600_v16  ;;  %v8603_v53 = vld [vmem:[%s12387_s3 + $0x94] ss:$12 sps:$4 sm:$0xff]   ;;  %v8605_v54 = vld [vmem:[%s12387_s3 + $0xb0] ss:$12 sps:$4 sm:$0xff]   ;;  %vm1123_vm1 = vcmask 261120  }
   0xd   : > { %875 = vmatpush1.bf16.msra.mxu0 %v8602_v17  ;;  %v8606_v55 = vld [vmem:[%s12387_s3 + $0x90] ss:$12 sps:$4 sm:$0xff]   ;;  %8090 = vmatprep.subr.bf16.mxu1 %v8605_v54  ;;  %vm1536_vm3 = vcmask 130048   ;;  %s9195_s17 = smov 96   ;;  %s9196_s18 = smov 64  }
   0xe   : > { %s12589_s27 = smov (!%p436_p3, %s7570_s27), 15  ;;  %876 = vmatprep.subr.bf16.mxu0 %v8603_v53  ;;  %8091 = vmatpush3.bf16.msra.mxu1 %v8605_v54  ;;  %s9197_s30 = smov 32  }
   0xf   : > { %s7776_s28 = sshll.u32 %s12589_s27, 4 }
  0x10   : > { %s9284_s14 = scalar_lea.vmem %s12384_s0, %s7776_s28  ;;  %s12333_s23 = scalar_lea.vmem %s12397_s13, %s7776_s28 }
  0x11   : > { %v450_v0 = vld [vmem:[%s9284_s14] sm:$0xff]  ;;  %v452_v1 = vld [vmem:[%s9284_s14 + $0x10] sm:$0xff]  ;;  %v451_v2 = vld [vmem:[%s9284_s14 + $0x8] sm:$0xff]  ;;  %877 = vmatpush1.bf16.msra.mxu0 %v8606_v55 }
  0x12   : > { %468 = vadd.xlane.f32.xlu0 %v450_v0  ;;  %472 = vadd.xlane.f32.xlu1 %v452_v1  ;;  %v453_v3 = vld [vmem:[%s9284_s14 + $0x18] sm:$0xff]  ;;  %v454_v4 = vld [vmem:[%s9284_s14 + $0x20] sm:$0xff]  ;;  %v455_v5 = vld [vmem:[%s9284_s14 + $0x28] sm:$0xff] }
  0x13   : > { %v456_v6 = vld [vmem:[%s9284_s14 + $0x30] sm:$0xff]  ;;  %v457_v7 = vld [vmem:[%s9284_s14 + $0x38] sm:$0xff]  ;;  %v9295_v8 = vld [vmem:[%s9284_s14 + $0x40] sm:$0xff] }
  0x14   : > { %v9298_v9 = vld [vmem:[%s9284_s14 + $0x48] sm:$0xff]  ;;  %v9301_v10 = vld [vmem:[%s9284_s14 + $0x50] sm:$0xff]  ;;  %v9304_v11 = vld [vmem:[%s9284_s14 + $0x58] sm:$0xff] }
  0x15   : > { %v9309_v12 = vld [vmem:[%s9284_s14 + $0x60] sm:$0xff]  ;;  %v9312_v13 = vld [vmem:[%s9284_s14 + $0x68] sm:$0xff]  ;;  %v9317_v14 = vld [vmem:[%s9284_s14 + $0x70] sm:$0xff] }
  0x16   : > { %470 = vadd.xlane.f32.xlu0 %v451_v2  ;;  %474 = vadd.xlane.f32.xlu1 %v453_v3  ;;  %v9320_v15 = vld [vmem:[%s9284_s14 + $0x78] sm:$0xff] }
  0x1a   : > { %476 = vadd.xlane.f32.xlu0 %v454_v4  ;;  %478 = vadd.xlane.f32.xlu1 %v455_v5 }
  0x1e   : > { %480 = vadd.xlane.f32.xlu0 %v456_v6  ;;  %482 = vadd.xlane.f32.xlu1 %v457_v7 }
  0x22   : > { %484 = vadd.xlane.f32.xlu0 %v9295_v8  ;;  %486 = vadd.xlane.f32.xlu1 %v9298_v9 }
  0x26   : > { %488 = vadd.xlane.f32.xlu0 %v9301_v10  ;;  %490 = vadd.xlane.f32.xlu1 %v9304_v11 }
  0x2a   : > { %492 = vadd.xlane.f32.xlu0 %v9309_v12  ;;  %494 = vadd.xlane.f32.xlu1 %v9312_v13 }
  0x2e   : > { %496 = vadd.xlane.f32.xlu0 %v9317_v14  ;;  %498 = vadd.xlane.f32.xlu1 %v9320_v15 }
  0x9b   : > { %v469_v18 = vpop.xlane.xlu0 %468  ;;  %v473_v19 = vpop.xlane.xlu1 %472 }
  0x9c   : > { %v501_v20 = vmul.f32 0.0078125, %v469_v18  ;;  %v503_v21 = vmul.f32 0.0078125, %v473_v19 }
  0x9e   : > { %v9332_v22 = vsub.f32 %v450_v0, %v501_v20  ;;  %v9334_v23 = vsub.f32 %v452_v1, %v503_v21  ;;  %v8607_v0 = vld [vmem:[%s12387_s3 + $0x7c] ss:$12 sps:$4 sm:$0xff]   ;;  %v8609_v1 = vld [vmem:[%s12387_s3 + $0x98] ss:$12 sps:$4 sm:$0xff]   ;;  %v8614_v20 = vld [vmem:[%s12387_s3 + $0x60] ss:$12 sps:$4 sm:$0xff]  }
  0x9f   : > { %v471_v24 = vpop.xlane.xlu0 %470  ;;  %v475_v25 = vpop.xlane.xlu1 %474  ;;  %878 = vmatprep.subr.bf16.mxu0 %v8607_v0  ;;  %8092 = vmatprep.subr.bf16.mxu1 %v8609_v1 }
  0xa0   : > { %v502_v26 = vmul.f32 0.0078125, %v471_v24  ;;  %v533_v27 = vmul.f32 %v9332_v22, %v9332_v22  ;;  %v504_v28 = vmul.f32 0.0078125, %v475_v25  ;;  %v535_v29 = vmul.f32 %v9334_v23, %v9334_v23  ;;  %8093 = vmatpush3.bf16.msra.mxu1 %v8609_v1 }
  0xa2   : > { %549 = vadd.xlane.f32.xlu0 %v533_v27  ;;  %v9340_v30 = vsub.f32 %v451_v2, %v502_v26  ;;  %v9342_v31 = vsub.f32 %v453_v3, %v504_v28 }
  0xa3   : > { %v477_v32 = vpop.xlane.xlu0 %476  ;;  %v479_v33 = vpop.xlane.xlu1 %478 }
  0xa4   : > { %v505_v34 = vmul.f32 0.0078125, %v477_v32  ;;  %v534_v35 = vmul.f32 %v9340_v30, %v9340_v30  ;;  %v506_v36 = vmul.f32 0.0078125, %v479_v33  ;;  %v536_v37 = vmul.f32 %v9342_v31, %v9342_v31  ;;  %v8618_v33 = vld [vmem:[%s12387_s3 + $0x48] ss:$12 sps:$4 sm:$0xff]  }
  0xa6   : > { %553 = vadd.xlane.f32.xlu0 %v535_v29  ;;  %551 = vadd.xlane.f32.xlu1 %v534_v35  ;;  %v9348_v38 = vsub.f32 %v454_v4, %v505_v34  ;;  %v9350_v39 = vsub.f32 %v455_v5, %v506_v36  ;;  %v8610_v5 = vld [vmem:[%s12387_s3 + $0x78] ss:$12 sps:$4 sm:$0xff]   ;;  %v8619_v35 = vld [vmem:[%s12387_s3 + $0x34] ss:$12 sps:$4 sm:$0xff]   ;;  %v8622_v36 = vld [vmem:[%s12387_s3 + $0x30] ss:$12 sps:$4 sm:$0xff]  }
  0xa7   : > { %v481_v40 = vpop.xlane.xlu0 %480  ;;  %v483_v41 = vpop.xlane.xlu1 %482  ;;  %879 = vmatpush1.bf16.msra.mxu0 %v8610_v5 }
  0xa8   : > { %v507_v42 = vmul.f32 0.0078125, %v481_v40  ;;  %v537_v43 = vmul.f32 %v9348_v38, %v9348_v38  ;;  %v508_v44 = vmul.f32 0.0078125, %v483_v41  ;;  %v538_v45 = vmul.f32 %v9350_v39, %v9350_v39  ;;  %v8625_v40 = vld [vmem:[%s12387_s3 + $0x38] ss:$12 sps:$4 sm:$0xff]  }
  0xa9   : > { %v8626_v41 = vld [vmem:[%s12387_s3 + $0x18] ss:$12 sps:$4 sm:$0xff]  }
  0xaa   : > { %555 = vadd.xlane.f32.xlu1 %v536_v37  ;;  %557 = vadd.xlane.f32.xlu0 %v537_v43  ;;  %v9356_v46 = vsub.f32 %v456_v6, %v507_v42  ;;  %v9358_v47 = vsub.f32 %v457_v7, %v508_v44  ;;  %v8623_v37 = vld [vmem:[%s12387_s3 + $0x1c] ss:$12 sps:$4 sm:$0xff]   ;;  %v8627_v42 = vld [vmem:[%s12387_s3 + $0x4] ss:$12 sps:$4 sm:$0xff]   ;;  %v8629_v43 = vld [vmem:[%s12387_s3 + $0x20] ss:$12 sps:$4 sm:$0xff]  }
  0xab   : > { %v485_v48 = vpop.xlane.xlu0 %484  ;;  %v487_v49 = vpop.xlane.xlu1 %486  ;;  %v8630_v44 = vld [vmem:[%s12387_s3] ss:$12 sps:$4 sm:$0xff]  }
  0xac   : > { %v509_v50 = vmul.f32 0.0078125, %v485_v48  ;;  %v539_v51 = vmul.f32 %v9356_v46, %v9356_v46  ;;  %v510_v52 = vmul.f32 0.0078125, %v487_v49  ;;  %v540_v56 = vmul.f32 %v9358_v47, %v9358_v47 }
  0xad   : > { %v12401_v48 = vmov 0  }
  0xae   : > { %559 = vadd.xlane.f32.xlu1 %v538_v45  ;;  %561 = vadd.xlane.f32.xlu0 %v539_v51  ;;  %v9374_v57 = vsub.f32 %v9295_v8, %v509_v50  ;;  %v9377_v58 = vsub.f32 %v9298_v9, %v510_v52  ;;  %v8631_v45 = vld [vmem:[%s12387_s3 + $0x8] ss:$12 sps:$4 sm:$0xff]  }
  0xaf   : > { %v489_v59 = vpop.xlane.xlu0 %488  ;;  %v491_v60 = vpop.xlane.xlu1 %490  ;;  %906 = vmatprep.mubr.bf16.mxu0 %v12401_v48 }
  0xb0   : > { %v511_v61 = vmul.f32 0.0078125, %v489_v59  ;;  %v541_v62 = vmul.f32 %v9374_v57, %v9374_v57  ;;  %v512_v63 = vmul.f32 0.0078125, %v491_v60  ;;  %v542_v2 = vmul.f32 %v9377_v58, %v9377_v58 }
  0xb2   : > { %563 = vadd.xlane.f32.xlu1 %v540_v56  ;;  %565 = vadd.xlane.f32.xlu0 %v541_v62  ;;  %v9390_v3 = vsub.f32 %v9301_v10, %v511_v61  ;;  %v9393_v4 = vsub.f32 %v9304_v11, %v512_v63  ;;  %v8611_v10 = vld [vmem:[%s12387_s3 + $0x64] ss:$12 sps:$4 sm:$0xff]   ;;  %v8613_v11 = vld [vmem:[%s12387_s3 + $0x80] ss:$12 sps:$4 sm:$0xff]  }
  0xb3   : > { %v493_v6 = vpop.xlane.xlu0 %492  ;;  %v495_v7 = vpop.xlane.xlu1 %494  ;;  %880 = vmatprep.subr.bf16.mxu0 %v8611_v10  ;;  %8094 = vmatprep.subr.bf16.mxu1 %v8613_v11 }
  0xb4   : > { %v513_v8 = vmul.f32 0.0078125, %v493_v6  ;;  %v543_v9 = vmul.f32 %v9390_v3, %v9390_v3  ;;  %v514_v16 = vmul.f32 0.0078125, %v495_v7  ;;  %v544_v17 = vmul.f32 %v9393_v4, %v9393_v4  ;;  %881 = vmatpush1.bf16.msra.mxu0 %v8614_v20  ;;  %8095 = vmatpush3.bf16.msra.mxu1 %v8613_v11 }
  0xb6   : > { %567 = vadd.xlane.f32.xlu1 %v542_v2  ;;  %569 = vadd.xlane.f32.xlu0 %v543_v9  ;;  %v9409_v18 = vsub.f32 %v9309_v12, %v513_v8  ;;  %v9412_v19 = vsub.f32 %v9312_v13, %v514_v16  ;;  %v8615_v12 = vld [vmem:[%s12387_s3 + $0x4c] ss:$12 sps:$4 sm:$0xff]   ;;  %v8617_v13 = vld [vmem:[%s12387_s3 + $0x68] ss:$12 sps:$4 sm:$0xff]  }
  0xb7   : > { %v497_v21 = vpop.xlane.xlu0 %496  ;;  %v499_v24 = vpop.xlane.xlu1 %498  ;;  %882 = vmatprep.subr.bf16.mxu0 %v8615_v12  ;;  %8096 = vmatprep.subr.bf16.mxu1 %v8617_v13 }
  0xb8   : > { %v515_v25 = vmul.f32 0.0078125, %v497_v21  ;;  %v545_v26 = vmul.f32 %v9409_v18, %v9409_v18  ;;  %v516_v27 = vmul.f32 0.0078125, %v499_v24  ;;  %v546_v28 = vmul.f32 %v9412_v19, %v9412_v19  ;;  %883 = vmatpush1.bf16.msra.mxu0 %v8618_v33  ;;  %8097 = vmatpush3.bf16.msra.mxu1 %v8617_v13 }
  0xb9   : > { %884 = vmatprep.subr.bf16.mxu0 %v8619_v35 }
  0xba   : > { %571 = vadd.xlane.f32.xlu1 %v544_v17  ;;  %573 = vadd.xlane.f32.xlu0 %v545_v26  ;;  %v9428_v29 = vsub.f32 %v9317_v14, %v515_v25  ;;  %v9431_v32 = vsub.f32 %v9320_v15, %v516_v27  ;;  %v8621_v14 = vld [vmem:[%s12387_s3 + $0x50] ss:$12 sps:$4 sm:$0xff]   ;;  %v9474_v25 = vld [vmem:[%s12385_s1] ss:$0 sm:$0xff] }
  0xbb   : > { %8098 = vmatprep.subr.bf16.mxu1 %v8621_v14 }
  0xbc   : > { %v547_v34 = vmul.f32 %v9428_v29, %v9428_v29  ;;  %v548_v15 = vmul.f32 %v9431_v32, %v9431_v32  ;;  %885 = vmatpush1.bf16.msra.mxu0 %v8622_v36  ;;  %8099 = vmatpush3.bf16.msra.mxu1 %v8621_v14  ;;  %v9481_v36 = vld [vmem:[%s12386_s2] ss:$0 sm:$0xff] }
  0xbd   : > { %886 = vmatprep.subr.bf16.mxu0 %v8623_v37  ;;  %8100 = vmatprep.subr.bf16.mxu1 %v8625_v40 }
  0xbe   : > { %575 = vadd.xlane.f32.xlu1 %v546_v28  ;;  %577 = vadd.xlane.f32.xlu0 %v547_v34 }
  0xc0   : > { %887 = vmatpush1.bf16.msra.mxu0 %v8626_v41  ;;  %8101 = vmatpush3.bf16.msra.mxu1 %v8625_v40 }
  0xc1   : > { %888 = vmatprep.subr.bf16.mxu0 %v8627_v42  ;;  %8102 = vmatprep.subr.bf16.mxu1 %v8629_v43 }
  0xc2   : > { %579 = vadd.xlane.f32.xlu1 %v548_v15 }
  0xc4   : > { %889 = vmatpush1.bf16.msra.mxu0 %v8630_v44  ;;  %8103 = vmatpush3.bf16.msra.mxu1 %v8629_v43 }
  0xc5   : > { %8104 = vmatprep.subr.bf16.mxu1 %v8631_v45 }
  0xc8   : > { %8105 = vmatpush3.bf16.msra.mxu1 %v8631_v45 }
 0x12b   : > { %v550_v49 = vpop.xlane.xlu0 %549 }
 0x12c   : > { %v581_v50 = vmul.f32 0.0078125, %v550_v49 }
 0x12e   : > { %v597_v51 = vadd.f32 1e-05, %v581_v50 }
 0x12f   : > { %v552_v52 = vpop.xlane.xlu1 %551  ;;  %v554_v53 = vpop.xlane.xlu0 %553 }
 0x130   : > { %8720 = vrsqrt.f32 %v597_v51  ;;  %v582_v54 = vmul.f32 0.0078125, %v552_v52  ;;  %v583_v55 = vmul.f32 0.0078125, %v554_v53 }
 0x132   : > { %v598_v56 = vadd.f32 1e-05, %v582_v54  ;;  %v599_v59 = vadd.f32 1e-05, %v583_v55 }
 0x133   : > { %v556_v60 = vpop.xlane.xlu1 %555  ;;  %v558_v61 = vpop.xlane.xlu0 %557 }
 0x134   : > { %8722 = vrsqrt.f32 %v598_v56  ;;  %v584_v62 = vmul.f32 0.0078125, %v556_v60  ;;  %v585_v63 = vmul.f32 0.0078125, %v558_v61 }
 0x135   : > { %8724 = vrsqrt.f32 %v599_v59 }
 0x136   : > { %v600_v0 = vadd.f32 1e-05, %v584_v62  ;;  %v601_v1 = vadd.f32 1e-05, %v585_v63 }
 0x137   : > { %v560_v2 = vpop.xlane.xlu1 %559  ;;  %v562_v5 = vpop.xlane.xlu0 %561 }
 0x138   : > { %8726 = vrsqrt.f32 %v600_v0  ;;  %v586_v6 = vmul.f32 0.0078125, %v560_v2  ;;  %v587_v7 = vmul.f32 0.0078125, %v562_v5 }
 0x139   : > { %8728 = vrsqrt.f32 %v601_v1 }
 0x13a   : > { %v602_v8 = vadd.f32 1e-05, %v586_v6  ;;  %v603_v9 = vadd.f32 1e-05, %v587_v7 }
 0x13b   : > { %v564_v16 = vpop.xlane.xlu1 %563  ;;  %v566_v10 = vpop.xlane.xlu0 %565 }
 0x13c   : > { %8730 = vrsqrt.f32 %v602_v8  ;;  %v588_v11 = vmul.f32 0.0078125, %v564_v16  ;;  %v589_v17 = vmul.f32 0.0078125, %v566_v10 }
 0x13d   : > { %v8721_v20 = vpop.eup %8720  ;;  %8732 = vrsqrt.f32 %v603_v9 }
 0x13e   : > { %v604_v21 = vadd.f32 1e-05, %v588_v11  ;;  %v605_v24 = vadd.f32 1e-05, %v589_v17  ;;  %v629_v26 = vmul.f32 %v8721_v20, %v9332_v22 }
 0x13f   : > { %v568_v27 = vpop.xlane.xlu1 %567  ;;  %v570_v12 = vpop.xlane.xlu0 %569 }
 0x140   : > { %8734 = vrsqrt.f32 %v604_v21  ;;  %v590_v13 = vmul.f32 0.0078125, %v568_v27  ;;  %v591_v28 = vmul.f32 0.0078125, %v570_v12  ;;  %v651_v34 = vmul.f32 %v9474_v25, %v629_v26 }
 0x141   : > { %v8723_v33 = vpop.eup %8722  ;;  %8736 = vrsqrt.f32 %v605_v24 }
 0x142   : > { %v8725_v35 = vpop.eup %8724  ;;  %v606_v14 = vadd.f32 1e-05, %v590_v13  ;;  %v607_v15 = vadd.f32 1e-05, %v591_v28  ;;  %v630_v37 = vmul.f32 %v8723_v33, %v9340_v30  ;;  %v673_v49 = vadd.f32 %v9481_v36, %v651_v34 }
 0x143   : > { %v572_v22 = vpop.xlane.xlu1 %571  ;;  %v574_v40 = vpop.xlane.xlu0 %573  ;;  %v631_v41 = vmul.f32 %v8725_v35, %v9334_v23 }
 0x144   : > { %8738 = vrsqrt.f32 %v606_v14  ;;  %v592_v42 = vmul.f32 0.0078125, %v572_v22  ;;  %v593_v43 = vmul.f32 0.0078125, %v574_v40  ;;  %v652_v44 = vmul.f32 %v9474_v25, %v630_v37 }
 0x145   : > { %v8727_v45 = vpop.eup %8726  ;;  %8740 = vrsqrt.f32 %v607_v15  ;;  %v653_v23 = vmul.f32 %v9474_v25, %v631_v41 }
 0x146   : > { %v8729_v50 = vpop.eup %8728  ;;  %v608_v51 = vadd.f32 1e-05, %v592_v42  ;;  %v609_v52 = vadd.f32 1e-05, %v593_v43  ;;  %v674_v53 = vadd.f32 %v9481_v36, %v652_v44  ;;  %v632_v30 = vmul.f32 %v8727_v45, %v9342_v31 }
 0x147   : > { %v576_v54 = vpop.xlane.xlu1 %575  ;;  %v578_v55 = vpop.xlane.xlu0 %577  ;;  %v633_v56 = vmul.f32 %v8729_v50, %v9348_v38  ;;  %v675_v38 = vadd.f32 %v9481_v36, %v653_v23 }
 0x148   : > { %8742 = vrsqrt.f32 %v608_v51  ;;  %v594_v59 = vmul.f32 0.0078125, %v576_v54  ;;  %v595_v60 = vmul.f32 0.0078125, %v578_v55  ;;  %v721_v61 = vpack.c.bf16 %v674_v53, %v673_v49 }
 0x149   : > { %v8731_v62 = vpop.eup %8730  ;;  %8744 = vrsqrt.f32 %v609_v52  ;;  %v654_v63 = vmul.f32 %v9474_v25, %v632_v30  ;;  %v655_v5 = vmul.f32 %v9474_v25, %v633_v56 }
 0x14a   : > { %v8733_v0 = vpop.eup %8732  ;;  %v610_v1 = vadd.f32 1e-05, %v594_v59  ;;  %v611_v2 = vadd.f32 1e-05, %v595_v60  ;;  %907 = vmatmul.mubr.bf16.vlgmr.msra.gmra.mxu0 %v721_v61  ;;  %8106 = vmatprep.mubr.bf16.mxu1 %v721_v61  ;;  %v634_v31 = vmul.f32 %v8731_v62, %v9350_v39 }
 0x14b   : > { %v580_v6 = vpop.xlane.xlu1 %579  ;;  %v676_v7 = vadd.f32 %v9481_v36, %v654_v63  ;;  %916 = vmatprep.mubr.bf16.mxu0 %v12401_v48  ;;  %v635_v8 = vmul.f32 %v8733_v0, %v9356_v46  ;;  %v677_v21 = vadd.f32 %v9481_v36, %v655_v5 }
 0x14c   : > { %8746 = vrsqrt.f32 %v610_v1  ;;  %v596_v9 = vmul.f32 0.0078125, %v580_v6  ;;  %v656_v16 = vmul.f32 %v9474_v25, %v634_v31  ;;  %v729_v1 = vld [vmem:[%s12388_s4] sm:$0x7] }
 0x14d   : > { %v8735_v10 = vpop.eup %8734  ;;  %8748 = vrsqrt.f32 %v611_v2  ;;  %v722_v11 = vpack.c.bf16 %v676_v7, %v675_v38  ;;  %v657_v39 = vmul.f32 %v9474_v25, %v635_v8 }
 0x14e   : > { %v8737_v17 = vpop.eup %8736  ;;  %v612_v20 = vadd.f32 1e-05, %v596_v9  ;;  %v678_v24 = vadd.f32 %v9481_v36, %v656_v16  ;;  %v636_v26 = vmul.f32 %v8735_v10, %v9358_v47 }
 0x14f   : > { %8107 = vmatmul.mubr.bf16.vlgmr.msra.gmra.mxu1 %v722_v11  ;;  %v637_v46 = vmul.f32 %v8737_v17, %v9374_v57  ;;  %v679_v28 = vadd.f32 %v9481_v36, %v657_v39 }
 0x150   : > { %8750 = vrsqrt.f32 %v612_v20  ;;  %v723_v27 = vpack.c.bf16 %v678_v24, %v677_v21  ;;  %v658_v12 = vmul.f32 %v9474_v25, %v636_v26 }
 0x151   : > { %v8739_v13 = vpop.eup %8738  ;;  %v659_v14 = vmul.f32 %v9474_v25, %v637_v46 }
 0x152   : > { %v8741_v33 = vpop.eup %8740  ;;  %917 = vmatmul.mubr.bf16.gmra.mxu0 %v722_v11  ;;  %8110 = vmatprep.mubr.bf16.mxu1 %v723_v27  ;;  %v680_v34 = vadd.f32 %v9481_v36, %v658_v12  ;;  %v638_v35 = vmul.f32 %v8739_v13, %v9377_v58 }
 0x153   : > { %926 = vmatprep.mubr.bf16.mxu0 %v12401_v48  ;;  %v639_v47 = vmul.f32 %v8741_v33, %v9390_v3  ;;  %v681_v41 = vadd.f32 %v9481_v36, %v659_v14 }
 0x154   : > { %v724_v57 = vpack.c.bf16 %v680_v34, %v679_v28  ;;  %v660_v15 = vmul.f32 %v9474_v25, %v638_v35 }
 0x155   : > { %v8743_v37 = vpop.eup %8742  ;;  %v661_v22 = vmul.f32 %v9474_v25, %v639_v47 }
 0x156   : > { %v8745_v40 = vpop.eup %8744  ;;  %v682_v42 = vadd.f32 %v9481_v36, %v660_v15  ;;  %v640_v43 = vmul.f32 %v8743_v37, %v9393_v4 }
 0x157   : > { %8111 = vmatmul.mubr.bf16.gmra.mxu1 %v724_v57  ;;  %v641_v58 = vmul.f32 %v8745_v40, %v9409_v18  ;;  %v683_v49 = vadd.f32 %v9481_v36, %v661_v22 }
 0x158   : > { %v725_v44 = vpack.c.bf16 %v682_v42, %v681_v41  ;;  %v662_v45 = vmul.f32 %v9474_v25, %v640_v43 }
 0x159   : > { %v8747_v3 = vpop.eup %8746  ;;  %v663_v53 = vmul.f32 %v9474_v25, %v641_v58 }
 0x15a   : > { %v8749_v50 = vpop.eup %8748  ;;  %927 = vmatmul.mubr.bf16.gmra.mxu0 %v723_v27  ;;  %8114 = vmatprep.mubr.bf16.mxu1 %v725_v44  ;;  %v684_v51 = vadd.f32 %v9481_v36, %v662_v45  ;;  %v642_v52 = vmul.f32 %v8747_v3, %v9412_v19 }
 0x15b   : > { %936 = vmatprep.mubr.bf16.mxu0 %v12401_v48  ;;  %v643_v4 = vmul.f32 %v8749_v50, %v9428_v29  ;;  %v685_v55 = vadd.f32 %v9481_v36, %v663_v53 }
 0x15c   : > { %v726_v18 = vpack.c.bf16 %v684_v51, %v683_v49  ;;  %v664_v30 = vmul.f32 %v9474_v25, %v642_v52 }
 0x15d   : > { %v8751_v54 = vpop.eup %8750  ;;  %v665_v59 = vmul.f32 %v9474_v25, %v643_v4 }
 0x15e   : > { %v686_v23 = vadd.f32 %v9481_v36, %v664_v30  ;;  %v644_v56 = vmul.f32 %v8751_v54, %v9431_v32  ;;  %v12403_v32 = vmov 0.0  }
 0x15f   : > { %8115 = vmatmul.mubr.bf16.gmra.mxu1 %v726_v18  ;;  %v687_v29 = vadd.f32 %v9481_v36, %v665_v59  ;;  %8122 = vmatprep.subr.bf16.mxu1 %v12403_v32 }
 0x160   : > { %v727_v19 = vpack.c.bf16 %v686_v23, %v685_v55  ;;  %v666_v60 = vmul.f32 %v9474_v25, %v644_v56  ;;  %8146 = vmatprep.subr.bf16.mxu0 %v12403_v32  ;;  %v731_v25 = vlaneseq }
 0x162   : > { %937 = vmatmul.mubr.bf16.gmra.mxu0 %v724_v57  ;;  %8118 = vmatprep.mubr.bf16.mxu1 %v727_v19  ;;  %v688_v61 = vadd.f32 %v9481_v36, %v666_v60  ;;  %v9543_v36 = vshrl.u32 %v731_v25, 7 }
 0x163   : > { %946 = vmatprep.mubr.bf16.mxu0 %v12401_v48 }
 0x164   : > { %v728_v62 = vpack.c.bf16 %v688_v61, %v687_v29  ;;  %12449 = vst [vmem:[#allocation2_spill] sm:$0xff] %v9543_v36  ;;  %v12398_v63 = vsub.s32 1, %v9543_v36  ;;  %v12400_v7 = vsub.s32 0, %v9543_v36  ;;  %v12399_v10 = vsub.s32 2, %v9543_v36 }
 0x166   : > { %v9551_v31 = vrot.slane %v729_v1, %v12398_v63  ;;  %v9567_v21 = vrot.slane %v729_v1, %v12400_v7  ;;  %v9575_v46 = vrot.slane %v729_v1, %v12399_v10 }
 0x167   : > { %8119 = vmatmul.mubr.bf16.gmra.mxu1 %v728_v62 }
 0x168   : > { %8124 = vmatprep.mubr.msk.bf16.mxu1 %vm9194_vm0, %v12403_v32 }
 0x16a   : > { %947 = vmatmul.mubr.bf16.gmra.mxu0 %v725_v44 }
 0x16b   : > { %956 = vmatprep.mubr.bf16.mxu0 %v12401_v48 }
 0x172   : > { %957 = vmatmul.mubr.bf16.gmra.mxu0 %v726_v18 }
 0x173   : > { %966 = vmatprep.mubr.bf16.mxu0 %v12401_v48 }
 0x17a   : > { %967 = vmatmul.mubr.bf16.gmra.mxu0 %v727_v19 }
 0x17b   : > { %976 = vmatprep.mubr.bf16.mxu0 %v12401_v48 }
 0x182   : > { %977 = vmatmul.mubr.bf16.gmra.mxu0 %v728_v62 }
 0x183   : > { %8148 = vmatprep.mubr.msk.bf16.mxu0 %vm9194_vm0, %v12403_v32 }
 0x20a   : > { %v908_v0 = vpop.f32.mrf.mxu0 }
 0x20b   : > { %v909_v34 = vadd.f32 %v908_v0, %v9567_v21 }
 0x20c   : > { %v910_v2 = vpop.f32.mrf.mxu0 }
 0x20d   : > { %v911_v8 = vadd.f32 %v910_v2, %v9551_v31 }
 0x20e   : > { %v912_v5 = vpop.f32.mrf.mxu0 }
 0x20f   : > { %v9553_v6 = vpop.f32.mrf.mxu1  ;;  %v913_v12 = vadd.f32 %v912_v5, %v9567_v21 }
 0x210   : > { %v914_v38 = vpop.f32.mrf.mxu0 }
 0x211   : > { %v915_v9 = vadd.f32 %v914_v38, %v9551_v31  ;;  %v9558_v16 = vpop.f32.mrf.mxu1  ;;  %v9584_v37 = vpack.c.bf16 %v913_v12, %v909_v34 }
 0x212   : > { %v918_v11 = vpop.f32.mrf.mxu0 }
 0x213   : > { %v9561_v39 = vpack.c.bf16 %v915_v9, %v911_v8  ;;  %v9563_v17 = vpop.f32.mrf.mxu1  ;;  %v919_v4 = vadd.f32 %v918_v11, %v9567_v21 }
 0x214   : > { %v920_v20 = vpop.f32.mrf.mxu0 }
 0x215   : > { %v9569_v24 = vpop.f32.mrf.mxu1  ;;  %v1128_v26 = vsel %vm1123_vm1, %v9561_v39, 0  ;;  %v921_v35 = vadd.f32 %v920_v20, %v9551_v31 }
 0x216   : > { %v922_v27 = vpop.f32.mrf.mxu0  ;;  %8123 = vmatpush3.bf16.xpose.msra.mxu1 %v1128_v26 }
 0x217   : > { %v8112_v13 = vpop.f32.mrf.mxu1  ;;  %8128 = vmatprep.subr.bf16.mxu1 %v12403_v32  ;;  %v923_v49 = vadd.f32 %v922_v27, %v9567_v21 }
 0x218   : > { %v1046_v28 = vadd.f32 %v8112_v13, %v9575_v46  ;;  %v924_v33 = vpop.f32.mrf.mxu0 }
 0x219   : > { %v925_v14 = vadd.f32 %v924_v33, %v9551_v31  ;;  %v1037_v47 = vpop.f32.mrf.mxu1  ;;  %v9607_v56 = vpack.c.bf16 %v923_v49, %v919_v4 }
 0x21a   : > { %v1038_v57 = vadd.f32 %v1037_v47, %v9575_v46  ;;  %v928_v15 = vpop.f32.mrf.mxu0 }
 0x21b   : > { %v9586_v22 = vpack.c.bf16 %v925_v14, %v921_v35  ;;  %v8113_v40 = vpop.f32.mrf.mxu1  ;;  %v929_v20 = vadd.f32 %v928_v15, %v9567_v21 }
 0x21c   : > { %v1049_v41 = vadd.f32 %v8113_v40, %v9575_v46  ;;  %v930_v42 = vpop.f32.mrf.mxu0 }
 0x21d   : > { %v1040_v43 = vpop.f32.mrf.mxu1  ;;  %8125 = vmatmul.mubr.msk.bf16.vlgmr.msra.gmra.mxu1 %vm1123_vm1, %v9584_v37  ;;  %v1175_v58 = vsel %vm1123_vm1, %v9586_v22, 0  ;;  %v931_v18 = vadd.f32 %v930_v42, %v9551_v31 }
 0x21e   : > { %v9593_v44 = vpack.c.bf16 %v1049_v41, %v1046_v28  ;;  %v1041_v45 = vadd.f32 %v1040_v43, %v9575_v46  ;;  %v932_v3 = vpop.f32.mrf.mxu0  ;;  %8129 = vmatpush3.bf16.xpose.msra.mxu1 %v1175_v58  ;;  %8130 = vmatprep.mubr.msk.bf16.mxu1 %vm9194_vm0, %v12403_v32 }
 0x21f   : > { %v8116_v50 = vpop.f32.mrf.mxu1  ;;  %8134 = vmatprep.subr.bf16.mxu1 %v12403_v32  ;;  %v933_v5 = vadd.f32 %v932_v3, %v9567_v21 }
 0x220   : > { %12450 = vst [vmem:[#allocation3_spill] sm:$0xff] %v9593_v44  ;;  %v9600_v51 = vpack.c.bf16 %v1041_v45, %v1038_v57  ;;  %v1062_v52 = vadd.f32 %v8116_v50, %v9575_v46  ;;  %v934_v53 = vpop.f32.mrf.mxu0 }
 0x221   : > { %v935_v30 = vadd.f32 %v934_v53, %v9551_v31  ;;  %v1053_v54 = vpop.f32.mrf.mxu1  ;;  %v9630_v33 = vpack.c.bf16 %v933_v5, %v929_v20 }
 0x222   : > { %12451 = vst [vmem:[#allocation4_spill] sm:$0xff] %v9600_v51  ;;  %v1054_v55 = vadd.f32 %v1053_v54, %v9575_v46  ;;  %v938_v23 = vpop.f32.mrf.mxu0 }
 0x223   : > { %v9609_v59 = vpack.c.bf16 %v935_v30, %v931_v18  ;;  %v8117_v19 = vpop.f32.mrf.mxu1  ;;  %v939_v3 = vadd.f32 %v938_v23, %v9567_v21 }
 0x224   : > { %v1065_v60 = vadd.f32 %v8117_v19, %v9575_v46  ;;  %v940_v29 = vpop.f32.mrf.mxu0 }
 0x225   : > { %v1056_v61 = vpop.f32.mrf.mxu1  ;;  %8131 = vmatmul.mubr.msk.bf16.vlgmr.msra.gmra.mxu1 %vm1123_vm1, %v9607_v56  ;;  %v1222_v62 = vsel %vm1123_vm1, %v9609_v59, 0  ;;  %v941_v26 = vadd.f32 %v940_v29, %v9551_v31 }
 0x226   : > { %v9616_v0 = vpack.c.bf16 %v1065_v60, %v1062_v52  ;;  %v1057_v1 = vadd.f32 %v1056_v61, %v9575_v46  ;;  %v942_v2 = vpop.f32.mrf.mxu0  ;;  %8135 = vmatpush3.bf16.xpose.msra.mxu1 %v1222_v62  ;;  %8136 = vmatprep.mubr.msk.bf16.mxu1 %vm9194_vm0, %v12403_v32 }
 0x227   : > { %v8120_v38 = vpop.f32.mrf.mxu1  ;;  %8140 = vmatprep.subr.bf16.mxu1 %v12403_v32  ;;  %v943_v43 = vadd.f32 %v942_v2, %v9567_v21 }
 0x228   : > { %12452 = vst [vmem:[#allocation5_spill] sm:$0xff] %v9616_v0  ;;  %v9623_v8 = vpack.c.bf16 %v1057_v1, %v1054_v55  ;;  %v1078_v9 = vadd.f32 %v8120_v38, %v9575_v46  ;;  %v944_v11 = vpop.f32.mrf.mxu0 }
 0x229   : > { %v945_v27 = vadd.f32 %v944_v11, %v9551_v31  ;;  %v1069_v12 = vpop.f32.mrf.mxu1  ;;  %v9651_v53 = vpack.c.bf16 %v943_v43, %v939_v3  ;;  %v1022_v3 = vadd.f32 %v9558_v16, %v9575_v46  ;;  %v1033_v16 = vadd.f32 %v9563_v17, %v9575_v46 }
 0x22a   : > { %12453 = vst [vmem:[#allocation6_spill] sm:$0xff] %v9623_v8  ;;  %v1070_v13 = vadd.f32 %v1069_v12, %v9575_v46  ;;  %v948_v28 = vpop.f32.mrf.mxu0  ;;  %v1088_v17 = vand.u32 127, %v731_v25 }
 0x22b   : > { %v9632_v34 = vpack.c.bf16 %v945_v27, %v941_v26  ;;  %v8121_v35 = vpop.f32.mrf.mxu1  ;;  %v949_v19 = vadd.f32 %v948_v28, %v9567_v21 }
 0x22c   : > { %v1081_v14 = vadd.f32 %v8121_v35, %v9575_v46  ;;  %v950_v47 = vpop.f32.mrf.mxu0  ;;  %vm9734_vm2 = vcmp.le.s32.totalorder %v1088_v17, %v9543_v36 }
 0x22d   : > { %v1072_v57 = vpop.f32.mrf.mxu1  ;;  %8137 = vmatmul.mubr.msk.bf16.vlgmr.msra.gmra.mxu1 %vm1123_vm1, %v9630_v33  ;;  %v1269_v15 = vsel %vm1123_vm1, %v9632_v34, 0  ;;  %v951_v49 = vadd.f32 %v950_v47, %v9551_v31 }
 0x22e   : > { %v9639_v40 = vpack.c.bf16 %v1081_v14, %v1078_v9  ;;  %v1073_v41 = vadd.f32 %v1072_v57, %v9575_v46  ;;  %v952_v42 = vpop.f32.mrf.mxu0  ;;  %8141 = vmatpush3.bf16.xpose.msra.mxu1 %v1269_v15  ;;  %8142 = vmatprep.mubr.msk.bf16.mxu1 %vm9194_vm0, %v12403_v32  ;;  %v1025_v15 = vadd.f32 %v9569_v24, %v9575_v46 }
 0x22f   : > { %8152 = vmatprep.subr.bf16.mxu1 %v12403_v32  ;;  %v953_v55 = vadd.f32 %v952_v42, %v9567_v21 }
 0x230   : > { %v9646_v58 = vpack.c.bf16 %v1073_v41, %v1070_v13  ;;  %v954_v45 = vpop.f32.mrf.mxu0 }
 0x231   : > { %v955_v50 = vadd.f32 %v954_v45, %v9551_v31  ;;  %v9666_v62 = vpack.c.bf16 %v953_v55, %v949_v19 }
 0x232   : > { %v958_v52 = vpop.f32.mrf.mxu0 }
 0x233   : > { %v9653_v4 = vpack.c.bf16 %v955_v50, %v951_v49  ;;  %v959_v20 = vadd.f32 %v958_v52, %v9567_v21  ;;  %v9704_v52 = vpack.c.bf16 %v1025_v15, %v1022_v3 }
 0x234   : > { %v960_v18 = vpop.f32.mrf.mxu0 }
 0x235   : > { %8143 = vmatmul.mubr.msk.bf16.vlgmr.msra.gmra.mxu1 %vm1123_vm1, %v9651_v53  ;;  %v1316_v30 = vsel %vm1123_vm1, %v9653_v4, 0  ;;  %v961_v60 = vadd.f32 %v960_v18, %v9551_v31  ;;  %12454 = vst [vmem:[#allocation7_spill] sm:$0xff] %v9704_v52 }
 0x236   : > { %v962_v54 = vpop.f32.mrf.mxu0  ;;  %8147 = vmatpush3.bf16.xpose.msra.mxu0 %v1316_v30  ;;  %8154 = vmatprep.mubr.msk.bf16.mxu1 %vm9194_vm0, %v12403_v32  ;;  %v1030_v30 = vadd.f32 %v9553_v6, %v9575_v46 }
 0x237   : > { %8158 = vmatprep.subr.bf16.mxu0 %v12403_v32  ;;  %v963_v9 = vadd.f32 %v962_v54, %v9567_v21 }
 0x238   : > { %v964_v23 = vpop.f32.mrf.mxu0  ;;  %v9723_v55 = vpack.c.bf16 %v1033_v16, %v1030_v30 }
 0x239   : > { %v965_v29 = vadd.f32 %v964_v23, %v9551_v31  ;;  %v9681_v13 = vpack.c.bf16 %v963_v9, %v959_v20 }
 0x23a   : > { %v968_v61 = vpop.f32.mrf.mxu0  ;;  %12455 = vst [vmem:[#allocation8_spill] sm:$0xff] %v9723_v55 }
 0x23b   : > { %v9668_v1 = vpack.c.bf16 %v965_v29, %v961_v60  ;;  %v969_v42 = vadd.f32 %v968_v61, %v9567_v21  ;;  %v12458_v29 = vmov 0 }
 0x23c   : > { %v970_v2 = vpop.f32.mrf.mxu0 }
 0x23d   : > { %8149 = vmatmul.mubr.msk.bf16.vlgmr.msra.gmra.mxu0 %vm1123_vm1, %v9666_v62  ;;  %v1363_v5 = vsel %vm1123_vm1, %v9668_v1, 0  ;;  %v971_v26 = vadd.f32 %v970_v2, %v9551_v31 }
 0x23e   : > { %v972_v38 = vpop.f32.mrf.mxu0  ;;  %8153 = vmatpush3.bf16.xpose.msra.mxu1 %v1363_v5  ;;  %8160 = vmatprep.mubr.msk.bf16.mxu0 %vm9194_vm0, %v12403_v32 }
 0x23f   : > { %8164 = vmatprep.subr.bf16.mxu1 %v12403_v32  ;;  %v973_v57 = vadd.f32 %v972_v38, %v9567_v21 }
 0x240   : > { %v974_v11 = vpop.f32.mrf.mxu0 }
 0x241   : > { %v975_v27 = vadd.f32 %v974_v11, %v9551_v31  ;;  %v9700_v49 = vpack.c.bf16 %v973_v57, %v969_v42 }
 0x242   : > { %v978_v12 = vpop.f32.mrf.mxu0 }
 0x243   : > { %v9683_v28 = vpack.c.bf16 %v975_v27, %v971_v26  ;;  %v979_v18 = vadd.f32 %v978_v12, %v9567_v21 }
 0x244   : > { %v980_v35 = vpop.f32.mrf.mxu0 }
 0x245   : > { %8155 = vmatmul.mubr.msk.bf16.vlgmr.msra.gmra.mxu1 %vm1123_vm1, %v9681_v13  ;;  %v1410_v14 = vsel %vm1123_vm1, %v9683_v28, 0  ;;  %v981_v43 = vadd.f32 %v980_v35, %v9551_v31 }
 0x246   : > { %v982_v47 = vpop.f32.mrf.mxu0  ;;  %8159 = vmatpush3.bf16.xpose.msra.mxu0 %v1410_v14  ;;  %8166 = vmatprep.mubr.msk.bf16.mxu1 %vm9194_vm0, %v12403_v32 }
 0x247   : > { %8170 = vmatprep.subr.bf16.mxu0 %v12403_v32 }
 0x248   : > { %v984_v41 = vpop.f32.mrf.mxu0 }
 0x249   : > { %v985_v45 = vadd.f32 %v984_v41, %v9551_v31  ;;  %v983_v31 = vadd.f32 %v982_v47, %v9567_v21  ;;  %v1086_v21 = vadd.s32 8, %v9543_v36 }
 0x24b   : > { %v9702_v50 = vpack.c.bf16 %v985_v45, %v981_v43  ;;  %v9721_v54 = vpack.c.bf16 %v983_v31, %v979_v18  ;;  %vm9742_vm4 = vcmp.le.s32.totalorder %v1088_v17, %v1086_v21 }
 0x24c   : > { %v12459_v29 = vsel %vm9742_vm4, 4294967295, %v12458_v29 }
 0x24d   : > { %8161 = vmatmul.mubr.msk.bf16.vlgmr.msra.gmra.mxu0 %vm1123_vm1, %v9700_v49  ;;  %v1457_v24 = vsel %vm1123_vm1, %v9702_v50, 0  ;;  %12460 = vst [vmem:[#allocation9_spill] sm:$0xff] %v12459_v29 }
 0x24e   : > { %8165 = vmatpush3.bf16.xpose.msra.mxu1 %v1457_v24  ;;  %8171 = vmatpush3.bf16.msra.mxu0 %v9704_v52 }
 0x24f   : > { %8176 = vmatprep.subr.bf16.mxu1 %v12403_v32  ;;  %8172 = vmatprep.mubr.msk.bf16.mxu0 %vm9194_vm0, %v12403_v32 }
 0x250   : > { %8182 = vmatprep.subr.bf16.mxu0 %v12403_v32 }
 0x255   : > { %8167 = vmatmul.mubr.msk.bf16.vlgmr.msra.gmra.mxu1 %vm1123_vm1, %v9721_v54 }
 0x256   : > { %8177 = vmatpush3.bf16.msra.mxu1 %v9723_v55  ;;  %8178 = vmatprep.mubr.msk.bf16.mxu1 %vm9194_vm0, %v12403_v32 }
 0x257   : > { %8188 = vmatprep.subr.bf16.mxu1 %v12403_v32 }
 0x2dd   : > { %v1164_v46 = vpop.f32.mrf.mxu1 }
 0x2de   : > { %v1500_v23 = vmul.f32 0.17677669, %v1164_v46 }
 0x2df   : > { %v8126_v19 = vpop.f32.mrf.mxu1 }
 0x2e0   : > { %v9740_v60 = vsel %vm9734_vm2, %v1500_v23, -1e+30 }
 0x2e1   : > { %v1167_v25 = vpop.f32.mrf.mxu1  ;;  %v1537_v61 = vsel %vm1536_vm3, %v9740_v60, -inf }
 0x2e2   : > { %v1501_v2 = vmul.f32 0.17677669, %v1167_v25  ;;  %1538 = vmax.xlane.f32.xlu0 %v1537_v61 }
 0x2e3   : > { %v8127_v5 = vpop.f32.mrf.mxu1 }
 0x2e4   : > { %v9750_v38 = vsel %vm9742_vm4, %v1501_v2, -1e+30 }
 0x2e5   : > { %v1211_v9 = vpop.f32.mrf.mxu1  ;;  %v1540_v11 = vsel %vm1536_vm3, %v9750_v38, -inf }
 0x2e6   : > { %v1502_v20 = vmul.f32 0.17677669, %v1211_v9  ;;  %1541 = vmax.xlane.f32.xlu1 %v1540_v11 }
 0x2e7   : > { %v8132_v26 = vpop.f32.mrf.mxu1 }
 0x2e8   : > { %v9756_v27 = vsel %vm9734_vm2, %v1502_v20, -1e+30 }
 0x2e9   : > { %v1214_v12 = vpop.f32.mrf.mxu1  ;;  %v1543_v35 = vsel %vm1536_vm3, %v9756_v27, -inf }
 0x2ea   : > { %v1503_v14 = vmul.f32 0.17677669, %v1214_v12  ;;  %1544 = vmax.xlane.f32.xlu0 %v1543_v35 }
 0x2eb   : > { %v8133_v47 = vpop.f32.mrf.mxu1 }
 0x2ec   : > { %v9762_v57 = vsel %vm9742_vm4, %v1503_v14, -1e+30 }
 0x2ed   : > { %v1258_v15 = vpop.f32.mrf.mxu1  ;;  %v1546_v41 = vsel %vm1536_vm3, %v9762_v57, -inf }
 0x2ee   : > { %v1504_v42 = vmul.f32 0.17677669, %v1258_v15  ;;  %1547 = vmax.xlane.f32.xlu1 %v1546_v41 }
 0x2ef   : > { %v8138_v43 = vpop.f32.mrf.mxu1 }
 0x2f0   : > { %v9768_v45 = vsel %vm9734_vm2, %v1504_v42, -1e+30 }
 0x2f1   : > { %v1261_v3 = vpop.f32.mrf.mxu1  ;;  %v1549_v24 = vsel %vm1536_vm3, %v9768_v45, -inf }
 0x2f2   : > { %v1505_v31 = vmul.f32 0.17677669, %v1261_v3  ;;  %1550 = vmax.xlane.f32.xlu0 %v1549_v24 }
 0x2f3   : > { %v8139_v16 = vpop.f32.mrf.mxu1 }
 0x2f4   : > { %v9774_v18 = vsel %vm9742_vm4, %v1505_v31, -1e+30 }
 0x2f5   : > { %v1305_v30 = vpop.f32.mrf.mxu1  ;;  %v1552_v17 = vsel %vm1536_vm3, %v9774_v18, -inf }
 0x2f6   : > { %v1506_v21 = vmul.f32 0.17677669, %v1305_v30  ;;  %1553 = vmax.xlane.f32.xlu1 %v1552_v17 }
 0x2f7   : > { %v8144_v46 = vpop.f32.mrf.mxu1 }
 0x2f8   : > { %v9780_v23 = vsel %vm9734_vm2, %v1506_v21, -1e+30 }
 0x2f9   : > { %v1308_v19 = vpop.f32.mrf.mxu1  ;;  %v1555_v25 = vsel %vm1536_vm3, %v9780_v23, -inf }
 0x2fa   : > { %v1507_v61 = vmul.f32 0.17677669, %v1308_v19  ;;  %1556 = vmax.xlane.f32.xlu0 %v1555_v25 }
 0x2fb   : > { %v8145_v2 = vpop.f32.mrf.mxu1 }
 0x2fc   : > { %v9786_v5 = vsel %vm9742_vm4, %v1507_v61, -1e+30 }
 0x2fd   : > { %v1352_v9 = vpop.f32.mrf.mxu0  ;;  %v1558_v11 = vsel %vm1536_vm3, %v9786_v5, -inf }
 0x2fe   : > { %v1508_v20 = vmul.f32 0.17677669, %v1352_v9  ;;  %1559 = vmax.xlane.f32.xlu1 %v1558_v11 }
 0x2ff   : > { %v8150_v26 = vpop.f32.mrf.mxu0 }
 0x300   : > { %v9792_v12 = vsel %vm9734_vm2, %v1508_v20, -1e+30 }
 0x301   : > { %v1355_v35 = vpop.f32.mrf.mxu0  ;;  %v1561_v14 = vsel %vm1536_vm3, %v9792_v12, -inf }
 0x302   : > { %v1509_v47 = vmul.f32 0.17677669, %v1355_v35  ;;  %1562 = vmax.xlane.f32.xlu0 %v1561_v14 }
 0x303   : > { %v8151_v15 = vpop.f32.mrf.mxu0 }
 0x304   : > { %v9798_v41 = vsel %vm9742_vm4, %v1509_v47, -1e+30 }
 0x305   : > { %v1399_v42 = vpop.f32.mrf.mxu1  ;;  %v1564_v43 = vsel %vm1536_vm3, %v9798_v41, -inf }
 0x306   : > { %v1510_v3 = vmul.f32 0.17677669, %v1399_v42  ;;  %1565 = vmax.xlane.f32.xlu1 %v1564_v43 }
 0x307   : > { %v8156_v24 = vpop.f32.mrf.mxu1 }
 0x308   : > { %v9804_v31 = vsel %vm9734_vm2, %v1510_v3, -1e+30 }
 0x309   : > { %v1402_v16 = vpop.f32.mrf.mxu1  ;;  %v1567_v30 = vsel %vm1536_vm3, %v9804_v31, -inf }
 0x30a   : > { %v1511_v17 = vmul.f32 0.17677669, %v1402_v16  ;;  %1568 = vmax.xlane.f32.xlu0 %v1567_v30 }
 0x30b   : > { %v8157_v21 = vpop.f32.mrf.mxu1 }
 0x30c   : > { %v9810_v46 = vsel %vm9742_vm4, %v1511_v17, -1e+30 }
 0x30d   : > { %v1446_v19 = vpop.f32.mrf.mxu0  ;;  %v1570_v25 = vsel %vm1536_vm3, %v9810_v46, -inf }
 0x30e   : > { %v1512_v61 = vmul.f32 0.17677669, %v1446_v19  ;;  %1571 = vmax.xlane.f32.xlu1 %v1570_v25 }
 0x30f   : > { %v8162_v2 = vpop.f32.mrf.mxu0 }
 0x310   : > { %v9816_v9 = vsel %vm9734_vm2, %v1512_v61, -1e+30 }
 0x311   : > { %v1449_v11 = vpop.f32.mrf.mxu0  ;;  %v1573_v20 = vsel %vm1536_vm3, %v9816_v9, -inf }
 0x312   : > { %v1513_v26 = vmul.f32 0.17677669, %v1449_v11  ;;  %1574 = vmax.xlane.f32.xlu0 %v1573_v20 }
 0x313   : > { %v8163_v35 = vpop.f32.mrf.mxu0 }
 0x314   : > { %v9822_v14 = vsel %vm9742_vm4, %v1513_v26, -1e+30 }
 0x315   : > { %v1493_v47 = vpop.f32.mrf.mxu1  ;;  %v1576_v15 = vsel %vm1536_vm3, %v9822_v14, -inf }
 0x316   : > { %v1514_v42 = vmul.f32 0.17677669, %v1493_v47  ;;  %1577 = vmax.xlane.f32.xlu1 %v1576_v15 }
 0x317   : > { %v8168_v43 = vpop.f32.mrf.mxu1 }
 0x318   : > { %v9828_v3 = vsel %vm9734_vm2, %v1514_v42, -1e+30 }
 0x319   : > { %v1496_v24 = vpop.f32.mrf.mxu1  ;;  %v1579_v16 = vsel %vm1536_vm3, %v9828_v3, -inf }
 0x31a   : > { %v1515_v30 = vmul.f32 0.17677669, %v1496_v24  ;;  %1580 = vmax.xlane.f32.xlu0 %v1579_v16 }
 0x31b   : > { %v8169_v17 = vpop.f32.mrf.mxu1 }
 0x31c   : > { %v9834_v21 = vsel %vm9742_vm4, %v1515_v30, -1e+30 }
 0x31d   : > { %v1582_v19 = vsel %vm1536_vm3, %v9834_v21, -inf }
 0x31e   : > { %1583 = vmax.xlane.f32.xlu1 %v1582_v19 }
 0x36b   : > { %v1539_v25 = vpop.xlane.xlu0 %1538 }
 0x36c   : > { %v1585_v61 = vsub.f32 %v9740_v60, %v1539_v25 }
 0x36e   : > { %v1601_v2 = vmul.f32 1.442695, %v1585_v61 }
 0x36f   : > { %v1542_v11 = vpop.xlane.xlu1 %1541 }
 0x370   : > { %8752 = vpow2.f32 %v1601_v2  ;;  %v1586_v20 = vsub.f32 %v9750_v38, %v1542_v11 }
 0x372   : > { %v1603_v26 = vmul.f32 1.442695, %v1586_v20 }
 0x373   : > { %v1545_v35 = vpop.xlane.xlu0 %1544 }
 0x374   : > { %8754 = vpow2.f32 %v1603_v26  ;;  %v1587_v47 = vsub.f32 %v9756_v27, %v1545_v35 }
 0x376   : > { %v1605_v15 = vmul.f32 1.442695, %v1587_v47 }
 0x377   : > { %v1548_v42 = vpop.xlane.xlu1 %1547 }
 0x378   : > { %8756 = vpow2.f32 %v1605_v15  ;;  %v1588_v43 = vsub.f32 %v9762_v57, %v1548_v42 }
 0x37a   : > { %v1607_v24 = vmul.f32 1.442695, %v1588_v43 }
 0x37b   : > { %v1551_v16 = vpop.xlane.xlu0 %1550 }
 0x37c   : > { %8758 = vpow2.f32 %v1607_v24  ;;  %v1589_v60 = vsub.f32 %v9768_v45, %v1551_v16 }
 0x37d   : > { %v9843_v30 = vpop.eup %8752 }
 0x37e   : > { %v1609_v17 = vmul.f32 1.442695, %v1589_v60  ;;  %v1633_v38 = vsel %vm1536_vm3, %v9843_v30, 0.0 }
 0x37f   : > { %v1554_v19 = vpop.xlane.xlu1 %1553  ;;  %1634 = vadd.xlane.f32.xlu0 %v1633_v38 }
 0x380   : > { %8760 = vpow2.f32 %v1609_v17  ;;  %v1590_v27 = vsub.f32 %v9774_v18, %v1554_v19 }
 0x381   : > { %v9848_v25 = vpop.eup %8754 }
 0x382   : > { %v1611_v61 = vmul.f32 1.442695, %v1590_v27  ;;  %v1636_v57 = vsel %vm1536_vm3, %v9848_v25, 0.0 }
 0x383   : > { %v1557_v2 = vpop.xlane.xlu0 %1556  ;;  %1637 = vadd.xlane.f32.xlu1 %v1636_v57 }
 0x384   : > { %8762 = vpow2.f32 %v1611_v61  ;;  %v1591_v45 = vsub.f32 %v9780_v23, %v1557_v2 }
 0x385   : > { %v9853_v11 = vpop.eup %8756 }
 0x386   : > { %v1613_v20 = vmul.f32 1.442695, %v1591_v45  ;;  %v1639_v26 = vsel %vm1536_vm3, %v9853_v11, 0.0 }
 0x387   : > { %v1560_v35 = vpop.xlane.xlu1 %1559  ;;  %1640 = vadd.xlane.f32.xlu0 %v1639_v26 }
 0x388   : > { %8764 = vpow2.f32 %v1613_v20  ;;  %v1592_v18 = vsub.f32 %v9786_v5, %v1560_v35 }
 0x389   : > { %v9858_v47 = vpop.eup %8758 }
 0x38a   : > { %v1615_v15 = vmul.f32 1.442695, %v1592_v18  ;;  %v1642_v42 = vsel %vm1536_vm3, %v9858_v47, 0.0 }
 0x38b   : > { %v1563_v43 = vpop.xlane.xlu0 %1562  ;;  %1643 = vadd.xlane.f32.xlu1 %v1642_v42 }
 0x38c   : > { %8766 = vpow2.f32 %v1615_v15  ;;  %v1593_v23 = vsub.f32 %v9792_v12, %v1563_v43 }
 0x38d   : > { %v9863_v24 = vpop.eup %8760 }
 0x38e   : > { %v1617_v16 = vmul.f32 1.442695, %v1593_v23  ;;  %v1645_v60 = vsel %vm1536_vm3, %v9863_v24, 0.0 }
 0x38f   : > { %v1566_v17 = vpop.xlane.xlu1 %1565  ;;  %1646 = vadd.xlane.f32.xlu0 %v1645_v60 }
 0x390   : > { %8768 = vpow2.f32 %v1617_v16  ;;  %v1594_v5 = vsub.f32 %v9798_v41, %v1566_v17 }
 0x391   : > { %v9868_v38 = vpop.eup %8762 }
 0x392   : > { %v1619_v19 = vmul.f32 1.442695, %v1594_v5  ;;  %v1648_v27 = vsel %vm1536_vm3, %v9868_v38, 0.0 }
 0x393   : > { %v1569_v61 = vpop.xlane.xlu0 %1568  ;;  %1649 = vadd.xlane.f32.xlu1 %v1648_v27 }
 0x394   : > { %8770 = vpow2.f32 %v1619_v19  ;;  %v1595_v12 = vsub.f32 %v9804_v31, %v1569_v61 }
 0x395   : > { %v9873_v57 = vpop.eup %8764 }
 0x396   : > { %v1621_v2 = vmul.f32 1.442695, %v1595_v12  ;;  %v1651_v45 = vsel %vm1536_vm3, %v9873_v57, 0.0 }
 0x397   : > { %v1572_v20 = vpop.xlane.xlu1 %1571  ;;  %1652 = vadd.xlane.f32.xlu0 %v1651_v45 }
 0x398   : > { %8772 = vpow2.f32 %v1621_v2  ;;  %v1596_v41 = vsub.f32 %v9810_v46, %v1572_v20 }
 0x399   : > { %v9878_v26 = vpop.eup %8766 }
 0x39a   : > { %v1623_v35 = vmul.f32 1.442695, %v1596_v41  ;;  %v1654_v18 = vsel %vm1536_vm3, %v9878_v26, 0.0 }
 0x39b   : > { %v1575_v15 = vpop.xlane.xlu0 %1574  ;;  %1655 = vadd.xlane.f32.xlu1 %v1654_v18 }
 0x39c   : > { %8774 = vpow2.f32 %v1623_v35  ;;  %v1597_v31 = vsub.f32 %v9816_v9, %v1575_v15 }
 0x39d   : > { %v9883_v42 = vpop.eup %8768 }
 0x39e   : > { %v1625_v43 = vmul.f32 1.442695, %v1597_v31  ;;  %v1657_v23 = vsel %vm1536_vm3, %v9883_v42, 0.0 }
 0x39f   : > { %v1578_v16 = vpop.xlane.xlu1 %1577  ;;  %1658 = vadd.xlane.f32.xlu0 %v1657_v23 }
 0x3a0   : > { %8776 = vpow2.f32 %v1625_v43  ;;  %v1598_v46 = vsub.f32 %v9822_v14, %v1578_v16 }
 0x3a1   : > { %v9888_v60 = vpop.eup %8770 }
 0x3a2   : > { %v1627_v17 = vmul.f32 1.442695, %v1598_v46  ;;  %v1660_v5 = vsel %vm1536_vm3, %v9888_v60, 0.0 }
 0x3a3   : > { %v1581_v19 = vpop.xlane.xlu0 %1580  ;;  %1661 = vadd.xlane.f32.xlu1 %v1660_v5 }
 0x3a4   : > { %8778 = vpow2.f32 %v1627_v17  ;;  %v1599_v9 = vsub.f32 %v9828_v3, %v1581_v19 }
 0x3a5   : > { %v9893_v27 = vpop.eup %8772 }
 0x3a6   : > { %v1629_v61 = vmul.f32 1.442695, %v1599_v9  ;;  %v1663_v12 = vsel %vm1536_vm3, %v9893_v27, 0.0 }
 0x3a7   : > { %1664 = vadd.xlane.f32.xlu0 %v1663_v12  ;;  %v1584_v15 = vpop.xlane.xlu1 %1583 }
 0x3a8   : > { %8780 = vpow2.f32 %v1629_v61  ;;  %v1600_v31 = vsub.f32 %v9834_v21, %v1584_v15 }
 0x3a9   : > { %v9897_v14 = vpop.eup %8774 }
 0x3aa   : > { %v1666_v2 = vsel %vm1536_vm3, %v9897_v14, 0.0  ;;  %v1631_v43 = vmul.f32 1.442695, %v1600_v31 }
 0x3ab   : > { %1667 = vadd.xlane.f32.xlu1 %v1666_v2 }
 0x3ac   : > { %8782 = vpow2.f32 %v1631_v43 }
 0x3ad   : > { %v9901_v45 = vpop.eup %8776 }
 0x3ae   : > { %v1669_v20 = vsel %vm1536_vm3, %v9901_v45, 0.0 }
 0x3af   : > { %1670 = vadd.xlane.f32.xlu0 %v1669_v20 }
 0x3b1   : > { %v9905_v3 = vpop.eup %8778 }
 0x3b2   : > { %v1672_v41 = vsel %vm1536_vm3, %v9905_v3, 0.0 }
 0x3b3   : > { %1673 = vadd.xlane.f32.xlu1 %v1672_v41 }
 0x3b5   : > { %v9909_v35 = vpop.eup %8780 }
 0x3b6   : > { %v1675_v18 = vsel %vm1536_vm3, %v9909_v35, 0.0 }
 0x3b7   : > { %1676 = vadd.xlane.f32.xlu0 %v1675_v18 }
 0x3b9   : > { %v9932_v23 = vpop.eup %8782 }
 0x3ba   : > { %v1678_v21 = vsel %vm1536_vm3, %v9932_v23, 0.0 }
 0x3c4   : > { %2146 = vrot.lane.b32.xlu1 %v9586_v22, %s9195_s17 }
 0x3c8   : > { %2090 = vrot.lane.b32.xlu1 %v9584_v37, %s9195_s17 }
 0x3cd   : > { %2093 = vrot.lane.b32.xlu0 %v9561_v39, %s9195_s17 }
 0x3d1   : > { %2143 = vrot.lane.b32.xlu0 %v9607_v56, %s9195_s17 }
 0x3d5   : > { %2196 = vrot.lane.b32.xlu0 %v9630_v33, %s9195_s17 }
 0x3d9   : > { %2249 = vrot.lane.b32.xlu0 %v9651_v53, %s9195_s17 }
 0x3dd   : > { %2302 = vrot.lane.b32.xlu0 %v9666_v62, %s9195_s17 }
 0x3e1   : > { %2355 = vrot.lane.b32.xlu0 %v9681_v13, %s9195_s17 }
 0x3e5   : > { %2408 = vrot.lane.b32.xlu0 %v9700_v49, %s9195_s17 }
 0x3ec   : > { %1679 = vadd.xlane.f32.xlu1 %v1678_v21 }
 0x3fd   : > { %2199 = vrot.lane.b32.xlu1 %v9609_v59, %s9195_s17 }
 0x401   : > { %2252 = vrot.lane.b32.xlu1 %v9632_v34, %s9195_s17 }
 0x405   : > { %2305 = vrot.lane.b32.xlu1 %v9653_v4, %s9195_s17 }
 0x408   : > { %v1635_v16 = vpop.xlane.xlu0 %1634 }
 0x409   : > { %2358 = vrot.lane.b32.xlu1 %v9668_v1, %s9195_s17  ;;  %8784 = vrcp.f32 %v1635_v16 }
 0x40c   : > { %v1638_v46 = vpop.xlane.xlu1 %1637 }
 0x40d   : > { %8786 = vrcp.f32 %v1638_v46  ;;  %2411 = vrot.lane.b32.xlu1 %v9683_v28, %s9195_s17 }
 0x410   : > { %v1641_v17 = vpop.xlane.xlu0 %1640 }
 0x411   : > { %2464 = vrot.lane.b32.xlu1 %v9702_v50, %s9195_s17  ;;  %8788 = vrcp.f32 %v1641_v17 }
 0x414   : > { %v1644_v5 = vpop.xlane.xlu1 %1643 }
 0x415   : > { %8790 = vrcp.f32 %v1644_v5  ;;  %2461 = vrot.lane.b32.xlu1 %v9721_v54, %s9195_s17 }
 0x416   : > { %v8785_v19 = vpop.eup %8784 }
 0x417   : > { %v1697_v12 = vmul.f32 %v8785_v19, %v9843_v30 }
 0x418   : > { %v1647_v9 = vpop.xlane.xlu0 %1646 }
 0x419   : > { %8792 = vrcp.f32 %v1647_v9 }
 0x41a   : > { %v8787_v61 = vpop.eup %8786 }
 0x41b   : > { %v1698_v2 = vmul.f32 %v8787_v61, %v9848_v25 }
 0x41c   : > { %v1650_v20 = vpop.xlane.xlu1 %1649 }
 0x41d   : > { %8794 = vrcp.f32 %v1650_v20  ;;  %v1713_v41 = vpack.c.bf16 %v1698_v2, %v1697_v12 }
 0x41e   : > { %v8789_v18 = vpop.eup %8788 }
 0x41f   : > { %8173 = vmatmul.mubr.msk.bf16.vlgmr.msra.gmra.mxu0 %vm1536_vm3, %v1713_v41  ;;  %v1699_v30 = vmul.f32 %v8789_v18, %v9853_v11 }
 0x420   : > { %8183 = vmatpush3.bf16.msra.mxu0 %v9600_v51  ;;  %v1653_v15 = vpop.xlane.xlu0 %1652  ;;  %8184 = vmatprep.mubr.msk.bf16.mxu0 %vm9194_vm0, %v12403_v32 }
 0x421   : > { %8194 = vmatprep.subr.bf16.mxu0 %v12403_v32  ;;  %8796 = vrcp.f32 %v1653_v15 }
 0x422   : > { %v8791_v31 = vpop.eup %8790 }
 0x423   : > { %v1700_v25 = vmul.f32 %v8791_v31, %v9858_v47 }
 0x424   : > { %v1656_v43 = vpop.xlane.xlu1 %1655 }
 0x425   : > { %8798 = vrcp.f32 %v1656_v43  ;;  %v1714_v21 = vpack.c.bf16 %v1700_v25, %v1699_v30 }
 0x426   : > { %v8793_v16 = vpop.eup %8792 }
 0x427   : > { %8179 = vmatmul.mubr.msk.bf16.vlgmr.msra.gmra.mxu1 %vm1536_vm3, %v1714_v21  ;;  %v1701_v11 = vmul.f32 %v8793_v16, %v9863_v24 }
 0x428   : > { %8189 = vmatpush3.bf16.msra.mxu1 %v9593_v44  ;;  %v1659_v46 = vpop.xlane.xlu0 %1658  ;;  %8190 = vmatprep.mubr.msk.bf16.mxu1 %vm9194_vm0, %v12403_v32 }
 0x429   : > { %8200 = vmatprep.subr.bf16.mxu1 %v12403_v32  ;;  %8800 = vrcp.f32 %v1659_v46 }
 0x42a   : > { %v8795_v17 = vpop.eup %8794 }
 0x42b   : > { %v1702_v47 = vmul.f32 %v8795_v17, %v9868_v38 }
 0x42c   : > { %v1662_v5 = vpop.xlane.xlu1 %1661 }
 0x42d   : > { %8802 = vrcp.f32 %v1662_v5  ;;  %v1715_v19 = vpack.c.bf16 %v1702_v47, %v1701_v11 }
 0x42e   : > { %v8797_v9 = vpop.eup %8796 }
 0x42f   : > { %8185 = vmatmul.mubr.msk.bf16.vlgmr.msra.gmra.mxu0 %vm1536_vm3, %v1715_v19  ;;  %v1703_v24 = vmul.f32 %v8797_v9, %v9873_v57 }
 0x430   : > { %8195 = vmatpush3.bf16.msra.mxu0 %v9623_v8  ;;  %v1665_v61 = vpop.xlane.xlu0 %1664  ;;  %8196 = vmatprep.mubr.msk.bf16.mxu0 %vm9194_vm0, %v12403_v32 }
 0x431   : > { %8206 = vmatprep.subr.bf16.mxu0 %v12403_v32  ;;  %8804 = vrcp.f32 %v1665_v61 }
 0x432   : > { %v8799_v12 = vpop.eup %8798 }
 0x433   : > { %v1704_v38 = vmul.f32 %v8799_v12, %v9878_v26 }
 0x434   : > { %v1668_v2 = vpop.xlane.xlu1 %1667 }
 0x435   : > { %8806 = vrcp.f32 %v1668_v2  ;;  %v1716_v20 = vpack.c.bf16 %v1704_v38, %v1703_v24 }
 0x436   : > { %v8801_v41 = vpop.eup %8800 }
 0x437   : > { %8191 = vmatmul.mubr.msk.bf16.vlgmr.msra.gmra.mxu1 %vm1536_vm3, %v1716_v20  ;;  %v1705_v57 = vmul.f32 %v8801_v41, %v9883_v42 }
 0x438   : > { %8201 = vmatpush3.bf16.msra.mxu1 %v9616_v0  ;;  %v1671_v18 = vpop.xlane.xlu0 %1670  ;;  %8202 = vmatprep.mubr.msk.bf16.mxu1 %vm9194_vm0, %v12403_v32 }
 0x439   : > { %8212 = vmatprep.subr.bf16.mxu1 %v12403_v32  ;;  %8808 = vrcp.f32 %v1671_v18 }
 0x43a   : > { %v8803_v15 = vpop.eup %8802 }
 0x43b   : > { %v1706_v26 = vmul.f32 %v8803_v15, %v9888_v60 }
 0x43c   : > { %v1674_v31 = vpop.xlane.xlu1 %1673 }
 0x43d   : > { %8810 = vrcp.f32 %v1674_v31  ;;  %v1717_v30 = vpack.c.bf16 %v1706_v26, %v1705_v57 }
 0x43e   : > { %v8805_v25 = vpop.eup %8804 }
 0x43f   : > { %8197 = vmatmul.mubr.msk.bf16.vlgmr.msra.gmra.mxu0 %vm1536_vm3, %v1717_v30  ;;  %v1707_v21 = vmul.f32 %v8805_v25, %v9893_v27 }
 0x440   : > { %8207 = vmatpush3.bf16.msra.mxu0 %v9646_v58  ;;  %8208 = vmatprep.mubr.msk.bf16.mxu0 %vm9194_vm0, %v12403_v32  ;;  %v1677_v60 = vpop.xlane.xlu0 %1676  ;;  %v2147_v19 = vpop.permute.xlu1 %2146 }
 0x441   : > { %8218 = vmatprep.subr.bf16.mxu0 %v12403_v32  ;;  %8812 = vrcp.f32 %v1677_v60 }
 0x442   : > { %v8807_v43 = vpop.eup %8806 }
 0x443   : > { %v1708_v42 = vmul.f32 %v8807_v43, %v9897_v14  ;;  %v2152_v43 = vsel %vm1123_vm1, %v2147_v19, 0 }
 0x444   : > { %v2094_v27 = vpop.permute.xlu0 %2093  ;;  %v2091_v9 = vpop.permute.xlu1 %2090 }
 0x445   : > { %v1718_v16 = vpack.c.bf16 %v1708_v42, %v1707_v21  ;;  %v2099_v14 = vsel %vm1123_vm1, %v2094_v27, 0 }
 0x446   : > { %v8809_v46 = vpop.eup %8808 }
 0x447   : > { %8203 = vmatmul.mubr.msk.bf16.vlgmr.msra.gmra.mxu1 %vm1536_vm3, %v1718_v16  ;;  %v1709_v11 = vmul.f32 %v8809_v46, %v9901_v45 }
 0x448   : > { %8213 = vmatpush3.bf16.msra.mxu1 %v9639_v40  ;;  %8214 = vmatprep.mubr.msk.bf16.mxu1 %vm9194_vm0, %v12403_v32  ;;  %v2144_v45 = vpop.permute.xlu0 %2143 }
 0x449   : > { %8224 = vmatprep.subr.bf16.mxu1 %v12403_v32 }
 0x44a   : > { %v8811_v17 = vpop.eup %8810 }
 0x44b   : > { %v1710_v47 = vmul.f32 %v8811_v17, %v9905_v3 }
 0x44c   : > { %v2197_v61 = vpop.permute.xlu0 %2196 }
 0x44d   : > { %v1719_v5 = vpack.c.bf16 %v1710_v47, %v1709_v11 }
 0x44e   : > { %v8813_v20 = vpop.eup %8812 }
 0x44f   : > { %8209 = vmatmul.mubr.msk.bf16.vlgmr.msra.gmra.mxu0 %vm1536_vm3, %v1719_v5  ;;  %v1711_v57 = vmul.f32 %v8813_v20, %v9909_v35 }
 0x450   : > { %8219 = vmatpush3.bf16.xpose.msra.mxu0 %v2099_v14  ;;  %8220 = vmatprep.mubr.msk.bf16.mxu0 %vm9194_vm0, %v12403_v32  ;;  %v2250_v2 = vpop.permute.xlu0 %2249 }
 0x451   : > { %8230 = vmatprep.subr.bf16.mxu0 %v12403_v32 }
 0x454   : > { %v2303_v31 = vpop.permute.xlu0 %2302 }
 0x457   : > { %8221 = vmatmul.mubr.msk.bf16.vlgmr.msra.gmra.mxu0 %vm1123_vm1, %v2091_v9 }
 0x458   : > { %8232 = vmatprep.mubr.msk.bf16.mxu0 %vm9194_vm0, %v12403_v32  ;;  %v2356_v35 = vpop.permute.xlu0 %2355 }
 0x45c   : > { %v2409_v16 = vpop.permute.xlu0 %2408 }
 0x475   : > { %v1680_v3 = vpop.xlane.xlu1 %1679 }
 0x476   : > { %8814 = vrcp.f32 %v1680_v3 }
 0x479   : > { %v2200_v12 = vpop.permute.xlu1 %2199 }
 0x47a   : > { %v2205_v24 = vsel %vm1123_vm1, %v2200_v12, 0 }
 0x47b   : > { %8231 = vmatpush3.bf16.xpose.msra.mxu0 %v2205_v24 }
 0x47c   : > { %8242 = vmatprep.subr.bf16.mxu0 %v12403_v32 }
 0x47d   : > { %v2253_v38 = vpop.permute.xlu1 %2252 }
 0x481   : > { %v2306_v41 = vpop.permute.xlu1 %2305 }
 0x482   : > { %v2311_v18 = vsel %vm1123_vm1, %v2306_v41, 0  ;;  %8233 = vmatmul.mubr.msk.bf16.vlgmr.msra.gmra.mxu0 %vm1123_vm1, %v2197_v61 }
 0x483   : > { %v8815_v15 = vpop.eup %8814  ;;  %8243 = vmatpush3.bf16.xpose.msra.mxu0 %v2311_v18  ;;  %8244 = vmatprep.mubr.msk.bf16.mxu0 %vm9194_vm0, %v12403_v32 }
 0x484   : > { %v1712_v26 = vmul.f32 %v8815_v15, %v9932_v23  ;;  %8254 = vmatprep.subr.bf16.mxu0 %v12403_v32  ;;  %v2258_v23 = vsel %vm1123_vm1, %v2253_v38, 0 }
 0x485   : > { %v2359_v30 = vpop.permute.xlu1 %2358 }
 0x486   : > { %v1720_v25 = vpack.c.bf16 %v1712_v26, %v1711_v57  ;;  %v2364_v60 = vsel %vm1123_vm1, %v2359_v30, 0 }
 0x488   : > { %8215 = vmatmul.mubr.msk.bf16.vlgmr.msra.gmra.mxu1 %vm1536_vm3, %v1720_v25 }
 0x489   : > { %8225 = vmatpush3.bf16.xpose.msra.mxu1 %v2152_v43  ;;  %v2412_v21 = vpop.permute.xlu1 %2411  ;;  %8226 = vmatprep.mubr.msk.bf16.mxu1 %vm9194_vm0, %v12403_v32 }
 0x48a   : > { %v2417_v42 = vsel %vm1123_vm1, %v2412_v21, 0  ;;  %8245 = vmatmul.mubr.msk.bf16.vlgmr.msra.gmra.mxu0 %vm1123_vm1, %v2303_v31  ;;  %8236 = vmatprep.subr.bf16.mxu1 %v12403_v32 }
 0x48b   : > { %8255 = vmatpush3.bf16.xpose.msra.mxu0 %v2417_v42  ;;  %8256 = vmatprep.mubr.msk.bf16.mxu0 %vm9194_vm0, %v12403_v32 }
 0x48c   : > { %8266 = vmatprep.subr.bf16.mxu0 %v12403_v32 }
 0x48d   : > { %v2465_v46 = vpop.permute.xlu1 %2464 }
 0x48e   : > { %v2470_v17 = vsel %vm1123_vm1, %v2465_v46, 0 }
 0x490   : > { %8227 = vmatmul.mubr.msk.bf16.vlgmr.msra.gmra.mxu1 %vm1123_vm1, %v2144_v45 }
 0x491   : > { %8237 = vmatpush3.bf16.xpose.msra.mxu1 %v2258_v23  ;;  %8238 = vmatprep.mubr.msk.bf16.mxu1 %vm9194_vm0, %v12403_v32  ;;  %v2462_v11 = vpop.permute.xlu1 %2461 }
 0x492   : > { %8257 = vmatmul.mubr.msk.bf16.vlgmr.msra.gmra.mxu0 %vm1123_vm1, %v2409_v16  ;;  %8248 = vmatprep.subr.bf16.mxu1 %v12403_v32 }
 0x493   : > { %8268 = vmatprep.mubr.msk.bf16.mxu0 %vm9194_vm0, %v12403_v32 }
 0x498   : > { %8239 = vmatmul.mubr.msk.bf16.vlgmr.msra.gmra.mxu1 %vm1123_vm1, %v2250_v2 }
 0x499   : > { %8249 = vmatpush3.bf16.xpose.msra.mxu1 %v2364_v60  ;;  %8250 = vmatprep.mubr.msk.bf16.mxu1 %vm9194_vm0, %v12403_v32 }
 0x49a   : > { %8260 = vmatprep.subr.bf16.mxu1 %v12403_v32 }
 0x4a0   : > { %8251 = vmatmul.mubr.msk.bf16.vlgmr.msra.gmra.mxu1 %vm1123_vm1, %v2356_v35 }
 0x4a1   : > { %8261 = vmatpush3.bf16.xpose.msra.mxu1 %v2470_v17  ;;  %8262 = vmatprep.mubr.msk.bf16.mxu1 %vm9194_vm0, %v12403_v32 }
 0x4a2   : > { %8272 = vmatprep.subr.bf16.mxu1 %v12403_v32 }
 0x4a8   : > { %8263 = vmatmul.mubr.msk.bf16.vlgmr.msra.gmra.mxu1 %vm1123_vm1, %v2462_v11 }
 0x4a9   : > { %8274 = vmatprep.mubr.msk.bf16.mxu1 %vm9194_vm0, %v12403_v32 }
 0x4df   : > { %v10042_v47 = vpop.f32.mrf.mxu0 }
 0x4e1   : > { %v8174_v27 = vpop.f32.mrf.mxu0 }
 0x4e3   : > { %v10044_v5 = vpop.f32.mrf.mxu0 }
 0x4e5   : > { %v8175_v19 = vpop.f32.mrf.mxu0 }
 0x4e7   : > { %v10048_v9 = vpop.f32.mrf.mxu1 }
 0x4e9   : > { %v8180_v45 = vpop.f32.mrf.mxu1 }
 0x4eb   : > { %v10050_v3 = vpop.f32.mrf.mxu1 }
 0x4ed   : > { %v8181_v12 = vpop.f32.mrf.mxu1 }
 0x4ef   : > { %v10054_v24 = vpop.f32.mrf.mxu0 }
 0x4f1   : > { %v8186_v38 = vpop.f32.mrf.mxu0 }
 0x4f3   : > { %v10056_v2 = vpop.f32.mrf.mxu0 }
 0x4f5   : > { %v8187_v41 = vpop.f32.mrf.mxu0 }
 0x4f7   : > { %v10060_v18 = vpop.f32.mrf.mxu1 }
 0x4f9   : > { %v8192_v15 = vpop.f32.mrf.mxu1 }
 0x4fb   : > { %v10062_v57 = vpop.f32.mrf.mxu1 }
 0x4fd   : > { %v8193_v31 = vpop.f32.mrf.mxu1 }
 0x4ff   : > { %v10066_v30 = vpop.f32.mrf.mxu0 }
 0x501   : > { %v8198_v25 = vpop.f32.mrf.mxu0 }
 0x503   : > { %v10068_v43 = vpop.f32.mrf.mxu0 }
 0x505   : > { %v8199_v42 = vpop.f32.mrf.mxu0 }
 0x507   : > { %v10072_v35 = vpop.f32.mrf.mxu1 }
 0x509   : > { %v8204_v23 = vpop.f32.mrf.mxu1 }
 0x50b   : > { %v10074_v16 = vpop.f32.mrf.mxu1 }
 0x50d   : > { %v8205_v46 = vpop.f32.mrf.mxu1 }
 0x50f   : > { %v10078_v17 = vpop.f32.mrf.mxu0 }
 0x511   : > { %v8210_v11 = vpop.f32.mrf.mxu0 }
 0x513   : > { %v10080_v27 = vpop.f32.mrf.mxu0 }
 0x515   : > { %v8211_v45 = vpop.f32.mrf.mxu0 }
 0x517   : > { %v2135_v12 = vpop.f32.mrf.mxu0 }
 0x518   : > { %v2513_v38 = vmul.f32 0.17677669, %v2135_v12 }
 0x519   : > { %v8222_v41 = vpop.f32.mrf.mxu0 }
 0x51a   : > { %v10086_v15 = vsel %vm9734_vm2, %v2513_v38, -1e+30 }
 0x51b   : > { %v2138_v31 = vpop.f32.mrf.mxu0  ;;  %v2545_v25 = vsel %vm1536_vm3, %v10086_v15, -inf }
 0x51c   : > { %v2514_v42 = vmul.f32 0.17677669, %v2138_v31  ;;  %2546 = vmax.xlane.f32.xlu0 %v2545_v25 }
 0x51d   : > { %v8223_v23 = vpop.f32.mrf.mxu0 }
 0x51e   : > { %v10092_v46 = vsel %vm9742_vm4, %v2514_v42, -1e+30 }
 0x51f   : > { %v2548_v11 = vsel %vm1536_vm3, %v10092_v46, -inf }
 0x520   : > { %2549 = vmax.xlane.f32.xlu1 %v2548_v11 }
 0x542   : > { %v2241_v45 = vpop.f32.mrf.mxu0 }
 0x544   : > { %v8234_v12 = vpop.f32.mrf.mxu0 }
 0x546   : > { %v2244_v41 = vpop.f32.mrf.mxu0 }
 0x547   : > { %v2518_v38 = vmul.f32 0.17677669, %v2244_v41 }
 0x548   : > { %v10096_v63 = vpop.f32.mrf.mxu1  ;;  %v8235_v10 = vpop.f32.mrf.mxu0 }
 0x549   : > { %12461 = vst [vmem:[#allocation10_spill] sm:$0xff] %v10096_v63  ;;  %v10100_v31 = vsel %vm9742_vm4, %v2518_v38, -1e+30 }
 0x54a   : > { %v8216_v25 = vpop.f32.mrf.mxu1  ;;  %v2347_v23 = vpop.f32.mrf.mxu0  ;;  %v2560_v42 = vsel %vm1536_vm3, %v10100_v31, -inf }
 0x54b   : > { %2561 = vmax.xlane.f32.xlu1 %v2560_v42 }
 0x54c   : > { %v10104_v7 = vpop.f32.mrf.mxu1  ;;  %v8246_v11 = vpop.f32.mrf.mxu0 }
 0x54d   : > { %12462 = vst [vmem:[#allocation11_spill] sm:$0xff] %v10104_v7  ;;  %v2517_v11 = vmul.f32 0.17677669, %v2241_v45 }
 0x54e   : > { %v8217_v41 = vpop.f32.mrf.mxu1  ;;  %v2350_v48 = vpop.f32.mrf.mxu0 }
 0x54f   : > { %v2522_v32 = vmul.f32 0.17677669, %v2350_v48 }
 0x550   : > { %v2188_v19 = vpop.f32.mrf.mxu1  ;;  %v8247_v10 = vpop.f32.mrf.mxu0 }
 0x551   : > { %v2515_v60 = vmul.f32 0.17677669, %v2188_v19 }
 0x552   : > { %v8228_v21 = vpop.f32.mrf.mxu1  ;;  %v2453_v38 = vpop.f32.mrf.mxu0 }
 0x553   : > { %v10110_v25 = vsel %vm9734_vm2, %v2515_v60, -1e+30 }
 0x554   : > { %v2191_v26 = vpop.f32.mrf.mxu1  ;;  %v8258_v20 = vpop.f32.mrf.mxu0  ;;  %v2551_v42 = vsel %vm1536_vm3, %v10110_v25, -inf }
 0x555   : > { %v2516_v61 = vmul.f32 0.17677669, %v2191_v26  ;;  %2552 = vmax.xlane.f32.xlu0 %v2551_v42  ;;  %v10122_v20 = vsel %vm9734_vm2, %v2517_v11, -1e+30  ;;  %v2521_v26 = vmul.f32 0.17677669, %v2347_v23 }
 0x556   : > { %v8229_v12 = vpop.f32.mrf.mxu1  ;;  %v2456_v41 = vpop.f32.mrf.mxu0 }
 0x557   : > { %v10116_v10 = vsel %vm9742_vm4, %v2516_v61, -1e+30  ;;  %v2557_v12 = vsel %vm1536_vm3, %v10122_v20, -inf  ;;  %v10140_v48 = vsel %vm9734_vm2, %v2521_v26, -1e+30 }
 0x558   : > { %v2294_v21 = vpop.f32.mrf.mxu1  ;;  %v8259_v19 = vpop.f32.mrf.mxu0  ;;  %v2554_v60 = vsel %vm1536_vm3, %v10116_v10, -inf }
 0x559   : > { %v2519_v14 = vmul.f32 0.17677669, %v2294_v21  ;;  %2555 = vmax.xlane.f32.xlu0 %v2554_v60 }
 0x55a   : > { %v8240_v45 = vpop.f32.mrf.mxu1 }
 0x55b   : > { %v10128_v19 = vsel %vm9734_vm2, %v2519_v14, -1e+30 }
 0x55c   : > { %v2297_v42 = vpop.f32.mrf.mxu1  ;;  %v2563_v23 = vsel %vm1536_vm3, %v10128_v19, -inf }
 0x55d   : > { %v2520_v61 = vmul.f32 0.17677669, %v2297_v42  ;;  %2558 = vmax.xlane.f32.xlu0 %v2557_v12  ;;  %v2525_v42 = vmul.f32 0.17677669, %v2453_v38 }
 0x55e   : > { %v8241_v36 = vpop.f32.mrf.mxu1 }
 0x55f   : > { %v10132_v21 = vsel %vm9742_vm4, %v2520_v61, -1e+30  ;;  %v10144_v36 = vsel %vm9742_vm4, %v2522_v32, -1e+30  ;;  %v2569_v61 = vsel %vm1536_vm3, %v10140_v48, -inf }
 0x560   : > { %v2400_v11 = vpop.f32.mrf.mxu1  ;;  %v2566_v60 = vsel %vm1536_vm3, %v10132_v21, -inf  ;;  %v2572_v63 = vsel %vm1536_vm3, %v10144_v36, -inf }
 0x561   : > { %v2523_v45 = vmul.f32 0.17677669, %v2400_v11  ;;  %2564 = vmax.xlane.f32.xlu0 %v2563_v23  ;;  %2567 = vmax.xlane.f32.xlu1 %v2566_v60  ;;  %v2526_v11 = vmul.f32 0.17677669, %v2456_v41 }
 0x562   : > { %v8252_v14 = vpop.f32.mrf.mxu1 }
 0x563   : > { %v10152_v26 = vsel %vm9734_vm2, %v2523_v45, -1e+30  ;;  %v10168_v45 = vsel %vm9742_vm4, %v2526_v11, -1e+30 }
 0x564   : > { %v2403_v12 = vpop.f32.mrf.mxu1  ;;  %v2575_v14 = vsel %vm1536_vm3, %v10152_v26, -inf }
 0x565   : > { %v2524_v23 = vmul.f32 0.17677669, %v2403_v12  ;;  %2570 = vmax.xlane.f32.xlu0 %v2569_v61  ;;  %2573 = vmax.xlane.f32.xlu1 %v2572_v63  ;;  %v10164_v63 = vsel %vm9734_vm2, %v2525_v42, -1e+30 }
 0x566   : > { %v8253_v60 = vpop.f32.mrf.mxu1 }
 0x567   : > { %v10156_v32 = vsel %vm9742_vm4, %v2524_v23, -1e+30  ;;  %v2581_v23 = vsel %vm1536_vm3, %v10164_v63, -inf  ;;  %v2584_v60 = vsel %vm1536_vm3, %v10168_v45, -inf }
 0x568   : > { %v2506_v38 = vpop.f32.mrf.mxu1  ;;  %v2578_v7 = vsel %vm1536_vm3, %v10156_v32, -inf }
 0x569   : > { %v2527_v41 = vmul.f32 0.17677669, %v2506_v38  ;;  %2576 = vmax.xlane.f32.xlu0 %v2575_v14  ;;  %2579 = vmax.xlane.f32.xlu1 %v2578_v7 }
 0x56a   : > { %v8264_v12 = vpop.f32.mrf.mxu1 }
 0x56b   : > { %v10176_v7 = vsel %vm9734_vm2, %v2527_v41, -1e+30 }
 0x56c   : > { %v2509_v61 = vpop.f32.mrf.mxu1  ;;  %v2587_v38 = vsel %vm1536_vm3, %v10176_v7, -inf }
 0x56d   : > { %2582 = vmax.xlane.f32.xlu0 %v2581_v23  ;;  %2585 = vmax.xlane.f32.xlu1 %v2584_v60  ;;  %v2528_v11 = vmul.f32 0.17677669, %v2509_v61 }
 0x56e   : > { %v8265_v42 = vpop.f32.mrf.mxu1 }
 0x56f   : > { %v10192_v41 = vsel %vm9742_vm4, %v2528_v11, -1e+30 }
 0x570   : > { %v2590_v60 = vsel %vm1536_vm3, %v10192_v41, -inf }
 0x571   : > { %2588 = vmax.xlane.f32.xlu0 %v2587_v38 }
 0x57e   : > { %2778 = vrot.lane.b32.xlu1 %v9723_v55, %s9195_s17 }
 0x582   : > { %2826 = vrot.lane.b32.xlu1 %v9600_v51, %s9195_s17 }
 0x586   : > { %2874 = vrot.lane.b32.xlu1 %v9593_v44, %s9195_s17 }
 0x587   : > { %2730 = vrot.lane.b32.xlu0 %v9704_v52, %s9195_s17 }
 0x58b   : > { %2922 = vrot.lane.b32.xlu0 %v9623_v8, %s9195_s17 }
 0x5a5   : > { %v2547_v14 = vpop.xlane.xlu0 %2546 }
 0x5a6   : > { %v2593_v12 = vsub.f32 %v10086_v15, %v2547_v14 }
 0x5a8   : > { %v2609_v23 = vmul.f32 1.442695, %v2593_v12 }
 0x5a9   : > { %v2550_v61 = vpop.xlane.xlu1 %2549 }
 0x5aa   : > { %8816 = vpow2.f32 %v2609_v23  ;;  %2591 = vmax.xlane.f32.xlu1 %v2590_v60  ;;  %v2594_v11 = vsub.f32 %v10092_v46, %v2550_v61 }
 0x5ac   : > { %v2611_v8 = vmul.f32 1.442695, %v2594_v11 }
 0x5ae   : > { %8818 = vpow2.f32 %v2611_v8 }
 0x5b7   : > { %v10197_v42 = vpop.eup %8816 }
 0x5b8   : > { %v2641_v38 = vsel %vm1536_vm3, %v10197_v42, 0.0 }
 0x5b9   : > { %2642 = vadd.xlane.f32.xlu0 %v2641_v38 }
 0x5bb   : > { %2970 = vrot.lane.b32.xlu1 %v9616_v0, %s9195_s17  ;;  %v10204_v15 = vpop.eup %8818 }
 0x5bc   : > { %v2644_v23 = vsel %vm1536_vm3, %v10204_v15, 0.0 }
 0x5d4   : > { %v2562_v14 = vpop.xlane.xlu1 %2561 }
 0x5d5   : > { %v2598_v38 = vsub.f32 %v10100_v31, %v2562_v14 }
 0x5d7   : > { %v2619_v46 = vmul.f32 1.442695, %v2598_v38 }
 0x5de   : > { %v2553_v12 = vpop.xlane.xlu0 %2552 }
 0x5df   : > { %v2595_v60 = vsub.f32 %v10110_v25, %v2553_v12  ;;  %2645 = vadd.xlane.f32.xlu1 %v2644_v23 }
 0x5e1   : > { %v2613_v44 = vmul.f32 1.442695, %v2595_v60 }
 0x5e2   : > { %v2556_v52 = vpop.xlane.xlu0 %2555 }
 0x5e3   : > { %8820 = vpow2.f32 %v2613_v44  ;;  %v2596_v0 = vsub.f32 %v10116_v10, %v2556_v52 }
 0x5e5   : > { %v2615_v61 = vmul.f32 1.442695, %v2596_v0 }
 0x5e6   : > { %v2559_v8 = vpop.xlane.xlu0 %2558 }
 0x5e7   : > { %8822 = vpow2.f32 %v2615_v61  ;;  %v2597_v11 = vsub.f32 %v10122_v20, %v2559_v8 }
 0x5e8   : > { %8824 = vpow2.f32 %v2619_v46 }
 0x5e9   : > { %v2617_v51 = vmul.f32 1.442695, %v2597_v11 }
 0x5ea   : > { %v2565_v55 = vpop.xlane.xlu0 %2564  ;;  %v2568_v29 = vpop.xlane.xlu1 %2567 }
 0x5eb   : > { %8826 = vpow2.f32 %v2617_v51  ;;  %v2599_v25 = vsub.f32 %v10128_v19, %v2565_v55  ;;  %v2600_v31 = vsub.f32 %v10132_v21, %v2568_v29 }
 0x5ed   : > { %v2621_v14 = vmul.f32 1.442695, %v2599_v25  ;;  %v2623_v12 = vmul.f32 1.442695, %v2600_v31 }
 0x5ee   : > { %v2571_v44 = vpop.xlane.xlu0 %2570  ;;  %v2574_v23 = vpop.xlane.xlu1 %2573 }
 0x5ef   : > { %8828 = vpow2.f32 %v2621_v14  ;;  %v2601_v0 = vsub.f32 %v10140_v48, %v2571_v44  ;;  %v2602_v52 = vsub.f32 %v10144_v36, %v2574_v23 }
 0x5f0   : > { %v10216_v10 = vpop.eup %8820  ;;  %8830 = vpow2.f32 %v2623_v12 }
 0x5f1   : > { %v2625_v20 = vmul.f32 1.442695, %v2601_v0  ;;  %v2627_v60 = vmul.f32 1.442695, %v2602_v52  ;;  %v2647_v51 = vsel %vm1536_vm3, %v10216_v10, 0.0  ;;  %v12463_v52 = vmov 0.0  }
 0x5f2   : > { %v2577_v55 = vpop.xlane.xlu0 %2576  ;;  %v2580_v19 = vpop.xlane.xlu1 %2579  ;;  %2648 = vadd.xlane.f32.xlu0 %v2647_v51 }
 0x5f3   : > { %8832 = vpow2.f32 %v2625_v20  ;;  %v2603_v29 = vsub.f32 %v10152_v26, %v2577_v55  ;;  %v2604_v21 = vsub.f32 %v10156_v32, %v2580_v19 }
 0x5f4   : > { %v10222_v38 = vpop.eup %8822  ;;  %8834 = vpow2.f32 %v2627_v60 }
 0x5f5   : > { %v2629_v48 = vmul.f32 1.442695, %v2603_v29  ;;  %v2631_v36 = vmul.f32 1.442695, %v2604_v21  ;;  %v2650_v46 = vsel %vm1536_vm3, %v10222_v38, 0.0  ;;  %v10226_v61 = vpop.eup %8824 }
 0x5f6   : > { %v2583_v8 = vpop.xlane.xlu0 %2582  ;;  %v2586_v11 = vpop.xlane.xlu1 %2585  ;;  %2651 = vadd.xlane.f32.xlu1 %v2650_v46  ;;  %v2656_v44 = vsel %vm1536_vm3, %v10226_v61, 0.0 }
 0x5f7   : > { %8836 = vpow2.f32 %v2629_v48  ;;  %v2605_v25 = vsub.f32 %v10164_v63, %v2583_v8  ;;  %v2606_v26 = vsub.f32 %v10168_v45, %v2586_v11 }
 0x5f8   : > { %v10230_v31 = vpop.eup %8826  ;;  %8838 = vpow2.f32 %v2631_v36 }
 0x5f9   : > { %v2633_v32 = vmul.f32 1.442695, %v2605_v25  ;;  %v2635_v14 = vmul.f32 1.442695, %v2606_v26  ;;  %v2653_v12 = vsel %vm1536_vm3, %v10230_v31, 0.0 }
 0x5fa   : > { %v2779_v23 = vpop.permute.xlu1 %2778  ;;  %2654 = vadd.xlane.f32.xlu0 %v2653_v12  ;;  %v2589_v0 = vpop.xlane.xlu0 %2588  ;;  %2657 = vadd.xlane.f32.xlu1 %v2656_v44 }
 0x5fb   : > { %8840 = vpow2.f32 %v2633_v32  ;;  %v2607_v63 = vsub.f32 %v10176_v7, %v2589_v0  ;;  %8273 = vmatpush3.bf16.msra.mxu1 %v2779_v23 }
 0x5fc   : > { %v10237_v45 = vpop.eup %8828  ;;  %8842 = vpow2.f32 %v2635_v14  ;;  %8284 = vmatprep.subr.bf16.mxu1 %v12463_v52 }
 0x5fd   : > { %v10240_v20 = vpop.eup %8830  ;;  %v2637_v60 = vmul.f32 1.442695, %v2607_v63  ;;  %v2659_v51 = vsel %vm1536_vm3, %v10237_v45, 0.0 }
 0x5fe   : > { %2660 = vadd.xlane.f32.xlu0 %v2659_v51  ;;  %v2731_v55 = vpop.permute.xlu0 %2730  ;;  %v2662_v19 = vsel %vm1536_vm3, %v10240_v20, 0.0  ;;  %v2827_v23 = vpop.permute.xlu1 %2826 }
 0x5ff   : > { %8844 = vpow2.f32 %v2637_v60  ;;  %2663 = vadd.xlane.f32.xlu1 %v2662_v19  ;;  %8267 = vmatpush3.bf16.msra.mxu0 %v2731_v55 }
 0x600   : > { %v10246_v7 = vpop.eup %8832  ;;  %8278 = vmatprep.subr.bf16.mxu0 %v12463_v52 }
 0x601   : > { %v10249_v29 = vpop.eup %8834  ;;  %v2665_v21 = vsel %vm1536_vm3, %v10246_v7, 0.0 }
 0x602   : > { %2666 = vadd.xlane.f32.xlu0 %v2665_v21  ;;  %v2668_v48 = vsel %vm1536_vm3, %v10249_v29, 0.0  ;;  %v10281_v0 = vpop.permute.xlu1 %2874  ;;  %v10304_v19 = vpop.permute.xlu0 %2922 }
 0x603   : > { %2669 = vadd.xlane.f32.xlu1 %v2668_v48 }
 0x604   : > { %v10255_v36 = vpop.eup %8836 }
 0x605   : > { %v10257_v46 = vpop.eup %8838  ;;  %v2671_v8 = vsel %vm1536_vm3, %v10255_v36, 0.0 }
 0x606   : > { %2672 = vadd.xlane.f32.xlu0 %v2671_v8  ;;  %v2674_v11 = vsel %vm1536_vm3, %v10257_v46, 0.0 }
 0x607   : > { %2675 = vadd.xlane.f32.xlu1 %v2674_v11 }
 0x608   : > { %v10263_v25 = vpop.eup %8840 }
 0x609   : > { %v10265_v26 = vpop.eup %8842  ;;  %v2677_v32 = vsel %vm1536_vm3, %v10263_v25, 0.0 }
 0x60a   : > { %2678 = vadd.xlane.f32.xlu0 %v2677_v32  ;;  %v2680_v14 = vsel %vm1536_vm3, %v10265_v26, 0.0 }
 0x60b   : > { %2681 = vadd.xlane.f32.xlu1 %v2680_v14 }
 0x60c   : > { %v10271_v12 = vpop.eup %8844 }
 0x60d   : > { %v2683_v44 = vsel %vm1536_vm3, %v10271_v12, 0.0 }
 0x60e   : > { %2684 = vadd.xlane.f32.xlu0 %v2683_v44 }
 0x624   : > { %3018 = vrot.lane.b32.xlu0 %v9646_v58, %s9195_s17 }
 0x628   : > { %3389 = vrot.lane.b32.xlu0 %v9561_v39, %s9196_s18 }
 0x62c   : > { %3387 = vrot.lane.b32.xlu0 %v9584_v37, %s9196_s18 }
 0x630   : > { %3438 = vrot.lane.b32.xlu0 %v9607_v56, %s9196_s18 }
 0x633   : > { %v2592_v63 = vpop.xlane.xlu1 %2591 }
 0x634   : > { %v2608_v60 = vsub.f32 %v10192_v41, %v2592_v63  ;;  %3489 = vrot.lane.b32.xlu0 %v9630_v33, %s9196_s18 }
 0x636   : > { %v2639_v51 = vmul.f32 1.442695, %v2608_v60 }
 0x637   : > { %v10308_v21 = vpop.permute.xlu1 %2970 }
 0x638   : > { %8846 = vpow2.f32 %v2639_v51  ;;  %3540 = vrot.lane.b32.xlu0 %v9651_v53, %s9196_s18 }
 0x63c   : > { %3591 = vrot.lane.b32.xlu0 %v9666_v62, %s9196_s18 }
 0x640   : > { %3642 = vrot.lane.b32.xlu0 %v9681_v13, %s9196_s18 }
 0x642   : > { %v2643_v48 = vpop.xlane.xlu0 %2642 }
 0x643   : > { %8848 = vrcp.f32 %v2643_v48 }
 0x644   : > { %3693 = vrot.lane.b32.xlu0 %v9700_v49, %s9196_s18 }
 0x645   : > { %v10296_v55 = vpop.eup %8846 }
 0x646   : > { %v2686_v41 = vsel %vm1536_vm3, %v10296_v55, 0.0 }
 0x647   : > { %2687 = vadd.xlane.f32.xlu1 %v2686_v41 }
 0x650   : > { %v8849_v11 = vpop.eup %8848 }
 0x651   : > { %v2705_v14 = vmul.f32 %v8849_v11, %v10197_v42 }
 0x658   : > { %3066 = vrot.lane.b32.xlu1 %v9639_v40, %s9195_s17 }
 0x65c   : > { %3440 = vrot.lane.b32.xlu1 %v9586_v22, %s9196_s18 }
 0x660   : > { %3491 = vrot.lane.b32.xlu1 %v9609_v59, %s9196_s18 }
 0x664   : > { %3542 = vrot.lane.b32.xlu1 %v9632_v34, %s9196_s18 }
 0x668   : > { %3593 = vrot.lane.b32.xlu1 %v9653_v4, %s9196_s18  ;;  %v2646_v8 = vpop.xlane.xlu1 %2645 }
 0x669   : > { %8850 = vrcp.f32 %v2646_v8 }
 0x66c   : > { %3644 = vrot.lane.b32.xlu1 %v9668_v1, %s9196_s18 }
 0x670   : > { %3695 = vrot.lane.b32.xlu1 %v9683_v28, %s9196_s18 }
 0x674   : > { %3746 = vrot.lane.b32.xlu1 %v9702_v50, %s9196_s18 }
 0x676   : > { %v8851_v32 = vpop.eup %8850 }
 0x677   : > { %v2706_v44 = vmul.f32 %v8851_v32, %v10204_v15 }
 0x678   : > { %3744 = vrot.lane.b32.xlu1 %v9721_v54, %s9196_s18 }
 0x679   : > { %v2721_v63 = vpack.c.bf16 %v2706_v44, %v2705_v14 }
 0x67b   : > { %v2649_v60 = vpop.xlane.xlu0 %2648  ;;  %8269 = vmatmul.mubr.msk.bf16.vlgmr.msra.gmra.mxu0 %vm1536_vm3, %v2721_v63 }
 0x67c   : > { %8279 = vmatpush3.bf16.msra.mxu0 %v2827_v23  ;;  %8280 = vmatprep.mubr.msk.bf16.mxu0 %vm9194_vm0, %v12463_v52  ;;  %8852 = vrcp.f32 %v2649_v60 }
 0x67d   : > { %8290 = vmatprep.subr.bf16.mxu0 %v12463_v52 }
 0x67f   : > { %v2652_v51 = vpop.xlane.xlu1 %2651 }
 0x680   : > { %8854 = vrcp.f32 %v2652_v51 }
 0x683   : > { %v2655_v41 = vpop.xlane.xlu0 %2654  ;;  %v2658_v42 = vpop.xlane.xlu1 %2657 }
 0x684   : > { %8856 = vrcp.f32 %v2655_v41 }
 0x685   : > { %8858 = vrcp.f32 %v2658_v42 }
 0x687   : > { %v2661_v15 = vpop.xlane.xlu0 %2660 }
 0x688   : > { %8860 = vrcp.f32 %v2661_v15  ;;  %v2664_v48 = vpop.xlane.xlu1 %2663 }
 0x689   : > { %8862 = vrcp.f32 %v2664_v48  ;;  %v8853_v8 = vpop.eup %8852 }
 0x68a   : > { %v2707_v14 = vmul.f32 %v8853_v8, %v10216_v10 }
 0x68b   : > { %v2667_v11 = vpop.xlane.xlu0 %2666 }
 0x68c   : > { %8864 = vrcp.f32 %v2667_v11  ;;  %v2670_v23 = vpop.xlane.xlu1 %2669 }
 0x68d   : > { %v8855_v32 = vpop.eup %8854  ;;  %8866 = vrcp.f32 %v2670_v23 }
 0x68e   : > { %v2708_v44 = vmul.f32 %v8855_v32, %v10222_v38 }
 0x68f   : > { %v2673_v63 = vpop.xlane.xlu0 %2672 }
 0x690   : > { %8868 = vrcp.f32 %v2673_v63  ;;  %v2676_v60 = vpop.xlane.xlu1 %2675  ;;  %v2722_v51 = vpack.c.bf16 %v2708_v44, %v2707_v14 }
 0x691   : > { %v8857_v41 = vpop.eup %8856  ;;  %8870 = vrcp.f32 %v2676_v60 }
 0x692   : > { %v8859_v42 = vpop.eup %8858  ;;  %8275 = vmatmul.mubr.msk.bf16.vlgmr.msra.gmra.mxu1 %vm1536_vm3, %v2722_v51  ;;  %v2709_v15 = vmul.f32 %v8857_v41, %v10230_v31 }
 0x693   : > { %8285 = vmatpush3.bf16.msra.mxu1 %v10281_v0  ;;  %v2679_v48 = vpop.xlane.xlu0 %2678  ;;  %v2710_v11 = vmul.f32 %v8859_v42, %v10226_v61  ;;  %8286 = vmatprep.mubr.msk.bf16.mxu1 %vm9194_vm0, %v12463_v52 }
 0x694   : > { %8872 = vrcp.f32 %v2679_v48  ;;  %v2682_v10 = vpop.xlane.xlu1 %2681  ;;  %8296 = vmatprep.subr.bf16.mxu1 %v12463_v52 }
 0x695   : > { %v8861_v38 = vpop.eup %8860  ;;  %8874 = vrcp.f32 %v2682_v10  ;;  %v2723_v8 = vpack.c.bf16 %v2710_v11, %v2709_v15  ;;  %v8635_v10 = vld [vmem:[%s12389_s5 + $0x10] sm:$0xff]  }
 0x696   : > { %v8863_v23 = vpop.eup %8862  ;;  %v2711_v32 = vmul.f32 %v8861_v38, %v10237_v45 }
 0x697   : > { %8281 = vmatmul.mubr.msk.bf16.vlgmr.msra.gmra.mxu0 %vm1536_vm3, %v2723_v8  ;;  %v2712_v31 = vmul.f32 %v8863_v23, %v10240_v20  ;;  %v2685_v0 = vpop.xlane.xlu0 %2684 }
 0x698   : > { %8291 = vmatpush3.bf16.msra.mxu0 %v10304_v19  ;;  %8292 = vmatprep.mubr.msk.bf16.mxu0 %vm9194_vm0, %v12463_v52  ;;  %8876 = vrcp.f32 %v2685_v0  ;;  %v12464_v0 = vpack.c.bf16 %v10044_v5, %v10042_v47  ;;  %v12467_v47 = vpack.c.bf16 %v10062_v57, %v10060_v18  ;;  %v12468_v5 = vpack.c.bf16 %v10068_v43, %v10066_v30  ;;  %v12471_v30 = vld [vmem:[#allocation11_spill] sm:$0xff]  ;;  %v12472_v43 = vld [vmem:[#allocation10_spill] sm:$0xff] }
 0x699   : > { %v8865_v61 = vpop.eup %8864  ;;  %v2724_v14 = vpack.c.bf16 %v2712_v31, %v2711_v32  ;;  %8302 = vmatprep.subr.bf16.mxu0 %v12463_v52  ;;  %v12470_v18 = vpack.c.bf16 %v10080_v27, %v10078_v17 }
 0x69a   : > { %v8867_v44 = vpop.eup %8866  ;;  %v2713_v63 = vmul.f32 %v8865_v61, %v10246_v7  ;;  %v8633_v61 = vld [vmem:[%s12389_s5] sm:$0xff]  }
 0x69b   : > { %8287 = vmatmul.mubr.msk.bf16.vlgmr.msra.gmra.mxu1 %vm1536_vm3, %v2724_v14  ;;  %v2714_v45 = vmul.f32 %v8867_v44, %v10249_v29  ;;  %v3019_v41 = vpop.permute.xlu0 %3018  ;;  %v12466_v44 = vpack.c.bf16 %v10056_v2, %v10054_v24  ;;  %v12469_v24 = vpack.c.bf16 %v10074_v16, %v10072_v35 }
 0x69c   : > { %8297 = vmatpush3.bf16.msra.mxu1 %v10308_v21  ;;  %8298 = vmatprep.mubr.msk.bf16.mxu1 %vm9194_vm0, %v12463_v52 }
 0x69d   : > { %v8869_v20 = vpop.eup %8868  ;;  %v2725_v19 = vpack.c.bf16 %v2714_v45, %v2713_v63  ;;  %8308 = vmatprep.subr.bf16.mxu1 %v12463_v52  ;;  %v12473_v45 = vpack.c.bf16 %v12471_v30, %v12472_v43 }
 0x69e   : > { %v8871_v60 = vpop.eup %8870  ;;  %v2715_v51 = vmul.f32 %v8869_v20, %v10255_v36 }
 0x69f   : > { %8293 = vmatmul.mubr.msk.bf16.vlgmr.msra.gmra.mxu0 %vm1536_vm3, %v2725_v19  ;;  %v2716_v7 = vmul.f32 %v8871_v60, %v10257_v46  ;;  %v8634_v46 = vld [vmem:[%s12389_s5 + $0x18] sm:$0xff]  }
 0x6a0   : > { %8303 = vmatpush3.bf16.msra.mxu0 %v3019_v41  ;;  %8304 = vmatprep.mubr.msk.bf16.mxu0 %vm9194_vm0, %v12463_v52 }
 0x6a1   : > { %v8873_v29 = vpop.eup %8872  ;;  %v2726_v21 = vpack.c.bf16 %v2716_v7, %v2715_v51  ;;  %8314 = vmatprep.subr.bf16.mxu0 %v8634_v46 }
 0x6a2   : > { %v8875_v42 = vpop.eup %8874  ;;  %v2717_v15 = vmul.f32 %v8873_v29, %v10263_v25  ;;  %v8632_v25 = vld [vmem:[%s12389_s5 + $0x8] sm:$0xff]  }
 0x6a3   : > { %8299 = vmatmul.mubr.msk.bf16.vlgmr.msra.gmra.mxu1 %vm1536_vm3, %v2726_v21  ;;  %v2718_v48 = vmul.f32 %v8875_v42, %v10265_v26 }
 0x6a4   : > { %8310 = vmatprep.mubr.msk.bf16.mxu1 %vm9194_vm0, %v12463_v52 }
 0x6a5   : > { %v2727_v36 = vpack.c.bf16 %v2718_v48, %v2717_v15  ;;  %v8877_v38 = vpop.eup %8876 }
 0x6a6   : > { %v2719_v23 = vmul.f32 %v8877_v38, %v10271_v12 }
 0x6a7   : > { %8305 = vmatmul.mubr.msk.bf16.vlgmr.msra.gmra.mxu0 %vm1536_vm3, %v2727_v36 }
 0x6a8   : > { %8315 = vmatpush3.bf16.msra.mxu0 %v8634_v46 }
 0x6a9   : > { %8316 = vmatprep.subr.bf16.mxu0 %v8635_v10 }
 0x6ac   : > { %8317 = vmatpush3.bf16.msra.mxu0 %v8635_v10 }
 0x6ad   : > { %8354 = vmatprep.subr.bf16.mxu0 %v12463_v52 }
 0x6d0   : > { %v2688_v11 = vpop.xlane.xlu1 %2687 }
 0x6d1   : > { %8878 = vrcp.f32 %v2688_v11 }
 0x6d4   : > { %v3067_v26 = vpop.permute.xlu1 %3066 }
 0x6d5   : > { %8309 = vmatpush3.bf16.msra.mxu1 %v3067_v26 }
 0x6d6   : > { %8334 = vmatprep.subr.bf16.mxu1 %v8632_v25 }
 0x6d8   : > { %v3441_v14 = vpop.permute.xlu1 %3440 }
 0x6d9   : > { %v3446_v12 = vsel %vm1123_vm1, %v3441_v14, 0 }
 0x6de   : > { %v8879_v8 = vpop.eup %8878 }
 0x6df   : > { %v2720_v32 = vmul.f32 %v8879_v8, %v10296_v55  ;;  %v12465_v55 = vpack.c.bf16 %v10050_v3, %v10048_v9  ;;  %v3390_v9 = vpop.permute.xlu0 %3389  ;;  %v10401_v3 = vpop.permute.xlu1 %3491 }
 0x6e1   : > { %v2728_v31 = vpack.c.bf16 %v2720_v32, %v2719_v23  ;;  %v3395_v23 = vsel %vm1123_vm1, %v3390_v9, 0 }
 0x6e3   : > { %8311 = vmatmul.mubr.msk.bf16.vlgmr.msra.gmra.mxu1 %vm1536_vm3, %v2728_v31  ;;  %v10407_v2 = vpop.permute.xlu0 %3387  ;;  %v3543_v57 = vpop.permute.xlu1 %3542 }
 0x6e4   : > { %8335 = vmatpush3.bf16.msra.mxu1 %v8632_v25  ;;  %8338 = vmatprep.mubr.msk.bf16.mxu1 %vm1123_vm1, %v12464_v0  ;;  %v3548_v20 = vsel %vm1123_vm1, %v3543_v57, 0 }
 0x6e5   : > { %8336 = vmatprep.subr.bf16.mxu1 %v8633_v61 }
 0x6e7   : > { %v3439_v63 = vpop.permute.xlu0 %3438  ;;  %v10419_v35 = vpop.permute.xlu1 %3593 }
 0x6e8   : > { %8337 = vmatpush3.bf16.msra.mxu1 %v8633_v61 }
 0x6e9   : > { %8360 = vmatprep.subr.bf16.mxu1 %v12463_v52 }
 0x6eb   : > { %8339 = vmatmul.mubr.msk.bf16.vlgmr.msra.gmra.mxu1 %vm1123_vm1, %v12465_v55  ;;  %v10421_v16 = vpop.permute.xlu0 %3489  ;;  %v3645_v17 = vpop.permute.xlu1 %3644 }
 0x6ec   : > { %8361 = vmatpush3.bf16.xpose.msra.mxu1 %v3446_v12  ;;  %8342 = vmatprep.mubr.msk.bf16.mxu1 %vm1123_vm1, %v12466_v44  ;;  %v3650_v60 = vsel %vm1123_vm1, %v3645_v17, 0 }
 0x6ed   : > { %8372 = vmatprep.subr.bf16.mxu1 %v12463_v52 }
 0x6ef   : > { %v3541_v27 = vpop.permute.xlu0 %3540  ;;  %v10428_v19 = vpop.permute.xlu1 %3695 }
 0x6f3   : > { %8343 = vmatmul.mubr.msk.bf16.gmra.mxu1 %vm1123_vm1, %v12467_v47  ;;  %v10432_v51 = vpop.permute.xlu0 %3591  ;;  %v3747_v41 = vpop.permute.xlu1 %3746 }
 0x6f4   : > { %8346 = vmatprep.mubr.msk.bf16.mxu1 %vm1123_vm1, %v12468_v5  ;;  %v3752_v29 = vsel %vm1123_vm1, %v3747_v41, 0 }
 0x6f7   : > { %v3643_v7 = vpop.permute.xlu0 %3642  ;;  %v3745_v21 = vpop.permute.xlu1 %3744 }
 0x6fb   : > { %8347 = vmatmul.mubr.msk.bf16.gmra.mxu1 %vm1123_vm1, %v12469_v24 }
 0x6fc   : > { %8350 = vmatprep.mubr.msk.bf16.mxu1 %vm1123_vm1, %v12470_v18 }
 0x703   : > { %8351 = vmatmul.mubr.msk.bf16.gmra.mxu1 %vm1123_vm1, %v12473_v45 }
 0x704   : > { %8362 = vmatprep.mubr.msk.bf16.mxu1 %vm9194_vm0, %v12463_v52 }
 0x70b   : > { %8363 = vmatmul.mubr.msk.bf16.vlgmr.msra.gmra.mxu1 %vm1123_vm1, %v3439_v63 }
 0x70c   : > { %8373 = vmatpush3.bf16.xpose.msra.mxu1 %v3548_v20  ;;  %8374 = vmatprep.mubr.msk.bf16.mxu1 %vm9194_vm0, %v12463_v52 }
 0x70d   : > { %8384 = vmatprep.subr.bf16.mxu1 %v12463_v52 }
 0x713   : > { %8375 = vmatmul.mubr.msk.bf16.vlgmr.msra.gmra.mxu1 %vm1123_vm1, %v3541_v27 }
 0x714   : > { %8385 = vmatpush3.bf16.xpose.msra.mxu1 %v3650_v60  ;;  %8386 = vmatprep.mubr.msk.bf16.mxu1 %vm9194_vm0, %v12463_v52 }
 0x715   : > { %8396 = vmatprep.subr.bf16.mxu1 %v12463_v52 }
 0x71b   : > { %8387 = vmatmul.mubr.msk.bf16.vlgmr.msra.gmra.mxu1 %vm1123_vm1, %v3643_v7 }
 0x71c   : > { %8397 = vmatpush3.bf16.xpose.msra.mxu1 %v3752_v29  ;;  %8398 = vmatprep.mubr.msk.bf16.mxu1 %vm9194_vm0, %v12463_v52 }
 0x71d   : > { %8408 = vmatprep.subr.bf16.mxu1 %v12463_v52 }
 0x723   : > { %8399 = vmatmul.mubr.msk.bf16.vlgmr.msra.gmra.mxu1 %vm1123_vm1, %v3745_v21 }
 0x724   : > { %8410 = vmatprep.mubr.msk.bf16.mxu1 %vm9194_vm0, %v12463_v52 }
 0x73b   : > { %v2770_v42 = vpop.f32.mrf.mxu0 }
 0x73d   : > { %v8270_v15 = vpop.f32.mrf.mxu0 }
 0x73f   : > { %v2773_v48 = vpop.f32.mrf.mxu0 }
 0x740   : > { %v3113_v36 = vpack.c.bf16 %v2773_v48, %v2770_v42 }
 0x741   : > { %v8271_v46 = vpop.f32.mrf.mxu0 }
 0x742   : > { %8318 = vmatprep.mubr.msk.bf16.mxu0 %vm1123_vm1, %v3113_v36 }
 0x752   : > { %v2818_v11 = vpop.f32.mrf.mxu1 }
 0x754   : > { %v8276_v25 = vpop.f32.mrf.mxu1 }
 0x756   : > { %v2821_v26 = vpop.f32.mrf.mxu1 }
 0x757   : > { %v3114_v10 = vpack.c.bf16 %v2821_v26, %v2818_v11  ;;  %v2866_v38 = vpop.f32.mrf.mxu0  ;;  %v3497_v26 = vsel %vm1123_vm1, %v10401_v3, 0  ;;  %v3599_v3 = vsel %vm1123_vm1, %v10419_v35, 0  ;;  %v3701_v35 = vsel %vm1123_vm1, %v10428_v19, 0 }
 0x758   : > { %v8277_v8 = vpop.f32.mrf.mxu1 }
 0x759   : > { %v8282_v32 = vpop.f32.mrf.mxu0  ;;  %8319 = vmatmul.mubr.msk.bf16.vlgmr.msra.gmra.mxu0 %vm1123_vm1, %v3114_v10 }
 0x75a   : > { %8355 = vmatpush3.bf16.xpose.msra.mxu0 %v3395_v23 }
 0x75b   : > { %v2869_v31 = vpop.f32.mrf.mxu0  ;;  %v2914_v61 = vpop.f32.mrf.mxu1  ;;  %8366 = vmatprep.subr.bf16.mxu0 %v12463_v52 }
 0x75c   : > { %v3115_v0 = vpack.c.bf16 %v2869_v31, %v2866_v38 }
 0x75d   : > { %v8283_v14 = vpop.f32.mrf.mxu0  ;;  %v8288_v12 = vpop.f32.mrf.mxu1 }
 0x75e   : > { %8322 = vmatprep.mubr.msk.bf16.mxu0 %vm1123_vm1, %v3115_v0  ;;  %v3694_v12 = vpop.permute.xlu0 %3693 }
 0x75f   : > { %v2917_v55 = vpop.f32.mrf.mxu1  ;;  %v2962_v44 = vpop.f32.mrf.mxu0 }
 0x760   : > { %v3116_v47 = vpack.c.bf16 %v2917_v55, %v2914_v61 }
 0x761   : > { %v8289_v5 = vpop.f32.mrf.mxu1  ;;  %v8294_v24 = vpop.f32.mrf.mxu0 }
 0x762   : > { %8323 = vmatmul.mubr.msk.bf16.gmra.mxu0 %vm1123_vm1, %v3116_v47 }
 0x763   : > { %v2965_v9 = vpop.f32.mrf.mxu0  ;;  %v3010_v18 = vpop.f32.mrf.mxu1 }
 0x764   : > { %v3117_v57 = vpack.c.bf16 %v2965_v9, %v2962_v44 }
 0x765   : > { %v8295_v63 = vpop.f32.mrf.mxu0  ;;  %v8300_v30 = vpop.f32.mrf.mxu1 }
 0x766   : > { %8326 = vmatprep.mubr.msk.bf16.mxu0 %vm1123_vm1, %v3117_v57  ;;  %v12523_v57 = vld [vmem:[#allocation3_spill] sm:$0xff] }
 0x767   : > { %v3013_v43 = vpop.f32.mrf.mxu1  ;;  %v3058_v45 = vpop.f32.mrf.mxu0 }
 0x768   : > { %v3118_v20 = vpack.c.bf16 %v3013_v43, %v3010_v18 }
 0x769   : > { %v8301_v17 = vpop.f32.mrf.mxu1  ;;  %v8306_v27 = vpop.f32.mrf.mxu0 }
 0x76a   : > { %8327 = vmatmul.mubr.msk.bf16.gmra.mxu0 %vm1123_vm1, %v3118_v20 }
 0x76b   : > { %v3061_v60 = vpop.f32.mrf.mxu0 }
 0x76c   : > { %v3119_v41 = vpack.c.bf16 %v3061_v60, %v3058_v45 }
 0x76d   : > { %v8307_v7 = vpop.f32.mrf.mxu0 }
 0x76e   : > { %8330 = vmatprep.mubr.msk.bf16.mxu0 %vm1123_vm1, %v3119_v41 }
 0x7a3   : > { %v3106_v29 = vpop.f32.mrf.mxu1 }
 0x7a5   : > { %v8312_v21 = vpop.f32.mrf.mxu1 }
 0x7a7   : > { %v3109_v42 = vpop.f32.mrf.mxu1 }
 0x7a8   : > { %v3120_v15 = vpack.c.bf16 %v3109_v42, %v3106_v29 }
 0x7a9   : > { %v8313_v48 = vpop.f32.mrf.mxu1 }
 0x7aa   : > { %8331 = vmatmul.mubr.msk.bf16.gmra.mxu0 %vm1123_vm1, %v3120_v15 }
 0x7ab   : > { %v10455_v36 = vpop.f32.mrf.mxu1  ;;  %8356 = vmatprep.mubr.msk.bf16.mxu0 %vm9194_vm0, %v12463_v52 }
 0x7ad   : > { %v10459_v46 = vpop.f32.mrf.mxu1 }
 0x7af   : > { %v10461_v11 = vpop.f32.mrf.mxu1 }
 0x7b1   : > { %v10463_v25 = vpop.f32.mrf.mxu1 }
 0x7b2   : > { %12474 = vst [vmem:[#allocation11_spill] sm:$0xff] %v10463_v25  ;;  %8357 = vmatmul.mubr.msk.bf16.vlgmr.msra.gmra.mxu0 %vm1123_vm1, %v10407_v2 }
 0x7b3   : > { %8367 = vmatpush3.bf16.xpose.msra.mxu0 %v3497_v26  ;;  %v10469_v10 = vpop.f32.mrf.mxu1  ;;  %8368 = vmatprep.mubr.msk.bf16.mxu0 %vm9194_vm0, %v12463_v52 }
 0x7b4   : > { %8378 = vmatprep.subr.bf16.mxu0 %v12463_v52 }
 0x7b5   : > { %v10474_v38 = vpop.f32.mrf.mxu1 }
 0x7b6   : > { %12475 = vst [vmem:[#allocation10_spill] sm:$0xff] %v10474_v38 }
 0x7b7   : > { %v10476_v8 = vpop.f32.mrf.mxu1 }
 0x7b8   : > { %12476 = vst [vmem:[#allocation12_spill] sm:$0xff] %v10476_v8 }
 0x7b9   : > { %v10478_v23 = vpop.f32.mrf.mxu1 }
 0x7ba   : > { %12477 = vst [vmem:[#allocation13_spill] sm:$0xff] %v10478_v23  ;;  %8369 = vmatmul.mubr.msk.bf16.vlgmr.msra.gmra.mxu0 %vm1123_vm1, %v10421_v16 }
 0x7bb   : > { %8379 = vmatpush3.bf16.xpose.msra.mxu0 %v3599_v3  ;;  %v10484_v2 = vpop.f32.mrf.mxu1  ;;  %8380 = vmatprep.mubr.msk.bf16.mxu0 %vm9194_vm0, %v12463_v52 }
 0x7bc   : > { %12478 = vst [vmem:[#allocation14_spill] sm:$0xff] %v10484_v2  ;;  %8390 = vmatprep.subr.bf16.mxu0 %v12463_v52 }
 0x7bd   : > { %v10489_v32 = vpop.f32.mrf.mxu1 }
 0x7be   : > { %12479 = vst [vmem:[#allocation15_spill] sm:$0xff] %v10489_v32 }
 0x7bf   : > { %v10491_v31 = vpop.f32.mrf.mxu1 }
 0x7c0   : > { %12480 = vst [vmem:[#allocation16_spill] sm:$0xff] %v10491_v31 }
 0x7c1   : > { %v10493_v61 = vpop.f32.mrf.mxu1 }
 0x7c2   : > { %12481 = vst [vmem:[#allocation17_spill] sm:$0xff] %v10493_v61  ;;  %8381 = vmatmul.mubr.msk.bf16.vlgmr.msra.gmra.mxu0 %vm1123_vm1, %v10432_v51 }
 0x7c3   : > { %8391 = vmatpush3.bf16.xpose.msra.mxu0 %v3701_v35  ;;  %v10499_v16 = vpop.f32.mrf.mxu1  ;;  %8392 = vmatprep.mubr.msk.bf16.mxu0 %vm9194_vm0, %v12463_v52 }
 0x7c4   : > { %12482 = vst [vmem:[#allocation18_spill] sm:$0xff] %v10499_v16  ;;  %8402 = vmatprep.subr.bf16.mxu0 %v12463_v52 }
 0x7c5   : > { %v10504_v0 = vpop.f32.mrf.mxu1 }
 0x7c6   : > { %12483 = vst [vmem:[#allocation19_spill] sm:$0xff] %v10504_v0 }
 0x7c7   : > { %v10506_v14 = vpop.f32.mrf.mxu1 }
 0x7c8   : > { %12484 = vst [vmem:[#allocation20_spill] sm:$0xff] %v10506_v14 }
 0x7c9   : > { %v10508_v55 = vpop.f32.mrf.mxu1 }
 0x7ca   : > { %12485 = vst [vmem:[#allocation21_spill] sm:$0xff] %v10508_v55  ;;  %8393 = vmatmul.mubr.msk.bf16.vlgmr.msra.gmra.mxu0 %vm1123_vm1, %v3694_v12 }
 0x7cb   : > { %v3482_v19 = vpop.f32.mrf.mxu1  ;;  %8404 = vmatprep.mubr.msk.bf16.mxu0 %vm9194_vm0, %v12463_v52 }
 0x7cc   : > { %v3797_v51 = vmul.f32 0.17677669, %v3482_v19 }
 0x7cd   : > { %v8364_v44 = vpop.f32.mrf.mxu1 }
 0x7ce   : > { %v3813_v47 = vsel %vm9734_vm2, %v3797_v51, -1e+30 }
 0x7cf   : > { %v3485_v5 = vpop.f32.mrf.mxu1  ;;  %v3833_v24 = vsel %vm1536_vm3, %v3813_v47, -inf }
 0x7d0   : > { %v3798_v9 = vmul.f32 0.17677669, %v3485_v5  ;;  %3834 = vmax.xlane.f32.xlu0 %v3833_v24 }
 0x7d1   : > { %v8365_v18 = vpop.f32.mrf.mxu1 }
 0x7d2   : > { %v3814_v63 = vsel %vm9742_vm4, %v3798_v9, -1e+30 }
 0x7d3   : > { %v3584_v30 = vpop.f32.mrf.mxu1  ;;  %v3836_v43 = vsel %vm1536_vm3, %v3814_v63, -inf }
 0x7d4   : > { %v3801_v45 = vmul.f32 0.17677669, %v3584_v30  ;;  %3837 = vmax.xlane.f32.xlu0 %v3836_v43 }
 0x7d5   : > { %v8376_v20 = vpop.f32.mrf.mxu1 }
 0x7d6   : > { %v3817_v17 = vsel %vm9734_vm2, %v3801_v45, -1e+30 }
 0x7d7   : > { %v3587_v27 = vpop.f32.mrf.mxu1  ;;  %v3845_v60 = vsel %vm1536_vm3, %v3817_v17, -inf }
 0x7d8   : > { %v3802_v41 = vmul.f32 0.17677669, %v3587_v27  ;;  %3846 = vmax.xlane.f32.xlu0 %v3845_v60 }
 0x7d9   : > { %v8377_v7 = vpop.f32.mrf.mxu1 }
 0x7da   : > { %v3818_v29 = vsel %vm9742_vm4, %v3802_v41, -1e+30 }
 0x7db   : > { %v3686_v21 = vpop.f32.mrf.mxu1  ;;  %v3848_v42 = vsel %vm1536_vm3, %v3818_v29, -inf }
 0x7dc   : > { %v3805_v15 = vmul.f32 0.17677669, %v3686_v21  ;;  %3849 = vmax.xlane.f32.xlu1 %v3848_v42 }
 0x7dd   : > { %v8388_v48 = vpop.f32.mrf.mxu1 }
 0x7de   : > { %v3821_v26 = vsel %vm9734_vm2, %v3805_v15, -1e+30 }
 0x7df   : > { %v3689_v3 = vpop.f32.mrf.mxu1  ;;  %v3857_v35 = vsel %vm1536_vm3, %v3821_v26, -inf }
 0x7e0   : > { %v3806_v12 = vmul.f32 0.17677669, %v3689_v3  ;;  %3858 = vmax.xlane.f32.xlu0 %v3857_v35 }
 0x7e1   : > { %v8389_v19 = vpop.f32.mrf.mxu1 }
 0x7e2   : > { %v3822_v51 = vsel %vm9742_vm4, %v3806_v12, -1e+30 }
 0x7e3   : > { %v3788_v44 = vpop.f32.mrf.mxu1  ;;  %v3860_v5 = vsel %vm1536_vm3, %v3822_v51, -inf }
 0x7e4   : > { %v3809_v24 = vmul.f32 0.17677669, %v3788_v44  ;;  %3861 = vmax.xlane.f32.xlu1 %v3860_v5 }
 0x7e5   : > { %v8400_v9 = vpop.f32.mrf.mxu1 }
 0x7e6   : > { %v3825_v18 = vsel %vm9734_vm2, %v3809_v24, -1e+30 }
 0x7e7   : > { %v3791_v30 = vpop.f32.mrf.mxu1  ;;  %v3869_v43 = vsel %vm1536_vm3, %v3825_v18, -inf }
 0x7e8   : > { %v3810_v45 = vmul.f32 0.17677669, %v3791_v30  ;;  %3870 = vmax.xlane.f32.xlu0 %v3869_v43 }
 0x7e9   : > { %v8401_v20 = vpop.f32.mrf.mxu1 }
 0x7ea   : > { %v10536_v27 = vsel %vm9742_vm4, %v3810_v45, -1e+30 }
 0x7eb   : > { %v3872_v60 = vsel %vm1536_vm3, %v10536_v27, -inf }
 0x7ec   : > { %3873 = vmax.xlane.f32.xlu1 %v3872_v60 }
 0x819   : > { %v10540_v41 = vpop.f32.mrf.mxu0 }
 0x81b   : > { %v10542_v7 = vpop.f32.mrf.mxu0 }
 0x81d   : > { %v10544_v21 = vpop.f32.mrf.mxu0 }
 0x81f   : > { %v10546_v42 = vpop.f32.mrf.mxu0 }
 0x820   : > { %12487 = vst [vmem:[#allocation9_spill] sm:$0xff] %v10546_v42 }
 0x822   : > { %v10548_v15 = vpop.f32.mrf.mxu0 }
 0x824   : > { %v10550_v48 = vpop.f32.mrf.mxu0 }
 0x825   : > { %12488 = vst [vmem:[#allocation22_spill] sm:$0xff] %v10550_v48 }
 0x826   : > { %v10552_v3 = vpop.f32.mrf.mxu0 }
 0x827   : > { %12489 = vst [vmem:[#allocation23_spill] sm:$0xff] %v10552_v3 }
 0x828   : > { %v10554_v35 = vpop.f32.mrf.mxu0 }
 0x829   : > { %12490 = vst [vmem:[#allocation24_spill] sm:$0xff] %v10554_v35 }
 0x82a   : > { %v10556_v44 = vpop.f32.mrf.mxu0 }
 0x82b   : > { %12491 = vst [vmem:[#allocation25_spill] sm:$0xff] %v10556_v44 }
 0x82c   : > { %v10558_v30 = vpop.f32.mrf.mxu0 }
 0x82d   : > { %12492 = vst [vmem:[#allocation26_spill] sm:$0xff] %v10558_v30 }
 0x82e   : > { %v10560_v60 = vpop.f32.mrf.mxu0 }
 0x82f   : > { %12493 = vst [vmem:[#allocation27_spill] sm:$0xff] %v10560_v60 }
 0x830   : > { %v10562_v35 = vpop.f32.mrf.mxu0 }
 0x831   : > { %12494 = vst [vmem:[#allocation28_spill] sm:$0xff] %v10562_v35 }
 0x859   : > { %v3835_v12 = vpop.xlane.xlu0 %3834 }
 0x85a   : > { %v3877_v19 = vsub.f32 %v3813_v47, %v3835_v12 }
 0x85c   : > { %v3895_v5 = vmul.f32 1.442695, %v3877_v19 }
 0x85d   : > { %v3838_v24 = vpop.xlane.xlu0 %3837 }
 0x85e   : > { %8880 = vpow2.f32 %v3895_v5  ;;  %v3878_v9 = vsub.f32 %v3814_v63, %v3838_v24 }
 0x860   : > { %v3897_v43 = vmul.f32 1.442695, %v3878_v9 }
 0x861   : > { %v3847_v45 = vpop.xlane.xlu0 %3846 }
 0x862   : > { %8882 = vpow2.f32 %v3897_v43  ;;  %v3881_v20 = vsub.f32 %v3817_v17, %v3847_v45 }
 0x864   : > { %v3903_v55 = vmul.f32 1.442695, %v3881_v20 }
 0x865   : > { %v3850_v61 = vpop.xlane.xlu1 %3849 }
 0x866   : > { %8884 = vpow2.f32 %v3903_v55  ;;  %v3882_v23 = vsub.f32 %v3818_v29, %v3850_v61 }
 0x868   : > { %v3905_v47 = vmul.f32 1.442695, %v3882_v23 }
 0x869   : > { %v3859_v12 = vpop.xlane.xlu0 %3858 }
 0x86a   : > { %8886 = vpow2.f32 %v3905_v47  ;;  %v3885_v19 = vsub.f32 %v3821_v26, %v3859_v12  ;;  %v10564_v5 = vpop.f32.mrf.mxu0 }
 0x86b   : > { %12495 = vst [vmem:[#allocation29_spill] sm:$0xff] %v10564_v5  ;;  %v10566_v63 = vpop.eup %8880 }
 0x86c   : > { %v3911_v24 = vmul.f32 1.442695, %v3885_v19  ;;  %v10568_v9 = vpop.f32.mrf.mxu0  ;;  %v3929_v17 = vsel %vm1536_vm3, %v10566_v63, 0.0 }
 0x86d   : > { %12496 = vst [vmem:[#allocation30_spill] sm:$0xff] %v10568_v9  ;;  %v3862_v43 = vpop.xlane.xlu1 %3861  ;;  %3930 = vadd.xlane.f32.xlu0 %v3929_v17 }
 0x86e   : > { %8888 = vpow2.f32 %v3911_v24  ;;  %v3886_v61 = vsub.f32 %v3822_v51, %v3862_v43  ;;  %v10572_v55 = vpop.f32.mrf.mxu0 }
 0x86f   : > { %12497 = vst [vmem:[#allocation31_spill] sm:$0xff] %v10572_v55  ;;  %v10574_v23 = vpop.eup %8882 }
 0x870   : > { %v3913_v29 = vmul.f32 1.442695, %v3886_v61  ;;  %v10576_v26 = vpop.f32.mrf.mxu0  ;;  %v3932_v45 = vsel %vm1536_vm3, %v10574_v23, 0.0 }
 0x871   : > { %12498 = vst [vmem:[#allocation32_spill] sm:$0xff] %v10576_v26  ;;  %v3871_v20 = vpop.xlane.xlu0 %3870  ;;  %3933 = vadd.xlane.f32.xlu1 %v3932_v45 }
 0x872   : > { %8890 = vpow2.f32 %v3913_v29  ;;  %v3889_v47 = vsub.f32 %v3825_v18, %v3871_v20  ;;  %v3431_v12 = vpop.f32.mrf.mxu0 }
 0x873   : > { %v10580_v19 = vpop.eup %8884  ;;  %v3795_v17 = vmul.f32 0.17677669, %v3431_v12 }
 0x874   : > { %v3919_v24 = vmul.f32 1.442695, %v3889_v47  ;;  %v8358_v51 = vpop.f32.mrf.mxu0  ;;  %v3941_v43 = vsel %vm1536_vm3, %v10580_v19, 0.0 }
 0x875   : > { %v10586_v61 = vsel %vm9734_vm2, %v3795_v17, -1e+30  ;;  %3942 = vadd.xlane.f32.xlu0 %v3941_v43  ;;  %v3874_v26 = vpop.xlane.xlu1 %3873 }
 0x876   : > { %8892 = vpow2.f32 %v3919_v24  ;;  %v3890_v45 = vsub.f32 %v10536_v27, %v3874_v26  ;;  %v3434_v29 = vpop.f32.mrf.mxu0  ;;  %v3827_v47 = vsel %vm1536_vm3, %v10586_v61, -inf }
 0x877   : > { %v10589_v18 = vpop.eup %8886  ;;  %v3796_v20 = vmul.f32 0.17677669, %v3434_v29 }
 0x878   : > { %v3921_v35 = vmul.f32 1.442695, %v3890_v45  ;;  %v8359_v12 = vpop.f32.mrf.mxu0  ;;  %v3944_v51 = vsel %vm1536_vm3, %v10589_v18, 0.0 }
 0x879   : > { %v10597_v17 = vsel %vm9742_vm4, %v3796_v20, -1e+30  ;;  %3828 = vmax.xlane.f32.xlu0 %v3827_v47  ;;  %3945 = vadd.xlane.f32.xlu1 %v3944_v51 }
 0x87a   : > { %8894 = vpow2.f32 %v3921_v35  ;;  %v3533_v27 = vpop.f32.mrf.mxu0  ;;  %v3830_v29 = vsel %vm1536_vm3, %v10597_v17, -inf }
 0x87b   : > { %v10599_v26 = vpop.eup %8888  ;;  %v3799_v24 = vmul.f32 0.17677669, %v3533_v27 }
 0x87c   : > { %v8370_v43 = vpop.f32.mrf.mxu0  ;;  %v3953_v45 = vsel %vm1536_vm3, %v10599_v26, 0.0 }
 0x87d   : > { %v10607_v12 = vsel %vm9734_vm2, %v3799_v24, -1e+30  ;;  %3954 = vadd.xlane.f32.xlu0 %v3953_v45  ;;  %3831 = vmax.xlane.f32.xlu1 %v3830_v29 }
 0x87e   : > { %v3536_v20 = vpop.f32.mrf.mxu0  ;;  %v3839_v27 = vsel %vm1536_vm3, %v10607_v12, -inf }
 0x87f   : > { %v10609_v47 = vpop.eup %8890  ;;  %v3800_v35 = vmul.f32 0.17677669, %v3536_v20 }
 0x880   : > { %v8371_v51 = vpop.f32.mrf.mxu0  ;;  %v3956_v43 = vsel %vm1536_vm3, %v10609_v47, 0.0 }
 0x881   : > { %v10617_v25 = vsel %vm9742_vm4, %v3800_v35, -1e+30  ;;  %3840 = vmax.xlane.f32.xlu0 %v3839_v27  ;;  %3957 = vadd.xlane.f32.xlu1 %v3956_v43 }
 0x882   : > { %v3635_v24 = vpop.f32.mrf.mxu0  ;;  %v3842_v51 = vsel %vm1536_vm3, %v10617_v25, -inf }
 0x883   : > { %v10619_v45 = vpop.eup %8892  ;;  %v3803_v29 = vmul.f32 0.17677669, %v3635_v24 }
 0x884   : > { %v8382_v42 = vpop.f32.mrf.mxu0  ;;  %v3965_v20 = vsel %vm1536_vm3, %v10619_v45, 0.0 }
 0x885   : > { %v10627_v14 = vsel %vm9734_vm2, %v3803_v29, -1e+30  ;;  %3966 = vadd.xlane.f32.xlu0 %v3965_v20  ;;  %3843 = vmax.xlane.f32.xlu1 %v3842_v51 }
 0x886   : > { %v3638_v35 = vpop.f32.mrf.mxu0  ;;  %v3851_v42 = vsel %vm1536_vm3, %v10627_v14, -inf }
 0x887   : > { %v10629_v27 = vpop.eup %8894  ;;  %v3804_v43 = vmul.f32 0.17677669, %v3638_v35 }
 0x888   : > { %v8383_v55 = vpop.f32.mrf.mxu0  ;;  %v3968_v24 = vsel %vm1536_vm3, %v10629_v27, 0.0 }
 0x889   : > { %v10637_v0 = vsel %vm9742_vm4, %v3804_v43, -1e+30  ;;  %3852 = vmax.xlane.f32.xlu0 %v3851_v42  ;;  %3969 = vadd.xlane.f32.xlu1 %v3968_v24  ;;  %v12499_v42 = vld [vmem:[#allocation8_spill] sm:$0xff] }
 0x88a   : > { %v3737_v29 = vpop.f32.mrf.mxu0  ;;  %v3854_v9 = vsel %vm1536_vm3, %v10637_v0, -inf  ;;  %v12500_v24 = vld [vmem:[#allocation4_spill] sm:$0xff] }
 0x88b   : > { %v3807_v20 = vmul.f32 0.17677669, %v3737_v29  ;;  %v12501_v29 = vld [vmem:[#allocation7_spill] sm:$0xff] }
 0x88c   : > { %v8394_v51 = vpop.f32.mrf.mxu0 }
 0x88d   : > { %v10643_v55 = vsel %vm9734_vm2, %v3807_v20, -1e+30  ;;  %3855 = vmax.xlane.f32.xlu1 %v3854_v9 }
 0x88e   : > { %v3740_v35 = vpop.f32.mrf.mxu0  ;;  %v3863_v16 = vsel %vm1536_vm3, %v10643_v55, -inf }
 0x88f   : > { %3864 = vmax.xlane.f32.xlu0 %v3863_v16  ;;  %v3808_v51 = vmul.f32 0.17677669, %v3740_v35  ;;  %v12502_v16 = vld [vmem:[#allocation3_spill] sm:$0xff] }
 0x890   : > { %v8395_v43 = vpop.f32.mrf.mxu0 }
 0x891   : > { %v10655_v20 = vsel %vm9742_vm4, %v3808_v51, -1e+30 }
 0x892   : > { %v3866_v9 = vsel %vm1536_vm3, %v10655_v20, -inf }
 0x89e   : > { %4058 = vrot.lane.b32.xlu1 %v12499_v42, %s9196_s18 }
 0x8a2   : > { %4105 = vrot.lane.b32.xlu1 %v12500_v24, %s9196_s18 }
 0x8a5   : > { %4011 = vrot.lane.b32.xlu0 %v12501_v29, %s9196_s18 }
 0x8c6   : > { %3867 = vmax.xlane.f32.xlu1 %v3866_v9 }
 0x8d7   : > { %4152 = vrot.lane.b32.xlu1 %v12502_v16, %s9196_s18 }
 0x8f6   : > { %v3931_v43 = vpop.xlane.xlu0 %3930 }
 0x8fa   : > { %v3934_v42 = vpop.xlane.xlu1 %3933 }
 0x8fe   : > { %v3943_v5 = vpop.xlane.xlu0 %3942 }
 0x902   : > { %v3829_v31 = vpop.xlane.xlu0 %3828  ;;  %v3946_v24 = vpop.xlane.xlu1 %3945 }
 0x903   : > { %v3875_v60 = vsub.f32 %v10586_v61, %v3829_v31 }
 0x905   : > { %v3891_v29 = vmul.f32 1.442695, %v3875_v60 }
 0x906   : > { %v10662_v35 = vpop.xlane.xlu0 %3954  ;;  %v3832_v32 = vpop.xlane.xlu1 %3831 }
 0x907   : > { %8896 = vpow2.f32 %v3891_v29  ;;  %v3876_v51 = vsub.f32 %v10597_v17, %v3832_v32 }
 0x908   : > { %8898 = vrcp.f32 %v3934_v42 }
 0x909   : > { %v3893_v30 = vmul.f32 1.442695, %v3876_v51  ;;  %8900 = vrcp.f32 %v3931_v43 }
 0x90a   : > { %v3841_v9 = vpop.xlane.xlu0 %3840  ;;  %v10665_v2 = vpop.xlane.xlu1 %3957 }
 0x90b   : > { %8902 = vpow2.f32 %v3893_v30  ;;  %v3879_v16 = vsub.f32 %v10607_v12, %v3841_v9 }
 0x90d   : > { %v3899_v44 = vmul.f32 1.442695, %v3879_v16 }
 0x90e   : > { %v10668_v8 = vpop.xlane.xlu0 %3966  ;;  %v3844_v31 = vpop.xlane.xlu1 %3843 }
 0x90f   : > { %8904 = vpow2.f32 %v3899_v44 }
 0x912   : > { %v10670_v60 = vpop.xlane.xlu1 %3969  ;;  %v3853_v29 = vpop.xlane.xlu0 %3852 }
 0x914   : > { %v10672_v61 = vpop.eup %8896 }
 0x915   : > { %v8899_v32 = vpop.eup %8898  ;;  %v3923_v17 = vsel %vm1536_vm3, %v10672_v61, 0.0 }
 0x916   : > { %3924 = vadd.xlane.f32.xlu0 %v3923_v17  ;;  %v3856_v42 = vpop.xlane.xlu1 %3855  ;;  %v8901_v43 = vpop.eup %8900  ;;  %v3990_v12 = vmul.f32 %v8899_v32, %v10574_v23  ;;  %v12504_v23 = vld [vmem:[#allocation6_spill] sm:$0xff]  ;;  %v3880_v32 = vsub.f32 %v10617_v25, %v3844_v31 }
 0x917   : > { %v3989_v51 = vmul.f32 %v8901_v43, %v10566_v63  ;;  %v12503_v63 = vld [vmem:[#allocation5_spill] sm:$0xff] }
 0x918   : > { %v10676_v30 = vpop.eup %8902  ;;  %v3865_v16 = vpop.xlane.xlu0 %3864  ;;  %v3901_v43 = vmul.f32 1.442695, %v3880_v32 }
 0x919   : > { %v3926_v44 = vsel %vm1536_vm3, %v10676_v30, 0.0  ;;  %v4004_v48 = vpack.c.bf16 %v3990_v12, %v3989_v51  ;;  %v3884_v12 = vsub.f32 %v10637_v0, %v3856_v42  ;;  %v3887_v51 = vsub.f32 %v10643_v55, %v3865_v16 }
 0x91a   : > { %3927 = vadd.xlane.f32.xlu1 %v3926_v44  ;;  %v4059_v9 = vpop.permute.xlu1 %4058  ;;  %8906 = vpow2.f32 %v3901_v43 }
 0x91b   : > { %8409 = vmatpush3.bf16.msra.mxu1 %v4059_v9  ;;  %8908 = vrcp.f32 %v3946_v24  ;;  %v3915_v9 = vmul.f32 1.442695, %v3887_v51 }
 0x91c   : > { %v10682_v3 = vpop.eup %8904  ;;  %v4012_v38 = vpop.permute.xlu0 %4011  ;;  %8420 = vmatprep.subr.bf16.mxu1 %v12463_v52 }
 0x91d   : > { %8403 = vmatpush3.bf16.msra.mxu0 %v4012_v38  ;;  %v3935_v17 = vsel %vm1536_vm3, %v10682_v3, 0.0  ;;  %v3883_v38 = vsub.f32 %v10627_v14, %v3853_v29 }
 0x91e   : > { %3936 = vadd.xlane.f32.xlu0 %v3935_v17  ;;  %8411 = vmatmul.mubr.msk.bf16.vlgmr.msra.gmra.mxu1 %vm1536_vm3, %v4004_v48  ;;  %v3909_v48 = vmul.f32 1.442695, %v3884_v12 }
 0x91f   : > { %8422 = vmatprep.mubr.msk.bf16.mxu1 %vm9194_vm0, %v12463_v52  ;;  %8414 = vmatprep.subr.bf16.mxu0 %v12463_v52  ;;  %v3907_v44 = vmul.f32 1.442695, %v3883_v38 }
 0x921   : > { %8910 = vpow2.f32 %v3907_v44 }
 0x922   : > { %8912 = vpow2.f32 %v3909_v48 }
 0x923   : > { %8914 = vrcp.f32 %v3943_v5 }
 0x924   : > { %8916 = vpow2.f32 %v3915_v9 }
 0x927   : > { %v10699_v17 = vpop.eup %8906 }
 0x928   : > { %v8909_v25 = vpop.eup %8908  ;;  %v3938_v0 = vsel %vm1536_vm3, %v10699_v17, 0.0 }
 0x929   : > { %v3994_v5 = vmul.f32 %v8909_v25, %v10589_v18 }
 0x92b   : > { %4246 = vrot.lane.b32.xlu1 %v12503_v63, %s9196_s18 }
 0x92e   : > { %v10703_v14 = vpop.eup %8910 }
 0x92f   : > { %v10707_v31 = vpop.eup %8912  ;;  %v3947_v16 = vsel %vm1536_vm3, %v10703_v14, 0.0 }
 0x930   : > { %v8915_v24 = vpop.eup %8914  ;;  %v3950_v32 = vsel %vm1536_vm3, %v10707_v31, 0.0 }
 0x931   : > { %v10715_v38 = vpop.eup %8916  ;;  %v3993_v43 = vmul.f32 %v8915_v24, %v10580_v19 }
 0x932   : > { %v3959_v18 = vsel %vm1536_vm3, %v10715_v38, 0.0 }
 0x933   : > { %v4006_v44 = vpack.c.bf16 %v3994_v5, %v3993_v43 }
 0x934   : > { %4199 = vrot.lane.b32.xlu0 %v12504_v23, %s9196_s18  ;;  %v10701_v23 = vpop.permute.xlu1 %4105 }
 0x94f   : > { %3939 = vadd.xlane.f32.xlu1 %v3938_v0  ;;  %v3868_v55 = vpop.xlane.xlu1 %3867 }
 0x950   : > { %v3888_v29 = vsub.f32 %v10655_v20, %v3868_v55 }
 0x952   : > { %v3917_v42 = vmul.f32 1.442695, %v3888_v29 }
 0x953   : > { %3948 = vadd.xlane.f32.xlu0 %v3947_v16  ;;  %3951 = vadd.xlane.f32.xlu1 %v3950_v32  ;;  %v4153_v12 = vpop.permute.xlu1 %4152 }
 0x954   : > { %8918 = vpow2.f32 %v3917_v42  ;;  %8421 = vmatpush3.bf16.msra.mxu1 %v4153_v12 }
 0x955   : > { %8432 = vmatprep.subr.bf16.mxu1 %v12463_v52  ;;  %8920 = vrcp.f32 %v10665_v2 }
 0x956   : > { %8922 = vrcp.f32 %v10662_v35 }
 0x957   : > { %3960 = vadd.xlane.f32.xlu0 %v3959_v18  ;;  %8423 = vmatmul.mubr.msk.bf16.vlgmr.msra.gmra.mxu1 %vm1536_vm3, %v4006_v44 }
 0x958   : > { %8434 = vmatprep.mubr.msk.bf16.mxu1 %vm9194_vm0, %v12463_v52 }
 0x961   : > { %v10724_v20 = vpop.eup %8918 }
 0x962   : > { %v3962_v19 = vsel %vm1536_vm3, %v10724_v20, 0.0 }
 0x963   : > { %3963 = vadd.xlane.f32.xlu1 %v3962_v19 }
 0x96d   : > { %4293 = vrot.lane.b32.xlu0 %v9646_v58, %s9196_s18 }
 0x971   : > { %4546 = vrot.lane.b32.xlu0 %v9561_v39, %s9197_s30 }
 0x974   : > { %4340 = vrot.lane.b32.xlu1 %v9639_v40, %s9196_s18 }
 0x975   : > { %4597 = vrot.lane.b32.xlu0 %v9586_v22, %s9197_s30 }
 0x978   : > { %4544 = vrot.lane.b32.xlu1 %v9584_v37, %s9197_s30  ;;  %v8921_v37 = vpop.eup %8920 }
 0x979   : > { %4648 = vrot.lane.b32.xlu0 %v9609_v59, %s9197_s30  ;;  %v3998_v59 = vmul.f32 %v8921_v37, %v10609_v47 }
 0x97c   : > { %4595 = vrot.lane.b32.xlu1 %v9607_v56, %s9197_s30  ;;  %v8923_v56 = vpop.eup %8922 }
 0x97d   : > { %4699 = vrot.lane.b32.xlu0 %v9632_v34, %s9197_s30 }
 0x980   : > { %4646 = vrot.lane.b32.xlu1 %v9630_v33, %s9197_s30  ;;  %v3997_v33 = vmul.f32 %v8923_v56, %v10599_v26 }
 0x981   : > { %4750 = vrot.lane.b32.xlu0 %v9653_v4, %s9197_s30 }
 0x984   : > { %4697 = vrot.lane.b32.xlu1 %v9651_v53, %s9197_s30  ;;  %v4008_v53 = vpack.c.bf16 %v3998_v59, %v3997_v33 }
 0x985   : > { %4748 = vrot.lane.b32.xlu0 %v9666_v62, %s9197_s30 }
 0x988   : > { %4801 = vrot.lane.b32.xlu1 %v9668_v1, %s9197_s30 }
 0x989   : > { %4852 = vrot.lane.b32.xlu0 %v9683_v28, %s9197_s30 }
 0x98c   : > { %4799 = vrot.lane.b32.xlu1 %v9681_v13, %s9197_s30 }
 0x98d   : > { %4850 = vrot.lane.b32.xlu0 %v9700_v49, %s9197_s30 }
 0x990   : > { %4903 = vrot.lane.b32.xlu1 %v9702_v50, %s9197_s30 }
 0x994   : > { %4901 = vrot.lane.b32.xlu1 %v9721_v54, %s9197_s30 }
 0x99f   : > { %v3925_v39 = vpop.xlane.xlu0 %3924 }
 0x9a0   : > { %8924 = vrcp.f32 %v3925_v39 }
 0x9a3   : > { %v3928_v22 = vpop.xlane.xlu1 %3927 }
 0x9a4   : > { %8926 = vrcp.f32 %v3928_v22 }
 0x9a7   : > { %v4247_v34 = vpop.permute.xlu1 %4246  ;;  %v3937_v49 = vpop.xlane.xlu0 %3936 }
 0x9a8   : > { %8433 = vmatpush3.bf16.msra.mxu1 %v4247_v34  ;;  %8928 = vrcp.f32 %v3937_v49  ;;  %v8637_v34 = vld [vmem:[%s12389_s5 + $0x20] sm:$0xff]  }
 0x9a9   : > { %8444 = vmatprep.subr.bf16.mxu1 %v12463_v52 }
 0x9ab   : > { %8435 = vmatmul.mubr.msk.bf16.vlgmr.msra.gmra.mxu1 %vm1536_vm3, %v4008_v53  ;;  %v4200_v50 = vpop.permute.xlu0 %4199 }
 0x9ac   : > { %8446 = vmatprep.mubr.msk.bf16.mxu1 %vm9194_vm0, %v12463_v52 }
 0x9ad   : > { %v8925_v4 = vpop.eup %8924 }
 0x9ae   : > { %v3987_v1 = vmul.f32 %v8925_v4, %v10672_v61 }
 0x9b1   : > { %v8927_v62 = vpop.eup %8926 }
 0x9b2   : > { %v3988_v13 = vmul.f32 %v8927_v62, %v10676_v30 }
 0x9b4   : > { %v4003_v28 = vpack.c.bf16 %v3988_v13, %v3987_v1 }
 0x9b6   : > { %8405 = vmatmul.mubr.msk.bf16.vlgmr.msra.gmra.mxu0 %vm1536_vm3, %v4003_v28 }
 0x9b7   : > { %8415 = vmatpush3.bf16.msra.mxu0 %v10701_v23  ;;  %8416 = vmatprep.mubr.msk.bf16.mxu0 %vm9194_vm0, %v12463_v52  ;;  %v8929_v23 = vpop.eup %8928 }
 0x9b8   : > { %8426 = vmatprep.subr.bf16.mxu0 %v12463_v52 }
 0x9d8   : > { %v3940_v54 = vpop.xlane.xlu1 %3939 }
 0x9d9   : > { %8930 = vrcp.f32 %v3940_v54 }
 0x9da   : > { %8932 = vrcp.f32 %v10670_v60  ;;  %v3991_v60 = vmul.f32 %v8929_v23, %v10682_v3 }
 0x9dc   : > { %v3949_v2 = vpop.xlane.xlu0 %3948  ;;  %v3952_v26 = vpop.xlane.xlu1 %3951 }
 0x9dd   : > { %8934 = vrcp.f32 %v3949_v2 }
 0x9de   : > { %8936 = vrcp.f32 %v3952_v26  ;;  %v10780_v47 = vpop.f32.mrf.mxu1 }
 0x9df   : > { %8938 = vrcp.f32 %v10668_v8 }
 0x9e0   : > { %v8412_v35 = vpop.f32.mrf.mxu1  ;;  %v3961_v51 = vpop.xlane.xlu0 %3960 }
 0x9e1   : > { %8940 = vrcp.f32 %v3961_v51 }
 0x9e2   : > { %v10783_v61 = vpop.f32.mrf.mxu1 }
 0x9e3   : > { %v4388_v30 = vpack.c.bf16 %v10783_v61, %v10780_v47 }
 0x9e4   : > { %v8413_v48 = vpop.f32.mrf.mxu1  ;;  %v4294_v8 = vpop.permute.xlu0 %4293 }
 0x9e6   : > { %v8931_v9 = vpop.eup %8930 }
 0x9e7   : > { %v3992_v25 = vmul.f32 %v8931_v9, %v10699_v17  ;;  %v8933_v0 = vpop.eup %8932 }
 0x9e8   : > { %v4002_v17 = vmul.f32 %v8933_v0, %v10629_v27  ;;  %v4547_v44 = vpop.permute.xlu0 %4546 }
 0x9e9   : > { %v4005_v55 = vpack.c.bf16 %v3992_v25, %v3991_v60 }
 0x9ea   : > { %v8935_v24 = vpop.eup %8934 }
 0x9eb   : > { %v8937_v29 = vpop.eup %8936  ;;  %8417 = vmatmul.mubr.msk.bf16.vlgmr.msra.gmra.mxu0 %vm1536_vm3, %v4005_v55  ;;  %v3995_v16 = vmul.f32 %v8935_v24, %v10703_v14  ;;  %v8636_v14 = vld [vmem:[%s12389_s5 + $0x28] sm:$0xff]  }
 0x9ec   : > { %8427 = vmatpush3.bf16.msra.mxu0 %v4200_v50  ;;  %v3964_v5 = vpop.xlane.xlu1 %3963  ;;  %8428 = vmatprep.mubr.msk.bf16.mxu0 %vm9194_vm0, %v12463_v52  ;;  %v8939_v42 = vpop.eup %8938  ;;  %v3996_v3 = vmul.f32 %v8937_v29, %v10707_v31  ;;  %v4552_v31 = vsel %vm1123_vm1, %v4547_v44, 0 }
 0x9ed   : > { %8942 = vrcp.f32 %v3964_v5  ;;  %8438 = vmatprep.subr.bf16.mxu0 %v12463_v52  ;;  %v4001_v32 = vmul.f32 %v8939_v42, %v10619_v45  ;;  %v4598_v19 = vpop.permute.xlu0 %4597 }
 0x9ee   : > { %v4007_v12 = vpack.c.bf16 %v3996_v3, %v3995_v16  ;;  %v8941_v45 = vpop.eup %8940  ;;  %v4603_v59 = vsel %vm1123_vm1, %v4598_v19, 0 }
 0x9ef   : > { %v4010_v18 = vpack.c.bf16 %v4002_v17, %v4001_v32  ;;  %v3999_v37 = vmul.f32 %v8941_v45, %v10715_v38 }
 0x9f0   : > { %v4341_v43 = vpop.permute.xlu1 %4340 }
 0x9f1   : > { %8445 = vmatpush3.bf16.msra.mxu1 %v4341_v43  ;;  %v4649_v38 = vpop.permute.xlu0 %4648 }
 0x9f2   : > { %8470 = vmatprep.subr.bf16.mxu1 %v12463_v52  ;;  %v4654_v53 = vsel %vm1123_vm1, %v4649_v38, 0 }
 0x9f3   : > { %8429 = vmatmul.mubr.msk.bf16.vlgmr.msra.gmra.mxu0 %vm1536_vm3, %v4007_v12 }
 0x9f4   : > { %8439 = vmatpush3.bf16.msra.mxu0 %v4294_v8  ;;  %8447 = vmatmul.mubr.msk.bf16.vlgmr.msra.gmra.mxu1 %vm1536_vm3, %v4010_v18  ;;  %v4545_v27 = vpop.permute.xlu1 %4544 }
 0x9f5   : > { %8471 = vmatpush3.bf16.xpose.msra.mxu1 %v4552_v31  ;;  %8472 = vmatprep.mubr.msk.bf16.mxu1 %vm9194_vm0, %v12463_v52  ;;  %v4700_v62 = vpop.permute.xlu0 %4699 }
 0x9f6   : > { %8476 = vmatprep.subr.bf16.mxu1 %v12463_v52  ;;  %8440 = vmatprep.mubr.msk.bf16.mxu0 %vm9194_vm0, %v12463_v52  ;;  %v4705_v1 = vsel %vm1123_vm1, %v4700_v62, 0 }
 0x9f7   : > { %8450 = vmatprep.subr.bf16.mxu0 %v8636_v14 }
 0x9f8   : > { %v4596_v56 = vpop.permute.xlu1 %4595 }
 0x9f9   : > { %v4751_v5 = vpop.permute.xlu0 %4750 }
 0x9fa   : > { %v8943_v39 = vpop.eup %8942  ;;  %v4756_v3 = vsel %vm1123_vm1, %v4751_v5, 0 }
 0x9fb   : > { %v4000_v22 = vmul.f32 %v8943_v39, %v10724_v20 }
 0x9fc   : > { %8473 = vmatmul.mubr.msk.bf16.vlgmr.msra.gmra.mxu1 %vm1123_vm1, %v4545_v27  ;;  %v4647_v20 = vpop.permute.xlu1 %4646 }
 0x9fd   : > { %v4009_v33 = vpack.c.bf16 %v4000_v22, %v3999_v37  ;;  %8477 = vmatpush3.bf16.xpose.msra.mxu1 %v4603_v59  ;;  %8478 = vmatprep.mubr.msk.bf16.mxu1 %vm9194_vm0, %v12463_v52 }
 0x9fe   : > { %8482 = vmatprep.subr.bf16.mxu1 %v12463_v52 }
 0x9ff   : > { %8441 = vmatmul.mubr.msk.bf16.vlgmr.msra.gmra.mxu0 %vm1536_vm3, %v4009_v33 }
 0xa00   : > { %8451 = vmatpush3.bf16.msra.mxu0 %v8636_v14  ;;  %v4698_v4 = vpop.permute.xlu1 %4697 }
 0xa01   : > { %8452 = vmatprep.subr.bf16.mxu0 %v8637_v34 }
 0xa04   : > { %8479 = vmatmul.mubr.msk.bf16.vlgmr.msra.gmra.mxu1 %vm1123_vm1, %v4596_v56  ;;  %8453 = vmatpush3.bf16.msra.mxu0 %v8637_v34  ;;  %v4802_v13 = vpop.permute.xlu1 %4801 }
 0xa05   : > { %8483 = vmatpush3.bf16.xpose.msra.mxu1 %v4654_v53  ;;  %8484 = vmatprep.mubr.msk.bf16.mxu1 %vm9194_vm0, %v12463_v52  ;;  %v4807_v49 = vsel %vm1123_vm1, %v4802_v13, 0 }
 0xa06   : > { %8488 = vmatprep.subr.bf16.mxu1 %v12463_v52  ;;  %8494 = vmatprep.subr.bf16.mxu0 %v12463_v52 }
 0xa08   : > { %v4800_v28 = vpop.permute.xlu1 %4799 }
 0xa0c   : > { %8485 = vmatmul.mubr.msk.bf16.vlgmr.msra.gmra.mxu1 %vm1123_vm1, %v4647_v20  ;;  %v4904_v54 = vpop.permute.xlu1 %4903 }
 0xa0d   : > { %8489 = vmatpush3.bf16.xpose.msra.mxu1 %v4705_v1  ;;  %8490 = vmatprep.mubr.msk.bf16.mxu1 %vm9194_vm0, %v12463_v52  ;;  %v4909_v35 = vsel %vm1123_vm1, %v4904_v54, 0 }
 0xa0e   : > { %8500 = vmatprep.subr.bf16.mxu1 %v12463_v52 }
 0xa10   : > { %v4902_v51 = vpop.permute.xlu1 %4901 }
 0xa14   : > { %8491 = vmatmul.mubr.msk.bf16.vlgmr.msra.gmra.mxu1 %vm1123_vm1, %v4698_v4 }
 0xa15   : > { %8501 = vmatpush3.bf16.xpose.msra.mxu1 %v4807_v49  ;;  %8502 = vmatprep.mubr.msk.bf16.mxu1 %vm9194_vm0, %v12463_v52 }
 0xa16   : > { %8512 = vmatprep.subr.bf16.mxu1 %v12463_v52 }
 0xa17   : > { %v4192_v50 = vpop.f32.mrf.mxu1 }
 0xa19   : > { %v8424_v2 = vpop.f32.mrf.mxu1 }
 0xa1a   : > { %v4749_v2 = vpop.permute.xlu0 %4748 }
 0xa1b   : > { %v4195_v26 = vpop.f32.mrf.mxu1 }
 0xa1c   : > { %v4390_v23 = vpack.c.bf16 %v4195_v26, %v4192_v50  ;;  %8503 = vmatmul.mubr.msk.bf16.vlgmr.msra.gmra.mxu1 %vm1123_vm1, %v4800_v28 }
 0xa1d   : > { %v8425_v48 = vpop.f32.mrf.mxu1  ;;  %8513 = vmatpush3.bf16.xpose.msra.mxu1 %v4909_v35  ;;  %8514 = vmatprep.mubr.msk.bf16.mxu1 %vm9194_vm0, %v12463_v52 }
 0xa1e   : > { %8524 = vmatprep.subr.bf16.mxu1 %v12463_v52 }
 0xa24   : > { %8515 = vmatmul.mubr.msk.bf16.vlgmr.msra.gmra.mxu1 %vm1123_vm1, %v4902_v51 }
 0xa25   : > { %8526 = vmatprep.mubr.msk.bf16.mxu1 %vm9194_vm0, %v12463_v52 }
 0xa6b   : > { %v4286_v9 = vpop.f32.mrf.mxu1 }
 0xa6d   : > { %v8436_v60 = vpop.f32.mrf.mxu1 }
 0xa6f   : > { %v4289_v25 = vpop.f32.mrf.mxu1 }
 0xa70   : > { %v4392_v0 = vpack.c.bf16 %v4289_v25, %v4286_v9  ;;  %v4853_v25 = vpop.permute.xlu0 %4852 }
 0xa71   : > { %v8437_v55 = vpop.f32.mrf.mxu1 }
 0xa76   : > { %v4051_v24 = vpop.f32.mrf.mxu0 }
 0xa78   : > { %v8406_v29 = vpop.f32.mrf.mxu0 }
 0xa7a   : > { %v4054_v8 = vpop.f32.mrf.mxu0 }
 0xa7b   : > { %v4387_v42 = vpack.c.bf16 %v4054_v8, %v4051_v24  ;;  %v4858_v8 = vsel %vm1123_vm1, %v4853_v25, 0  ;;  %v3325_v25 = vadd.f32 %v10459_v46, %v10542_v7 }
 0xa7c   : > { %v8407_v16 = vpop.f32.mrf.mxu0 }
 0xa7d   : > { %8454 = vmatprep.mubr.msk.bf16.mxu0 %vm1123_vm1, %v4387_v42 }
 0xa7e   : > { %8455 = vmatmul.mubr.msk.bf16.vlgmr.msra.gmra.mxu0 %vm1123_vm1, %v4388_v30 }
 0xa7f   : > { %8495 = vmatpush3.bf16.xpose.msra.mxu0 %v4756_v3 }
 0xa80   : > { %8506 = vmatprep.subr.bf16.mxu0 %v12463_v52 }
 0xaab   : > { %v4145_v17 = vpop.f32.mrf.mxu0 }
 0xaad   : > { %v8418_v32 = vpop.f32.mrf.mxu0 }
 0xaaf   : > { %v4148_v43 = vpop.f32.mrf.mxu0 }
 0xab0   : > { %v4389_v12 = vpack.c.bf16 %v4148_v43, %v4145_v17 }
 0xab1   : > { %v8419_v44 = vpop.f32.mrf.mxu0 }
 0xab2   : > { %8458 = vmatprep.mubr.msk.bf16.mxu0 %vm1123_vm1, %v4389_v12 }
 0xab3   : > { %v4239_v18 = vpop.f32.mrf.mxu0  ;;  %8459 = vmatmul.mubr.msk.bf16.gmra.mxu0 %vm1123_vm1, %v4390_v23 }
 0xab4   : > { %v4380_v14 = vpop.f32.mrf.mxu1 }
 0xab5   : > { %v8430_v31 = vpop.f32.mrf.mxu0 }
 0xab6   : > { %v8448_v27 = vpop.f32.mrf.mxu1 }
 0xab7   : > { %v4242_v45 = vpop.f32.mrf.mxu0 }
 0xab8   : > { %v4391_v47 = vpack.c.bf16 %v4242_v45, %v4239_v18  ;;  %v4383_v61 = vpop.f32.mrf.mxu1  ;;  %v4851_v18 = vpop.permute.xlu0 %4850 }
 0xab9   : > { %v8431_v30 = vpop.f32.mrf.mxu0  ;;  %v4394_v49 = vpack.c.bf16 %v4383_v61, %v4380_v14 }
 0xaba   : > { %v8449_v19 = vpop.f32.mrf.mxu1  ;;  %8462 = vmatprep.mubr.msk.bf16.mxu0 %vm1123_vm1, %v4391_v47 }
 0xabb   : > { %8463 = vmatmul.mubr.msk.bf16.gmra.mxu0 %vm1123_vm1, %v4392_v0 }
 0xabc   : > { %v4588_v39 = vpop.f32.mrf.mxu1 }
 0xabd   : > { %v4952_v37 = vmul.f32 0.17677669, %v4588_v39 }
 0xabe   : > { %v8474_v22 = vpop.f32.mrf.mxu1 }
 0xabf   : > { %v10857_v56 = vsel %vm9734_vm2, %v4952_v37, -1e+30  ;;  %v4333_v59 = vpop.f32.mrf.mxu0 }
 0xac0   : > { %v4591_v33 = vpop.f32.mrf.mxu1  ;;  %v4984_v34 = vsel %vm1536_vm3, %v10857_v56, -inf }
 0xac1   : > { %v4953_v38 = vmul.f32 0.17677669, %v4591_v33  ;;  %v8442_v20 = vpop.f32.mrf.mxu0  ;;  %4985 = vmax.xlane.f32.xlu0 %v4984_v34 }
 0xac2   : > { %v8475_v53 = vpop.f32.mrf.mxu1 }
 0xac3   : > { %v10863_v4 = vsel %vm9742_vm4, %v4953_v38, -1e+30  ;;  %v4336_v62 = vpop.f32.mrf.mxu0 }
 0xac4   : > { %v4393_v1 = vpack.c.bf16 %v4336_v62, %v4333_v59  ;;  %v4639_v13 = vpop.f32.mrf.mxu1  ;;  %v4987_v28 = vsel %vm1536_vm3, %v10863_v4, -inf }
 0xac5   : > { %v4954_v50 = vmul.f32 0.17677669, %v4639_v13  ;;  %v8443_v54 = vpop.f32.mrf.mxu0  ;;  %4988 = vmax.xlane.f32.xlu1 %v4987_v28 }
 0xac6   : > { %8466 = vmatprep.mubr.msk.bf16.mxu0 %vm1123_vm1, %v4393_v1  ;;  %v8480_v26 = vpop.f32.mrf.mxu1 }
 0xac7   : > { %v10870_v35 = vsel %vm9734_vm2, %v4954_v50, -1e+30  ;;  %8467 = vmatmul.mubr.msk.bf16.gmra.mxu0 %vm1123_vm1, %v4394_v49 }
 0xac8   : > { %v4642_v23 = vpop.f32.mrf.mxu1  ;;  %v4990_v48 = vsel %vm1536_vm3, %v10870_v35, -inf  ;;  %8496 = vmatprep.mubr.msk.bf16.mxu0 %vm9194_vm0, %v12463_v52 }
 0xac9   : > { %v4955_v51 = vmul.f32 0.17677669, %v4642_v23  ;;  %4991 = vmax.xlane.f32.xlu0 %v4990_v48 }
 0xaca   : > { %v8481_v9 = vpop.f32.mrf.mxu1 }
 0xacb   : > { %v10879_v60 = vsel %vm9742_vm4, %v4955_v51, -1e+30  ;;  %v3333_v51 = vadd.f32 %v10455_v36, %v10540_v41 }
 0xacc   : > { %v4690_v0 = vpop.f32.mrf.mxu1  ;;  %v4993_v55 = vsel %vm1536_vm3, %v10879_v60, -inf }
 0xacd   : > { %v4956_v24 = vmul.f32 0.17677669, %v4690_v0  ;;  %4994 = vmax.xlane.f32.xlu0 %v4993_v55 }
 0xace   : > { %v8486_v29 = vpop.f32.mrf.mxu1 }
 0xacf   : > { %v10886_v5 = vsel %vm9734_vm2, %v4956_v24, -1e+30  ;;  %8497 = vmatmul.mubr.msk.bf16.vlgmr.msra.gmra.mxu0 %vm1123_vm1, %v4749_v2  ;;  %v3336_v24 = vadd.f32 %v10461_v11, %v10544_v21 }
 0xad0   : > { %8507 = vmatpush3.bf16.xpose.msra.mxu0 %v4858_v8  ;;  %v4693_v42 = vpop.f32.mrf.mxu1  ;;  %v4996_v16 = vsel %vm1536_vm3, %v10886_v5, -inf  ;;  %8508 = vmatprep.mubr.msk.bf16.mxu0 %vm9194_vm0, %v12463_v52 }
 0xad1   : > { %v4957_v3 = vmul.f32 0.17677669, %v4693_v42  ;;  %4997 = vmax.xlane.f32.xlu0 %v4996_v16  ;;  %8518 = vmatprep.subr.bf16.mxu0 %v12463_v52 }
 0xad2   : > { %v8487_v17 = vpop.f32.mrf.mxu1 }
 0xad3   : > { %v10896_v32 = vsel %vm9742_vm4, %v4957_v3, -1e+30 }
 0xad4   : > { %v4741_v43 = vpop.f32.mrf.mxu1  ;;  %v4999_v12 = vsel %vm1536_vm3, %v10896_v32, -inf }
 0xad5   : > { %v4958_v44 = vmul.f32 0.17677669, %v4741_v43  ;;  %5000 = vmax.xlane.f32.xlu1 %v4999_v12 }
 0xad6   : > { %v8492_v14 = vpop.f32.mrf.mxu1 }
 0xad7   : > { %v10902_v31 = vsel %vm9734_vm2, %v4958_v44, -1e+30  ;;  %8509 = vmatmul.mubr.msk.bf16.vlgmr.msra.gmra.mxu0 %vm1123_vm1, %v4851_v18 }
 0xad8   : > { %v4744_v27 = vpop.f32.mrf.mxu1  ;;  %v5002_v45 = vsel %vm1536_vm3, %v10902_v31, -inf  ;;  %8520 = vmatprep.mubr.msk.bf16.mxu0 %vm9194_vm0, %v12463_v52 }
 0xad9   : > { %v4959_v47 = vmul.f32 0.17677669, %v4744_v27  ;;  %5003 = vmax.xlane.f32.xlu0 %v5002_v45 }
 0xada   : > { %v8493_v61 = vpop.f32.mrf.mxu1 }
 0xadb   : > { %v10911_v30 = vsel %vm9742_vm4, %v4959_v47, -1e+30 }
 0xadc   : > { %v4843_v19 = vpop.f32.mrf.mxu1  ;;  %v5005_v39 = vsel %vm1536_vm3, %v10911_v30, -inf }
 0xadd   : > { %v4962_v37 = vmul.f32 0.17677669, %v4843_v19  ;;  %5006 = vmax.xlane.f32.xlu1 %v5005_v39 }
 0xade   : > { %v8504_v22 = vpop.f32.mrf.mxu1 }
 0xadf   : > { %v10917_v59 = vsel %vm9734_vm2, %v4962_v37, -1e+30 }
 0xae0   : > { %v4846_v33 = vpop.f32.mrf.mxu1  ;;  %v5014_v34 = vsel %vm1536_vm3, %v10917_v59, -inf }
 0xae1   : > { %v4963_v38 = vmul.f32 0.17677669, %v4846_v33  ;;  %5015 = vmax.xlane.f32.xlu0 %v5014_v34 }
 0xae2   : > { %v8505_v20 = vpop.f32.mrf.mxu1 }
 0xae3   : > { %v10923_v53 = vsel %vm9742_vm4, %v4963_v38, -1e+30 }
 0xae4   : > { %v4945_v62 = vpop.f32.mrf.mxu1  ;;  %v5017_v1 = vsel %vm1536_vm3, %v10923_v53, -inf }
 0xae5   : > { %v4966_v13 = vmul.f32 0.17677669, %v4945_v62  ;;  %5018 = vmax.xlane.f32.xlu1 %v5017_v1 }
 0xae6   : > { %v8516_v28 = vpop.f32.mrf.mxu1 }
 0xae7   : > { %v10929_v49 = vsel %vm9734_vm2, %v4966_v13, -1e+30  ;;  %v3349_v28 = vadd.f32 %v10469_v10, %v10548_v15 }
 0xae8   : > { %v4948_v50 = vpop.f32.mrf.mxu1  ;;  %v5026_v54 = vsel %vm1536_vm3, %v10929_v49, -inf }
 0xae9   : > { %v4967_v2 = vmul.f32 0.17677669, %v4948_v50  ;;  %5027 = vmax.xlane.f32.xlu0 %v5026_v54 }
 0xaea   : > { %v8517_v26 = vpop.f32.mrf.mxu1 }
 0xaeb   : > { %v10935_v23 = vsel %vm9742_vm4, %v4967_v2, -1e+30  ;;  %v12505_v2 = vld [vmem:[#allocation22_spill] sm:$0xff] }
 0xaec   : > { %v5029_v48 = vsel %vm1536_vm3, %v10935_v23, -inf  ;;  %v12506_v26 = vld [vmem:[#allocation10_spill] sm:$0xff] }
 0xaed   : > { %5030 = vmax.xlane.f32.xlu1 %v5029_v48  ;;  %v3341_v48 = vadd.f32 %v12506_v26, %v12505_v2 }
 0xb3e   : > { %v8456_v9 = vpop.f32.mrf.mxu0 }
 0xb3f   : > { %v10943_v0 = vadd.f32 %v8456_v9, %v3333_v51 }
 0xb40   : > { %v4465_v55 = vpop.f32.mrf.mxu0 }
 0xb41   : > { %v10947_v29 = vadd.f32 %v4465_v55, %v3325_v25  ;;  %v12507_v55 = vld [vmem:[#allocation23_spill] sm:$0xff] }
 0xb42   : > { %v8457_v8 = vpop.f32.mrf.mxu0 }
 0xb43   : > { %v10949_v42 = vadd.f32 %v8457_v8, %v3336_v24  ;;  %v12508_v24 = vld [vmem:[#allocation12_spill] sm:$0xff] }
 0xb44   : > { %v10981_v13 = vpop.f32.mrf.mxu0  ;;  %v3352_v8 = vadd.f32 %v12508_v24, %v12507_v55 }
 0xb4a   : > { %v4986_v16 = vpop.xlane.xlu0 %4985 }
 0xb4b   : > { %v5032_v3 = vsub.f32 %v10857_v56, %v4986_v16 }
 0xb4d   : > { %v5048_v17 = vmul.f32 1.442695, %v5032_v3 }
 0xb4e   : > { %v4989_v36 = vpop.xlane.xlu1 %4988 }
 0xb4f   : > { %8944 = vpow2.f32 %v5048_v17  ;;  %v5033_v41 = vsub.f32 %v10863_v4, %v4989_v36 }
 0xb51   : > { %v5050_v46 = vmul.f32 1.442695, %v5033_v41  ;;  %v12509_v41 = vld [vmem:[#allocation25_spill] sm:$0xff] }
 0xb52   : > { %v4992_v7 = vpop.xlane.xlu0 %4991 }
 0xb53   : > { %8946 = vpow2.f32 %v5050_v46  ;;  %v5034_v43 = vsub.f32 %v10870_v35, %v4992_v7  ;;  %v12510_v46 = vld [vmem:[#allocation14_spill] sm:$0xff] }
 0xb54   : > { %v3365_v7 = vadd.f32 %v12510_v46, %v12509_v41 }
 0xb55   : > { %v5052_v12 = vmul.f32 1.442695, %v5034_v43 }
 0xb56   : > { %v4995_v11 = vpop.xlane.xlu0 %4994 }
 0xb57   : > { %8948 = vpow2.f32 %v5052_v12  ;;  %v5035_v21 = vsub.f32 %v10879_v60, %v4995_v11  ;;  %v12511_v12 = vld [vmem:[#allocation26_spill] sm:$0xff]  ;;  %v12512_v11 = vld [vmem:[#allocation15_spill] sm:$0xff] }
 0xb59   : > { %v5054_v44 = vmul.f32 1.442695, %v5035_v21  ;;  %v3357_v21 = vadd.f32 %v12512_v11, %v12511_v12 }
 0xb5a   : > { %v4998_v18 = vpop.xlane.xlu0 %4997 }
 0xb5b   : > { %8950 = vpow2.f32 %v5054_v44  ;;  %v5036_v56 = vsub.f32 %v10886_v5, %v4998_v18 }
 0xb5c   : > { %v10956_v14 = vpop.eup %8944 }
 0xb5d   : > { %v5056_v27 = vmul.f32 1.442695, %v5036_v56  ;;  %v5080_v4 = vsel %vm1536_vm3, %v10956_v14, 0.0  ;;  %v12513_v56 = vld [vmem:[#allocation27_spill] sm:$0xff] }
 0xb5e   : > { %v5001_v45 = vpop.xlane.xlu1 %5000  ;;  %5081 = vadd.xlane.f32.xlu0 %v5080_v4 }
 0xb5f   : > { %8952 = vpow2.f32 %v5056_v27  ;;  %v5037_v35 = vsub.f32 %v10896_v32, %v5001_v45  ;;  %v12514_v27 = vld [vmem:[#allocation16_spill] sm:$0xff] }
 0xb60   : > { %v10961_v47 = vpop.eup %8946  ;;  %v3368_v4 = vadd.f32 %v12514_v27, %v12513_v56 }
 0xb61   : > { %v5058_v61 = vmul.f32 1.442695, %v5037_v35  ;;  %v5083_v60 = vsel %vm1536_vm3, %v10961_v47, 0.0 }
 0xb62   : > { %v5004_v19 = vpop.xlane.xlu0 %5003  ;;  %5084 = vadd.xlane.f32.xlu1 %v5083_v60 }
 0xb63   : > { %8954 = vpow2.f32 %v5058_v61  ;;  %v5038_v5 = vsub.f32 %v10902_v31, %v5004_v19  ;;  %v12515_v19 = vld [vmem:[#allocation29_spill] sm:$0xff] }
 0xb64   : > { %v10966_v39 = vpop.eup %8948 }
 0xb65   : > { %v5060_v37 = vmul.f32 1.442695, %v5038_v5  ;;  %v5086_v22 = vsel %vm1536_vm3, %v10966_v39, 0.0  ;;  %v12516_v5 = vld [vmem:[#allocation18_spill] sm:$0xff] }
 0xb66   : > { %v5007_v33 = vpop.xlane.xlu1 %5006  ;;  %5087 = vadd.xlane.f32.xlu0 %v5086_v22 }
 0xb67   : > { %8956 = vpow2.f32 %v5060_v37  ;;  %v5039_v32 = vsub.f32 %v10911_v30, %v5007_v33  ;;  %v3381_v37 = vadd.f32 %v12516_v5, %v12515_v19  ;;  %v12517_v33 = vld [vmem:[#allocation30_spill] sm:$0xff]  ;;  %v12522_v19 = vld [vmem:[#allocation7_spill] sm:$0xff] }
 0xb68   : > { %v10971_v34 = vpop.eup %8950 }
 0xb69   : > { %v5062_v38 = vmul.f32 1.442695, %v5039_v32  ;;  %v5089_v20 = vsel %vm1536_vm3, %v10971_v34, 0.0  ;;  %v12518_v32 = vld [vmem:[#allocation19_spill] sm:$0xff] }
 0xb6a   : > { %5090 = vadd.xlane.f32.xlu1 %v5089_v20  ;;  %v5016_v5 = vpop.xlane.xlu0 %5015 }
 0xb6b   : > { %8958 = vpow2.f32 %v5062_v38  ;;  %v3373_v38 = vadd.f32 %v12518_v32, %v12517_v33 }
 0xb6c   : > { %v10975_v31 = vpop.eup %8952 }
 0xb6d   : > { %v5092_v62 = vsel %vm1536_vm3, %v10975_v31, 0.0 }
 0xb6e   : > { %5093 = vadd.xlane.f32.xlu0 %v5092_v62 }
 0xb70   : > { %v10979_v1 = vpop.eup %8954 }
 0xb71   : > { %v5095_v30 = vsel %vm1536_vm3, %v10979_v1, 0.0 }
 0xb72   : > { %5096 = vadd.xlane.f32.xlu1 %v5095_v30  ;;  %v12519_v30 = vld [vmem:[#allocation31_spill] sm:$0xff] }
 0xb73   : > { %v8460_v50 = vpop.f32.mrf.mxu0 }
 0xb74   : > { %v10987_v54 = vpop.eup %8956  ;;  %v10991_v51 = vadd.f32 %v8460_v50, %v3349_v28  ;;  %v12520_v28 = vld [vmem:[#allocation20_spill] sm:$0xff] }
 0xb75   : > { %v4481_v9 = vpop.f32.mrf.mxu0  ;;  %v5098_v25 = vsel %vm1536_vm3, %v10987_v54, 0.0  ;;  %v3384_v50 = vadd.f32 %v12520_v28, %v12519_v30 }
 0xb76   : > { %v10997_v16 = vadd.f32 %v4481_v9, %v3341_v48  ;;  %5099 = vadd.xlane.f32.xlu0 %v5098_v25 }
 0xb77   : > { %v8461_v10 = vpop.f32.mrf.mxu0 }
 0xb78   : > { %v10999_v15 = vpop.eup %8958  ;;  %v11001_v3 = vadd.f32 %v8461_v10, %v3352_v8 }
 0xb79   : > { %v11003_v17 = vpop.f32.mrf.mxu0  ;;  %v5101_v36 = vsel %vm1536_vm3, %v10999_v15, 0.0 }
 0xb7a   : > { %5102 = vadd.xlane.f32.xlu1 %v5101_v36 }
 0xb7b   : > { %v8464_v43 = vpop.f32.mrf.mxu0 }
 0xb7c   : > { %v11011_v44 = vadd.f32 %v8464_v43, %v3365_v7 }
 0xb7d   : > { %v4497_v18 = vpop.f32.mrf.mxu0 }
 0xb7e   : > { %v11015_v45 = vadd.f32 %v4497_v18, %v3357_v21 }
 0xb7f   : > { %v8465_v35 = vpop.f32.mrf.mxu0 }
 0xb80   : > { %v11017_v61 = vadd.f32 %v8465_v35, %v3368_v4  ;;  %v12521_v35 = vld [vmem:[#allocation8_spill] sm:$0xff] }
 0xb81   : > { %v11019_v60 = vpop.f32.mrf.mxu0 }
 0xb87   : > { %v8468_v22 = vpop.f32.mrf.mxu0 }
 0xb88   : > { %v11025_v20 = vadd.f32 %v8468_v22, %v3381_v37  ;;  %v5019_v37 = vpop.xlane.xlu1 %5018  ;;  %v5042_v22 = vsub.f32 %v10917_v59, %v5016_v5 }
 0xb89   : > { %v4513_v62 = vpop.f32.mrf.mxu0  ;;  %v5043_v6 = vsub.f32 %v10923_v53, %v5019_v37 }
 0xb8a   : > { %v11029_v2 = vadd.f32 %v4513_v62, %v3373_v38  ;;  %v5068_v33 = vmul.f32 1.442695, %v5042_v22 }
 0xb8b   : > { %v8469_v26 = vpop.f32.mrf.mxu0  ;;  %v5070_v32 = vmul.f32 1.442695, %v5043_v6 }
 0xb8c   : > { %v11031_v48 = vadd.f32 %v8469_v26, %v3384_v50  ;;  %8960 = vpow2.f32 %v5068_v33  ;;  %v12524_v26 = vld [vmem:[#allocation4_spill] sm:$0xff] }
 0xb8d   : > { %v11033_v9 = vpop.f32.mrf.mxu0  ;;  %8962 = vpow2.f32 %v5070_v32 }
 0xb8f   : > { %v4792_v25 = vpop.f32.mrf.mxu0 }
 0xb90   : > { %v4960_v55 = vmul.f32 0.17677669, %v4792_v25  ;;  %v5028_v25 = vpop.xlane.xlu0 %5027 }
 0xb91   : > { %v8498_v24 = vpop.f32.mrf.mxu0 }
 0xb92   : > { %v11037_v8 = vsel %vm9734_vm2, %v4960_v55, -1e+30  ;;  %v5031_v55 = vpop.xlane.xlu1 %5030  ;;  %v5046_v24 = vsub.f32 %v10929_v49, %v5028_v25 }
 0xb93   : > { %v4795_v10 = vpop.f32.mrf.mxu0  ;;  %v5008_v36 = vsel %vm1536_vm3, %v11037_v8, -inf }
 0xb94   : > { %v4961_v41 = vmul.f32 0.17677669, %v4795_v10  ;;  %5009 = vmax.xlane.f32.xlu0 %v5008_v36  ;;  %v5047_v10 = vsub.f32 %v10935_v23, %v5031_v55  ;;  %v5076_v36 = vmul.f32 1.442695, %v5046_v24 }
 0xb95   : > { %v8499_v46 = vpop.f32.mrf.mxu0 }
 0xb96   : > { %v11043_v7 = vsel %vm9742_vm4, %v4961_v41, -1e+30  ;;  %v5078_v41 = vmul.f32 1.442695, %v5047_v10  ;;  %8964 = vpow2.f32 %v5076_v36 }
 0xb97   : > { %v4894_v43 = vpop.f32.mrf.mxu0  ;;  %v5011_v12 = vsel %vm1536_vm3, %v11043_v7, -inf }
 0xb98   : > { %v4964_v11 = vmul.f32 0.17677669, %v4894_v43  ;;  %5012 = vmax.xlane.f32.xlu1 %v5011_v12  ;;  %8966 = vpow2.f32 %v5078_v41 }
 0xb99   : > { %v8510_v21 = vpop.f32.mrf.mxu0  ;;  %v11063_v30 = vpop.eup %8960 }
 0xb9a   : > { %v11049_v18 = vsel %vm9734_vm2, %v4964_v11, -1e+30  ;;  %v11067_v50 = vpop.eup %8962  ;;  %v5110_v59 = vsel %vm1536_vm3, %v11063_v30, 0.0 }
 0xb9b   : > { %v4897_v56 = vpop.f32.mrf.mxu0  ;;  %v5020_v27 = vsel %vm1536_vm3, %v11049_v18, -inf  ;;  %v5113_v53 = vsel %vm1536_vm3, %v11067_v50, 0.0 }
 0xb9c   : > { %5021 = vmax.xlane.f32.xlu0 %v5020_v27  ;;  %v4965_v38 = vmul.f32 0.17677669, %v4897_v56 }
 0xb9d   : > { %v8511_v4 = vpop.f32.mrf.mxu0 }
 0xb9e   : > { %v11061_v62 = vsel %vm9742_vm4, %v4965_v38, -1e+30 }
 0xb9f   : > { %v5023_v28 = vsel %vm1536_vm3, %v11061_v62, -inf }
 0xba3   : > { %v11079_v46 = vpop.eup %8964 }
 0xba4   : > { %v5122_v12 = vsel %vm1536_vm3, %v11079_v46, 0.0 }
 0xba5   : > { %v11081_v43 = vpop.eup %8966 }
 0xba6   : > { %v5125_v11 = vsel %vm1536_vm3, %v11081_v43, 0.0 }
 0xba9   : > { %5215 = vrot.lane.b32.xlu1 %v12521_v35, %s9197_s30 }
 0xbb2   : > { %5168 = vrot.lane.b32.xlu0 %v12522_v19, %s9197_s30 }
 0xbcd   : > { %5024 = vmax.xlane.f32.xlu1 %v5023_v28 }
 0xbd1   : > { %5111 = vadd.xlane.f32.xlu0 %v5110_v59  ;;  %5114 = vadd.xlane.f32.xlu1 %v5113_v53 }
 0xbe2   : > { %5309 = vrot.lane.b32.xlu1 %v12523_v57, %s9197_s30 }
 0xbe7   : > { %5262 = vrot.lane.b32.xlu0 %v12524_v26, %s9197_s30  ;;  %v5082_v49 = vpop.xlane.xlu0 %5081 }
 0xbeb   : > { %v5085_v21 = vpop.xlane.xlu1 %5084 }
 0xbef   : > { %v5088_v23 = vpop.xlane.xlu0 %5087 }
 0xbf3   : > { %v5091_v56 = vpop.xlane.xlu1 %5090 }
 0xbf4   : > { %8968 = vrcp.f32 %v5091_v56 }
 0xbf5   : > { %8970 = vrcp.f32 %v5088_v23 }
 0xbf6   : > { %8972 = vrcp.f32 %v5085_v21 }
 0xbf7   : > { %v5094_v27 = vpop.xlane.xlu0 %5093  ;;  %8974 = vrcp.f32 %v5082_v49 }
 0xbfb   : > { %v5097_v4 = vpop.xlane.xlu1 %5096 }
 0xbff   : > { %v5100_v35 = vpop.xlane.xlu0 %5099 }
 0xc01   : > { %v8969_v22 = vpop.eup %8968 }
 0xc02   : > { %v8971_v32 = vpop.eup %8970  ;;  %v5147_v28 = vmul.f32 %v8969_v22, %v10971_v34 }
 0xc03   : > { %v5103_v19 = vpop.xlane.xlu1 %5102  ;;  %v8973_v59 = vpop.eup %8972  ;;  %v5146_v57 = vmul.f32 %v8971_v32, %v10966_v39 }
 0xc04   : > { %v8975_v55 = vpop.eup %8974 }
 0xc05   : > { %v5161_v10 = vpack.c.bf16 %v5147_v28, %v5146_v57 }
 0xc06   : > { %5123 = vadd.xlane.f32.xlu0 %v5122_v12  ;;  %5126 = vadd.xlane.f32.xlu1 %v5125_v11 }
 0xc1d   : > { %v5010_v5 = vpop.xlane.xlu0 %5009 }
 0xc1e   : > { %v5040_v37 = vsub.f32 %v11037_v8, %v5010_v5  ;;  %v5145_v8 = vmul.f32 %v8973_v59, %v10961_v47  ;;  %v12525_v59 = vld [vmem:[#allocation6_spill] sm:$0xff] }
 0xc20   : > { %v5064_v6 = vmul.f32 1.442695, %v5040_v37 }
 0xc21   : > { %v5013_v33 = vpop.xlane.xlu1 %5012 }
 0xc22   : > { %8976 = vpow2.f32 %v5064_v6  ;;  %v5041_v38 = vsub.f32 %v11043_v7, %v5013_v33  ;;  %v5144_v7 = vmul.f32 %v8975_v55, %v10956_v14 }
 0xc24   : > { %v5066_v53 = vmul.f32 1.442695, %v5041_v38  ;;  %v5160_v39 = vpack.c.bf16 %v5145_v8, %v5144_v7 }
 0xc25   : > { %v5022_v26 = vpop.xlane.xlu0 %5021  ;;  %v5216_v25 = vpop.permute.xlu1 %5215 }
 0xc26   : > { %8978 = vpow2.f32 %v5066_v53  ;;  %v5044_v24 = vsub.f32 %v11049_v18, %v5022_v26  ;;  %8525 = vmatpush3.bf16.msra.mxu1 %v5216_v25 }
 0xc27   : > { %8536 = vmatprep.subr.bf16.mxu1 %v12463_v52 }
 0xc28   : > { %v5072_v36 = vmul.f32 1.442695, %v5044_v24 }
 0xc29   : > { %v5169_v34 = vpop.permute.xlu0 %5168  ;;  %8527 = vmatmul.mubr.msk.bf16.vlgmr.msra.gmra.mxu1 %vm1536_vm3, %v5161_v10 }
 0xc2a   : > { %8980 = vpow2.f32 %v5072_v36  ;;  %8519 = vmatpush3.bf16.msra.mxu0 %v5169_v34  ;;  %8538 = vmatprep.mubr.msk.bf16.mxu1 %vm9194_vm0, %v12463_v52  ;;  %v12526_v34 = vmov 0  }
 0xc2b   : > { %8530 = vmatprep.subr.bf16.mxu0 %v12463_v52  ;;  %8982 = vrcp.f32 %v5097_v4 }
 0xc2c   : > { %8984 = vrcp.f32 %v5103_v19 }
 0xc2d   : > { %8521 = vmatmul.mubr.msk.bf16.vlgmr.msra.gmra.mxu0 %vm1536_vm3, %v5160_v39  ;;  %8986 = vrcp.f32 %v5094_v27 }
 0xc2e   : > { %8532 = vmatprep.mubr.msk.bf16.mxu0 %vm9194_vm0, %v12463_v52  ;;  %8988 = vrcp.f32 %v5100_v35 }
 0xc2f   : > { %v11102_v47 = vpop.eup %8976 }
 0xc30   : > { %v5104_v14 = vsel %vm1536_vm3, %v11102_v47, 0.0 }
 0xc31   : > { %5105 = vadd.xlane.f32.xlu1 %v5104_v14 }
 0xc33   : > { %v11106_v18 = vpop.eup %8978 }
 0xc34   : > { %v5107_v41 = vsel %vm1536_vm3, %v11106_v18, 0.0 }
 0xc35   : > { %5108 = vadd.xlane.f32.xlu0 %v5107_v41 }
 0xc37   : > { %v11110_v12 = vpop.eup %8980 }
 0xc38   : > { %v5116_v11 = vsel %vm1536_vm3, %v11110_v12, 0.0  ;;  %v8983_v56 = vpop.eup %8982 }
 0xc39   : > { %5117 = vadd.xlane.f32.xlu1 %v5116_v11  ;;  %v8985_v23 = vpop.eup %8984  ;;  %v5149_v27 = vmul.f32 %v8983_v56, %v10979_v1 }
 0xc3a   : > { %v8987_v37 = vpop.eup %8986  ;;  %v5151_v4 = vmul.f32 %v8985_v23, %v10999_v15 }
 0xc4a   : > { %5403 = vrot.lane.b32.xlu1 %v12503_v63, %s9197_s30  ;;  %v8989_v63 = vpop.eup %8988 }
 0xc4e   : > { %5450 = vrot.lane.b32.xlu1 %v9646_v58, %s9197_s30  ;;  %v5148_v58 = vmul.f32 %v8987_v37, %v10975_v31 }
 0xc50   : > { %v5162_v19 = vpack.c.bf16 %v5149_v27, %v5148_v58 }
 0xc52   : > { %5497 = vrot.lane.b32.xlu1 %v9639_v40, %s9197_s30  ;;  %v5150_v40 = vmul.f32 %v8989_v63, %v10987_v54 }
 0xc54   : > { %v5163_v33 = vpack.c.bf16 %v5151_v4, %v5150_v40  ;;  %v8638_v4 = vld [vmem:[%s12389_s5 + $0x38] sm:$0xff]  }
 0xc56   : > { %v5025_v21 = vpop.xlane.xlu1 %5024 }
 0xc57   : > { %v5045_v49 = vsub.f32 %v11061_v62, %v5025_v21 }
 0xc59   : > { %v5074_v5 = vmul.f32 1.442695, %v5045_v49 }
 0xc5a   : > { %v5112_v22 = vpop.xlane.xlu0 %5111  ;;  %v5115_v6 = vpop.xlane.xlu1 %5114 }
 0xc5b   : > { %8990 = vpow2.f32 %v5074_v5 }
 0xc5c   : > { %8992 = vrcp.f32 %v5112_v22 }
 0xc5d   : > { %8994 = vrcp.f32 %v5115_v6 }
 0xc5e   : > { %v5263_v35 = vpop.permute.xlu0 %5262  ;;  %v5310_v62 = vpop.permute.xlu1 %5309 }
 0xc5f   : > { %8531 = vmatpush3.bf16.msra.mxu0 %v5263_v35  ;;  %8537 = vmatpush3.bf16.msra.mxu1 %v5310_v62  ;;  %v8639_v62 = vld [vmem:[%s12389_s5 + $0x30] sm:$0xff]  }
 0xc60   : > { %8548 = vmatprep.subr.bf16.mxu1 %v12463_v52  ;;  %8542 = vmatprep.subr.bf16.mxu0 %v12463_v52 }
 0xc62   : > { %8533 = vmatmul.mubr.msk.bf16.vlgmr.msra.gmra.mxu0 %vm1536_vm3, %v5162_v19  ;;  %8539 = vmatmul.mubr.msk.bf16.vlgmr.msra.gmra.mxu1 %vm1536_vm3, %v5163_v33 }
 0xc63   : > { %8550 = vmatprep.mubr.msk.bf16.mxu1 %vm9194_vm0, %v12463_v52  ;;  %8544 = vmatprep.mubr.msk.bf16.mxu0 %vm9194_vm0, %v12463_v52 }
 0xc68   : > { %v8991_v31 = vpop.eup %8990 }
 0xc69   : > { %v8993_v1 = vpop.eup %8992  ;;  %v5119_v54 = vsel %vm1536_vm3, %v8991_v31, 0.0 }
 0xc6a   : > { %v8995_v15 = vpop.eup %8994  ;;  %v5154_v32 = vmul.f32 %v8993_v1, %v11063_v30  ;;  %5120 = vadd.xlane.f32.xlu0 %v5119_v54 }
 0xc6b   : > { %v5155_v38 = vmul.f32 %v8995_v15, %v11067_v50 }
 0xc6d   : > { %v5165_v28 = vpack.c.bf16 %v5155_v38, %v5154_v32 }
 0xc80   : > { %5356 = vrot.lane.b32.xlu0 %v12525_v59, %s9197_s30 }
 0xc8f   : > { %v5124_v53 = vpop.xlane.xlu0 %5123  ;;  %v5127_v57 = vpop.xlane.xlu1 %5126 }
 0xc90   : > { %8996 = vrcp.f32 %v5124_v53 }
 0xc91   : > { %8998 = vrcp.f32 %v5127_v57 }
 0xc9d   : > { %v8997_v24 = vpop.eup %8996 }
 0xc9e   : > { %v8999_v8 = vpop.eup %8998  ;;  %v5158_v50 = vmul.f32 %v8997_v24, %v11079_v46 }
 0xc9f   : > { %v5159_v10 = vmul.f32 %v8999_v8, %v11081_v43 }
 0xca1   : > { %v5167_v7 = vpack.c.bf16 %v5159_v10, %v5158_v50 }
 0xcba   : > { %v5106_v26 = vpop.xlane.xlu1 %5105 }
 0xcbe   : > { %v5109_v39 = vpop.xlane.xlu0 %5108 }
 0xcbf   : > { %9000 = vrcp.f32 %v5109_v39 }
 0xcc0   : > { %9002 = vrcp.f32 %v5106_v26 }
 0xcc2   : > { %v5118_v25 = vpop.xlane.xlu1 %5117 }
 0xcc3   : > { %9004 = vrcp.f32 %v5118_v25 }
 0xcc6   : > { %v5404_v55 = vpop.permute.xlu1 %5403 }
 0xcc7   : > { %8549 = vmatpush3.bf16.msra.mxu1 %v5404_v55 }
 0xcc8   : > { %8560 = vmatprep.subr.bf16.mxu1 %v12463_v52 }
 0xcca   : > { %8551 = vmatmul.mubr.msk.bf16.vlgmr.msra.gmra.mxu1 %vm1536_vm3, %v5165_v28  ;;  %v5451_v30 = vpop.permute.xlu1 %5450 }
 0xccb   : > { %8562 = vmatprep.mubr.msk.bf16.mxu1 %vm9194_vm0, %v12463_v52 }
 0xccc   : > { %v9001_v46 = vpop.eup %9000 }
 0xccd   : > { %v9003_v37 = vpop.eup %9002  ;;  %v5153_v22 = vmul.f32 %v9001_v46, %v11106_v18 }
 0xcce   : > { %v5498_v36 = vpop.permute.xlu1 %5497  ;;  %v5152_v6 = vmul.f32 %v9003_v37, %v11102_v47  ;;  %v12528_v37 = vld [vmem:[#allocation11_spill] sm:$0xff] }
 0xccf   : > { %8561 = vmatpush3.bf16.msra.mxu1 %v5498_v36 }
 0xcd0   : > { %v5164_v27 = vpack.c.bf16 %v5153_v22, %v5152_v6  ;;  %v9005_v58 = vpop.eup %9004 }
 0xcd1   : > { %v5156_v47 = vmul.f32 %v9005_v58, %v11110_v12  ;;  %v9168_v58 = vld [vmem:[%s9284_s14] sm:$0xff] }
 0xcd2   : > { %8563 = vmatmul.mubr.msk.bf16.vlgmr.msra.gmra.mxu1 %vm1536_vm3, %v5167_v7 }
 0xcd3   : > { %6216 = vmatprep.mubr.bf16.mxu1 %v12526_v34 }
 0xce9   : > { %v5255_v14 = vpop.f32.mrf.mxu1 }
 0xceb   : > { %v8528_v41 = vpop.f32.mrf.mxu1 }
 0xced   : > { %v5208_v11 = vpop.f32.mrf.mxu0  ;;  %v5258_v21 = vpop.f32.mrf.mxu1 }
 0xcef   : > { %v8522_v49 = vpop.f32.mrf.mxu0  ;;  %v8529_v56 = vpop.f32.mrf.mxu1 }
 0xcf1   : > { %v5211_v23 = vpop.f32.mrf.mxu0 }
 0xcf2   : > { %v5544_v19 = vpack.c.bf16 %v5211_v23, %v5208_v11 }
 0xcf3   : > { %v8523_v43 = vpop.f32.mrf.mxu0  ;;  %v5121_v5 = vpop.xlane.xlu0 %5120 }
 0xcf4   : > { %9006 = vrcp.f32 %v5121_v5  ;;  %v12527_v5 = vld [vmem:[#allocation9_spill] sm:$0xff] }
 0xcf5   : > { %v3328_v22 = vadd.f32 %v12528_v37, %v12527_v5 }
 0xcf7   : > { %v5357_v63 = vpop.permute.xlu0 %5356 }
 0xcf8   : > { %8543 = vmatpush3.bf16.msra.mxu0 %v5357_v63 }
 0xcf9   : > { %8554 = vmatprep.subr.bf16.mxu0 %v12463_v52 }
 0xcfb   : > { %8545 = vmatmul.mubr.msk.bf16.vlgmr.msra.gmra.mxu0 %vm1536_vm3, %v5164_v27 }
 0xcfc   : > { %8555 = vmatpush3.bf16.msra.mxu0 %v5451_v30  ;;  %8556 = vmatprep.mubr.msk.bf16.mxu0 %vm9194_vm0, %v12463_v52  ;;  %v5545_v52 = vpack.c.bf16 %v5258_v21, %v5255_v14 }
 0xcfd   : > { %8566 = vmatprep.subr.bf16.mxu0 %v8638_v4 }
 0xd01   : > { %v9007_v18 = vpop.eup %9006 }
 0xd02   : > { %v5157_v40 = vmul.f32 %v9007_v18, %v8991_v31 }
 0xd04   : > { %v5166_v35 = vpack.c.bf16 %v5157_v40, %v5156_v47  ;;  %v11178_v40 = vld [vmem:[%s12390_s6] ss:$0 sm:$0xff] }
 0xd06   : > { %8557 = vmatmul.mubr.msk.bf16.vlgmr.msra.gmra.mxu0 %vm1536_vm3, %v5166_v35  ;;  %v9169_v35 = vld [vmem:[%s9284_s14 + $0x10] sm:$0xff] }
 0xd07   : > { %8567 = vmatpush3.bf16.msra.mxu0 %v8638_v4  ;;  %8570 = vmatprep.mubr.msk.bf16.mxu0 %vm1123_vm1, %v5544_v19  ;;  %v4529_v4 = vadd.f32 %v10981_v13, %v3328_v22  ;;  %v9171_v13 = vld [vmem:[%s9284_s14 + $0x18] sm:$0xff]  ;;  %v9176_v22 = vld [vmem:[%s9284_s14 + $0x40] sm:$0xff] }
 0xd08   : > { %8568 = vmatprep.subr.bf16.mxu0 %v8639_v62 }
 0xd0b   : > { %8569 = vmatpush3.bf16.msra.mxu0 %v8639_v62 }
 0xd0e   : > { %8571 = vmatmul.mubr.msk.bf16.vlgmr.msra.gmra.mxu0 %vm1123_vm1, %v5545_v52 }
 0xd22   : > { %v5302_v33 = vpop.f32.mrf.mxu0  ;;  %v5349_v1 = vpop.f32.mrf.mxu1 }
 0xd24   : > { %v8534_v12 = vpop.f32.mrf.mxu0  ;;  %v8540_v31 = vpop.f32.mrf.mxu1 }
 0xd26   : > { %v5305_v54 = vpop.f32.mrf.mxu0  ;;  %v5352_v15 = vpop.f32.mrf.mxu1 }
 0xd27   : > { %v5546_v32 = vpack.c.bf16 %v5305_v54, %v5302_v33  ;;  %v5547_v38 = vpack.c.bf16 %v5352_v15, %v5349_v1 }
 0xd28   : > { %v8535_v28 = vpop.f32.mrf.mxu0  ;;  %v8541_v59 = vpop.f32.mrf.mxu1 }
 0xd29   : > { %8574 = vmatprep.mubr.msk.bf16.mxu0 %vm1123_vm1, %v5546_v32  ;;  %v12533_v32 = vld [vmem:[#allocation24_spill] sm:$0xff] }
 0xd2a   : > { %8575 = vmatmul.mubr.msk.bf16.gmra.mxu0 %vm1123_vm1, %v5547_v38  ;;  %v12534_v38 = vld [vmem:[#allocation13_spill] sm:$0xff] }
 0xd2b   : > { %v3344_v28 = vadd.f32 %v12534_v38, %v12533_v32 }
 0xd8a   : > { %v5443_v53 = vpop.f32.mrf.mxu1 }
 0xd8c   : > { %v8552_v57 = vpop.f32.mrf.mxu1 }
 0xd8e   : > { %v5446_v26 = vpop.f32.mrf.mxu1 }
 0xd8f   : > { %v5549_v39 = vpack.c.bf16 %v5446_v26, %v5443_v53  ;;  %v4533_v26 = vadd.f32 %v11003_v17, %v3344_v28 }
 0xd90   : > { %v8553_v25 = vpop.f32.mrf.mxu1 }
 0xd91   : > { %v9172_v25 = vld [vmem:[%s9284_s14 + $0x20] sm:$0xff] }
 0xd92   : > { %v5537_v55 = vpop.f32.mrf.mxu1 }
 0xd94   : > { %v8564_v24 = vpop.f32.mrf.mxu1 }
 0xd96   : > { %v5540_v8 = vpop.f32.mrf.mxu1 }
 0xd97   : > { %v5551_v56 = vpack.c.bf16 %v5540_v8, %v5537_v55  ;;  %v9173_v8 = vld [vmem:[%s9284_s14 + $0x30] sm:$0xff] }
 0xd98   : > { %v8565_v30 = vpop.f32.mrf.mxu1 }
 0xdbb   : > { %v5396_v50 = vpop.f32.mrf.mxu0 }
 0xdbd   : > { %v8546_v10 = vpop.f32.mrf.mxu0 }
 0xdbf   : > { %v5399_v36 = vpop.f32.mrf.mxu0 }
 0xdc0   : > { %v5548_v7 = vpack.c.bf16 %v5399_v36, %v5396_v50 }
 0xdc1   : > { %v8547_v14 = vpop.f32.mrf.mxu0 }
 0xdc2   : > { %8578 = vmatprep.mubr.msk.bf16.mxu0 %vm1123_vm1, %v5548_v7  ;;  %v9174_v7 = vld [vmem:[%s9284_s14 + $0x28] sm:$0xff] }
 0xdc3   : > { %8579 = vmatmul.mubr.msk.bf16.gmra.mxu0 %vm1123_vm1, %v5549_v39 }
 0xdc6   : > { %v5490_v41 = vpop.f32.mrf.mxu0 }
 0xdc8   : > { %v8558_v11 = vpop.f32.mrf.mxu0 }
 0xdca   : > { %v5493_v21 = vpop.f32.mrf.mxu0 }
 0xdcb   : > { %v5550_v49 = vpack.c.bf16 %v5493_v21, %v5490_v41  ;;  %v12539_v21 = vld [vmem:[#allocation28_spill] sm:$0xff] }
 0xdcc   : > { %v8559_v23 = vpop.f32.mrf.mxu0 }
 0xdcd   : > { %8582 = vmatprep.mubr.msk.bf16.mxu0 %vm1123_vm1, %v5550_v49  ;;  %v12540_v49 = vld [vmem:[#allocation17_spill] sm:$0xff] }
 0xdce   : > { %v8572_v46 = vpop.f32.mrf.mxu0  ;;  %8583 = vmatmul.mubr.msk.bf16.gmra.mxu0 %vm1123_vm1, %v5551_v56  ;;  %v3360_v56 = vadd.f32 %v12540_v49, %v12539_v21 }
 0xdcf   : > { %6329 = vmatprep.mubr.bf16.mxu0 %v12526_v34  ;;  %v5687_v6 = vadd.f32 %v8572_v46, %v10943_v0 }
 0xdd0   : > { %v5622_v43 = vpop.f32.mrf.mxu0  ;;  %v4537_v5 = vadd.f32 %v11019_v60, %v3360_v56 }
 0xdd1   : > { %v5685_v63 = vadd.f32 %v5622_v43, %v10947_v29  ;;  %v5703_v62 = vadd.f32 %v9169_v35, %v5687_v6  ;;  %v9170_v29 = vld [vmem:[%s9284_s14 + $0x8] sm:$0xff] }
 0xdd2   : > { %v8573_v27 = vpop.f32.mrf.mxu0  ;;  %v9178_v35 = vld [vmem:[%s9284_s14 + $0x48] sm:$0xff] }
 0xdd3   : > { %v5701_v18 = vadd.f32 %v9168_v58, %v5685_v63  ;;  %v5688_v19 = vadd.f32 %v8573_v27, %v10949_v42  ;;  %v11192_v31 = vadd.f32 %v11178_v40, %v5703_v62  ;;  %v9177_v27 = vld [vmem:[%s9284_s14 + $0x50] sm:$0xff]  ;;  %v9179_v62 = vld [vmem:[%s9284_s14 + $0x58] sm:$0xff] }
 0xdd4   : > { %v5625_v47 = vpop.f32.mrf.mxu0 }
 0xdd5   : > { %v5686_v52 = vadd.f32 %v5625_v47, %v4529_v4  ;;  %v11183_v0 = vadd.f32 %v11178_v40, %v5701_v18  ;;  %v5704_v1 = vadd.f32 %v9171_v13, %v5688_v19  ;;  %12531 = vst [vmem:[#allocation10_spill] sm:$0xff] %v11192_v31  ;;  %v12545_v13 = vld [vmem:[#allocation21_spill] sm:$0xff] }
 0xdd7   : > { %12529 = vst [vmem:[#allocation5_spill] sm:$0xff] %v11183_v0  ;;  %v5702_v33 = vadd.f32 %v9170_v29, %v5686_v52  ;;  %5742 = vadd.xlane.f32.xlu0 %v11183_v0  ;;  %v11197_v42 = vadd.f32 %v11178_v40, %v5704_v1 }
 0xdd9   : > { %v11189_v12 = vadd.f32 %v11178_v40, %v5702_v33  ;;  %12532 = vst [vmem:[#allocation23_spill] sm:$0xff] %v11197_v42  ;;  %v12544_v33 = vld [vmem:[#allocation32_spill] sm:$0xff] }
 0xdda   : > { %v3376_v1 = vadd.f32 %v12545_v13, %v12544_v33  ;;  %v8645_v33 = vld [vmem:[%s12393_s9 + $0xec] ss:$16 sps:$4 sm:$0xff]  }
 0xddb   : > { %12530 = vst [vmem:[#allocation22_spill] sm:$0xff] %v11189_v12  ;;  %5744 = vadd.xlane.f32.xlu1 %v11189_v12  ;;  %5746 = vadd.xlane.f32.xlu0 %v11192_v31 }
 0xddc   : > { %v4541_v28 = vadd.f32 %v11033_v9, %v3376_v1  ;;  %6297 = vmatprep.subr.bf16.mxu0 %v8645_v33 }
 0xddf   : > { %5748 = vadd.xlane.f32.xlu0 %v11197_v42 }
 0xdea   : > { %v8576_v54 = vpop.f32.mrf.mxu0 }
 0xdeb   : > { %v5691_v59 = vadd.f32 %v8576_v54, %v10991_v51  ;;  %v9175_v51 = vld [vmem:[%s9284_s14 + $0x38] sm:$0xff] }
 0xdec   : > { %v5638_v15 = vpop.f32.mrf.mxu0 }
 0xded   : > { %v5689_v53 = vadd.f32 %v5638_v15, %v10997_v16  ;;  %v5707_v30 = vadd.f32 %v9173_v8, %v5691_v59  ;;  %v9180_v59 = vld [vmem:[%s9284_s14 + $0x60] sm:$0xff] }
 0xdee   : > { %v8577_v57 = vpop.f32.mrf.mxu0 }
 0xdef   : > { %v5705_v55 = vadd.f32 %v9172_v25, %v5689_v53  ;;  %v5692_v50 = vadd.f32 %v8577_v57, %v11001_v3  ;;  %v11218_v14 = vadd.f32 %v11178_v40, %v5707_v30 }
 0xdf0   : > { %v5641_v24 = vpop.f32.mrf.mxu0 }
 0xdf1   : > { %v5690_v10 = vadd.f32 %v5641_v24, %v4533_v26  ;;  %v11209_v36 = vadd.f32 %v11178_v40, %v5705_v55  ;;  %v5708_v16 = vadd.f32 %v9175_v51, %v5692_v50  ;;  %12537 = vst [vmem:[#allocation14_spill] sm:$0xff] %v11218_v14  ;;  %v9181_v24 = vld [vmem:[%s9284_s14 + $0x70] sm:$0xff]  ;;  %v9182_v50 = vld [vmem:[%s9284_s14 + $0x68] sm:$0xff] }
 0xdf3   : > { %12535 = vst [vmem:[#allocation12_spill] sm:$0xff] %v11209_v36  ;;  %v5706_v39 = vadd.f32 %v9174_v7, %v5690_v10  ;;  %5750 = vadd.xlane.f32.xlu0 %v11209_v36  ;;  %v11223_v3 = vadd.f32 %v11178_v40, %v5708_v16  ;;  %v9183_v16 = vld [vmem:[%s9284_s14 + $0x78] sm:$0xff] }
 0xdf5   : > { %v11215_v17 = vadd.f32 %v11178_v40, %v5706_v39  ;;  %12538 = vst [vmem:[#allocation26_spill] sm:$0xff] %v11223_v3 }
 0xdf7   : > { %12536 = vst [vmem:[#allocation25_spill] sm:$0xff] %v11215_v17  ;;  %5752 = vadd.xlane.f32.xlu1 %v11215_v17  ;;  %5754 = vadd.xlane.f32.xlu0 %v11218_v14 }
 0xdfb   : > { %5756 = vadd.xlane.f32.xlu1 %v11223_v3 }
 0xe60   : > { %v5743_v37 = vpop.xlane.xlu0 %5742 }
 0xe61   : > { %v5774_v57 = vmul.f32 0.0078125, %v5743_v37 }
 0xe63   : > { %v11266_v9 = vsub.f32 %v11183_v0, %v5774_v57  ;;  %v8654_v57 = vld [vmem:[%s12393_s9 + $0xa4] ss:$16 sps:$4 sm:$0xff]  }
 0xe64   : > { %v5745_v55 = vpop.xlane.xlu1 %5744 }
 0xe65   : > { %v5775_v7 = vmul.f32 0.0078125, %v5745_v55  ;;  %v8655_v55 = vld [vmem:[%s12393_s9 + $0xa8] ss:$16 sps:$4 sm:$0xff]  }
 0xe67   : > { %v11278_v21 = vsub.f32 %v11189_v12, %v5775_v7  ;;  %v8664_v7 = vld [vmem:[%s12393_s9 + $0x60] ss:$16 sps:$4 sm:$0xff]  }
 0xe80   : > { %v5753_v56 = vpop.xlane.xlu1 %5752 }
 0xe83   : > { %v8580_v41 = vpop.f32.mrf.mxu0 }
 0xe84   : > { %v5695_v23 = vadd.f32 %v8580_v41, %v11011_v44 }
 0xe85   : > { %v5654_v11 = vpop.f32.mrf.mxu0 }
 0xe86   : > { %v5693_v46 = vadd.f32 %v5654_v11, %v11015_v45  ;;  %v5711_v4 = vadd.f32 %v9177_v27, %v5695_v23  ;;  %v5747_v45 = vpop.xlane.xlu0 %5746  ;;  %v5779_v27 = vmul.f32 0.0078125, %v5753_v56  ;;  %v8676_v56 = vld [vmem:[%s12393_s9 + $0x20] ss:$16 sps:$4 sm:$0xff]  }
 0xe87   : > { %v8581_v43 = vpop.f32.mrf.mxu0  ;;  %v5776_v51 = vmul.f32 0.0078125, %v5747_v45 }
 0xe88   : > { %v5709_v6 = vadd.f32 %v9176_v22, %v5693_v46  ;;  %v5696_v58 = vadd.f32 %v8581_v43, %v11017_v61  ;;  %v11244_v29 = vadd.f32 %v11178_v40, %v5711_v4 }
 0xe89   : > { %v5657_v63 = vpop.f32.mrf.mxu0  ;;  %v11281_v23 = vsub.f32 %v11192_v31, %v5776_v51  ;;  %v8672_v51 = vld [vmem:[%s12393_s9 + $0x44] ss:$16 sps:$4 sm:$0xff]  }
 0xe8a   : > { %v5694_v18 = vadd.f32 %v5657_v63, %v4537_v5  ;;  %v11235_v47 = vadd.f32 %v11178_v40, %v5709_v6  ;;  %v5712_v60 = vadd.f32 %v9179_v62, %v5696_v58  ;;  %12543 = vst [vmem:[#allocation16_spill] sm:$0xff] %v11244_v29  ;;  %v5749_v26 = vpop.xlane.xlu0 %5748  ;;  %v5806_v5 = vmul.f32 %v11266_v9, %v11266_v9  ;;  %v5757_v58 = vpop.xlane.xlu1 %5756 }
 0xe8b   : > { %v5777_v49 = vmul.f32 0.0078125, %v5749_v26  ;;  %v5807_v6 = vmul.f32 %v11278_v21, %v11278_v21  ;;  %v5781_v45 = vmul.f32 0.0078125, %v5757_v58  ;;  %v8657_v26 = vld [vmem:[%s12393_s9 + $0xac] ss:$16 sps:$4 sm:$0xff]  }
 0xe8c   : > { %12541 = vst [vmem:[#allocation15_spill] sm:$0xff] %v11235_v47  ;;  %v5710_v44 = vadd.f32 %v9178_v35, %v5694_v18  ;;  %5758 = vadd.xlane.f32.xlu0 %v11235_v47  ;;  %v11253_v38 = vadd.f32 %v11178_v40, %v5712_v60  ;;  %v11302_v35 = vsub.f32 %v11215_v17, %v5779_v27  ;;  %v8640_v60 = vld [vmem:[%s12393_s9 + $0xe0] ss:$16 sps:$4 sm:$0xff]   ;;  %v8687_v27 = vld [vmem:[%s12393_s9 + $0xc] ss:$16 sps:$4 sm:$0xff]  }
 0xe8d   : > { %v11290_v22 = vsub.f32 %v11197_v42, %v5777_v49  ;;  %v11322_v13 = vsub.f32 %v11223_v3, %v5781_v45  ;;  %v8673_v49 = vld [vmem:[%s12393_s9 + $0x48] ss:$16 sps:$4 sm:$0xff]  }
 0xe8e   : > { %v8584_v19 = vpop.f32.mrf.mxu0  ;;  %v11241_v52 = vadd.f32 %v11178_v40, %v5710_v44  ;;  %12546 = vst [vmem:[#allocation29_spill] sm:$0xff] %v11253_v38  ;;  %v5751_v39 = vpop.xlane.xlu0 %5750  ;;  %v5811_v1 = vmul.f32 %v11302_v35, %v11302_v35 }
 0xe8f   : > { %v5699_v54 = vadd.f32 %v8584_v19, %v11025_v20  ;;  %v5778_v46 = vmul.f32 0.0078125, %v5751_v39  ;;  %v5809_v18 = vmul.f32 %v11290_v22, %v11290_v22  ;;  %v8642_v19 = vld [vmem:[%s12393_s9 + $0xe4] ss:$16 sps:$4 sm:$0xff]   ;;  %v8667_v39 = vld [vmem:[%s12393_s9 + $0x68] ss:$16 sps:$4 sm:$0xff]  }
 0xe90   : > { %12542 = vst [vmem:[#allocation27_spill] sm:$0xff] %v11241_v52  ;;  %v5670_v61 = vpop.f32.mrf.mxu0  ;;  %5760 = vadd.xlane.f32.xlu1 %v11241_v52  ;;  %5762 = vadd.xlane.f32.xlu0 %v11244_v29 }
 0xe91   : > { %v5697_v15 = vadd.f32 %v5670_v61, %v11029_v2  ;;  %v5715_v20 = vadd.f32 %v9181_v24, %v5699_v54  ;;  %v11295_v63 = vsub.f32 %v11209_v36, %v5778_v46  ;;  %v8643_v61 = vld [vmem:[%s12393_s9 + $0xe8] ss:$16 sps:$4 sm:$0xff]   ;;  %6184 = vmatprep.subr.bf16.mxu1 %v8642_v19  ;;  %v8660_v24 = vld [vmem:[%s12393_s9 + $0x84] ss:$16 sps:$4 sm:$0xff]  }
 0xe92   : > { %v8585_v32 = vpop.f32.mrf.mxu0  ;;  %v5755_v37 = vpop.xlane.xlu0 %5754  ;;  %6185 = vmatpush1.bf16.msra.mxu1 %v8640_v60  ;;  %6298 = vmatpush1.bf16.msra.mxu0 %v8643_v61  ;;  %v8678_v46 = vld [vmem:[%s12393_s9 + $0x24] ss:$16 sps:$4 sm:$0xff]  }
 0xe93   : > { %v5713_v53 = vadd.f32 %v9180_v59, %v5697_v15  ;;  %v5700_v2 = vadd.f32 %v8585_v32, %v11031_v48  ;;  %v11273_v48 = vadd.f32 %v11178_v40, %v5715_v20  ;;  %v5780_v4 = vmul.f32 0.0078125, %v5755_v37  ;;  %v8648_v15 = vld [vmem:[%s12393_s9 + $0xc4] ss:$16 sps:$4 sm:$0xff]   ;;  %v8651_v32 = vld [vmem:[%s12393_s9 + $0xcc] ss:$16 sps:$4 sm:$0xff]  }
 0xe94   : > { %v5673_v25 = vpop.f32.mrf.mxu0  ;;  %5764 = vadd.xlane.f32.xlu1 %v11253_v38  ;;  %v5810_v62 = vmul.f32 %v11295_v63, %v11295_v63  ;;  %v8649_v59 = vld [vmem:[%s12393_s9 + $0xc8] ss:$16 sps:$4 sm:$0xff]   ;;  %6186 = vmatprep.subr.bf16.mxu1 %v8648_v15  ;;  %v8663_v20 = vld [vmem:[%s12393_s9 + $0x8c] ss:$16 sps:$4 sm:$0xff]  }
 0xe95   : > { %v5698_v8 = vadd.f32 %v5673_v25, %v4541_v28  ;;  %v11261_v30 = vadd.f32 %v11178_v40, %v5713_v53  ;;  %v5716_v41 = vadd.f32 %v9183_v16, %v5700_v2  ;;  %12549 = vst [vmem:[#allocation19_spill] sm:$0xff] %v11273_v48  ;;  %v11305_v44 = vsub.f32 %v11218_v14, %v5780_v4  ;;  %v8646_v28 = vld [vmem:[%s12393_s9 + $0xc0] ss:$16 sps:$4 sm:$0xff]   ;;  %v8675_v16 = vld [vmem:[%s12393_s9 + $0x4c] ss:$16 sps:$4 sm:$0xff]  }
 0xe96   : > { %v5813_v53 = vmul.f32 %v11322_v13, %v11322_v13  ;;  %6299 = vmatprep.subr.bf16.mxu0 %v8651_v32  ;;  %6187 = vmatpush1.bf16.msra.mxu1 %v8646_v28  ;;  %v8652_v25 = vld [vmem:[%s12393_s9 + $0xa0] ss:$16 sps:$4 sm:$0xff]   ;;  %v8681_v37 = vld [vmem:[%s12393_s9 + $0x2c] ss:$16 sps:$4 sm:$0xff]  }
 0xe97   : > { %12547 = vst [vmem:[#allocation18_spill] sm:$0xff] %v11261_v30  ;;  %v5714_v10 = vadd.f32 %v9182_v50, %v5698_v8  ;;  %5766 = vadd.xlane.f32.xlu0 %v11261_v30  ;;  %v11284_v43 = vadd.f32 %v11178_v40, %v5716_v41  ;;  %v5812_v54 = vmul.f32 %v11305_v44, %v11305_v44  ;;  %v8658_v2 = vld [vmem:[%s12393_s9 + $0x80] ss:$16 sps:$4 sm:$0xff]   ;;  %v8661_v8 = vld [vmem:[%s12393_s9 + $0x88] ss:$16 sps:$4 sm:$0xff]  }
 0xe98   : > { %6300 = vmatpush1.bf16.msra.mxu0 %v8649_v59  ;;  %6188 = vmatprep.subr.bf16.mxu1 %v8654_v57  ;;  %v8666_v50 = vld [vmem:[%s12393_s9 + $0x64] ss:$16 sps:$4 sm:$0xff]   ;;  %v8670_v41 = vld [vmem:[%s12393_s9 + $0x40] ss:$16 sps:$4 sm:$0xff]  }
 0xe99   : > { %v11270_v11 = vadd.f32 %v11178_v40, %v5714_v10  ;;  %12550 = vst [vmem:[#allocation31_spill] sm:$0xff] %v11284_v43  ;;  %v5808_v40 = vmul.f32 %v11281_v23, %v11281_v23  ;;  %6301 = vmatprep.subr.bf16.mxu0 %v8657_v26  ;;  %v8669_v10 = vld [vmem:[%s12393_s9 + $0x6c] ss:$16 sps:$4 sm:$0xff]   ;;  %v8682_v4 = vld [vmem:[%s12393_s9] ss:$16 sps:$4 sm:$0xff]  }
 0xe9a   : > { %6189 = vmatpush1.bf16.msra.mxu1 %v8652_v25 }
 0xe9b   : > { %12548 = vst [vmem:[#allocation30_spill] sm:$0xff] %v11270_v11  ;;  %5768 = vadd.xlane.f32.xlu1 %v11270_v11  ;;  %5770 = vadd.xlane.f32.xlu0 %v11273_v48 }
 0xe9c   : > { %6302 = vmatpush1.bf16.msra.mxu0 %v8655_v55  ;;  %6190 = vmatprep.subr.bf16.mxu1 %v8660_v24 }
 0xe9d   : > { %6303 = vmatprep.subr.bf16.mxu0 %v8663_v20 }
 0xe9e   : > { %6191 = vmatpush1.bf16.msra.mxu1 %v8658_v2 }
 0xe9f   : > { %5772 = vadd.xlane.f32.xlu1 %v11284_v43  ;;  %5822 = vadd.xlane.f32.xlu0 %v5806_v5  ;;  %v8679_v5 = vld [vmem:[%s12393_s9 + $0x28] ss:$16 sps:$4 sm:$0xff]  }
 0xea0   : > { %6304 = vmatpush1.bf16.msra.mxu0 %v8661_v8  ;;  %6192 = vmatprep.subr.bf16.mxu1 %v8666_v50 }
 0xea1   : > { %6305 = vmatprep.subr.bf16.mxu0 %v8669_v10 }
 0xea2   : > { %6193 = vmatpush1.bf16.msra.mxu1 %v8664_v7 }
 0xea3   : > { %5824 = vadd.xlane.f32.xlu1 %v5807_v6  ;;  %5826 = vadd.xlane.f32.xlu0 %v5808_v40  ;;  %v8684_v6 = vld [vmem:[%s12393_s9 + $0x4] ss:$16 sps:$4 sm:$0xff]   ;;  %v8685_v40 = vld [vmem:[%s12393_s9 + $0x8] ss:$16 sps:$4 sm:$0xff]  }
 0xea4   : > { %6306 = vmatpush1.bf16.msra.mxu0 %v8667_v39  ;;  %6194 = vmatprep.subr.bf16.mxu1 %v8672_v51 }
 0xea5   : > { %6307 = vmatprep.subr.bf16.mxu0 %v8675_v16 }
 0xea6   : > { %6195 = vmatpush1.bf16.msra.mxu1 %v8670_v41 }
 0xea7   : > { %5828 = vadd.xlane.f32.xlu1 %v5809_v18  ;;  %5830 = vadd.xlane.f32.xlu0 %v5810_v62 }
 0xea8   : > { %6308 = vmatpush1.bf16.msra.mxu0 %v8673_v49  ;;  %6196 = vmatprep.subr.bf16.mxu1 %v8678_v46 }
 0xea9   : > { %6309 = vmatprep.subr.bf16.mxu0 %v8681_v37 }
 0xeaa   : > { %6197 = vmatpush1.bf16.msra.mxu1 %v8676_v56 }
 0xeab   : > { %5832 = vadd.xlane.f32.xlu1 %v5811_v1  ;;  %5834 = vadd.xlane.f32.xlu0 %v5812_v54 }
 0xeac   : > { %6198 = vmatprep.subr.bf16.mxu1 %v8684_v6  ;;  %6310 = vmatpush1.bf16.msra.mxu0 %v8679_v5 }
 0xead   : > { %6311 = vmatprep.subr.bf16.mxu0 %v8687_v27 }
 0xeae   : > { %6199 = vmatpush1.bf16.msra.mxu1 %v8682_v4 }
 0xeaf   : > { %5836 = vadd.xlane.f32.xlu1 %v5813_v53 }
 0xeb0   : > { %6312 = vmatpush1.bf16.msra.mxu0 %v8685_v40 }
 0xf15   : > { %v5759_v58 = vpop.xlane.xlu0 %5758 }
 0xf16   : > { %v5782_v18 = vmul.f32 0.0078125, %v5759_v58 }
 0xf18   : > { %v11415_v45 = vsub.f32 %v11235_v47, %v5782_v18 }
 0xf19   : > { %v5761_v62 = vpop.xlane.xlu1 %5760  ;;  %v5763_v60 = vpop.xlane.xlu0 %5762 }
 0xf1a   : > { %v5783_v19 = vmul.f32 0.0078125, %v5761_v62  ;;  %v5784_v61 = vmul.f32 0.0078125, %v5763_v60  ;;  %v5814_v33 = vmul.f32 %v11415_v45, %v11415_v45 }
 0xf1c   : > { %v11420_v1 = vsub.f32 %v11241_v52, %v5783_v19  ;;  %v11423_v54 = vsub.f32 %v11244_v29, %v5784_v61  ;;  %5838 = vadd.xlane.f32.xlu0 %v5814_v33 }
 0xf1d   : > { %v5765_v15 = vpop.xlane.xlu1 %5764 }
 0xf1e   : > { %v5785_v32 = vmul.f32 0.0078125, %v5765_v15  ;;  %v5815_v28 = vmul.f32 %v11420_v1, %v11420_v1  ;;  %v5816_v59 = vmul.f32 %v11423_v54, %v11423_v54 }
 0xf20   : > { %v11430_v53 = vsub.f32 %v11253_v38, %v5785_v32  ;;  %5840 = vadd.xlane.f32.xlu1 %v5815_v28  ;;  %5842 = vadd.xlane.f32.xlu0 %v5816_v59  ;;  %v5767_v57 = vpop.xlane.xlu0 %5766 }
 0xf21   : > { %v5786_v26 = vmul.f32 0.0078125, %v5767_v57 }
 0xf22   : > { %v5817_v25 = vmul.f32 %v11430_v53, %v11430_v53 }
 0xf23   : > { %v11435_v55 = vsub.f32 %v11261_v30, %v5786_v26 }
 0xf24   : > { %v5769_v24 = vpop.xlane.xlu1 %5768  ;;  %5844 = vadd.xlane.f32.xlu1 %v5817_v25  ;;  %v5771_v20 = vpop.xlane.xlu0 %5770 }
 0xf25   : > { %v5787_v2 = vmul.f32 0.0078125, %v5769_v24  ;;  %v5788_v8 = vmul.f32 0.0078125, %v5771_v20  ;;  %v5818_v50 = vmul.f32 %v11435_v55, %v11435_v55 }
 0xf27   : > { %v11440_v10 = vsub.f32 %v11270_v11, %v5787_v2  ;;  %v11443_v7 = vsub.f32 %v11273_v48, %v5788_v8  ;;  %5846 = vadd.xlane.f32.xlu0 %v5818_v50  ;;  %v11458_v8 = vld [vmem:[%s12391_s7] ss:$0 sm:$0xff] }
 0xf28   : > { %v5773_v39 = vpop.xlane.xlu1 %5772  ;;  %v5823_v51 = vpop.xlane.xlu0 %5822 }
 0xf29   : > { %v5789_v16 = vmul.f32 0.0078125, %v5773_v39  ;;  %v5854_v41 = vmul.f32 0.0078125, %v5823_v51  ;;  %v5819_v49 = vmul.f32 %v11440_v10, %v11440_v10  ;;  %v5820_v56 = vmul.f32 %v11443_v7, %v11443_v7 }
 0xf2b   : > { %v11450_v46 = vsub.f32 %v11284_v43, %v5789_v16  ;;  %v5870_v5 = vadd.f32 1e-05, %v5854_v41  ;;  %5848 = vadd.xlane.f32.xlu1 %v5819_v49  ;;  %5850 = vadd.xlane.f32.xlu0 %v5820_v56  ;;  %v11465_v56 = vld [vmem:[%s12392_s8] ss:$0 sm:$0xff] }
 0xf2c   : > { %v5825_v37 = vpop.xlane.xlu1 %5824  ;;  %v5827_v6 = vpop.xlane.xlu0 %5826 }
 0xf2d   : > { %9008 = vrsqrt.f32 %v5870_v5  ;;  %v5855_v27 = vmul.f32 0.0078125, %v5825_v37  ;;  %v5856_v4 = vmul.f32 0.0078125, %v5827_v6  ;;  %v5821_v40 = vmul.f32 %v11450_v46, %v11450_v46 }
 0xf2f   : > { %v5871_v58 = vadd.f32 1e-05, %v5855_v27  ;;  %v5872_v18 = vadd.f32 1e-05, %v5856_v4  ;;  %5852 = vadd.xlane.f32.xlu1 %v5821_v40 }
 0xf30   : > { %v5829_v62 = vpop.xlane.xlu1 %5828  ;;  %v5831_v60 = vpop.xlane.xlu0 %5830 }
 0xf31   : > { %9010 = vrsqrt.f32 %v5871_v58  ;;  %v5857_v19 = vmul.f32 0.0078125, %v5829_v62  ;;  %v5858_v33 = vmul.f32 0.0078125, %v5831_v60 }
 0xf32   : > { %9012 = vrsqrt.f32 %v5872_v18 }
 0xf33   : > { %v5873_v61 = vadd.f32 1e-05, %v5857_v19  ;;  %v5874_v28 = vadd.f32 1e-05, %v5858_v33 }
 0xf34   : > { %v5833_v15 = vpop.xlane.xlu1 %5832  ;;  %v5835_v57 = vpop.xlane.xlu0 %5834 }
 0xf35   : > { %9014 = vrsqrt.f32 %v5873_v61  ;;  %v5859_v32 = vmul.f32 0.0078125, %v5833_v15  ;;  %v5860_v20 = vmul.f32 0.0078125, %v5835_v57 }
 0xf37   : > { %v5875_v59 = vadd.f32 1e-05, %v5859_v32  ;;  %v5876_v51 = vadd.f32 1e-05, %v5860_v20 }
 0xf38   : > { %v5837_v26 = vpop.xlane.xlu1 %5836 }
 0xf39   : > { %9016 = vrsqrt.f32 %v5875_v59  ;;  %v5861_v25 = vmul.f32 0.0078125, %v5837_v26 }
 0xf3a   : > { %v9009_v24 = vpop.eup %9008  ;;  %9018 = vrsqrt.f32 %v5874_v28 }
 0xf3b   : > { %v5902_v2 = vmul.f32 %v9009_v24, %v11266_v9  ;;  %v5877_v50 = vadd.f32 1e-05, %v5861_v25 }
 0xf3d   : > { %v5924_v41 = vmul.f32 %v11458_v8, %v5902_v2  ;;  %9020 = vrsqrt.f32 %v5877_v50  ;;  %v8689_v50 = vld [vmem:[%s12395_s11 + $0xf8] sm:$0xff]  }
 0xf3e   : > { %v9011_v39 = vpop.eup %9010  ;;  %9022 = vrsqrt.f32 %v5876_v51  ;;  %v8691_v51 = vld [vmem:[%s12395_s11 + $0xb8] sm:$0xff]   ;;  %8026 = vmatprep.subr.bf16.mxu0 %v8689_v50 }
 0xf3f   : > { %v5903_v16 = vmul.f32 %v9011_v39, %v11278_v21  ;;  %v9013_v49 = vpop.eup %9012  ;;  %v5946_v37 = vadd.f32 %v11465_v56, %v5924_v41  ;;  %v8690_v39 = vld [vmem:[%s12395_s11 + $0x38] sm:$0xff]   ;;  %v8693_v41 = vld [vmem:[%s12395_s11 + $0xf0] sm:$0xff]  }
 0xf40   : > { %v5904_v27 = vmul.f32 %v9013_v49, %v11281_v23  ;;  %v8694_v49 = vld [vmem:[%s12395_s11 + $0x30] sm:$0xff]  }
 0xf41   : > { %v5925_v9 = vmul.f32 %v11458_v8, %v5903_v16  ;;  %v8692_v16 = vld [vmem:[%s12395_s11 + $0x70] sm:$0xff]  }
 0xf42   : > { %v9015_v5 = vpop.eup %9014  ;;  %v5926_v18 = vmul.f32 %v11458_v8, %v5904_v27  ;;  %v8699_v27 = vld [vmem:[%s12395_s11 + $0xa8] sm:$0xff]  }
 0xf43   : > { %v5947_v6 = vadd.f32 %v11465_v56, %v5925_v9  ;;  %v5905_v21 = vmul.f32 %v9015_v5, %v11290_v22  ;;  %v8695_v9 = vld [vmem:[%s12395_s11 + $0xb0] sm:$0xff]   ;;  %v8696_v5 = vld [vmem:[%s12395_s11 + $0x68] sm:$0xff]  }
 0xf44   : > { %v5948_v23 = vadd.f32 %v11465_v56, %v5926_v18  ;;  %v8703_v18 = vld [vmem:[%s12395_s11 + $0xa0] sm:$0xff]  }
 0xf45   : > { %v5994_v4 = vpack.c.bf16 %v5947_v6, %v5946_v37  ;;  %v5927_v40 = vmul.f32 %v11458_v8, %v5905_v21  ;;  %v8697_v37 = vld [vmem:[%s12395_s11 + $0xe8] sm:$0xff]   ;;  %v8700_v21 = vld [vmem:[%s12395_s11 + $0x60] sm:$0xff]  }
 0xf46   : > { %v9017_v58 = vpop.eup %9016  ;;  %v8698_v6 = vld [vmem:[%s12395_s11 + $0x28] sm:$0xff]  }
 0xf47   : > { %6217 = vmatmul.mubr.bf16.vlgmr.msra.gmra.mxu1 %v5994_v4  ;;  %6330 = vmatmul.mubr.bf16.vlgmr.msra.gmra.mxu0 %v5994_v4  ;;  %v9019_v62 = vpop.eup %9018  ;;  %v5949_v60 = vadd.f32 %v11465_v56, %v5927_v40  ;;  %v5907_v19 = vmul.f32 %v9017_v58, %v11302_v35  ;;  %v8701_v4 = vld [vmem:[%s12395_s11 + $0xe0] sm:$0xff]  }
 0xf48   : > { %6226 = vmatprep.mubr.bf16.mxu1 %v12526_v34  ;;  %6339 = vmatprep.mubr.bf16.mxu0 %v12526_v34  ;;  %v5906_v22 = vmul.f32 %v9019_v62, %v11295_v63  ;;  %v8702_v58 = vld [vmem:[%s12395_s11 + $0x20] sm:$0xff]  }
 0xf49   : > { %v5995_v61 = vpack.c.bf16 %v5949_v60, %v5948_v23  ;;  %v5929_v33 = vmul.f32 %v11458_v8, %v5907_v19  ;;  %8027 = vmatpush3.bf16.msra.mxu0 %v8691_v51 }
 0xf4a   : > { %v9021_v15 = vpop.eup %9020  ;;  %v5928_v28 = vmul.f32 %v11458_v8, %v5906_v22  ;;  %8028 = vmatprep.subr.bf16.mxu0 %v8693_v41  ;;  %v8704_v22 = vld [vmem:[%s12395_s11 + $0x58] sm:$0xff]   ;;  %v8713_v41 = vld [vmem:[%s12395_s11 + $0xc8] sm:$0xff]  }
 0xf4b   : > { %v9023_v32 = vpop.eup %9022  ;;  %v5951_v59 = vadd.f32 %v11465_v56, %v5929_v33  ;;  %v5909_v35 = vmul.f32 %v9021_v15, %v11322_v13 }
 0xf4c   : > { %v5950_v57 = vadd.f32 %v11465_v56, %v5928_v28  ;;  %v5908_v63 = vmul.f32 %v9023_v32, %v11305_v44  ;;  %v8688_v44 = vld [vmem:[%s12395_s11 + $0x78] sm:$0xff]  }
 0xf4d   : > { %v5931_v25 = vmul.f32 %v11458_v8, %v5909_v35  ;;  %7962 = vmatprep.subr.bf16.mxu1 %v8688_v44  ;;  %8029 = vmatpush3.bf16.msra.mxu0 %v8695_v9  ;;  %v8706_v32 = vld [vmem:[%s12395_s11 + $0x18] sm:$0xff]   ;;  %v8714_v9 = vld [vmem:[%s12395_s11 + $0x8] sm:$0xff]  }
 0xf4e   : > { %v5996_v26 = vpack.c.bf16 %v5951_v59, %v5950_v57  ;;  %v5930_v24 = vmul.f32 %v11458_v8, %v5908_v63  ;;  %7963 = vmatpush3.bf16.msra.mxu1 %v8690_v39  ;;  %8030 = vmatprep.subr.bf16.mxu0 %v8697_v37  ;;  %v8707_v28 = vld [vmem:[%s12395_s11 + $0x98] sm:$0xff]  }
 0xf4f   : > { %6227 = vmatmul.mubr.bf16.gmra.mxu1 %v5995_v61  ;;  %6340 = vmatmul.mubr.bf16.gmra.mxu0 %v5995_v61  ;;  %v5953_v20 = vadd.f32 %v11465_v56, %v5931_v25  ;;  %v8705_v61 = vld [vmem:[%s12395_s11 + $0xd8] sm:$0xff]   ;;  %v8709_v25 = vld [vmem:[%s12395_s11 + $0xd0] sm:$0xff]  }
 0xf50   : > { %6236 = vmatprep.mubr.bf16.mxu1 %v12526_v34  ;;  %6349 = vmatprep.mubr.bf16.mxu0 %v12526_v34  ;;  %v5952_v2 = vadd.f32 %v11465_v56, %v5930_v24 }
 0xf51   : > { %7964 = vmatprep.subr.bf16.mxu1 %v8692_v16  ;;  %8031 = vmatpush3.bf16.msra.mxu0 %v8699_v27  ;;  %v8712_v16 = vld [vmem:[%s12395_s11 + $0x48] sm:$0xff]  }
 0xf52   : > { %v5997_v13 = vpack.c.bf16 %v5953_v20, %v5952_v2  ;;  %7965 = vmatpush3.bf16.msra.mxu1 %v8694_v49  ;;  %8032 = vmatprep.subr.bf16.mxu0 %v8701_v4  ;;  %v8710_v2 = vld [vmem:[%s12395_s11 + $0x10] sm:$0xff]  }
 0xf53   : > { %7966 = vmatprep.subr.bf16.mxu1 %v8696_v5  ;;  %v8715_v5 = vld [vmem:[%s12395_s11 + $0x88] sm:$0xff]  }
 0xf55   : > { %8033 = vmatpush3.bf16.msra.mxu0 %v8703_v18 }
 0xf56   : > { %7967 = vmatpush3.bf16.msra.mxu1 %v8698_v6  ;;  %8034 = vmatprep.subr.bf16.mxu0 %v8705_v61 }
 0xf57   : > { %6237 = vmatmul.mubr.bf16.gmra.mxu1 %v5996_v26  ;;  %6350 = vmatmul.mubr.bf16.gmra.mxu0 %v5996_v26  ;;  %v8708_v26 = vld [vmem:[%s12395_s11 + $0x50] sm:$0xff]  }
 0xf58   : > { %6246 = vmatprep.mubr.bf16.mxu1 %v12526_v34  ;;  %6359 = vmatprep.mubr.bf16.mxu0 %v12526_v34 }
 0xf59   : > { %7968 = vmatprep.subr.bf16.mxu1 %v8700_v21  ;;  %8035 = vmatpush3.bf16.msra.mxu0 %v8707_v28 }
 0xf5a   : > { %7969 = vmatpush3.bf16.msra.mxu1 %v8702_v58  ;;  %8036 = vmatprep.subr.bf16.mxu0 %v8709_v25  ;;  %v8717_v58 = vld [vmem:[%s12395_s11 + $0xc0] sm:$0xff]  }
 0xf5b   : > { %7970 = vmatprep.subr.bf16.mxu1 %v8704_v22 }
 0xf5e   : > { %7971 = vmatpush3.bf16.msra.mxu1 %v8706_v32 }
 0xf5f   : > { %6247 = vmatmul.mubr.bf16.gmra.mxu1 %v5997_v13  ;;  %6360 = vmatmul.mubr.bf16.gmra.mxu0 %v5997_v13  ;;  %v8711_v13 = vld [vmem:[%s12395_s11 + $0x90] sm:$0xff]  }
 0xf60   : > { %6256 = vmatprep.mubr.bf16.mxu1 %v12526_v34  ;;  %6369 = vmatprep.mubr.bf16.mxu0 %v12526_v34 }
 0xf61   : > { %7972 = vmatprep.subr.bf16.mxu1 %v8708_v26  ;;  %8037 = vmatpush3.bf16.msra.mxu0 %v8711_v13 }
 0xf62   : > { %7973 = vmatpush3.bf16.msra.mxu1 %v8710_v2  ;;  %8038 = vmatprep.subr.bf16.mxu0 %v8713_v41 }
 0xf63   : > { %7974 = vmatprep.subr.bf16.mxu1 %v8712_v16 }
 0xf65   : > { %8039 = vmatpush3.bf16.msra.mxu0 %v8715_v5 }
 0xf66   : > { %7975 = vmatpush3.bf16.msra.mxu1 %v8714_v9  ;;  %8040 = vmatprep.subr.bf16.mxu0 %v8717_v58 }
 0xfa5   : > { %v5839_v40 = vpop.xlane.xlu0 %5838 }
 0xfa6   : > { %v5862_v62 = vmul.f32 0.0078125, %v5839_v40  ;;  %v8716_v40 = vld [vmem:[%s12395_s11 + $0x40] sm:$0xff]  }
 0xfa7   : > { %7976 = vmatprep.subr.bf16.mxu1 %v8716_v40 }
 0xfa8   : > { %v5878_v60 = vadd.f32 1e-05, %v5862_v62  ;;  %v8718_v62 = vld [vmem:[%s12395_s11] sm:$0xff]  }
 0xfa9   : > { %v5841_v19 = vpop.xlane.xlu1 %5840  ;;  %v5843_v23 = vpop.xlane.xlu0 %5842  ;;  %7977 = vmatpush3.bf16.msra.mxu1 %v8718_v62 }
 0xfaa   : > { %9024 = vrsqrt.f32 %v5878_v60  ;;  %v5863_v33 = vmul.f32 0.0078125, %v5841_v19  ;;  %v5864_v15 = vmul.f32 0.0078125, %v5843_v23  ;;  %v8719_v60 = vld [vmem:[%s12395_s11 + $0x80] sm:$0xff]  }
 0xfab   : > { %8041 = vmatpush3.bf16.msra.mxu0 %v8719_v60 }
 0xfac   : > { %v5879_v59 = vadd.f32 1e-05, %v5863_v33  ;;  %v5880_v35 = vadd.f32 1e-05, %v5864_v15 }
 0xfad   : > { %v5845_v57 = vpop.xlane.xlu1 %5844 }
 0xfae   : > { %9026 = vrsqrt.f32 %v5879_v59  ;;  %v5865_v63 = vmul.f32 0.0078125, %v5845_v57 }
 0xfaf   : > { %9028 = vrsqrt.f32 %v5880_v35 }
 0xfb0   : > { %v5881_v24 = vadd.f32 1e-05, %v5865_v63  ;;  %v5847_v20 = vpop.xlane.xlu0 %5846 }
 0xfb1   : > { %v5866_v44 = vmul.f32 0.0078125, %v5847_v20 }
 0xfb2   : > { %9030 = vrsqrt.f32 %v5881_v24 }
 0xfb3   : > { %v5882_v50 = vadd.f32 1e-05, %v5866_v44 }
 0xfb4   : > { %v5849_v39 = vpop.xlane.xlu1 %5848  ;;  %v5851_v51 = vpop.xlane.xlu0 %5850 }
 0xfb5   : > { %v5867_v49 = vmul.f32 0.0078125, %v5849_v39  ;;  %v5868_v27 = vmul.f32 0.0078125, %v5851_v51  ;;  %9032 = vrsqrt.f32 %v5882_v50 }
 0xfb7   : > { %v9025_v37 = vpop.eup %9024  ;;  %v5883_v6 = vadd.f32 1e-05, %v5867_v49  ;;  %v5884_v19 = vadd.f32 1e-05, %v5868_v27  ;;  %v12551_v27 = vld [vmem:[#allocation2_spill] sm:$0xff] }
 0xfb8   : > { %v5853_v21 = vpop.xlane.xlu1 %5852  ;;  %v5910_v4 = vmul.f32 %v9025_v37, %v11415_v45 }
 0xfb9   : > { %9034 = vrsqrt.f32 %v5883_v6  ;;  %v5869_v18 = vmul.f32 0.0078125, %v5853_v21  ;;  %v12552_v21 = vsub.s32 0, %v12551_v27 }
 0xfba   : > { %v5932_v61 = vmul.f32 %v11458_v8, %v5910_v4 }
 0xfbb   : > { %v9027_v45 = vpop.eup %9026  ;;  %v5885_v23 = vadd.f32 1e-05, %v5869_v18 }
 0xfbc   : > { %v5911_v22 = vmul.f32 %v9027_v45, %v11420_v1  ;;  %v9029_v33 = vpop.eup %9028  ;;  %v5954_v28 = vadd.f32 %v11465_v56, %v5932_v61 }
 0xfbd   : > { %9036 = vrsqrt.f32 %v5885_v23  ;;  %v5912_v35 = vmul.f32 %v9029_v33, %v11423_v54  ;;  %v6018_v23 = vsub.s32 3, %v12551_v27 }
 0xfbe   : > { %v5933_v15 = vmul.f32 %v11458_v8, %v5911_v22  ;;  %9038 = vrsqrt.f32 %v5884_v19 }
 0xfbf   : > { %v9031_v32 = vpop.eup %9030  ;;  %v5934_v1 = vmul.f32 %v11458_v8, %v5912_v35 }
 0xfc0   : > { %v5955_v59 = vadd.f32 %v11465_v56, %v5933_v15  ;;  %v5913_v57 = vmul.f32 %v9031_v32, %v11430_v53 }
 0xfc1   : > { %v5956_v54 = vadd.f32 %v11465_v56, %v5934_v1 }
 0xfc2   : > { %v5998_v63 = vpack.c.bf16 %v5955_v59, %v5954_v28  ;;  %v5935_v26 = vmul.f32 %v11458_v8, %v5913_v57  ;;  %v9033_v25 = vpop.eup %9032 }
 0xfc3   : > { %v5914_v53 = vmul.f32 %v9033_v25, %v11435_v55 }
 0xfc4   : > { %6257 = vmatmul.mubr.bf16.gmra.mxu1 %v5998_v63  ;;  %6370 = vmatmul.mubr.bf16.gmra.mxu0 %v5998_v63  ;;  %v5957_v20 = vadd.f32 %v11465_v56, %v5935_v26 }
 0xfc5   : > { %6266 = vmatprep.mubr.bf16.mxu1 %v12526_v34  ;;  %6379 = vmatprep.mubr.bf16.mxu0 %v12526_v34  ;;  %v5936_v51 = vmul.f32 %v11458_v8, %v5914_v53 }
 0xfc6   : > { %v9035_v24 = vpop.eup %9034  ;;  %v5999_v13 = vpack.c.bf16 %v5957_v20, %v5956_v54  ;;  %v12556_v20 = vsub.s32 1, %v12551_v27 }
 0xfc7   : > { %v5915_v2 = vmul.f32 %v9035_v24, %v11440_v10  ;;  %v5958_v41 = vadd.f32 %v11465_v56, %v5936_v51 }
 0xfc9   : > { %v5937_v44 = vmul.f32 %v11458_v8, %v5915_v2 }
 0xfca   : > { %v9037_v50 = vpop.eup %9036 }
 0xfcb   : > { %v9039_v39 = vpop.eup %9038  ;;  %v5959_v16 = vadd.f32 %v11465_v56, %v5937_v44  ;;  %v5917_v10 = vmul.f32 %v9037_v50, %v11450_v46 }
 0xfcc   : > { %6267 = vmatmul.mubr.bf16.gmra.mxu1 %v5999_v13  ;;  %6380 = vmatmul.mubr.bf16.gmra.mxu0 %v5999_v13  ;;  %v5916_v55 = vmul.f32 %v9039_v39, %v11443_v7  ;;  %v6002_v7 = vld [vmem:[%s12394_s10] sm:$0xf] }
 0xfcd   : > { %6276 = vmatprep.mubr.bf16.mxu1 %v12526_v34  ;;  %6389 = vmatprep.mubr.bf16.mxu0 %v12526_v34  ;;  %v6000_v49 = vpack.c.bf16 %v5959_v16, %v5958_v41  ;;  %v5939_v9 = vmul.f32 %v11458_v8, %v5917_v10  ;;  %v11627_v4 = vrot.slane %v6002_v7, %v12552_v21 }
 0xfce   : > { %v5938_v5 = vmul.f32 %v11458_v8, %v5916_v55  ;;  %v12554_v8 = vsub.s32 2, %v12551_v27  ;;  %v11643_v2 = vrot.slane %v6002_v7, %v12556_v20  ;;  %v11645_v54 = vrot.slane %v6002_v7, %v6018_v23 }
 0xfcf   : > { %v5961_v37 = vadd.f32 %v11465_v56, %v5939_v9  ;;  %12553 = vst [vmem:[#allocation20_spill] sm:$0xff] %v11627_v4 }
 0xfd0   : > { %v5960_v6 = vadd.f32 %v11465_v56, %v5938_v5  ;;  %v11631_v40 = vrot.slane %v6002_v7, %v12554_v8 }
 0xfd2   : > { %v6001_v46 = vpack.c.bf16 %v5961_v37, %v5960_v6  ;;  %12555 = vst [vmem:[#allocation8_spill] sm:$0xff] %v11631_v40 }
 0xfd4   : > { %6277 = vmatmul.mubr.bf16.gmra.mxu1 %v6000_v49  ;;  %6390 = vmatmul.mubr.bf16.gmra.mxu0 %v6000_v49 }
 0xfd5   : > { %6286 = vmatprep.mubr.bf16.mxu1 %v12526_v34  ;;  %6399 = vmatprep.mubr.bf16.mxu0 %v12526_v34 }
 0xfdc   : > { %6287 = vmatmul.mubr.bf16.gmra.mxu1 %v6001_v46  ;;  %6400 = vmatmul.mubr.bf16.gmra.mxu0 %v6001_v46 }
0x1007   : > { %v6218_v34 = vpop.f32.mrf.mxu1  ;;  %v6331_v58 = vpop.f32.mrf.mxu0 }
0x1008   : > { %v6219_v18 = vadd.f32 %v6218_v34, %v11627_v4  ;;  %v6332_v56 = vadd.f32 %v6331_v58, %v11631_v40 }
0x1009   : > { %v6220_v62 = vpop.f32.mrf.mxu1  ;;  %v6333_v60 = vpop.f32.mrf.mxu0 }
0x100a   : > { %v6474_v45 = vmul.f32 0.044715, %v6219_v18  ;;  %v6476_v19 = vmul.f32 0.044715, %v6332_v56  ;;  %v11655_v9 = vadd.f32 %v6220_v62, %v11643_v2  ;;  %v11658_v5 = vadd.f32 %v6333_v60, %v11645_v54 }
0x100b   : > { %v6222_v22 = vpop.f32.mrf.mxu1  ;;  %v6335_v61 = vpop.f32.mrf.mxu0  ;;  %v11663_v8 = vmul.f32 0.5, %v6219_v18  ;;  %v11665_v34 = vmul.f32 0.5, %v6332_v56 }
0x100c   : > { %v6538_v33 = vmul.f32 %v6474_v45, %v6219_v18  ;;  %v6540_v15 = vmul.f32 %v6476_v19, %v6332_v56  ;;  %v6223_v32 = vadd.f32 %v6222_v22, %v11627_v4  ;;  %v11638_v28 = vadd.f32 %v6335_v61, %v11631_v40 }
0x100d   : > { %v6224_v59 = vpop.f32.mrf.mxu1  ;;  %v6337_v35 = vpop.f32.mrf.mxu0  ;;  %v6475_v19 = vmul.f32 0.044715, %v11655_v9  ;;  %v6477_v60 = vmul.f32 0.044715, %v11658_v5 }
0x100e   : > { %v6602_v57 = vmul.f32 %v6538_v33, %v6219_v18  ;;  %v6478_v63 = vmul.f32 0.044715, %v6223_v32  ;;  %v6604_v26 = vmul.f32 %v6540_v15, %v6332_v56  ;;  %v6480_v1 = vmul.f32 0.044715, %v11638_v28 }
0x100f   : > { %v6228_v25 = vpop.f32.mrf.mxu1  ;;  %v6341_v24 = vpop.f32.mrf.mxu0  ;;  %v11674_v61 = vadd.f32 %v6224_v59, %v11643_v2 }
0x1010   : > { %v6542_v53 = vmul.f32 %v6478_v63, %v6223_v32  ;;  %v6666_v50 = vadd.f32 %v6602_v57, %v6219_v18  ;;  %v6544_v39 = vmul.f32 %v6480_v1, %v11638_v28  ;;  %v6668_v51 = vadd.f32 %v6604_v26, %v6332_v56 }
0x1011   : > { %v6230_v13 = vpop.f32.mrf.mxu1  ;;  %v6343_v44 = vpop.f32.mrf.mxu0  ;;  %v11649_v10 = vadd.f32 %v6228_v25, %v11627_v4  ;;  %v11652_v41 = vadd.f32 %v6341_v24, %v11631_v40  ;;  %v11677_v18 = vadd.f32 %v6337_v35, %v11645_v54  ;;  %v11692_v25 = vmul.f32 0.5, %v11655_v9 }
0x1012   : > { %v6606_v16 = vmul.f32 %v6542_v53, %v6223_v32  ;;  %v6730_v7 = vmul.f32 0.7978846, %v6666_v50  ;;  %v6608_v27 = vmul.f32 %v6544_v39, %v11638_v28  ;;  %v6732_v58 = vmul.f32 0.7978846, %v6668_v51 }
0x1013   : > { %v6232_v55 = vpop.f32.mrf.mxu1  ;;  %v6345_v49 = vpop.f32.mrf.mxu0  ;;  %v6482_v37 = vmul.f32 0.044715, %v11649_v10  ;;  %v6484_v21 = vmul.f32 0.044715, %v11652_v41  ;;  %v11685_v63 = vadd.f32 %v6230_v13, %v11643_v2  ;;  %v11688_v26 = vadd.f32 %v6343_v44, %v11645_v54 }
0x1014   : > { %v6670_v45 = vadd.f32 %v6606_v16, %v6223_v32  ;;  %v11671_v22 = vadd.f32 %v6232_v55, %v11627_v4  ;;  %v11681_v33 = vadd.f32 %v6345_v49, %v11631_v40  ;;  %9040 = vtanh.f32 %v6730_v7 }
0x1015   : > { %v6234_v6 = vpop.f32.mrf.mxu1  ;;  %v6347_v46 = vpop.f32.mrf.mxu0  ;;  %v6546_v23 = vmul.f32 %v6482_v37, %v11649_v10  ;;  %v6548_v56 = vmul.f32 %v6484_v21, %v11652_v41  ;;  %v6672_v57 = vadd.f32 %v6608_v27, %v11638_v28  ;;  %9042 = vtanh.f32 %v6732_v58 }
0x1016   : > { %v6734_v1 = vmul.f32 0.7978846, %v6670_v45  ;;  %v6486_v35 = vmul.f32 0.044715, %v11671_v22  ;;  %v11694_v24 = vmul.f32 0.5, %v6223_v32  ;;  %v11699_v13 = vmul.f32 0.5, %v11658_v5 }
0x1017   : > { %v6238_v62 = vpop.f32.mrf.mxu1  ;;  %v6351_v15 = vpop.f32.mrf.mxu0  ;;  %v6610_v20 = vmul.f32 %v6546_v23, %v11649_v10  ;;  %v6488_v53 = vmul.f32 0.044715, %v11681_v33  ;;  %v6479_v44 = vmul.f32 0.044715, %v11674_v61  ;;  %v6481_v50 = vmul.f32 0.044715, %v11677_v18 }
0x1018   : > { %v6612_v39 = vmul.f32 %v6548_v56, %v11652_v41  ;;  %v11705_v51 = vadd.f32 %v6238_v62, %v11627_v4  ;;  %v6736_v55 = vmul.f32 0.7978846, %v6672_v57  ;;  %v6483_v32 = vmul.f32 0.044715, %v11685_v63 }
0x1019   : > { %v6240_v59 = vpop.f32.mrf.mxu1  ;;  %v6353_v16 = vpop.f32.mrf.mxu0  ;;  %v6485_v49 = vmul.f32 0.044715, %v11688_v26  ;;  %v6539_v7 = vmul.f32 %v6475_v19, %v11655_v9  ;;  %9044 = vtanh.f32 %v6734_v1  ;;  %v6550_v27 = vmul.f32 %v6486_v35, %v11671_v22 }
0x101a   : > { %v11712_v21 = vadd.f32 %v6234_v6, %v11643_v2  ;;  %v6541_v58 = vmul.f32 %v6477_v60, %v11658_v5  ;;  %v6674_v45 = vadd.f32 %v6610_v20, %v11649_v10  ;;  %v6552_v62 = vmul.f32 %v6488_v53, %v11681_v33 }
0x101b   : > { %v6242_v37 = vpop.f32.mrf.mxu1  ;;  %v11718_v23 = vadd.f32 %v6351_v15, %v11631_v40  ;;  %v6543_v56 = vmul.f32 %v6479_v44, %v11674_v61  ;;  %v6676_v57 = vadd.f32 %v6612_v39, %v11652_v41  ;;  %v11723_v19 = vadd.f32 %v6347_v46, %v11645_v54  ;;  %v6355_v6 = vpop.f32.mrf.mxu0 }
0x101c   : > { %v6490_v1 = vmul.f32 0.044715, %v11705_v51  ;;  %9046 = vtanh.f32 %v6736_v55  ;;  %v6545_v60 = vmul.f32 %v6481_v50, %v11677_v18  ;;  %v6547_v35 = vmul.f32 %v6483_v32, %v11685_v63 }
0x101d   : > { %v6549_v20 = vmul.f32 %v6485_v49, %v11688_v26  ;;  %v6244_v53 = vpop.f32.mrf.mxu1  ;;  %v11730_v15 = vmul.f32 %v6539_v7, %v11655_v9  ;;  %v11733_v44 = vmul.f32 0.5, %v11638_v28  ;;  %v6614_v46 = vmul.f32 %v6550_v27, %v11671_v22  ;;  %v6357_v11 = vpop.f32.mrf.mxu0 }
0x101e   : > { %v6487_v39 = vmul.f32 0.044715, %v11712_v21  ;;  %v11738_v43 = vmul.f32 %v6541_v58, %v11658_v5  ;;  %v6738_v55 = vmul.f32 0.7978846, %v6674_v45  ;;  %v6616_v50 = vmul.f32 %v6552_v62, %v11681_v33 }
0x101f   : > { %v6492_v32 = vmul.f32 0.044715, %v11718_v23  ;;  %v11743_v49 = vmul.f32 %v6543_v56, %v11674_v61  ;;  %v6740_v7 = vmul.f32 0.7978846, %v6676_v57  ;;  %v6489_v48 = vmul.f32 0.044715, %v11723_v19  ;;  %v6248_v56 = vpop.f32.mrf.mxu1 }
0x1020   : > { %v6554_v28 = vmul.f32 %v6490_v1, %v11705_v51  ;;  %v11748_v27 = vmul.f32 %v6545_v60, %v11677_v18  ;;  %v11751_v58 = vmul.f32 %v6547_v35, %v11685_v63  ;;  %v11754_v45 = vmul.f32 %v6549_v20, %v11688_v26 }
0x1021   : > { %v11757_v62 = vadd.f32 %v6242_v37, %v11627_v4  ;;  %v9041_v30 = vpop.eup %9040  ;;  %v6678_v57 = vadd.f32 %v6614_v46, %v11671_v22  ;;  %v6551_v38 = vmul.f32 %v6487_v39, %v11712_v21  ;;  %v11762_v1 = vadd.f32 %v6240_v59, %v11643_v2  ;;  %v6361_v59 = vpop.f32.mrf.mxu0 }
0x1022   : > { %v11765_v60 = vadd.f32 %v6355_v6, %v11631_v40  ;;  %v9043_v35 = vpop.eup %9042  ;;  %9048 = vtanh.f32 %v6738_v55  ;;  %v6680_v20 = vadd.f32 %v6616_v50, %v11681_v33  ;;  %v6556_v29 = vmul.f32 %v6492_v32, %v11718_v23  ;;  %v6250_v32 = vpop.f32.mrf.mxu1 }
0x1023   : > { %v6494_v37 = vmul.f32 0.044715, %v11757_v62  ;;  %9050 = vtanh.f32 %v6740_v7  ;;  %v6553_v52 = vmul.f32 %v6489_v48, %v11723_v19  ;;  %v6618_v46 = vmul.f32 %v6554_v28, %v11705_v51  ;;  %v6363_v36 = vpop.f32.mrf.mxu0 }
0x1024   : > { %v6496_v39 = vmul.f32 0.044715, %v11765_v60  ;;  %v6858_v47 = vadd.f32 1.0, %v9041_v30  ;;  %v11774_v6 = vadd.f32 %v6353_v16, %v11645_v54  ;;  %v11778_v50 = vadd.f32 %v6248_v56, %v11627_v4  ;;  %v6252_v31 = vpop.f32.mrf.mxu1 }
0x1025   : > { %v6558_v55 = vmul.f32 %v6494_v37, %v11757_v62  ;;  %v6860_v3 = vadd.f32 1.0, %v9043_v35  ;;  %v6742_v14 = vmul.f32 0.7978846, %v6678_v57  ;;  %v11781_v7 = vmul.f32 %v6551_v38, %v11712_v21 }
0x1026   : > { %12557 = vst [vmem:[#allocation7_spill] sm:$0xff] %v11778_v50  ;;  %v6491_v48 = vmul.f32 0.044715, %v11762_v1  ;;  %v9045_v28 = vpop.eup %9044  ;;  %v6744_v17 = vmul.f32 0.7978846, %v6680_v20  ;;  %v6620_v30 = vmul.f32 %v6556_v29, %v11718_v23  ;;  %v11786_v16 = vadd.f32 %v6244_v53, %v11643_v2 }
0x1027   : > { %v6498_v37 = vmul.f32 0.044715, %v11778_v50  ;;  %v11790_v56 = vmul.f32 %v6553_v52, %v11723_v19  ;;  %v6682_v35 = vadd.f32 %v6618_v46, %v11705_v51  ;;  %v6560_v57 = vmul.f32 %v6496_v39, %v11765_v60 }
0x1028   : > { %v11795_v38 = vadd.f32 %v6361_v59, %v11631_v40  ;;  %v11798_v20 = vmul.f32 %v6858_v47, %v11663_v8  ;;  %v6493_v29 = vmul.f32 0.044715, %v11774_v6  ;;  %v6622_v53 = vmul.f32 %v6558_v55, %v11757_v62 }
0x1029   : > { %v6562_v42 = vmul.f32 %v6498_v37, %v11778_v50  ;;  %v9047_v52 = vpop.eup %9046  ;;  %v11804_v12 = vmul.f32 %v6860_v3, %v11665_v34  ;;  %v6862_v46 = vadd.f32 1.0, %v9045_v28  ;;  %9052 = vtanh.f32 %v6742_v14  ;;  %v6365_v34 = vpop.f32.mrf.mxu0 }
0x102a   : > { %v6555_v39 = vmul.f32 %v6491_v48, %v11762_v1  ;;  %9054 = vtanh.f32 %v6744_v17  ;;  %v6684_v59 = vadd.f32 %v6620_v30, %v11718_v23  ;;  %v6495_v47 = vmul.f32 0.044715, %v11786_v16 }
0x102b   : > { %v11810_v8 = vadd.f32 %v6357_v11, %v11645_v54  ;;  %v6746_v55 = vmul.f32 0.7978846, %v6682_v35  ;;  %v6624_v37 = vmul.f32 %v6560_v57, %v11765_v60  ;;  %v6500_v0 = vmul.f32 0.044715, %v11795_v38 }
0x102c   : > { %v11815_v3 = vadd.f32 %v6252_v31, %v11627_v4  ;;  %v6864_v14 = vadd.f32 1.0, %v9047_v52  ;;  %v11818_v48 = vmul.f32 %v6493_v29, %v11774_v6  ;;  %v6686_v17 = vadd.f32 %v6622_v53, %v11757_v62 }
0x102d   : > { %v6626_v28 = vmul.f32 %v6562_v42, %v11778_v50  ;;  %v11823_v11 = vmul.f32 %v6862_v46, %v11694_v24  ;;  %v11826_v30 = vmul.f32 %v6555_v39, %v11762_v1  ;;  %v11829_v35 = vadd.f32 %v6250_v32, %v11643_v2 }
0x102e   : > { %v6502_v31 = vmul.f32 0.044715, %v11815_v3  ;;  %v6748_v57 = vmul.f32 0.7978846, %v6684_v59  ;;  %v6559_v52 = vmul.f32 %v6495_v47, %v11786_v16  ;;  %v6497_v29 = vmul.f32 0.044715, %v11810_v8 }
0x102f   : > { %v11835_v53 = vadd.f32 %v6365_v34, %v11631_v40  ;;  %v11837_v42 = vpop.eup %9048  ;;  %9056 = vtanh.f32 %v6746_v55  ;;  %v6688_v24 = vadd.f32 %v6624_v37, %v11765_v60  ;;  %v6564_v46 = vmul.f32 %v6500_v0, %v11795_v38 }
0x1030   : > { %v6667_v32 = vadd.f32 %v11730_v15, %v11655_v9  ;;  %v11843_v39 = vpop.eup %9050  ;;  %v11846_v59 = vmul.f32 %v6864_v14, %v11733_v44  ;;  %v6750_v47 = vmul.f32 0.7978846, %v6686_v17  ;;  %v6690_v4 = vadd.f32 %v6626_v28, %v11778_v50  ;;  %v6254_v50 = vpop.f32.mrf.mxu1 }
0x1031   : > { %v11850_v34 = vadd.f32 %v6363_v36, %v11645_v54  ;;  %v6499_v55 = vmul.f32 0.044715, %v11829_v35  ;;  %v6566_v37 = vmul.f32 %v6502_v31, %v11815_v3  ;;  %v6671_v0 = vadd.f32 %v11743_v49, %v11674_v61 }
0x1032   : > { %v6731_v40 = vmul.f32 0.7978846, %v6667_v32  ;;  %9058 = vtanh.f32 %v6748_v57  ;;  %v6623_v9 = vmul.f32 %v6559_v52, %v11786_v16  ;;  %v6561_v15 = vmul.f32 %v6497_v29, %v11810_v8 }
0x1033   : > { %v6504_v44 = vmul.f32 0.044715, %v11835_v53  ;;  %v6752_v14 = vmul.f32 0.7978846, %v6688_v24  ;;  %v6628_v17 = vmul.f32 %v6564_v46, %v11795_v38  ;;  %v6735_v36 = vmul.f32 0.7978846, %v6671_v0  ;;  %v6367_v24 = vpop.f32.mrf.mxu0 }
0x1034   : > { %9060 = vtanh.f32 %v6731_v40  ;;  %v6754_v28 = vmul.f32 0.7978846, %v6690_v4  ;;  %v6669_v31 = vadd.f32 %v11738_v43, %v11658_v5  ;;  %v6673_v49 = vadd.f32 %v11748_v27, %v11677_v18 }
0x1035   : > { %9062 = vtanh.f32 %v6750_v47  ;;  %v6563_v57 = vmul.f32 %v6499_v55, %v11829_v35  ;;  %v6501_v52 = vmul.f32 0.044715, %v11850_v34  ;;  %v6630_v29 = vmul.f32 %v6566_v37, %v11815_v3 }
0x1036   : > { %9064 = vtanh.f32 %v6735_v36  ;;  %v11867_v46 = vpop.eup %9052  ;;  %v6568_v40 = vmul.f32 %v6504_v44, %v11835_v53  ;;  %v6733_v4 = vmul.f32 0.7978846, %v6669_v31  ;;  %v6737_v32 = vmul.f32 0.7978846, %v6673_v49 }
0x1037   : > { %v6675_v43 = vadd.f32 %v11751_v58, %v11685_v63  ;;  %v11872_v5 = vpop.eup %9054  ;;  %9066 = vtanh.f32 %v6752_v14  ;;  %v6692_v27 = vadd.f32 %v6628_v17, %v11795_v38  ;;  %v11876_v47 = vadd.f32 %v6254_v50, %v11643_v2 }
0x1038   : > { %v6679_v55 = vadd.f32 %v11781_v7, %v11712_v21  ;;  %9068 = vtanh.f32 %v6754_v28  ;;  %v11881_v37 = vadd.f32 %v6367_v24, %v11645_v54  ;;  %v6677_v44 = vadd.f32 %v11754_v45, %v11688_v26 }
0x1039   : > { %v6739_v0 = vmul.f32 0.7978846, %v6675_v43  ;;  %v6694_v58 = vadd.f32 %v6630_v29, %v11815_v3  ;;  %9070 = vtanh.f32 %v6733_v4  ;;  %v6681_v17 = vadd.f32 %v11790_v56, %v11723_v19 }
0x103a   : > { %v6743_v14 = vmul.f32 0.7978846, %v6679_v55  ;;  %v6565_v50 = vmul.f32 %v6501_v52, %v11850_v34  ;;  %v6632_v36 = vmul.f32 %v6568_v40, %v11835_v53  ;;  %9072 = vtanh.f32 %v6737_v32 }
0x103b   : > { %v6741_v7 = vmul.f32 0.7978846, %v6677_v44  ;;  %v6756_v28 = vmul.f32 0.7978846, %v6692_v27  ;;  %v6503_v31 = vmul.f32 0.044715, %v11876_v47  ;;  %9074 = vtanh.f32 %v6739_v0 }
0x103c   : > { %v6745_v49 = vmul.f32 0.7978846, %v6681_v17  ;;  %v11891_v24 = vpop.eup %9056  ;;  %v6621_v45 = vmul.f32 %v11818_v48, %v11774_v6  ;;  %v6625_v29 = vmul.f32 %v6561_v15, %v11810_v8  ;;  %v6505_v56 = vmul.f32 0.044715, %v11881_v37 }
0x103d   : > { %9076 = vtanh.f32 %v6743_v14  ;;  %v7050_v52 = vpack.c.bf16 %v11823_v11, %v11798_v20  ;;  %v6758_v4 = vmul.f32 0.7978846, %v6694_v58  ;;  %v6627_v32 = vmul.f32 %v6563_v57, %v11829_v35 }
0x103e   : > { %9078 = vtanh.f32 %v6741_v7  ;;  %v6696_v43 = vadd.f32 %v6632_v36, %v11835_v53  ;;  %v6683_v48 = vadd.f32 %v11826_v30, %v11762_v1  ;;  %v11908_v27 = vmul.f32 %v6565_v50, %v11850_v34 }
0x103f   : > { %9080 = vtanh.f32 %v6745_v49  ;;  %v11905_v15 = vpop.eup %9058  ;;  %v6567_v55 = vmul.f32 %v6503_v31, %v11876_v47  ;;  %v6687_v0 = vadd.f32 %v6623_v9, %v11786_v16  ;;  %v6569_v58 = vmul.f32 %v6505_v56, %v11881_v37 }
0x1040   : > { %9082 = vtanh.f32 %v6756_v28  ;;  %v6747_v57 = vmul.f32 0.7978846, %v6683_v48  ;;  %v6685_v14 = vadd.f32 %v6621_v45, %v11774_v6  ;;  %v6689_v17 = vadd.f32 %v6625_v29, %v11810_v8 }
0x1041   : > { %v9061_v44 = vpop.eup %9060  ;;  %9084 = vtanh.f32 %v6758_v4  ;;  %v6415_v30 = vmul.f32 0.5, %v11674_v61  ;;  %v6751_v50 = vmul.f32 0.7978846, %v6687_v0  ;;  %v6760_v49 = vmul.f32 0.7978846, %v6696_v43 }
0x1042   : > { %v11915_v36 = vpop.eup %9062  ;;  %v6859_v7 = vadd.f32 1.0, %v9061_v44  ;;  %9086 = vtanh.f32 %v6747_v57  ;;  %v6749_v31 = vmul.f32 0.7978846, %v6685_v14  ;;  %v6753_v9 = vmul.f32 0.7978846, %v6689_v17 }
0x1043   : > { %v9065_v28 = vpop.eup %9064  ;;  %v6631_v40 = vmul.f32 %v6567_v55, %v11876_v47  ;;  %v6417_v48 = vmul.f32 0.5, %v11677_v18  ;;  %9088 = vtanh.f32 %v6751_v50  ;;  %v6633_v29 = vmul.f32 %v6569_v58, %v11881_v37 }
0x1044   : > { %v6863_v56 = vadd.f32 1.0, %v9065_v28  ;;  %v11920_v45 = vpop.eup %9066  ;;  %v6419_v4 = vmul.f32 0.5, %v11685_v63  ;;  %v6423_v61 = vmul.f32 0.5, %v11712_v21  ;;  %9090 = vtanh.f32 %v6749_v31 }
0x1045   : > { %v11925_v0 = vpop.eup %9068  ;;  %v6923_v43 = vmul.f32 %v6859_v7, %v11692_v25  ;;  %v6870_v55 = vadd.f32 1.0, %v11867_v46  ;;  %9092 = vtanh.f32 %v6753_v9  ;;  %v6421_v18 = vmul.f32 0.5, %v11688_v26 }
0x1046   : > { %v6927_v44 = vmul.f32 %v6863_v56, %v6415_v30  ;;  %v9071_v57 = vpop.eup %9070  ;;  %9094 = vtanh.f32 %v6760_v49  ;;  %v6425_v14 = vmul.f32 0.5, %v11723_v19  ;;  %v6418_v58 = vmul.f32 0.5, %v11649_v10 }
0x1047   : > { %v9073_v63 = vpop.eup %9072  ;;  %v6861_v21 = vadd.f32 1.0, %v9071_v57  ;;  %v6422_v50 = vmul.f32 0.5, %v11671_v22  ;;  %v6691_v28 = vadd.f32 %v6627_v32, %v11829_v35  ;;  %v6866_v46 = vadd.f32 1.0, %v11837_v42 }
0x1048   : > { %v7051_v17 = vpack.c.bf16 %v6927_v44, %v6923_v43  ;;  %v9075_v25 = vpop.eup %9074  ;;  %v6865_v30 = vadd.f32 1.0, %v9073_v63  ;;  %v6420_v7 = vmul.f32 0.5, %v11652_v41  ;;  %v6695_v49 = vadd.f32 %v6631_v40, %v11876_v47 }
0x1049   : > { %v6867_v19 = vadd.f32 1.0, %v9075_v25  ;;  %v6934_v31 = vmul.f32 %v6870_v55, %v6422_v50  ;;  %v6868_v10 = vadd.f32 1.0, %v11843_v39  ;;  %v6755_v9 = vmul.f32 0.7978846, %v6691_v28 }
0x104a   : > { %v9077_v26 = vpop.eup %9076  ;;  %7313 = vmatprep.mubr.bf16.mxu1 %v7051_v17  ;;  %v6925_v22 = vmul.f32 %v6861_v21, %v11699_v13  ;;  %v6929_v43 = vmul.f32 %v6865_v30, %v6417_v48  ;;  %v6759_v32 = vmul.f32 0.7978846, %v6695_v49  ;;  %v6872_v57 = vadd.f32 1.0, %v11872_v5 }
0x104b   : > { %v9079_v56 = vpop.eup %9078  ;;  %7314 = vmatmul.mubr.bf16.vlgmr.msra.gmra.mxu1 %v7050_v52  ;;  %v6871_v42 = vadd.f32 1.0, %v9077_v26  ;;  %v6931_v44 = vmul.f32 %v6867_v19, %v6419_v4  ;;  %9096 = vtanh.f32 %v6755_v9  ;;  %v6930_v13 = vmul.f32 %v6866_v46, %v6418_v58 }
0x104c   : > { %v9081_v41 = vpop.eup %9080  ;;  %v6869_v40 = vadd.f32 1.0, %v9079_v56  ;;  %v7053_v39 = vpack.c.bf16 %v6929_v43, %v6925_v22  ;;  %9098 = vtanh.f32 %v6759_v32  ;;  %v6424_v48 = vmul.f32 0.5, %v11681_v33 }
0x104d   : > { %v11943_v55 = vpop.eup %9082  ;;  %v6935_v63 = vmul.f32 %v6871_v42, %v6423_v61  ;;  %v6873_v17 = vadd.f32 1.0, %v9081_v41  ;;  %v6693_v20 = vadd.f32 %v11908_v27, %v11850_v34  ;;  %v6697_v11 = vadd.f32 %v6633_v29, %v11881_v37 }
0x104e   : > { %v9085_v52 = vpop.eup %9084  ;;  %7410 = vmatprep.mubr.bf16.mxu0 %v7053_v39  ;;  %v6933_v21 = vmul.f32 %v6869_v40, %v6421_v18  ;;  %v6427_v50 = vmul.f32 0.5, %v11762_v1  ;;  %v12558_v61 = vpack.c.bf16 %v11846_v59, %v11804_v12  ;;  %v7054_v58 = vpack.c.bf16 %v6934_v31, %v6930_v13 }
0x104f   : > { %v7055_v4 = vpack.c.bf16 %v6935_v63, %v6931_v44  ;;  %v6937_v5 = vmul.f32 %v6873_v17, %v6425_v14  ;;  %v9087_v28 = vpop.eup %9086  ;;  %v6932_v25 = vmul.f32 %v6868_v10, %v6420_v7  ;;  %v6757_v33 = vmul.f32 0.7978846, %v6693_v20 }
0x1050   : > { %7411 = vmatmul.mubr.bf16.vlgmr.msra.gmra.mxu0 %v12558_v61  ;;  %v6761_v30 = vmul.f32 0.7978846, %v6697_v11  ;;  %v9089_v46 = vpop.eup %9088  ;;  %v6936_v29 = vmul.f32 %v6872_v57, %v6424_v48  ;;  %v6875_v49 = vadd.f32 1.0, %v9087_v28  ;;  %v6878_v26 = vadd.f32 1.0, %v11915_v36 }
0x1051   : > { %7321 = vmatprep.mubr.bf16.mxu1 %v7055_v4  ;;  %v7057_v27 = vpack.c.bf16 %v6937_v5, %v6933_v21  ;;  %v9091_v18 = vpop.eup %9090  ;;  %v6431_v14 = vmul.f32 0.5, %v11786_v16  ;;  %v6879_v1 = vadd.f32 1.0, %v9089_v46  ;;  %v6429_v19 = vmul.f32 0.5, %v11774_v6 }
0x1052   : > { %9100 = vtanh.f32 %v6757_v33  ;;  %v9093_v12 = vpop.eup %9092  ;;  %v6877_v59 = vadd.f32 1.0, %v9091_v18  ;;  %v6430_v7 = vmul.f32 0.5, %v11757_v62  ;;  %v6874_v31 = vadd.f32 1.0, %v11891_v24 }
0x1053   : > { %7418 = vmatprep.mubr.bf16.mxu0 %v7057_v27  ;;  %7322 = vmatmul.mubr.bf16.gmra.mxu1 %v7054_v58  ;;  %9102 = vtanh.f32 %v6761_v30  ;;  %v9095_v10 = vpop.eup %9094  ;;  %v6939_v9 = vmul.f32 %v6875_v49, %v6427_v50  ;;  %v6943_v56 = vmul.f32 %v6879_v1, %v6431_v14  ;;  %v6433_v36 = vmul.f32 0.5, %v11810_v8 }
0x1054   : > { %v6881_v22 = vadd.f32 1.0, %v9093_v12  ;;  %v7056_v16 = vpack.c.bf16 %v6936_v29, %v6932_v25  ;;  %v6426_v43 = vmul.f32 0.5, %v11705_v51  ;;  %v6942_v6 = vmul.f32 %v6878_v26, %v6430_v7 }
0x1055   : > { %v7059_v42 = vpack.c.bf16 %v6943_v56, %v6939_v9  ;;  %v6941_v32 = vmul.f32 %v6877_v59, %v6429_v19  ;;  %v6880_v44 = vadd.f32 1.0, %v11920_v45  ;;  %v6432_v24 = vmul.f32 0.5, %v11765_v60  ;;  %v12560_v59 = vld [vmem:[#allocation20_spill] sm:$0xff] }
0x1056   : > { %v6945_v41 = vmul.f32 %v6881_v22, %v6433_v36  ;;  %v6938_v40 = vmul.f32 %v6874_v31, %v6426_v43  ;;  %v6876_v57 = vadd.f32 1.0, %v11905_v15  ;;  %v6886_v63 = vadd.f32 1.0, %v9085_v52  ;;  %v12559_v52 = vld [vmem:[#allocation7_spill] sm:$0xff] }
0x1057   : > { %7329 = vmatprep.mubr.bf16.mxu1 %v7059_v42  ;;  %v6428_v51 = vmul.f32 0.5, %v11718_v23  ;;  %v6944_v13 = vmul.f32 %v6880_v44, %v6432_v24  ;;  %v6435_v48 = vmul.f32 0.5, %v11829_v35  ;;  %v6439_v45 = vmul.f32 0.5, %v11876_v47 }
0x1058   : > { %7419 = vmatmul.mubr.bf16.gmra.mxu0 %v7056_v16  ;;  %v7061_v62 = vpack.c.bf16 %v6945_v41, %v6941_v32  ;;  %v9097_v39 = vpop.eup %9096  ;;  %v7058_v8 = vpack.c.bf16 %v6942_v6, %v6938_v40  ;;  %v6438_v4 = vmul.f32 0.5, %v11815_v3  ;;  %v6882_v60 = vadd.f32 1.0, %v11925_v0 }
0x1059   : > { %v9099_v17 = vpop.eup %9098  ;;  %v6883_v20 = vadd.f32 1.0, %v9097_v39  ;;  %v6940_v15 = vmul.f32 %v6876_v57, %v6428_v51  ;;  %v6434_v50 = vmul.f32 0.5, %v12559_v52  ;;  %v6888_v23 = vadd.f32 1.0, %v9095_v10 }
0x105a   : > { %7426 = vmatprep.mubr.bf16.mxu0 %v7061_v62  ;;  %v6887_v11 = vadd.f32 1.0, %v9099_v17  ;;  %v6950_v28 = vmul.f32 %v6886_v63, %v6438_v4  ;;  %v6440_v47 = vmul.f32 0.5, %v11835_v53  ;;  %v6884_v3 = vadd.f32 1.0, %v11943_v55 }
0x105b   : > { %7330 = vmatmul.mubr.bf16.gmra.mxu1 %v7058_v8  ;;  %v6947_v21 = vmul.f32 %v6883_v20, %v6435_v48  ;;  %v7060_v61 = vpack.c.bf16 %v6944_v13, %v6940_v15  ;;  %v6946_v35 = vmul.f32 %v6882_v60, %v6434_v50  ;;  %v6437_v0 = vmul.f32 0.5, %v11850_v34  ;;  %v12561_v34 = vld [vmem:[#allocation8_spill] sm:$0xff] }
0x105c   : > { %v6951_v5 = vmul.f32 %v6887_v11, %v6439_v45  ;;  %v6441_v46 = vmul.f32 0.5, %v11881_v37  ;;  %v6436_v49 = vmul.f32 0.5, %v11795_v38  ;;  %v6952_v26 = vmul.f32 %v6888_v23, %v6440_v47 }
0x105d   : > { %v7062_v29 = vpack.c.bf16 %v6950_v28, %v6946_v35 }
0x105e   : > { %v7063_v25 = vpack.c.bf16 %v6951_v5, %v6947_v21  ;;  %v6948_v1 = vmul.f32 %v6884_v3, %v6436_v49 }
0x105f   : > { %v9101_v58 = vpop.eup %9100 }
0x1060   : > { %v9103_v33 = vpop.eup %9102  ;;  %7427 = vmatmul.mubr.bf16.gmra.mxu0 %v7060_v61  ;;  %v6885_v30 = vadd.f32 1.0, %v9101_v58  ;;  %7337 = vmatprep.mubr.bf16.mxu1 %v7063_v25  ;;  %v7064_v12 = vpack.c.bf16 %v6952_v26, %v6948_v1 }
0x1061   : > { %v6889_v27 = vadd.f32 1.0, %v9103_v33 }
0x1062   : > { %v6949_v18 = vmul.f32 %v6885_v30, %v6437_v0 }
0x1063   : > { %v6953_v14 = vmul.f32 %v6889_v27, %v6441_v46  ;;  %7338 = vmatmul.mubr.bf16.gmra.mxu1 %v7062_v29 }
0x1065   : > { %v7065_v19 = vpack.c.bf16 %v6953_v14, %v6949_v18 }
0x1067   : > { %7434 = vmatprep.mubr.bf16.mxu0 %v7065_v19 }
0x1068   : > { %7435 = vmatmul.mubr.bf16.gmra.mxu0 %v7064_v12 }
0x1084   : > { %v6258_v53 = vpop.f32.mrf.mxu1  ;;  %v6371_v55 = vpop.f32.mrf.mxu0 }
0x1085   : > { %v6259_v7 = vadd.f32 %v6258_v53, %v12560_v59  ;;  %v6372_v31 = vadd.f32 %v6371_v55, %v12561_v34 }
0x1086   : > { %v6260_v37 = vpop.f32.mrf.mxu1  ;;  %v6373_v10 = vpop.f32.mrf.mxu0 }
0x1087   : > { %v6506_v9 = vmul.f32 0.044715, %v6259_v7  ;;  %v6508_v56 = vmul.f32 0.044715, %v6372_v31  ;;  %v11983_v32 = vadd.f32 %v6260_v37, %v11643_v2  ;;  %v11989_v17 = vadd.f32 %v6373_v10, %v11645_v54 }
0x1088   : > { %v6262_v38 = vpop.f32.mrf.mxu1  ;;  %v6375_v36 = vpop.f32.mrf.mxu0  ;;  %v12008_v28 = vmul.f32 0.5, %v6259_v7  ;;  %v12013_v25 = vmul.f32 0.5, %v6372_v31 }
0x1089   : > { %v6570_v22 = vmul.f32 %v6506_v9, %v6259_v7  ;;  %v11977_v16 = vadd.f32 %v6262_v38, %v12560_v59  ;;  %v11980_v43 = vadd.f32 %v6375_v36, %v12561_v34  ;;  %v6572_v41 = vmul.f32 %v6508_v56, %v6372_v31 }
0x108a   : > { %v6264_v6 = vpop.f32.mrf.mxu1  ;;  %v6377_v42 = vpop.f32.mrf.mxu0  ;;  %v6507_v63 = vmul.f32 0.044715, %v11983_v32  ;;  %v6509_v23 = vmul.f32 0.044715, %v11989_v17  ;;  %v12025_v49 = vmul.f32 0.5, %v11983_v32 }
0x108b   : > { %v6634_v62 = vmul.f32 %v6570_v22, %v6259_v7  ;;  %v6510_v24 = vmul.f32 0.044715, %v11977_v16  ;;  %v6512_v57 = vmul.f32 0.044715, %v11980_v43  ;;  %v6636_v48 = vmul.f32 %v6572_v41, %v6372_v31 }
0x108c   : > { %v6268_v44 = vpop.f32.mrf.mxu1  ;;  %v6381_v40 = vpop.f32.mrf.mxu0  ;;  %v11998_v20 = vadd.f32 %v6264_v6, %v11643_v2  ;;  %v12001_v45 = vadd.f32 %v6377_v42, %v11645_v54  ;;  %v6571_v61 = vmul.f32 %v6507_v63, %v11983_v32  ;;  %v6573_v53 = vmul.f32 %v6509_v23, %v11989_v17 }
0x108d   : > { %v11992_v51 = vadd.f32 %v6268_v44, %v12560_v59  ;;  %v11995_v13 = vadd.f32 %v6381_v40, %v12561_v34  ;;  %v6698_v60 = vadd.f32 %v6634_v62, %v6259_v7  ;;  %v6574_v15 = vmul.f32 %v6510_v24, %v11977_v16 }
0x108e   : > { %v6270_v39 = vpop.f32.mrf.mxu1  ;;  %v6383_v8 = vpop.f32.mrf.mxu0  ;;  %v6576_v21 = vmul.f32 %v6512_v57, %v11980_v43  ;;  %v6700_v35 = vadd.f32 %v6636_v48, %v6372_v31  ;;  %v6511_v33 = vmul.f32 0.044715, %v11998_v20  ;;  %v6513_v30 = vmul.f32 0.044715, %v12001_v45 }
0x108f   : > { %v6514_v5 = vmul.f32 0.044715, %v11992_v51  ;;  %v6516_v58 = vmul.f32 0.044715, %v11995_v13  ;;  %v6762_v46 = vmul.f32 0.7978846, %v6698_v60  ;;  %v6638_v27 = vmul.f32 %v6574_v15, %v11977_v16 }
0x1090   : > { %v6272_v11 = vpop.f32.mrf.mxu1  ;;  %v6385_v4 = vpop.f32.mrf.mxu0  ;;  %v6640_v26 = vmul.f32 %v6576_v21, %v11980_v43  ;;  %v12030_v14 = vadd.f32 %v6270_v39, %v11643_v2  ;;  %v12038_v7 = vadd.f32 %v6383_v8, %v11645_v54  ;;  %v12041_v31 = vmul.f32 0.5, %v11989_v17 }
0x1091   : > { %v12018_v47 = vadd.f32 %v6272_v11, %v12560_v59  ;;  %v12022_v29 = vadd.f32 %v6385_v4, %v12561_v34  ;;  %v6578_v18 = vmul.f32 %v6514_v5, %v11992_v51  ;;  %v6580_v55 = vmul.f32 %v6516_v58, %v11995_v13 }
0x1092   : > { %v6274_v52 = vpop.f32.mrf.mxu1  ;;  %v12006_v50 = vpop.f32.mrf.mxu0  ;;  %v6764_v37 = vmul.f32 0.7978846, %v6700_v35  ;;  %v12044_v10 = vmul.f32 %v6571_v61, %v11983_v32  ;;  %v6575_v9 = vmul.f32 %v6511_v33, %v11998_v20  ;;  %v6577_v56 = vmul.f32 %v6513_v30, %v12001_v45 }
0x1093   : > { %v6518_v1 = vmul.f32 0.044715, %v12018_v47  ;;  %v6702_v36 = vadd.f32 %v6638_v27, %v11977_v16  ;;  %v6520_v6 = vmul.f32 0.044715, %v12022_v29  ;;  %9104 = vtanh.f32 %v6762_v46 }
0x1094   : > { %v6278_v3 = vpop.f32.mrf.mxu1  ;;  %v6391_v0 = vpop.f32.mrf.mxu0  ;;  %v6704_v44 = vadd.f32 %v6640_v26, %v11980_v43  ;;  %v6642_v40 = vmul.f32 %v6578_v18, %v11992_v51  ;;  %v6515_v62 = vmul.f32 0.044715, %v12030_v14  ;;  %v6644_v24 = vmul.f32 %v6580_v55, %v11995_v13 }
0x1095   : > { %v6582_v22 = vmul.f32 %v6518_v1, %v12018_v47  ;;  %v12052_v42 = vadd.f32 %v6278_v3, %v12560_v59  ;;  %v6517_v57 = vmul.f32 0.044715, %v12038_v7  ;;  %v12061_v8 = vadd.f32 %v6391_v0, %v12561_v34 }
0x1096   : > { %v6280_v19 = vpop.f32.mrf.mxu1  ;;  %v12033_v12 = vpop.f32.mrf.mxu0  ;;  %9106 = vtanh.f32 %v6764_v37  ;;  %v12064_v48 = vmul.f32 %v6573_v53, %v11989_v17  ;;  %v12067_v11 = vmul.f32 %v6575_v9, %v11998_v20  ;;  %v12070_v4 = vadd.f32 %v6274_v52, %v11643_v2 }
0x1097   : > { %12562 = vst [vmem:[#allocation3_spill] sm:$0xff] %v12052_v42  ;;  %v6522_v39 = vmul.f32 0.044715, %v12052_v42  ;;  %12563 = vst [vmem:[#allocation4_spill] sm:$0xff] %v12061_v8  ;;  %v6766_v60 = vmul.f32 0.7978846, %v6702_v36  ;;  %v6646_v15 = vmul.f32 %v6582_v22, %v12018_v47  ;;  %v6584_v21 = vmul.f32 %v6520_v6, %v12022_v29 }
0x1098   : > { %v6282_v38 = vpop.f32.mrf.mxu1  ;;  %v6395_v41 = vpop.f32.mrf.mxu0  ;;  %v6524_v5 = vmul.f32 0.044715, %v12061_v8  ;;  %v6768_v23 = vmul.f32 0.7978846, %v6704_v44  ;;  %v12078_v58 = vmul.f32 %v6577_v56, %v12001_v45  ;;  %v6579_v35 = vmul.f32 %v6515_v62, %v12030_v14 }
0x1099   : > { %v12082_v33 = vadd.f32 %v6282_v38, %v12560_v59  ;;  %v6706_v52 = vadd.f32 %v6642_v40, %v11992_v51  ;;  %v6708_v30 = vadd.f32 %v6644_v24, %v11995_v13  ;;  %v6581_v3 = vmul.f32 %v6517_v57, %v12038_v7 }
0x109a   : > { %v6284_v63 = vpop.f32.mrf.mxu1  ;;  %v12075_v61 = vpop.f32.mrf.mxu0  ;;  %v6586_v0 = vmul.f32 %v6522_v39, %v12052_v42  ;;  %v6519_v27 = vmul.f32 0.044715, %v12070_v4  ;;  %v12091_v26 = vadd.f32 %v12006_v50, %v11645_v54  ;;  %v6588_v18 = vmul.f32 %v6524_v5, %v12061_v8 }
0x109b   : > { %12564 = vst [vmem:[#allocation6_spill] sm:$0xff] %v12082_v33  ;;  %v6526_v1 = vmul.f32 0.044715, %v12082_v33  ;;  %9108 = vtanh.f32 %v6766_v60  ;;  %v6710_v53 = vadd.f32 %v6646_v15, %v12018_v47  ;;  %v6648_v55 = vmul.f32 %v6584_v21, %v12022_v29 }
0x109c   : > { %v6288_v46 = vpop.f32.mrf.mxu1  ;;  %v12098_v37 = vadd.f32 %v6395_v41, %v12561_v34  ;;  %v6401_v9 = vpop.f32.mrf.mxu0  ;;  %9110 = vtanh.f32 %v6768_v23  ;;  %v12101_v56 = vmul.f32 %v6579_v35, %v12030_v14  ;;  %v12104_v50 = vadd.f32 %v6280_v19, %v11643_v2 }
0x109d   : > { %v6590_v38 = vmul.f32 %v6526_v1, %v12082_v33  ;;  %v6770_v36 = vmul.f32 0.7978846, %v6706_v52  ;;  %v6772_v22 = vmul.f32 0.7978846, %v6708_v30  ;;  %v6650_v6 = vmul.f32 %v6586_v0, %v12052_v42 }
0x109e   : > { %12565 = vst [vmem:[#allocation9_spill] sm:$0xff] %v12098_v37  ;;  %v6528_v44 = vmul.f32 0.044715, %v12098_v37  ;;  %v6290_v40 = vpop.f32.mrf.mxu1  ;;  %v12110_v41 = vmul.f32 %v6581_v3, %v12038_v7  ;;  %v6583_v62 = vmul.f32 %v6519_v27, %v12070_v4  ;;  %v6521_v24 = vmul.f32 0.044715, %v12091_v26  ;;  %v6403_v21 = vpop.f32.mrf.mxu0 }
0x109f   : > { %v6652_v57 = vmul.f32 %v6588_v18, %v12061_v8  ;;  %v6774_v19 = vmul.f32 0.7978846, %v6710_v53  ;;  %v6712_v39 = vadd.f32 %v6648_v55, %v12022_v29  ;;  %v12118_v60 = vadd.f32 %v12033_v12, %v11645_v54 }
0x10a0   : > { %v12121_v15 = vadd.f32 %v6288_v46, %v12560_v59  ;;  %v6523_v5 = vmul.f32 0.044715, %v12104_v50  ;;  %v6654_v23 = vmul.f32 %v6590_v38, %v12082_v33  ;;  %v6592_v35 = vmul.f32 %v6528_v44, %v12098_v37  ;;  %v12129_v30 = vpop.eup %9104  ;;  %v6292_v46 = vpop.f32.mrf.mxu1 }
0x10a1   : > { %v12127_v52 = vadd.f32 %v6401_v9, %v12561_v34  ;;  %9112 = vtanh.f32 %v6770_v36  ;;  %v6714_v3 = vadd.f32 %v6650_v6, %v12052_v42  ;;  %v12133_v12 = vadd.f32 %v6284_v63, %v11643_v2  ;;  %v6405_v63 = vpop.f32.mrf.mxu0 }
0x10a2   : > { %12566 = vst [vmem:[#allocation11_spill] sm:$0xff] %v12121_v15  ;;  %v6530_v0 = vmul.f32 0.044715, %v12121_v15  ;;  %9114 = vtanh.f32 %v6772_v22  ;;  %v6585_v27 = vmul.f32 %v6521_v24, %v12091_v26  ;;  %v6716_v18 = vadd.f32 %v6652_v57, %v12061_v8 }
0x10a3   : > { %v6532_v1 = vmul.f32 0.044715, %v12127_v52  ;;  %v12139_v53 = vpop.eup %9106  ;;  %9116 = vtanh.f32 %v6774_v19  ;;  %v6776_v55 = vmul.f32 0.7978846, %v6712_v39  ;;  %v6525_v9 = vmul.f32 0.044715, %v12118_v60 }
0x10a4   : > { %v6594_v38 = vmul.f32 %v6530_v0, %v12121_v15  ;;  %v6587_v36 = vmul.f32 %v6523_v5, %v12104_v50  ;;  %v6718_v6 = vadd.f32 %v6654_v23, %v12082_v33  ;;  %v6656_v22 = vmul.f32 %v6592_v35, %v12098_v37 }
0x10a5   : > { %v12147_v44 = vadd.f32 %v6292_v46, %v12560_v59  ;;  %v6778_v24 = vmul.f32 0.7978846, %v6714_v3  ;;  %v6527_v57 = vmul.f32 0.044715, %v12133_v12  ;;  %v12152_v19 = vadd.f32 %v12075_v61, %v11645_v54 }
0x10a6   : > { %v6596_v39 = vmul.f32 %v6532_v1, %v12127_v52  ;;  %v6780_v0 = vmul.f32 0.7978846, %v6716_v18  ;;  %v6658_v8 = vmul.f32 %v6594_v38, %v12121_v15  ;;  %v12158_v23 = vadd.f32 %v6405_v63, %v12561_v34 }
0x10a7   : > { %v6534_v5 = vmul.f32 0.044715, %v12147_v44  ;;  %9118 = vtanh.f32 %v6776_v55  ;;  %v6647_v59 = vmul.f32 %v6583_v62, %v12070_v4  ;;  %v12162_v35 = vmul.f32 %v6585_v27, %v12091_v26 }
0x10a8   : > { %v6589_v3 = vmul.f32 %v6525_v9, %v12118_v60  ;;  %v12165_v61 = vpop.eup %9108  ;;  %v6782_v46 = vmul.f32 0.7978846, %v6718_v6  ;;  %v6720_v18 = vadd.f32 %v6656_v22, %v12098_v37  ;;  %v12169_v1 = vadd.f32 %v6290_v40, %v11643_v2  ;;  %v6294_v9 = vpop.f32.mrf.mxu1 }
0x10a9   : > { %v6536_v38 = vmul.f32 0.044715, %v12158_v23  ;;  %v12172_v34 = vpop.eup %9110  ;;  %9120 = vtanh.f32 %v6778_v24  ;;  %v12175_v62 = vmul.f32 %v6587_v36, %v12104_v50  ;;  %v6660_v27 = vmul.f32 %v6596_v39, %v12127_v52  ;;  %v6407_v37 = vpop.f32.mrf.mxu0 }
0x10aa   : > { %v6598_v55 = vmul.f32 %v6534_v5, %v12147_v44  ;;  %9122 = vtanh.f32 %v6780_v0  ;;  %v6591_v63 = vmul.f32 %v6527_v57, %v12133_v12  ;;  %v6529_v6 = vmul.f32 0.044715, %v12152_v19 }
0x10ab   : > { %v6722_v40 = vadd.f32 %v6658_v8, %v12121_v15  ;;  %v12183_v22 = vadd.f32 %v6403_v21, %v11645_v54  ;;  %v6600_v24 = vmul.f32 %v6536_v38, %v12158_v23  ;;  %v6699_v36 = vadd.f32 %v12044_v10, %v11983_v32 }
0x10ac   : > { %v6703_v39 = vadd.f32 %v12067_v11, %v11998_v20  ;;  %9124 = vtanh.f32 %v6782_v46  ;;  %v6784_v0 = vmul.f32 0.7978846, %v6720_v18  ;;  %v6531_v57 = vmul.f32 0.044715, %v12169_v1 }
0x10ad   : > { %v12192_v5 = vadd.f32 %v6294_v9, %v11643_v2  ;;  %v6724_v8 = vadd.f32 %v6660_v27, %v12127_v52  ;;  %v6662_v21 = vmul.f32 %v6598_v55, %v12147_v44  ;;  %v6763_v15 = vmul.f32 0.7978846, %v6699_v36 }
0x10ae   : > { %v6767_v38 = vmul.f32 0.7978846, %v6703_v39  ;;  %v12196_v42 = vpop.eup %9112  ;;  %v6786_v33 = vmul.f32 0.7978846, %v6722_v40  ;;  %v12199_v32 = vadd.f32 %v6407_v37, %v11645_v54  ;;  %v6701_v10 = vadd.f32 %v12064_v48, %v11989_v17 }
0x10af   : > { %v6705_v11 = vadd.f32 %v12078_v58, %v12001_v45  ;;  %v12205_v2 = vpop.eup %9114  ;;  %v6593_v46 = vmul.f32 %v6529_v6, %v12152_v19  ;;  %v6533_v18 = vmul.f32 0.044715, %v12183_v22  ;;  %v6664_v27 = vmul.f32 %v6600_v24, %v12158_v23 }
0x10b0   : > { %9126 = vtanh.f32 %v6763_v15  ;;  %v12210_v55 = vpop.eup %9116  ;;  %v6595_v54 = vmul.f32 %v6531_v57, %v12169_v1  ;;  %v6765_v37 = vmul.f32 0.7978846, %v6701_v10  ;;  %v6788_v17 = vmul.f32 0.7978846, %v6724_v8 }
0x10b1   : > { %9128 = vtanh.f32 %v6784_v0  ;;  %v6769_v9 = vmul.f32 0.7978846, %v6705_v11  ;;  %v6726_v48 = vadd.f32 %v6662_v21, %v12147_v44  ;;  %v6535_v58 = vmul.f32 0.044715, %v12192_v5 }
0x10b2   : > { %9130 = vtanh.f32 %v6767_v38  ;;  %v6653_v6 = vmul.f32 %v6589_v3, %v12118_v60  ;;  %v6655_v40 = vmul.f32 %v6591_v63, %v12133_v12  ;;  %v6537_v15 = vmul.f32 0.044715, %v12199_v32 }
0x10b3   : > { %9132 = vtanh.f32 %v6786_v33  ;;  %v6597_v24 = vmul.f32 %v6533_v18, %v12183_v22  ;;  %v6728_v36 = vadd.f32 %v6664_v27, %v12158_v23  ;;  %v6707_v39 = vadd.f32 %v12101_v56, %v12030_v14 }
0x10b4   : > { %9134 = vtanh.f32 %v6765_v37  ;;  %v12222_v0 = vpop.eup %9118  ;;  %v6657_v57 = vmul.f32 %v6593_v46, %v12152_v19  ;;  %v12226_v8 = vmul.f32 %v6595_v54, %v12169_v1  ;;  %v6711_v33 = vadd.f32 %v6647_v59, %v12070_v4 }
0x10b5   : > { %9136 = vtanh.f32 %v6769_v9  ;;  %v6790_v3 = vmul.f32 0.7978846, %v6726_v48  ;;  %v6599_v63 = vmul.f32 %v6535_v58, %v12192_v5  ;;  %v6771_v21 = vmul.f32 0.7978846, %v6707_v39 }
0x10b6   : > { %9138 = vtanh.f32 %v6788_v17  ;;  %v12230_v38 = vpop.eup %9120  ;;  %v6601_v10 = vmul.f32 %v6537_v15, %v12199_v32  ;;  %v6775_v56 = vmul.f32 0.7978846, %v6711_v33  ;;  %v6709_v11 = vadd.f32 %v12110_v41, %v12038_v7 }
0x10b7   : > { %v6713_v46 = vadd.f32 %v12162_v35, %v12091_v26  ;;  %v12237_v18 = vpop.eup %9122  ;;  %v12240_v59 = vmul.f32 %v6597_v24, %v12183_v22  ;;  %v6792_v27 = vmul.f32 0.7978846, %v6728_v36  ;;  %v6890_v54 = vadd.f32 1.0, %v12129_v30 }
0x10b8   : > { %9140 = vtanh.f32 %v6771_v21  ;;  %v6894_v37 = vadd.f32 1.0, %v12165_v61  ;;  %v6773_v9 = vmul.f32 0.7978846, %v6709_v11  ;;  %v12247_v41 = vmul.f32 %v6599_v63, %v12192_v5 }
0x10b9   : > { %9142 = vtanh.f32 %v6775_v56  ;;  %v6777_v17 = vmul.f32 0.7978846, %v6713_v46  ;;  %v12244_v48 = vpop.eup %9124  ;;  %v6447_v35 = vmul.f32 0.5, %v11998_v20  ;;  %v6449_v58 = vmul.f32 0.5, %v12001_v45 }
0x10ba   : > { %9144 = vtanh.f32 %v6790_v3  ;;  %v12252_v15 = vmul.f32 %v6601_v10, %v12199_v32  ;;  %v6446_v30 = vmul.f32 0.5, %v11977_v16  ;;  %v6892_v61 = vadd.f32 1.0, %v12139_v53 }
0x10bb   : > { %9146 = vtanh.f32 %v6773_v9  ;;  %v6954_v24 = vmul.f32 %v6890_v54, %v12008_v28  ;;  %v6896_v36 = vadd.f32 1.0, %v12172_v34  ;;  %v6715_v39 = vadd.f32 %v12175_v62, %v12104_v50 }
0x10bc   : > { %9148 = vtanh.f32 %v6777_v17  ;;  %v6958_v20 = vmul.f32 %v6894_v37, %v6446_v30  ;;  %v6448_v45 = vmul.f32 0.5, %v11980_v43  ;;  %v6719_v3 = vadd.f32 %v6655_v40, %v12133_v12 }
0x10bd   : > { %v9127_v33 = vpop.eup %9126  ;;  %9150 = vtanh.f32 %v6792_v27  ;;  %v6451_v53 = vmul.f32 0.5, %v12030_v14  ;;  %v6779_v21 = vmul.f32 0.7978846, %v6715_v39  ;;  %v6717_v28 = vadd.f32 %v6653_v6, %v12118_v60 }
0x10be   : > { %v12262_v63 = vpop.eup %9128  ;;  %v6891_v16 = vadd.f32 1.0, %v9127_v33  ;;  %v6956_v10 = vmul.f32 %v6892_v61, %v12013_v25  ;;  %v6455_v62 = vmul.f32 0.5, %v12070_v4  ;;  %v6783_v56 = vmul.f32 0.7978846, %v6719_v3 }
0x10bf   : > { %v9131_v34 = vpop.eup %9130  ;;  %v6721_v11 = vadd.f32 %v6657_v57, %v12152_v19  ;;  %v6960_v40 = vmul.f32 %v6896_v36, %v6448_v45  ;;  %9152 = vtanh.f32 %v6779_v21  ;;  %v6781_v27 = vmul.f32 0.7978846, %v6717_v28 }
0x10c0   : > { %v12269_v46 = vpop.eup %9132  ;;  %v6895_v43 = vadd.f32 1.0, %v9131_v34  ;;  %v7066_v37 = vpack.c.bf16 %v6958_v20, %v6954_v24  ;;  %v6898_v14 = vadd.f32 1.0, %v12196_v42  ;;  %9154 = vtanh.f32 %v6783_v56 }
0x10c1   : > { %v9135_v54 = vpop.eup %9134  ;;  %v6785_v6 = vmul.f32 0.7978846, %v6721_v11  ;;  %v6955_v25 = vmul.f32 %v6891_v16, %v12025_v49  ;;  %9156 = vtanh.f32 %v6781_v27  ;;  %v6453_v61 = vmul.f32 0.5, %v12038_v7 }
0x10c2   : > { %v9137_v9 = vpop.eup %9136  ;;  %v6959_v17 = vmul.f32 %v6895_v43, %v6447_v35  ;;  %v6893_v4 = vadd.f32 1.0, %v9135_v54  ;;  %v6457_v36 = vmul.f32 0.5, %v12091_v26  ;;  %v7068_v24 = vpack.c.bf16 %v6960_v40, %v6956_v10 }
0x10c3   : > { %v12273_v30 = vpop.eup %9138  ;;  %v6897_v57 = vadd.f32 1.0, %v9137_v9  ;;  %9158 = vtanh.f32 %v6785_v6  ;;  %v6450_v42 = vmul.f32 0.5, %v11992_v51  ;;  %v6902_v33 = vadd.f32 1.0, %v12210_v55 }
0x10c4   : > { %v7067_v39 = vpack.c.bf16 %v6959_v17, %v6955_v25  ;;  %v6957_v49 = vmul.f32 %v6893_v4, %v12041_v31  ;;  %v6454_v45 = vmul.f32 0.5, %v12018_v47  ;;  %v6900_v3 = vadd.f32 1.0, %v12205_v2 }
0x10c5   : > { %v9141_v20 = vpop.eup %9140  ;;  %v6961_v35 = vmul.f32 %v6897_v57, %v6449_v58  ;;  %v6962_v21 = vmul.f32 %v6898_v14, %v6450_v42  ;;  %v6452_v26 = vmul.f32 0.5, %v11995_v13  ;;  %v6723_v28 = vadd.f32 %v12226_v8, %v12169_v1 }
0x10c6   : > { %v9143_v16 = vpop.eup %9142  ;;  %7345 = vmatprep.mubr.bf16.mxu1 %v7067_v39  ;;  %v6899_v7 = vadd.f32 1.0, %v9141_v20  ;;  %v6456_v31 = vmul.f32 0.5, %v12022_v29  ;;  %v6904_v47 = vadd.f32 1.0, %v12222_v0  ;;  %v6966_v2 = vmul.f32 %v6902_v33, %v6454_v45 }
0x10c7   : > { %v12285_v51 = vpop.eup %9144  ;;  %v7069_v55 = vpack.c.bf16 %v6961_v35, %v6957_v49  ;;  %7346 = vmatmul.mubr.bf16.gmra.mxu1 %v7066_v37  ;;  %v6903_v34 = vadd.f32 1.0, %v9143_v16  ;;  %v6459_v10 = vmul.f32 0.5, %v12104_v50  ;;  %v6727_v56 = vadd.f32 %v12247_v41, %v12192_v5 }
0x10c8   : > { %v9147_v58 = vpop.eup %9146  ;;  %v6787_v13 = vmul.f32 0.7978846, %v6723_v28  ;;  %v6963_v8 = vmul.f32 %v6899_v7, %v6451_v53  ;;  %v6964_v27 = vmul.f32 %v6900_v3, %v6452_v26  ;;  %v6725_v0 = vadd.f32 %v12240_v59, %v12183_v22  ;;  %v12569_v26 = vld [vmem:[#allocation9_spill] sm:$0xff] }
0x10c9   : > { %v9149_v11 = vpop.eup %9148  ;;  %7442 = vmatprep.mubr.bf16.mxu0 %v7069_v55  ;;  %v6967_v43 = vmul.f32 %v6903_v34, %v6455_v62  ;;  %v6901_v40 = vadd.f32 1.0, %v9147_v58  ;;  %v6791_v37 = vmul.f32 0.7978846, %v6727_v56  ;;  %v6968_v14 = vmul.f32 %v6904_v47, %v6456_v31  ;;  %v12570_v58 = vld [vmem:[#allocation4_spill] sm:$0xff] }
0x10ca   : > { %v12292_v54 = vpop.eup %9150  ;;  %7443 = vmatmul.mubr.bf16.gmra.mxu0 %v7068_v24  ;;  %v6905_v29 = vadd.f32 1.0, %v9149_v11  ;;  %9160 = vtanh.f32 %v6787_v13  ;;  %v6463_v41 = vmul.f32 0.5, %v12133_v12  ;;  %v6729_v6 = vadd.f32 %v12252_v15, %v12199_v32 }
0x10cb   : > { %v7071_v50 = vpack.c.bf16 %v6967_v43, %v6963_v8  ;;  %v6965_v53 = vmul.f32 %v6901_v40, %v6453_v61  ;;  %9162 = vtanh.f32 %v6791_v37  ;;  %v6789_v9 = vmul.f32 0.7978846, %v6725_v0  ;;  %v12567_v61 = vld [vmem:[#allocation6_spill] sm:$0xff] }
0x10cc   : > { %v6969_v62 = vmul.f32 %v6905_v29, %v6457_v36  ;;  %v9153_v25 = vpop.eup %9152  ;;  %v7070_v17 = vpack.c.bf16 %v6966_v2, %v6962_v21  ;;  %v6461_v4 = vmul.f32 0.5, %v12118_v60  ;;  %v6910_v57 = vadd.f32 1.0, %v12244_v48  ;;  %v12568_v48 = vld [vmem:[#allocation3_spill] sm:$0xff] }
0x10cd   : > { %7353 = vmatprep.mubr.bf16.mxu1 %v7071_v50  ;;  %v6793_v39 = vmul.f32 0.7978846, %v6729_v6  ;;  %v9155_v59 = vpop.eup %9154  ;;  %v6907_v42 = vadd.f32 1.0, %v9153_v25  ;;  %v6465_v12 = vmul.f32 0.5, %v12152_v19  ;;  %9164 = vtanh.f32 %v6789_v9  ;;  %v12571_v6 = vld [vmem:[#allocation11_spill] sm:$0xff] }
0x10ce   : > { %v7073_v24 = vpack.c.bf16 %v6969_v62, %v6965_v53  ;;  %v9157_v33 = vpop.eup %9156  ;;  %v6911_v15 = vadd.f32 1.0, %v9155_v59  ;;  %v6462_v36 = vmul.f32 0.5, %v12567_v61  ;;  %v6906_v20 = vadd.f32 1.0, %v12230_v38 }
0x10cf   : > { %7354 = vmatmul.mubr.bf16.gmra.mxu1 %v7070_v17  ;;  %9166 = vtanh.f32 %v6793_v39  ;;  %v7072_v60 = vpack.c.bf16 %v6968_v14, %v6964_v27  ;;  %v6909_v35 = vadd.f32 1.0, %v9157_v33  ;;  %v6458_v45 = vmul.f32 0.5, %v12568_v48 }
0x10d0   : > { %v9159_v49 = vpop.eup %9158  ;;  %7450 = vmatprep.mubr.bf16.mxu0 %v7073_v24  ;;  %v6912_v3 = vadd.f32 1.0, %v12262_v63  ;;  %v6971_v16 = vmul.f32 %v6907_v42, %v6459_v10  ;;  %v6975_v7 = vmul.f32 %v6911_v15, %v6463_v41  ;;  %v6974_v21 = vmul.f32 %v6910_v57, %v6462_v36 }
0x10d1   : > { %v6913_v19 = vadd.f32 1.0, %v9159_v49  ;;  %v6464_v28 = vmul.f32 0.5, %v12569_v26  ;;  %v6908_v55 = vadd.f32 1.0, %v12237_v18  ;;  %v6973_v38 = vmul.f32 %v6909_v35, %v6461_v4 }
0x10d2   : > { %7451 = vmatmul.mubr.bf16.gmra.mxu0 %v7072_v60  ;;  %v7075_v34 = vpack.c.bf16 %v6975_v7, %v6971_v16  ;;  %v6970_v47 = vmul.f32 %v6906_v20, %v6458_v45  ;;  %v6460_v2 = vmul.f32 0.5, %v12570_v58  ;;  %v6918_v8 = vadd.f32 1.0, %v12285_v51 }
0x10d3   : > { %v6977_v31 = vmul.f32 %v6913_v19, %v6465_v12  ;;  %v6976_v56 = vmul.f32 %v6912_v3, %v6464_v28  ;;  %v6470_v18 = vmul.f32 0.5, %v12147_v44  ;;  %v6914_v29 = vadd.f32 1.0, %v12269_v46  ;;  %v12572_v28 = vld [vmem:[#allocation5_spill] sm:$0xff] }
0x10d4   : > { %7361 = vmatprep.mubr.bf16.mxu1 %v7075_v34  ;;  %v7074_v11 = vpack.c.bf16 %v6974_v21, %v6970_v47  ;;  %v6972_v63 = vmul.f32 %v6908_v55, %v6460_v2  ;;  %v6467_v37 = vmul.f32 0.5, %v12169_v1  ;;  %v6471_v0 = vmul.f32 0.5, %v12192_v5 }
0x10d5   : > { %v7077_v13 = vpack.c.bf16 %v6977_v31, %v6973_v38  ;;  %v6920_v14 = vadd.f32 1.0, %v12292_v54  ;;  %v6466_v53 = vmul.f32 0.5, %v12571_v6  ;;  %v6982_v62 = vmul.f32 %v6918_v8, %v6470_v18 }
0x10d6   : > { %v7076_v43 = vpack.c.bf16 %v6976_v56, %v6972_v63  ;;  %v6472_v51 = vmul.f32 0.5, %v12158_v23  ;;  %v6916_v46 = vadd.f32 1.0, %v12273_v30  ;;  %v6469_v4 = vmul.f32 0.5, %v12183_v22 }
0x10d7   : > { %v9161_v10 = vpop.eup %9160  ;;  %7458 = vmatprep.mubr.bf16.mxu0 %v7077_v13  ;;  %7362 = vmatmul.mubr.bf16.gmra.mxu1 %v7074_v11  ;;  %v6473_v1 = vmul.f32 0.5, %v12199_v32  ;;  %v6978_v57 = vmul.f32 %v6914_v29, %v6466_v53  ;;  %v6468_v54 = vmul.f32 0.5, %v12127_v52  ;;  %v12324_v32 = vld [vmem:[%s12396_s12] ss:$0 sm:$0xff] }
0x10d8   : > { %v6915_v40 = vadd.f32 1.0, %v9161_v10  ;;  %v9163_v27 = vpop.eup %9162  ;;  %v6984_v59 = vmul.f32 %v6920_v14, %v6472_v51  ;;  %v12573_v11 = vld [vmem:[#allocation22_spill] sm:$0xff] }
0x10d9   : > { %v6919_v50 = vadd.f32 1.0, %v9163_v27  ;;  %v7078_v12 = vpack.c.bf16 %v6982_v62, %v6978_v57  ;;  %v6980_v23 = vmul.f32 %v6916_v46, %v6468_v54 }
0x10da   : > { %7459 = vmatmul.mubr.bf16.gmra.mxu0 %v7076_v43  ;;  %v9165_v41 = vpop.eup %9164  ;;  %v6979_v25 = vmul.f32 %v6915_v40, %v6467_v37 }
0x10db   : > { %v6983_v17 = vmul.f32 %v6919_v50, %v6471_v0  ;;  %v6917_v44 = vadd.f32 1.0, %v9165_v41  ;;  %v7080_v15 = vpack.c.bf16 %v6984_v59, %v6980_v23  ;;  %v12574_v0 = vld [vmem:[#allocation10_spill] sm:$0xff] }
0x10dc   : > { %v9167_v9 = vpop.eup %9166 }
0x10dd   : > { %v6921_v5 = vadd.f32 1.0, %v9167_v9  ;;  %v7079_v39 = vpack.c.bf16 %v6983_v17, %v6979_v25  ;;  %v6981_v24 = vmul.f32 %v6917_v44, %v6469_v4  ;;  %v12575_v17 = vld [vmem:[#allocation23_spill] sm:$0xff] }
0x10df   : > { %v6985_v42 = vmul.f32 %v6921_v5, %v6473_v1  ;;  %7369 = vmatprep.mubr.bf16.mxu1 %v7079_v39 }
0x10e0   : > { %7370 = vmatmul.mubr.bf16.gmra.mxu1 %v7078_v12 }
0x10e1   : > { %v7081_v33 = vpack.c.bf16 %v6985_v42, %v6981_v24  ;;  %v12576_v24 = vld [vmem:[#allocation12_spill] sm:$0xff] }
0x10e3   : > { %7466 = vmatprep.mubr.bf16.mxu0 %v7081_v33 }
0x10e4   : > { %7467 = vmatmul.mubr.bf16.gmra.mxu0 %v7080_v15 }
0x110b   : > { %v7978_v30 = vpop.f32.mrf.mxu1 }
0x110d   : > { %v7979_v22 = vpop.f32.mrf.mxu1 }
0x110e   : > { %v7980_v52 = vadd.f32 %v7979_v22, %v7978_v30 }
0x110f   : > { %v7981_v61 = vpop.f32.mrf.mxu1 }
0x1110   : > { %v8042_v36 = vpop.f32.mrf.mxu0  ;;  %v7316_v20 = vadd.f32 %v7980_v52, %v12324_v32 }
0x1111   : > { %v7982_v49 = vpop.f32.mrf.mxu1 }
0x1112   : > { %v8043_v60 = vpop.f32.mrf.mxu0  ;;  %v7983_v35 = vadd.f32 %v7982_v49, %v7981_v61 }
0x1113   : > { %v8044_v48 = vadd.f32 %v8043_v60, %v8042_v36  ;;  %v7984_v45 = vpop.f32.mrf.mxu1  ;;  %v12577_v36 = vld [vmem:[#allocation25_spill] sm:$0xff] }
0x1114   : > { %v8045_v3 = vpop.f32.mrf.mxu0  ;;  %v7319_v7 = vadd.f32 %v7983_v35, %v12324_v32 }
0x1115   : > { %v7413_v16 = vadd.f32 %v8044_v48, %v7316_v20  ;;  %v7985_v19 = vpop.f32.mrf.mxu1 }
0x1116   : > { %v8046_v21 = vpop.f32.mrf.mxu0  ;;  %v7986_v26 = vadd.f32 %v7985_v19, %v7984_v45 }
0x1117   : > { %v7475_v55 = vadd.f32 %v7413_v16, %v12572_v28  ;;  %v8047_v34 = vadd.f32 %v8046_v21, %v8045_v3  ;;  %v7987_v38 = vpop.f32.mrf.mxu1  ;;  %v12578_v3 = vld [vmem:[#allocation14_spill] sm:$0xff] }
0x1118   : > { %v8048_v31 = vpop.f32.mrf.mxu0  ;;  %v7324_v58 = vadd.f32 %v7986_v26, %v12324_v32  ;;  %v12579_v21 = vld [vmem:[#allocation26_spill] sm:$0xff] }
0x1119   : > { %7491 = vst [vmem:[%s12333_s23] sm:$0xff] %v7475_v55  ;;  %v7416_v47 = vadd.f32 %v8047_v34, %v7319_v7  ;;  %v7988_v2 = vpop.f32.mrf.mxu1 }
0x111a   : > { %v8049_v56 = vpop.f32.mrf.mxu0  ;;  %v7989_v13 = vadd.f32 %v7988_v2, %v7987_v38 }
0x111b   : > { %v7476_v63 = vadd.f32 %v7416_v47, %v12573_v11  ;;  %v8050_v10 = vadd.f32 %v8049_v56, %v8048_v31  ;;  %v7990_v8 = vpop.f32.mrf.mxu1 }
0x111c   : > { %v8051_v43 = vpop.f32.mrf.mxu0  ;;  %v7327_v27 = vadd.f32 %v7989_v13, %v12324_v32 }
0x111d   : > { %7492 = vst [vmem:[%s12333_s23 + $0x8] sm:$0xff] %v7476_v63  ;;  %v7421_v40 = vadd.f32 %v8050_v10, %v7324_v58  ;;  %v7991_v18 = vpop.f32.mrf.mxu1 }
0x111e   : > { %v8052_v29 = vpop.f32.mrf.mxu0  ;;  %v7992_v37 = vadd.f32 %v7991_v18, %v7990_v8 }
0x111f   : > { %v7477_v50 = vadd.f32 %v7421_v40, %v12574_v0  ;;  %v8053_v14 = vadd.f32 %v8052_v29, %v8051_v43  ;;  %v7993_v41 = vpop.f32.mrf.mxu1  ;;  %v12580_v40 = vld [vmem:[#allocation15_spill] sm:$0xff] }
0x1120   : > { %v8054_v6 = vpop.f32.mrf.mxu0  ;;  %v7332_v62 = vadd.f32 %v7992_v37, %v12324_v32 }
0x1121   : > { %7493 = vst [vmem:[%s12333_s23 + $0x10] sm:$0xff] %v7477_v50  ;;  %v7424_v53 = vadd.f32 %v8053_v14, %v7327_v27  ;;  %v7994_v51 = vpop.f32.mrf.mxu1 }
0x1122   : > { %v8055_v9 = vpop.f32.mrf.mxu0  ;;  %v7995_v25 = vadd.f32 %v7994_v51, %v7993_v41 }
0x1123   : > { %v7478_v44 = vadd.f32 %v7424_v53, %v12575_v17  ;;  %v8056_v46 = vadd.f32 %v8055_v9, %v8054_v6  ;;  %v7996_v4 = vpop.f32.mrf.mxu1  ;;  %v12581_v53 = vld [vmem:[#allocation27_spill] sm:$0xff] }
0x1124   : > { %v8057_v1 = vpop.f32.mrf.mxu0  ;;  %v7335_v57 = vadd.f32 %v7995_v25, %v12324_v32 }
0x1125   : > { %7494 = vst [vmem:[%s12333_s23 + $0x18] sm:$0xff] %v7478_v44  ;;  %v7429_v5 = vadd.f32 %v8056_v46, %v7332_v62  ;;  %v7997_v39 = vpop.f32.mrf.mxu1 }
0x1126   : > { %v8058_v54 = vpop.f32.mrf.mxu0  ;;  %v7998_v59 = vadd.f32 %v7997_v39, %v7996_v4 }
0x1127   : > { %v7479_v42 = vadd.f32 %v7429_v5, %v12576_v24  ;;  %v8059_v12 = vadd.f32 %v8058_v54, %v8057_v1  ;;  %v7999_v23 = vpop.f32.mrf.mxu1  ;;  %v12582_v5 = vld [vmem:[#allocation16_spill] sm:$0xff] }
0x1128   : > { %v8060_v33 = vpop.f32.mrf.mxu0  ;;  %v7340_v30 = vadd.f32 %v7998_v59, %v12324_v32 }
0x1129   : > { %7495 = vst [vmem:[%s12333_s23 + $0x20] sm:$0xff] %v7479_v42  ;;  %v7432_v15 = vadd.f32 %v8059_v12, %v7335_v57  ;;  %v8000_v22 = vpop.f32.mrf.mxu1 }
0x112a   : > { %v8061_v52 = vpop.f32.mrf.mxu0  ;;  %v8001_v61 = vadd.f32 %v8000_v22, %v7999_v23 }
0x112b   : > { %v7480_v20 = vadd.f32 %v7432_v15, %v12577_v36  ;;  %v8062_v49 = vadd.f32 %v8061_v52, %v8060_v33  ;;  %v12583_v15 = vld [vmem:[#allocation29_spill] sm:$0xff] }
0x112c   : > { %v8063_v60 = vpop.f32.mrf.mxu0  ;;  %v7343_v48 = vadd.f32 %v8001_v61, %v12324_v32 }
0x112d   : > { %7496 = vst [vmem:[%s12333_s23 + $0x28] sm:$0xff] %v7480_v20  ;;  %v7437_v35 = vadd.f32 %v8062_v49, %v7340_v30 }
0x112e   : > { %v8064_v45 = vpop.f32.mrf.mxu0 }
0x112f   : > { %v7481_v16 = vadd.f32 %v7437_v35, %v12578_v3  ;;  %v8065_v7 = vadd.f32 %v8064_v45, %v8063_v60  ;;  %v12584_v35 = vld [vmem:[#allocation18_spill] sm:$0xff] }
0x1131   : > { %7497 = vst [vmem:[%s12333_s23 + $0x30] sm:$0xff] %v7481_v16  ;;  %v7440_v19 = vadd.f32 %v8065_v7, %v7343_v48 }
0x1133   : > { %v7482_v26 = vadd.f32 %v7440_v19, %v12579_v21 }
0x1135   : > { %7498 = vst [vmem:[%s12333_s23 + $0x38] sm:$0xff] %v7482_v26  ;;  %v12585_v26 = vld [vmem:[#allocation30_spill] sm:$0xff] }
0x1187   : > { %v8002_v28 = vpop.f32.mrf.mxu1 }
0x1189   : > { %v8003_v55 = vpop.f32.mrf.mxu1 }
0x118a   : > { %v8066_v34 = vpop.f32.mrf.mxu0  ;;  %v8004_v38 = vadd.f32 %v8003_v55, %v8002_v28 }
0x118b   : > { %v8005_v31 = vpop.f32.mrf.mxu1 }
0x118c   : > { %v7348_v47 = vadd.f32 %v8004_v38, %v12324_v32  ;;  %v8067_v58 = vpop.f32.mrf.mxu0 }
0x118d   : > { %v8068_v2 = vadd.f32 %v8067_v58, %v8066_v34  ;;  %v8006_v56 = vpop.f32.mrf.mxu1 }
0x118e   : > { %v8069_v13 = vpop.f32.mrf.mxu0  ;;  %v8007_v11 = vadd.f32 %v8006_v56, %v8005_v31 }
0x118f   : > { %v7445_v63 = vadd.f32 %v8068_v2, %v7348_v47  ;;  %v8008_v10 = vpop.f32.mrf.mxu1 }
0x1190   : > { %v7351_v8 = vadd.f32 %v8007_v11, %v12324_v32  ;;  %v8070_v43 = vpop.f32.mrf.mxu0 }
0x1191   : > { %v7483_v27 = vadd.f32 %v7445_v63, %v12580_v40  ;;  %v8071_v18 = vadd.f32 %v8070_v43, %v8069_v13  ;;  %v8009_v29 = vpop.f32.mrf.mxu1  ;;  %v12586_v63 = vld [vmem:[#allocation19_spill] sm:$0xff] }
0x1192   : > { %v8072_v37 = vpop.f32.mrf.mxu0  ;;  %v8010_v0 = vadd.f32 %v8009_v29, %v8008_v10  ;;  %v12587_v40 = vld [vmem:[#allocation31_spill] sm:$0xff] }
0x1193   : > { %7499 = vst [vmem:[%s12333_s23 + $0x40] sm:$0xff] %v7483_v27  ;;  %v7448_v50 = vadd.f32 %v8071_v18, %v7351_v8  ;;  %v8011_v14 = vpop.f32.mrf.mxu1 }
0x1194   : > { %v7356_v41 = vadd.f32 %v8010_v0, %v12324_v32  ;;  %v8073_v6 = vpop.f32.mrf.mxu0 }
0x1195   : > { %v7484_v62 = vadd.f32 %v7448_v50, %v12581_v53  ;;  %v8074_v51 = vadd.f32 %v8073_v6, %v8072_v37  ;;  %v8012_v9 = vpop.f32.mrf.mxu1 }
0x1196   : > { %v8075_v25 = vpop.f32.mrf.mxu0  ;;  %v8013_v17 = vadd.f32 %v8012_v9, %v8011_v14 }
0x1197   : > { %7500 = vst [vmem:[%s12333_s23 + $0x48] sm:$0xff] %v7484_v62  ;;  %v7453_v44 = vadd.f32 %v8074_v51, %v7356_v41  ;;  %v8014_v46 = vpop.f32.mrf.mxu1 }
0x1198   : > { %v7359_v4 = vadd.f32 %v8013_v17, %v12324_v32  ;;  %v8076_v1 = vpop.f32.mrf.mxu0 }
0x1199   : > { %v7485_v57 = vadd.f32 %v7453_v44, %v12582_v5  ;;  %v8077_v39 = vadd.f32 %v8076_v1, %v8075_v25  ;;  %v8015_v54 = vpop.f32.mrf.mxu1 }
0x119a   : > { %v8078_v59 = vpop.f32.mrf.mxu0  ;;  %v8016_v24 = vadd.f32 %v8015_v54, %v8014_v46 }
0x119b   : > { %7501 = vst [vmem:[%s12333_s23 + $0x50] sm:$0xff] %v7485_v57  ;;  %v7456_v42 = vadd.f32 %v8077_v39, %v7359_v4  ;;  %v8017_v12 = vpop.f32.mrf.mxu1 }
0x119c   : > { %v7364_v23 = vadd.f32 %v8016_v24, %v12324_v32  ;;  %v8079_v33 = vpop.f32.mrf.mxu0 }
0x119d   : > { %v7486_v30 = vadd.f32 %v7456_v42, %v12583_v15  ;;  %v8080_v22 = vadd.f32 %v8079_v33, %v8078_v59  ;;  %v8018_v52 = vpop.f32.mrf.mxu1 }
0x119e   : > { %v8081_v61 = vpop.f32.mrf.mxu0  ;;  %v8019_v36 = vadd.f32 %v8018_v52, %v8017_v12 }
0x119f   : > { %7502 = vst [vmem:[%s12333_s23 + $0x58] sm:$0xff] %v7486_v30  ;;  %v7461_v20 = vadd.f32 %v8080_v22, %v7364_v23 }
0x11a0   : > { %v7367_v49 = vadd.f32 %v8019_v36, %v12324_v32  ;;  %v8082_v60 = vpop.f32.mrf.mxu0  ;;  %v8020_v3 = vpop.f32.mrf.mxu1 }
0x11a1   : > { %v7487_v48 = vadd.f32 %v7461_v20, %v12584_v35  ;;  %v8083_v45 = vadd.f32 %v8082_v60, %v8081_v61 }
0x11a2   : > { %v8021_v7 = vpop.f32.mrf.mxu1 }
0x11a3   : > { %7503 = vst [vmem:[%s12333_s23 + $0x60] sm:$0xff] %v7487_v48  ;;  %v7464_v16 = vadd.f32 %v8083_v45, %v7367_v49  ;;  %v8022_v21 = vadd.f32 %v8021_v7, %v8020_v3 }
0x11a4   : > { %v8084_v19 = vpop.f32.mrf.mxu0  ;;  %v8023_v55 = vpop.f32.mrf.mxu1 }
0x11a5   : > { %v7488_v28 = vadd.f32 %v7464_v16, %v12585_v26  ;;  %v7372_v34 = vadd.f32 %v8022_v21, %v12324_v32 }
0x11a6   : > { %v8085_v38 = vpop.f32.mrf.mxu0  ;;  %v8024_v47 = vpop.f32.mrf.mxu1 }
0x11a7   : > { %7504 = vst [vmem:[%s12333_s23 + $0x68] sm:$0xff] %v7488_v28  ;;  %v8086_v31 = vadd.f32 %v8085_v38, %v8084_v19  ;;  %v8025_v2 = vadd.f32 %v8024_v47, %v8023_v55 }
0x11a8   : > { %v8087_v58 = vpop.f32.mrf.mxu0 }
0x11a9   : > { %v7469_v56 = vadd.f32 %v8086_v31, %v7372_v34  ;;  %v7375_v13 = vadd.f32 %v8025_v2, %v12324_v32 }
0x11aa   : > { %v8088_v11 = vpop.f32.mrf.mxu0 }
0x11ab   : > { %v7489_v10 = vadd.f32 %v7469_v56, %v12586_v63  ;;  %v8089_v8 = vadd.f32 %v8088_v11, %v8087_v58 }
0x11ad   : > { %7505 = vst [vmem:[%s12333_s23 + $0x70] sm:$0xff] %v7489_v10  ;;  %v7472_v43 = vadd.f32 %v8089_v8, %v7375_v13 }
0x11af   : > { %v7490_v27 = vadd.f32 %v7472_v43, %v12587_v40 }
0x11b1   : > { %7506 = vst [vmem:[%s12333_s23 + $0x78] sm:$0xff] %v7490_v27 }
0x11b2 PF: > { %s23_s25 = sadd.s32 1, %s9190_s25  }
0x11b3   : > { %p20_p4 = scmp.ge.s32.totalorder %s23_s25, 4  }
0x11b5   :  { %22 = sbr.rel (!%p20_p4) target bundleno = 1 (0x1), region = 102 }

</bundles_post_ra>
